<compile_context>
chip_gen: v7x
topology: tpu7x:2x2x1
jax: 0.10.0
libtpu: 0.0.40
codegen_flags: <defaults>
</compile_context>

<pallas_src>
import functools

import jax
import jax.numpy as jnp
from jax.experimental import pallas as pl
from jax.experimental.pallas import tpu as pltpu

EPS = 1e-5  # InstanceNorm2d default


def _fill_shifted_pad(xs_ref, a, H, W, Wpa, cdtype):
    """Reflect-pad `a` (uses only its first W columns), flatten with row stride
    Wpa (multiple of 8) and store 3 kx-pre-shifted copies into the scratch.

    xs_ref: VMEM scratch, shape (3, (H+2)*Wpa, C), dtype cdtype.
    a:      (H, Wany >= W, C); only columns [0, W) are read.
    """
    Hp, Wp = H + 2, W + 2
    C = a.shape[-1]
    cols = [a[:, 1:2, :], a[:, 0:W, :], a[:, W - 2:W - 1, :]]
    if Wpa > Wp:
        cols.append(jnp.zeros((H, Wpa - Wp, C), a.dtype))
    ac = jnp.concatenate(cols, axis=1)                            # (H, Wpa, C)
    ap = jnp.concatenate([ac[1:2], ac, ac[H - 2:H - 1]], axis=0)  # (Hp, Wpa, C)
    flat = ap.reshape(Hp * Wpa, C).astype(cdtype)  # cheap reshape: Wpa % 8 == 0
    N = Hp * Wpa
    xs_ref[0, :, :] = flat
    xs_ref[1, 0:N - 1, :] = flat[1:N, :]   # +1 row shift (kx = 1 taps)
    xs_ref[2, 0:N - 2, :] = flat[2:N, :]   # +2 row shift (kx = 2 taps)
    # Tail rows of slots 1/2 are never read: max read row is
    # 2*Wpa + (H-1)*Wpa + W - 1 <= (H+2)*Wpa - 3 (since Wpa >= W + 2).


def _conv3x3_in(xs_ref, w, b_row, H, W, Wpa, *, apply_relu):
    """3x3 conv (+bias) + InstanceNorm (+optional ReLU) from the pre-shifted
    flattened padded tile.  Returns (H, Wpa, C) f32; only cols [0, W) valid."""
    C = w.shape[-1]
    M = (H - 1) * Wpa + W          # flat output rows that contain valid pixels
    # Accumulator starts from the broadcast bias (saves a full add pass).
    acc = jnp.broadcast_to(b_row, (M, C)).astype(jnp.float32)
    for ky in range(3):
        base = ky * Wpa            # sublane-aligned offset (Wpa % 8 == 0)
        for kx in range(3):
            patch = xs_ref[kx, base:base + M, :]   # contiguous aligned slice
            acc = acc + jnp.dot(patch, w[ky, kx],
                                preferred_element_type=jnp.float32)
    # Back to a (H, Wpa, C) grid (reshape is cheap since Wpa % 8 == 0).
    pad_rows = H * Wpa - M
    acc = jnp.concatenate(
        [acc, jnp.zeros((pad_rows, C), jnp.float32)], axis=0
    ).reshape(H, Wpa, C)
    # Fused single-pass InstanceNorm statistics over valid columns only.
    valid = jax.lax.broadcasted_iota(jnp.int32, (1, Wpa, 1), 1) < W
    am = jnp.where(valid, acc, 0.0)
    cnt = float(H * W)
    s1 = jnp.sum(am, axis=(0, 1), keepdims=True)          # (1, 1, C)
    s2 = jnp.sum(am * am, axis=(0, 1), keepdims=True)
    mean = s1 / cnt
    var = s2 / cnt - mean * mean
    y = (acc - mean) * jax.lax.rsqrt(var + EPS)
    if apply_relu:
        y = jnp.maximum(y, 0.0)
    return y


def resnet_block_kernel(x_ref, w1_ref, b1_ref, w2_ref, b2_ref, o_ref, xs_ref,
                        *, H, W, Wpa, cdtype):
    # x_ref/o_ref: (1, H, W, C); w*: (3, 3, C, C); b*: (1, C)
    x = x_ref[0].astype(jnp.float32)            # (H, W, C)
    w1 = w1_ref[...].astype(cdtype)             # cast weights to MXU dtype once
    w2 = w2_ref[...].astype(cdtype)
    b1 = b1_ref[...].astype(jnp.float32)        # (1, C)
    b2 = b2_ref[...].astype(jnp.float32)

    # conv1 (reflect pad) + InstanceNorm + ReLU
    _fill_shifted_pad(xs_ref, x, H, W, Wpa, cdtype)
    y = _conv3x3_in(xs_ref, w1, b1, H, W, Wpa, apply_relu=True)    # (H, Wpa, C)

    # conv2 (reflect pad) + InstanceNorm
    _fill_shifted_pad(xs_ref, y, H, W, Wpa, cdtype)
    z = _conv3x3_in(xs_ref, w2, b2, H, W, Wpa, apply_relu=False)

    # residual add on the valid columns
    o_ref[0] = (x + z[:, 0:W, :]).astype(o_ref.dtype)


def resnet_block_nhwc(x, w1, b1, w2, b2, *, compute_dtype=jnp.bfloat16):
    """x: (B, H, W, C) NHWC.  w*: (3, 3, C, C) HWIO.  b*: (C,)."""
    B, H, W, C = x.shape
    assert H >= 2 and W >= 2, "reflect padding requires H, W >= 2"
    Hp, Wp = H + 2, W + 2
    Wpa = ((Wp + 7) // 8) * 8          # padded row stride: multiple of 8 sublanes
    N = Hp * Wpa
    b1r = b1.reshape(1, C).astype(jnp.float32)
    b2r = b2.reshape(1, C).astype(jnp.float32)

    kernel = functools.partial(resnet_block_kernel, H=H, W=W, Wpa=Wpa,
                               cdtype=compute_dtype)

    # Rough VMEM budget: double-buffered IO blocks + weights + scratch + temps.
    f32 = 4
    est = (4 * H * W * C * x.dtype.itemsize            # x + out, 2x buffered
           + 4 * (9 * C * C + C) * f32                 # w1/b1 + w2/b2, 2x buf
           + 3 * N * C * jnp.dtype(compute_dtype).itemsize
           + 8 * H * Wpa * C * f32)                    # in-kernel f32 temporaries
    vmem_limit = int(min(max(2 * est, 16 * 1024 * 1024), 64 * 1024 * 1024))

    # TODO(synk): for very large feature maps (v7x's 64 MiB VMEM) add an H-strip
    # grid axis with a two-phase InstanceNorm reduction; that also gives the
    # second v7x TensorCore work when B == 1.
    return pl.pallas_call(
        kernel,
        out_shape=jax.ShapeDtypeStruct((B, H, W, C), x.dtype),
        grid_spec=pltpu.PrefetchScalarGridSpec(
            num_scalar_prefetch=0,
            grid=(B,),
            in_specs=[
                pl.BlockSpec((1, H, W, C), lambda b: (b, 0, 0, 0)),
                pl.BlockSpec((3, 3, C, C), lambda b: (0, 0, 0, 0)),  # constant
                pl.BlockSpec((1, C), lambda b: (0, 0)),              # index maps:
                pl.BlockSpec((3, 3, C, C), lambda b: (0, 0, 0, 0)),  # copied once
                pl.BlockSpec((1, C), lambda b: (0, 0)),
            ],
            out_specs=pl.BlockSpec((1, H, W, C), lambda b: (b, 0, 0, 0)),
            scratch_shapes=[pltpu.VMEM((3, N, C), compute_dtype)],
        ),
        compiler_params=pltpu.CompilerParams(
            dimension_semantics=("parallel",),
            vmem_limit_bytes=vmem_limit),
    )(x, w1, b1r, w2, b2r)


def resnet_block(x_nchw, w1, b1, w2, b2, *, compute_dtype=jnp.bfloat16):
    """NCHW convenience adapter (PyTorch layout). Prefer resnet_block_nhwc when
    the surrounding model already runs NHWC (avoids two HBM transposes)."""
    x = jnp.transpose(x_nchw, (0, 2, 3, 1))
    out = resnet_block_nhwc(x, w1, b1, w2, b2, compute_dtype=compute_dtype)
    return jnp.transpose(out, (0, 3, 1, 2))


def _reference(x_nchw, w1, b1, w2, b2):
    """Pure-JAX f32 reference (lax conv + instance norm) for validation."""
    def conv(x, w, b):  # x: NCHW, w: HWIO
        xp = jnp.pad(x, ((0, 0), (0, 0), (1, 1), (1, 1)), mode="reflect")
        y = jax.lax.conv_general_dilated(
            xp, w, window_strides=(1, 1), padding="VALID",
            dimension_numbers=("NCHW", "HWIO", "NCHW"))
        return y + b.reshape(1, -1, 1, 1)

    def inorm(y):
        m = jnp.mean(y, axis=(2, 3), keepdims=True)
        v = jnp.mean((y - m) ** 2, axis=(2, 3), keepdims=True)
        return (y - m) * jax.lax.rsqrt(v + EPS)

    h = jnp.maximum(inorm(conv(x_nchw, w1, b1)), 0.0)
    return x_nchw + inorm(conv(h, w2, b2))


if __name__ == "__main__":
    B, C, H, W = 2, 4, 16, 16
    key = jax.random.PRNGKey(0)
    kx, kw1, kb1, kw2, kb2 = jax.random.split(key, 5)

    x = jax.random.normal(kx, (B, C, H, W), dtype=jnp.float32)
    # Conv2d(dim, dim, 3) weights; generated directly in HWIO layout.
    scale = 1.0 / (C * 9) ** 0.5
    w1 = jax.random.normal(kw1, (3, 3, C, C), dtype=jnp.float32) * scale
    b1 = jax.random.normal(kb1, (C,), dtype=jnp.float32) * scale
    w2 = jax.random.normal(kw2, (3, 3, C, C), dtype=jnp.float32) * scale
    b2 = jax.random.normal(kb2, (C,), dtype=jnp.float32) * scale

    ref = jax.block_until_ready(_reference(x, w1, b1, w2, b2))

    # 1) f32 compute path: validates the restructured indexing / padding / IN.
    out_f32 = jax.block_until_ready(
        resnet_block(x, w1, b1, w2, b2, compute_dtype=jnp.float32))
    assert out_f32.shape == (B, C, H, W)
    assert jnp.allclose(out_f32, ref, atol=1e-3, rtol=1e-3), "f32 path mismatch"

    # 2) production path: bf16 MXU feeds, f32 accumulation / norm / residual.
    out_bf16 = jax.block_until_ready(
        resnet_block(x, w1, b1, w2, b2, compute_dtype=jnp.bfloat16))
    assert out_bf16.shape == (B, C, H, W)
    assert jnp.allclose(out_bf16, ref, atol=0.15, rtol=0.05), "bf16 path mismatch"

    print("KERNEL_OK")
</pallas_src>

<mosaic_0001>
module attributes {stable_mosaic.version = 11 : i64} {
  func.func @resnet_block_kernel(%arg0: i32, %arg1: memref<1x16x16x4xf32, #tpu.memory_space<vmem>>, %arg2: memref<3x3x4x4xf32, #tpu.memory_space<vmem>>, %arg3: memref<1x4xf32, #tpu.memory_space<vmem>>, %arg4: memref<3x3x4x4xf32, #tpu.memory_space<vmem>>, %arg5: memref<1x4xf32, #tpu.memory_space<vmem>>, %arg6: memref<1x16x16x4xf32, #tpu.memory_space<vmem>>, %arg7: memref<3x432x4xf32, #tpu.memory_space<vmem>>) attributes {dimension_semantics = [#tpu.dimension_semantics<parallel>], iteration_bounds = array<i64: 2>, scalar_prefetch = 0 : i64, scratch_operands = 1 : i64, tpu.core_type = #tpu.core_type<tc>, window_params = [{transform_indices = @transform_0, window_bounds = array<i64: 1, 16, 16, 4>}, {pipeline_mode = #tpu.pipeline_mode<synchronous>, transform_indices = @transform_1, window_bounds = array<i64: 3, 3, 4, 4>}, {pipeline_mode = #tpu.pipeline_mode<synchronous>, transform_indices = @transform_2, window_bounds = array<i64: 1, 4>}, {pipeline_mode = #tpu.pipeline_mode<synchronous>, transform_indices = @transform_3, window_bounds = array<i64: 3, 3, 4, 4>}, {pipeline_mode = #tpu.pipeline_mode<synchronous>, transform_indices = @transform_4, window_bounds = array<i64: 1, 4>}, {transform_indices = @transform_5, window_bounds = array<i64: 1, 16, 16, 4>}]} {
    %c0 = arith.constant 0 : index
    %c0_0 = arith.constant 0 : index
    %c0_1 = arith.constant 0 : index
    %c0_2 = arith.constant 0 : index
    %0 = vector.load %arg1[%c0, %c0_0, %c0_1, %c0_2] : memref<1x16x16x4xf32, #tpu.memory_space<vmem>>, vector<1x16x16x4xf32>
    %1 = vector.shape_cast %0 : vector<1x16x16x4xf32> to vector<16x16x4xf32>
    %c0_3 = arith.constant 0 : index
    %c0_4 = arith.constant 0 : index
    %c0_5 = arith.constant 0 : index
    %c0_6 = arith.constant 0 : index
    %2 = vector.load %arg2[%c0_3, %c0_4, %c0_5, %c0_6] : memref<3x3x4x4xf32, #tpu.memory_space<vmem>>, vector<3x3x4x4xf32>
    %c0_7 = arith.constant 0 : index
    %c0_8 = arith.constant 0 : index
    %c0_9 = arith.constant 0 : index
    %c0_10 = arith.constant 0 : index
    %3 = vector.load %arg4[%c0_7, %c0_8, %c0_9, %c0_10] : memref<3x3x4x4xf32, #tpu.memory_space<vmem>>, vector<3x3x4x4xf32>
    %c0_11 = arith.constant 0 : index
    %c0_12 = arith.constant 0 : index
    %4 = vector.load %arg3[%c0_11, %c0_12] : memref<1x4xf32, #tpu.memory_space<vmem>>, vector<1x4xf32>
    %c0_13 = arith.constant 0 : index
    %c0_14 = arith.constant 0 : index
    %5 = vector.load %arg5[%c0_13, %c0_14] : memref<1x4xf32, #tpu.memory_space<vmem>>, vector<1x4xf32>
    %6 = vector.extract_strided_slice %1 {offsets = [0, 1, 0], sizes = [16, 1, 4], strides = [1, 1, 1]} : vector<16x16x4xf32> to vector<16x1x4xf32>
    %7 = vector.extract_strided_slice %1 {offsets = [0, 14, 0], sizes = [16, 1, 4], strides = [1, 1, 1]} : vector<16x16x4xf32> to vector<16x1x4xf32>
    %cst = arith.constant 0.000000e+00 : f32
    %8 = vector.broadcast %cst : f32 to vector<16x6x4xf32>
    %9 = tpu.concatenate %6, %1, %7, %8 in 1 : vector<16x1x4xf32>, vector<16x16x4xf32>, vector<16x1x4xf32>, vector<16x6x4xf32> -> vector<16x24x4xf32>
    %10 = vector.extract_strided_slice %9 {offsets = [1, 0, 0], sizes = [1, 24, 4], strides = [1, 1, 1]} : vector<16x24x4xf32> to vector<1x24x4xf32>
    %11 = vector.extract_strided_slice %9 {offsets = [14, 0, 0], sizes = [1, 24, 4], strides = [1, 1, 1]} : vector<16x24x4xf32> to vector<1x24x4xf32>
    %12 = tpu.concatenate %10, %9, %11 in 0 : vector<1x24x4xf32>, vector<16x24x4xf32>, vector<1x24x4xf32> -> vector<18x24x4xf32>
    %13 = vector.shape_cast %12 : vector<18x24x4xf32> to vector<432x4xf32>
    %c0_15 = arith.constant 0 : index
    %c0_16 = arith.constant 0 : index
    %c0_17 = arith.constant 0 : index
    %14 = vector.load %arg7[%c0_15, %c0_16, %c0_17] : memref<3x432x4xf32, #tpu.memory_space<vmem>>, vector<1x432x4xf32>
    %15 = vector.shape_cast %14 : vector<1x432x4xf32> to vector<432x4xf32>
    %16 = vector.shape_cast %13 : vector<432x4xf32> to vector<1x432x4xf32>
    tpu.vector_store %arg7[%c0_15, %c0_16, %c0_17], %16 {strides = array<i32>} : memref<3x432x4xf32, #tpu.memory_space<vmem>>, vector<1x432x4xf32>,
    %17 = vector.extract_strided_slice %13 {offsets = [1, 0], sizes = [431, 4], strides = [1, 1]} : vector<432x4xf32> to vector<431x4xf32>
    %c1 = arith.constant 1 : index
    %c0_18 = arith.constant 0 : index
    %c0_19 = arith.constant 0 : index
    %18 = vector.load %arg7[%c1, %c0_18, %c0_19] : memref<3x432x4xf32, #tpu.memory_space<vmem>>, vector<1x431x4xf32>
    %19 = vector.shape_cast %18 : vector<1x431x4xf32> to vector<431x4xf32>
    %20 = vector.shape_cast %17 : vector<431x4xf32> to vector<1x431x4xf32>
    tpu.vector_store %arg7[%c1, %c0_18, %c0_19], %20 {strides = array<i32>} : memref<3x432x4xf32, #tpu.memory_space<vmem>>, vector<1x431x4xf32>,
    %21 = vector.extract_strided_slice %13 {offsets = [2, 0], sizes = [430, 4], strides = [1, 1]} : vector<432x4xf32> to vector<430x4xf32>
    %c2 = arith.constant 2 : index
    %c0_20 = arith.constant 0 : index
    %c0_21 = arith.constant 0 : index
    %22 = vector.load %arg7[%c2, %c0_20, %c0_21] : memref<3x432x4xf32, #tpu.memory_space<vmem>>, vector<1x430x4xf32>
    %23 = vector.shape_cast %22 : vector<1x430x4xf32> to vector<430x4xf32>
    %24 = vector.shape_cast %21 : vector<430x4xf32> to vector<1x430x4xf32>
    tpu.vector_store %arg7[%c2, %c0_20, %c0_21], %24 {strides = array<i32>} : memref<3x432x4xf32, #tpu.memory_space<vmem>>, vector<1x430x4xf32>,
    %25 = vector.shape_cast %4 : vector<1x4xf32> to vector<1x4xf32>
    %26 = vector.broadcast %25 : vector<1x4xf32> to vector<376x4xf32>
    %c0_22 = arith.constant 0 : index
    %c0_23 = arith.constant 0 : index
    %c0_24 = arith.constant 0 : index
    %27 = vector.load %arg7[%c0_22, %c0_23, %c0_24] : memref<3x432x4xf32, #tpu.memory_space<vmem>>, vector<1x376x4xf32>
    %28 = vector.shape_cast %27 : vector<1x376x4xf32> to vector<376x4xf32>
    %29 = vector.extract_strided_slice %2 {offsets = [0, 0, 0, 0], sizes = [1, 1, 4, 4], strides = [1, 1, 1, 1]} : vector<3x3x4x4xf32> to vector<1x1x4x4xf32>
    %30 = vector.shape_cast %29 : vector<1x1x4x4xf32> to vector<4x4xf32>
    %cst_25 = arith.constant dense<0.000000e+00> : vector<376x4xf32>
    %31 = tpu.matmul %28, %30, %cst_25 {dimension_numbers = #tpu.dot_dimension_numbers<[1], [0], [0], [1], [0, 0, 1, 1], [], []>} : vector<376x4xf32>, vector<4x4xf32>, vector<376x4xf32> -> vector<376x4xf32>
    %32 = arith.addf %26, %31 : vector<376x4xf32>
    %c1_26 = arith.constant 1 : index
    %c0_27 = arith.constant 0 : index
    %c0_28 = arith.constant 0 : index
    %33 = vector.load %arg7[%c1_26, %c0_27, %c0_28] : memref<3x432x4xf32, #tpu.memory_space<vmem>>, vector<1x376x4xf32>
    %34 = vector.shape_cast %33 : vector<1x376x4xf32> to vector<376x4xf32>
    %35 = vector.extract_strided_slice %2 {offsets = [0, 1, 0, 0], sizes = [1, 1, 4, 4], strides = [1, 1, 1, 1]} : vector<3x3x4x4xf32> to vector<1x1x4x4xf32>
    %36 = vector.shape_cast %35 : vector<1x1x4x4xf32> to vector<4x4xf32>
    %cst_29 = arith.constant dense<0.000000e+00> : vector<376x4xf32>
    %37 = tpu.matmul %34, %36, %cst_29 {dimension_numbers = #tpu.dot_dimension_numbers<[1], [0], [0], [1], [0, 0, 1, 1], [], []>} : vector<376x4xf32>, vector<4x4xf32>, vector<376x4xf32> -> vector<376x4xf32>
    %38 = arith.addf %32, %37 : vector<376x4xf32>
    %c2_30 = arith.constant 2 : index
    %c0_31 = arith.constant 0 : index
    %c0_32 = arith.constant 0 : index
    %39 = vector.load %arg7[%c2_30, %c0_31, %c0_32] : memref<3x432x4xf32, #tpu.memory_space<vmem>>, vector<1x376x4xf32>
    %40 = vector.shape_cast %39 : vector<1x376x4xf32> to vector<376x4xf32>
    %41 = vector.extract_strided_slice %2 {offsets = [0, 2, 0, 0], sizes = [1, 1, 4, 4], strides = [1, 1, 1, 1]} : vector<3x3x4x4xf32> to vector<1x1x4x4xf32>
    %42 = vector.shape_cast %41 : vector<1x1x4x4xf32> to vector<4x4xf32>
    %cst_33 = arith.constant dense<0.000000e+00> : vector<376x4xf32>
    %43 = tpu.matmul %40, %42, %cst_33 {dimension_numbers = #tpu.dot_dimension_numbers<[1], [0], [0], [1], [0, 0, 1, 1], [], []>} : vector<376x4xf32>, vector<4x4xf32>, vector<376x4xf32> -> vector<376x4xf32>
    %44 = arith.addf %38, %43 : vector<376x4xf32>
    %c0_34 = arith.constant 0 : index
    %c24 = arith.constant 24 : index
    %c0_35 = arith.constant 0 : index
    %45 = vector.load %arg7[%c0_34, %c24, %c0_35] : memref<3x432x4xf32, #tpu.memory_space<vmem>>, vector<1x376x4xf32>
    %46 = vector.shape_cast %45 : vector<1x376x4xf32> to vector<376x4xf32>
    %47 = vector.extract_strided_slice %2 {offsets = [1, 0, 0, 0], sizes = [1, 1, 4, 4], strides = [1, 1, 1, 1]} : vector<3x3x4x4xf32> to vector<1x1x4x4xf32>
    %48 = vector.shape_cast %47 : vector<1x1x4x4xf32> to vector<4x4xf32>
    %cst_36 = arith.constant dense<0.000000e+00> : vector<376x4xf32>
    %49 = tpu.matmul %46, %48, %cst_36 {dimension_numbers = #tpu.dot_dimension_numbers<[1], [0], [0], [1], [0, 0, 1, 1], [], []>} : vector<376x4xf32>, vector<4x4xf32>, vector<376x4xf32> -> vector<376x4xf32>
    %50 = arith.addf %44, %49 : vector<376x4xf32>
    %c1_37 = arith.constant 1 : index
    %c24_38 = arith.constant 24 : index
    %c0_39 = arith.constant 0 : index
    %51 = vector.load %arg7[%c1_37, %c24_38, %c0_39] : memref<3x432x4xf32, #tpu.memory_space<vmem>>, vector<1x376x4xf32>
    %52 = vector.shape_cast %51 : vector<1x376x4xf32> to vector<376x4xf32>
    %53 = vector.extract_strided_slice %2 {offsets = [1, 1, 0, 0], sizes = [1, 1, 4, 4], strides = [1, 1, 1, 1]} : vector<3x3x4x4xf32> to vector<1x1x4x4xf32>
    %54 = vector.shape_cast %53 : vector<1x1x4x4xf32> to vector<4x4xf32>
    %cst_40 = arith.constant dense<0.000000e+00> : vector<376x4xf32>
    %55 = tpu.matmul %52, %54, %cst_40 {dimension_numbers = #tpu.dot_dimension_numbers<[1], [0], [0], [1], [0, 0, 1, 1], [], []>} : vector<376x4xf32>, vector<4x4xf32>, vector<376x4xf32> -> vector<376x4xf32>
    %56 = arith.addf %50, %55 : vector<376x4xf32>
    %c2_41 = arith.constant 2 : index
    %c24_42 = arith.constant 24 : index
    %c0_43 = arith.constant 0 : index
    %57 = vector.load %arg7[%c2_41, %c24_42, %c0_43] : memref<3x432x4xf32, #tpu.memory_space<vmem>>, vector<1x376x4xf32>
    %58 = vector.shape_cast %57 : vector<1x376x4xf32> to vector<376x4xf32>
    %59 = vector.extract_strided_slice %2 {offsets = [1, 2, 0, 0], sizes = [1, 1, 4, 4], strides = [1, 1, 1, 1]} : vector<3x3x4x4xf32> to vector<1x1x4x4xf32>
    %60 = vector.shape_cast %59 : vector<1x1x4x4xf32> to vector<4x4xf32>
    %cst_44 = arith.constant dense<0.000000e+00> : vector<376x4xf32>
    %61 = tpu.matmul %58, %60, %cst_44 {dimension_numbers = #tpu.dot_dimension_numbers<[1], [0], [0], [1], [0, 0, 1, 1], [], []>} : vector<376x4xf32>, vector<4x4xf32>, vector<376x4xf32> -> vector<376x4xf32>
    %62 = arith.addf %56, %61 : vector<376x4xf32>
    %c0_45 = arith.constant 0 : index
    %c48 = arith.constant 48 : index
    %c0_46 = arith.constant 0 : index
    %63 = vector.load %arg7[%c0_45, %c48, %c0_46] : memref<3x432x4xf32, #tpu.memory_space<vmem>>, vector<1x376x4xf32>
    %64 = vector.shape_cast %63 : vector<1x376x4xf32> to vector<376x4xf32>
    %65 = vector.extract_strided_slice %2 {offsets = [2, 0, 0, 0], sizes = [1, 1, 4, 4], strides = [1, 1, 1, 1]} : vector<3x3x4x4xf32> to vector<1x1x4x4xf32>
    %66 = vector.shape_cast %65 : vector<1x1x4x4xf32> to vector<4x4xf32>
    %cst_47 = arith.constant dense<0.000000e+00> : vector<376x4xf32>
    %67 = tpu.matmul %64, %66, %cst_47 {dimension_numbers = #tpu.dot_dimension_numbers<[1], [0], [0], [1], [0, 0, 1, 1], [], []>} : vector<376x4xf32>, vector<4x4xf32>, vector<376x4xf32> -> vector<376x4xf32>
    %68 = arith.addf %62, %67 : vector<376x4xf32>
    %c1_48 = arith.constant 1 : index
    %c48_49 = arith.constant 48 : index
    %c0_50 = arith.constant 0 : index
    %69 = vector.load %arg7[%c1_48, %c48_49, %c0_50] : memref<3x432x4xf32, #tpu.memory_space<vmem>>, vector<1x376x4xf32>
    %70 = vector.shape_cast %69 : vector<1x376x4xf32> to vector<376x4xf32>
    %71 = vector.extract_strided_slice %2 {offsets = [2, 1, 0, 0], sizes = [1, 1, 4, 4], strides = [1, 1, 1, 1]} : vector<3x3x4x4xf32> to vector<1x1x4x4xf32>
    %72 = vector.shape_cast %71 : vector<1x1x4x4xf32> to vector<4x4xf32>
    %cst_51 = arith.constant dense<0.000000e+00> : vector<376x4xf32>
    %73 = tpu.matmul %70, %72, %cst_51 {dimension_numbers = #tpu.dot_dimension_numbers<[1], [0], [0], [1], [0, 0, 1, 1], [], []>} : vector<376x4xf32>, vector<4x4xf32>, vector<376x4xf32> -> vector<376x4xf32>
    %74 = arith.addf %68, %73 : vector<376x4xf32>
    %c2_52 = arith.constant 2 : index
    %c48_53 = arith.constant 48 : index
    %c0_54 = arith.constant 0 : index
    %75 = vector.load %arg7[%c2_52, %c48_53, %c0_54] : memref<3x432x4xf32, #tpu.memory_space<vmem>>, vector<1x376x4xf32>
    %76 = vector.shape_cast %75 : vector<1x376x4xf32> to vector<376x4xf32>
    %77 = vector.extract_strided_slice %2 {offsets = [2, 2, 0, 0], sizes = [1, 1, 4, 4], strides = [1, 1, 1, 1]} : vector<3x3x4x4xf32> to vector<1x1x4x4xf32>
    %78 = vector.shape_cast %77 : vector<1x1x4x4xf32> to vector<4x4xf32>
    %cst_55 = arith.constant dense<0.000000e+00> : vector<376x4xf32>
    %79 = tpu.matmul %76, %78, %cst_55 {dimension_numbers = #tpu.dot_dimension_numbers<[1], [0], [0], [1], [0, 0, 1, 1], [], []>} : vector<376x4xf32>, vector<4x4xf32>, vector<376x4xf32> -> vector<376x4xf32>
    %80 = arith.addf %74, %79 : vector<376x4xf32>
    %cst_56 = arith.constant 0.000000e+00 : f32
    %81 = vector.broadcast %cst_56 : f32 to vector<8x4xf32>
    %82 = tpu.concatenate %80, %81 in 0 : vector<376x4xf32>, vector<8x4xf32> -> vector<384x4xf32>
    %83 = vector.shape_cast %82 : vector<384x4xf32> to vector<16x24x4xf32>
    %84 = tpu.iota {dimensions = array<i32: 1>} : vector<1x24x1xi32>
    %c16_i32 = arith.constant 16 : i32
    %85 = vector.broadcast %c16_i32 : i32 to vector<1x24x1xi32>
    %86 = arith.cmpi slt, %84, %85 : vector<1x24x1xi32>
    %cst_57 = arith.constant 0.000000e+00 : f32
    %87 = vector.shape_cast %86 : vector<1x24x1xi1> to vector<1x24x1xi1>
    %88 = vector.broadcast %87 : vector<1x24x1xi1> to vector<16x24x4xi1>
    %89 = vector.broadcast %cst_57 : f32 to vector<16x24x4xf32>
    %90 = arith.select %88, %83, %89 : vector<16x24x4xi1>, vector<16x24x4xf32>
    %cst_58 = arith.constant dense<0.000000e+00> : vector<4xf32>
    %91 = vector.multi_reduction <add>, %90, %cst_58 [0, 1] : vector<16x24x4xf32> to vector<4xf32>
    %92 = vector.shape_cast %91 : vector<4xf32> to vector<1x1x4xf32>
    %93 = arith.mulf %90, %90 : vector<16x24x4xf32>
    %cst_59 = arith.constant dense<0.000000e+00> : vector<4xf32>
    %94 = vector.multi_reduction <add>, %93, %cst_59 [0, 1] : vector<16x24x4xf32> to vector<4xf32>
    %95 = vector.shape_cast %94 : vector<4xf32> to vector<1x1x4xf32>
    %cst_60 = arith.constant 2.560000e+02 : f32
    %96 = vector.broadcast %cst_60 : f32 to vector<1x1x4xf32>
    %97 = arith.divf %92, %96 : vector<1x1x4xf32>
    %cst_61 = arith.constant 2.560000e+02 : f32
    %98 = vector.broadcast %cst_61 : f32 to vector<1x1x4xf32>
    %99 = arith.divf %95, %98 : vector<1x1x4xf32>
    %100 = arith.mulf %97, %97 : vector<1x1x4xf32>
    %101 = arith.subf %99, %100 : vector<1x1x4xf32>
    %102 = vector.broadcast %97 : vector<1x1x4xf32> to vector<16x24x4xf32>
    %103 = arith.subf %83, %102 : vector<16x24x4xf32>
    %cst_62 = arith.constant 9.99999974E-6 : f32
    %104 = vector.broadcast %cst_62 : f32 to vector<1x1x4xf32>
    %105 = arith.addf %101, %104 : vector<1x1x4xf32>
    %106 = math.rsqrt %105 : vector<1x1x4xf32>
    %107 = vector.broadcast %106 : vector<1x1x4xf32> to vector<16x24x4xf32>
    %108 = arith.mulf %103, %107 : vector<16x24x4xf32>
    %cst_63 = arith.constant 0.000000e+00 : f32
    %109 = vector.broadcast %cst_63 : f32 to vector<16x24x4xf32>
    %110 = arith.maximumf %108, %109 : vector<16x24x4xf32>
    %111 = vector.extract_strided_slice %110 {offsets = [0, 1, 0], sizes = [16, 1, 4], strides = [1, 1, 1]} : vector<16x24x4xf32> to vector<16x1x4xf32>
    %112 = vector.extract_strided_slice %110 {offsets = [0, 0, 0], sizes = [16, 16, 4], strides = [1, 1, 1]} : vector<16x24x4xf32> to vector<16x16x4xf32>
    %113 = vector.extract_strided_slice %110 {offsets = [0, 14, 0], sizes = [16, 1, 4], strides = [1, 1, 1]} : vector<16x24x4xf32> to vector<16x1x4xf32>
    %cst_64 = arith.constant 0.000000e+00 : f32
    %114 = vector.broadcast %cst_64 : f32 to vector<16x6x4xf32>
    %115 = tpu.concatenate %111, %112, %113, %114 in 1 : vector<16x1x4xf32>, vector<16x16x4xf32>, vector<16x1x4xf32>, vector<16x6x4xf32> -> vector<16x24x4xf32>
    %116 = vector.extract_strided_slice %115 {offsets = [1, 0, 0], sizes = [1, 24, 4], strides = [1, 1, 1]} : vector<16x24x4xf32> to vector<1x24x4xf32>
    %117 = vector.extract_strided_slice %115 {offsets = [14, 0, 0], sizes = [1, 24, 4], strides = [1, 1, 1]} : vector<16x24x4xf32> to vector<1x24x4xf32>
    %118 = tpu.concatenate %116, %115, %117 in 0 : vector<1x24x4xf32>, vector<16x24x4xf32>, vector<1x24x4xf32> -> vector<18x24x4xf32>
    %119 = vector.shape_cast %118 : vector<18x24x4xf32> to vector<432x4xf32>
    %c0_65 = arith.constant 0 : index
    %c0_66 = arith.constant 0 : index
    %c0_67 = arith.constant 0 : index
    %120 = vector.load %arg7[%c0_65, %c0_66, %c0_67] : memref<3x432x4xf32, #tpu.memory_space<vmem>>, vector<1x432x4xf32>
    %121 = vector.shape_cast %120 : vector<1x432x4xf32> to vector<432x4xf32>
    %122 = vector.shape_cast %119 : vector<432x4xf32> to vector<1x432x4xf32>
    tpu.vector_store %arg7[%c0_65, %c0_66, %c0_67], %122 {strides = array<i32>} : memref<3x432x4xf32, #tpu.memory_space<vmem>>, vector<1x432x4xf32>,
    %123 = vector.extract_strided_slice %119 {offsets = [1, 0], sizes = [431, 4], strides = [1, 1]} : vector<432x4xf32> to vector<431x4xf32>
    %c1_68 = arith.constant 1 : index
    %c0_69 = arith.constant 0 : index
    %c0_70 = arith.constant 0 : index
    %124 = vector.load %arg7[%c1_68, %c0_69, %c0_70] : memref<3x432x4xf32, #tpu.memory_space<vmem>>, vector<1x431x4xf32>
    %125 = vector.shape_cast %124 : vector<1x431x4xf32> to vector<431x4xf32>
    %126 = vector.shape_cast %123 : vector<431x4xf32> to vector<1x431x4xf32>
    tpu.vector_store %arg7[%c1_68, %c0_69, %c0_70], %126 {strides = array<i32>} : memref<3x432x4xf32, #tpu.memory_space<vmem>>, vector<1x431x4xf32>,
    %127 = vector.extract_strided_slice %119 {offsets = [2, 0], sizes = [430, 4], strides = [1, 1]} : vector<432x4xf32> to vector<430x4xf32>
    %c2_71 = arith.constant 2 : index
    %c0_72 = arith.constant 0 : index
    %c0_73 = arith.constant 0 : index
    %128 = vector.load %arg7[%c2_71, %c0_72, %c0_73] : memref<3x432x4xf32, #tpu.memory_space<vmem>>, vector<1x430x4xf32>
    %129 = vector.shape_cast %128 : vector<1x430x4xf32> to vector<430x4xf32>
    %130 = vector.shape_cast %127 : vector<430x4xf32> to vector<1x430x4xf32>
    tpu.vector_store %arg7[%c2_71, %c0_72, %c0_73], %130 {strides = array<i32>} : memref<3x432x4xf32, #tpu.memory_space<vmem>>, vector<1x430x4xf32>,
    %131 = vector.shape_cast %5 : vector<1x4xf32> to vector<1x4xf32>
    %132 = vector.broadcast %131 : vector<1x4xf32> to vector<376x4xf32>
    %c0_74 = arith.constant 0 : index
    %c0_75 = arith.constant 0 : index
    %c0_76 = arith.constant 0 : index
    %133 = vector.load %arg7[%c0_74, %c0_75, %c0_76] : memref<3x432x4xf32, #tpu.memory_space<vmem>>, vector<1x376x4xf32>
    %134 = vector.shape_cast %133 : vector<1x376x4xf32> to vector<376x4xf32>
    %135 = vector.extract_strided_slice %3 {offsets = [0, 0, 0, 0], sizes = [1, 1, 4, 4], strides = [1, 1, 1, 1]} : vector<3x3x4x4xf32> to vector<1x1x4x4xf32>
    %136 = vector.shape_cast %135 : vector<1x1x4x4xf32> to vector<4x4xf32>
    %cst_77 = arith.constant dense<0.000000e+00> : vector<376x4xf32>
    %137 = tpu.matmul %134, %136, %cst_77 {dimension_numbers = #tpu.dot_dimension_numbers<[1], [0], [0], [1], [0, 0, 1, 1], [], []>} : vector<376x4xf32>, vector<4x4xf32>, vector<376x4xf32> -> vector<376x4xf32>
    %138 = arith.addf %132, %137 : vector<376x4xf32>
    %c1_78 = arith.constant 1 : index
    %c0_79 = arith.constant 0 : index
    %c0_80 = arith.constant 0 : index
    %139 = vector.load %arg7[%c1_78, %c0_79, %c0_80] : memref<3x432x4xf32, #tpu.memory_space<vmem>>, vector<1x376x4xf32>
    %140 = vector.shape_cast %139 : vector<1x376x4xf32> to vector<376x4xf32>
    %141 = vector.extract_strided_slice %3 {offsets = [0, 1, 0, 0], sizes = [1, 1, 4, 4], strides = [1, 1, 1, 1]} : vector<3x3x4x4xf32> to vector<1x1x4x4xf32>
    %142 = vector.shape_cast %141 : vector<1x1x4x4xf32> to vector<4x4xf32>
    %cst_81 = arith.constant dense<0.000000e+00> : vector<376x4xf32>
    %143 = tpu.matmul %140, %142, %cst_81 {dimension_numbers = #tpu.dot_dimension_numbers<[1], [0], [0], [1], [0, 0, 1, 1], [], []>} : vector<376x4xf32>, vector<4x4xf32>, vector<376x4xf32> -> vector<376x4xf32>
    %144 = arith.addf %138, %143 : vector<376x4xf32>
    %c2_82 = arith.constant 2 : index
    %c0_83 = arith.constant 0 : index
    %c0_84 = arith.constant 0 : index
    %145 = vector.load %arg7[%c2_82, %c0_83, %c0_84] : memref<3x432x4xf32, #tpu.memory_space<vmem>>, vector<1x376x4xf32>
    %146 = vector.shape_cast %145 : vector<1x376x4xf32> to vector<376x4xf32>
    %147 = vector.extract_strided_slice %3 {offsets = [0, 2, 0, 0], sizes = [1, 1, 4, 4], strides = [1, 1, 1, 1]} : vector<3x3x4x4xf32> to vector<1x1x4x4xf32>
    %148 = vector.shape_cast %147 : vector<1x1x4x4xf32> to vector<4x4xf32>
    %cst_85 = arith.constant dense<0.000000e+00> : vector<376x4xf32>
    %149 = tpu.matmul %146, %148, %cst_85 {dimension_numbers = #tpu.dot_dimension_numbers<[1], [0], [0], [1], [0, 0, 1, 1], [], []>} : vector<376x4xf32>, vector<4x4xf32>, vector<376x4xf32> -> vector<376x4xf32>
    %150 = arith.addf %144, %149 : vector<376x4xf32>
    %c0_86 = arith.constant 0 : index
    %c24_87 = arith.constant 24 : index
    %c0_88 = arith.constant 0 : index
    %151 = vector.load %arg7[%c0_86, %c24_87, %c0_88] : memref<3x432x4xf32, #tpu.memory_space<vmem>>, vector<1x376x4xf32>
    %152 = vector.shape_cast %151 : vector<1x376x4xf32> to vector<376x4xf32>
    %153 = vector.extract_strided_slice %3 {offsets = [1, 0, 0, 0], sizes = [1, 1, 4, 4], strides = [1, 1, 1, 1]} : vector<3x3x4x4xf32> to vector<1x1x4x4xf32>
    %154 = vector.shape_cast %153 : vector<1x1x4x4xf32> to vector<4x4xf32>
    %cst_89 = arith.constant dense<0.000000e+00> : vector<376x4xf32>
    %155 = tpu.matmul %152, %154, %cst_89 {dimension_numbers = #tpu.dot_dimension_numbers<[1], [0], [0], [1], [0, 0, 1, 1], [], []>} : vector<376x4xf32>, vector<4x4xf32>, vector<376x4xf32> -> vector<376x4xf32>
    %156 = arith.addf %150, %155 : vector<376x4xf32>
    %c1_90 = arith.constant 1 : index
    %c24_91 = arith.constant 24 : index
    %c0_92 = arith.constant 0 : index
    %157 = vector.load %arg7[%c1_90, %c24_91, %c0_92] : memref<3x432x4xf32, #tpu.memory_space<vmem>>, vector<1x376x4xf32>
    %158 = vector.shape_cast %157 : vector<1x376x4xf32> to vector<376x4xf32>
    %159 = vector.extract_strided_slice %3 {offsets = [1, 1, 0, 0], sizes = [1, 1, 4, 4], strides = [1, 1, 1, 1]} : vector<3x3x4x4xf32> to vector<1x1x4x4xf32>
    %160 = vector.shape_cast %159 : vector<1x1x4x4xf32> to vector<4x4xf32>
    %cst_93 = arith.constant dense<0.000000e+00> : vector<376x4xf32>
    %161 = tpu.matmul %158, %160, %cst_93 {dimension_numbers = #tpu.dot_dimension_numbers<[1], [0], [0], [1], [0, 0, 1, 1], [], []>} : vector<376x4xf32>, vector<4x4xf32>, vector<376x4xf32> -> vector<376x4xf32>
    %162 = arith.addf %156, %161 : vector<376x4xf32>
    %c2_94 = arith.constant 2 : index
    %c24_95 = arith.constant 24 : index
    %c0_96 = arith.constant 0 : index
    %163 = vector.load %arg7[%c2_94, %c24_95, %c0_96] : memref<3x432x4xf32, #tpu.memory_space<vmem>>, vector<1x376x4xf32>
    %164 = vector.shape_cast %163 : vector<1x376x4xf32> to vector<376x4xf32>
    %165 = vector.extract_strided_slice %3 {offsets = [1, 2, 0, 0], sizes = [1, 1, 4, 4], strides = [1, 1, 1, 1]} : vector<3x3x4x4xf32> to vector<1x1x4x4xf32>
    %166 = vector.shape_cast %165 : vector<1x1x4x4xf32> to vector<4x4xf32>
    %cst_97 = arith.constant dense<0.000000e+00> : vector<376x4xf32>
    %167 = tpu.matmul %164, %166, %cst_97 {dimension_numbers = #tpu.dot_dimension_numbers<[1], [0], [0], [1], [0, 0, 1, 1], [], []>} : vector<376x4xf32>, vector<4x4xf32>, vector<376x4xf32> -> vector<376x4xf32>
    %168 = arith.addf %162, %167 : vector<376x4xf32>
    %c0_98 = arith.constant 0 : index
    %c48_99 = arith.constant 48 : index
    %c0_100 = arith.constant 0 : index
    %169 = vector.load %arg7[%c0_98, %c48_99, %c0_100] : memref<3x432x4xf32, #tpu.memory_space<vmem>>, vector<1x376x4xf32>
    %170 = vector.shape_cast %169 : vector<1x376x4xf32> to vector<376x4xf32>
    %171 = vector.extract_strided_slice %3 {offsets = [2, 0, 0, 0], sizes = [1, 1, 4, 4], strides = [1, 1, 1, 1]} : vector<3x3x4x4xf32> to vector<1x1x4x4xf32>
    %172 = vector.shape_cast %171 : vector<1x1x4x4xf32> to vector<4x4xf32>
    %cst_101 = arith.constant dense<0.000000e+00> : vector<376x4xf32>
    %173 = tpu.matmul %170, %172, %cst_101 {dimension_numbers = #tpu.dot_dimension_numbers<[1], [0], [0], [1], [0, 0, 1, 1], [], []>} : vector<376x4xf32>, vector<4x4xf32>, vector<376x4xf32> -> vector<376x4xf32>
    %174 = arith.addf %168, %173 : vector<376x4xf32>
    %c1_102 = arith.constant 1 : index
    %c48_103 = arith.constant 48 : index
    %c0_104 = arith.constant 0 : index
    %175 = vector.load %arg7[%c1_102, %c48_103, %c0_104] : memref<3x432x4xf32, #tpu.memory_space<vmem>>, vector<1x376x4xf32>
    %176 = vector.shape_cast %175 : vector<1x376x4xf32> to vector<376x4xf32>
    %177 = vector.extract_strided_slice %3 {offsets = [2, 1, 0, 0], sizes = [1, 1, 4, 4], strides = [1, 1, 1, 1]} : vector<3x3x4x4xf32> to vector<1x1x4x4xf32>
    %178 = vector.shape_cast %177 : vector<1x1x4x4xf32> to vector<4x4xf32>
    %cst_105 = arith.constant dense<0.000000e+00> : vector<376x4xf32>
    %179 = tpu.matmul %176, %178, %cst_105 {dimension_numbers = #tpu.dot_dimension_numbers<[1], [0], [0], [1], [0, 0, 1, 1], [], []>} : vector<376x4xf32>, vector<4x4xf32>, vector<376x4xf32> -> vector<376x4xf32>
    %180 = arith.addf %174, %179 : vector<376x4xf32>
    %c2_106 = arith.constant 2 : index
    %c48_107 = arith.constant 48 : index
    %c0_108 = arith.constant 0 : index
    %181 = vector.load %arg7[%c2_106, %c48_107, %c0_108] : memref<3x432x4xf32, #tpu.memory_space<vmem>>, vector<1x376x4xf32>
    %182 = vector.shape_cast %181 : vector<1x376x4xf32> to vector<376x4xf32>
    %183 = vector.extract_strided_slice %3 {offsets = [2, 2, 0, 0], sizes = [1, 1, 4, 4], strides = [1, 1, 1, 1]} : vector<3x3x4x4xf32> to vector<1x1x4x4xf32>
    %184 = vector.shape_cast %183 : vector<1x1x4x4xf32> to vector<4x4xf32>
    %cst_109 = arith.constant dense<0.000000e+00> : vector<376x4xf32>
    %185 = tpu.matmul %182, %184, %cst_109 {dimension_numbers = #tpu.dot_dimension_numbers<[1], [0], [0], [1], [0, 0, 1, 1], [], []>} : vector<376x4xf32>, vector<4x4xf32>, vector<376x4xf32> -> vector<376x4xf32>
    %186 = arith.addf %180, %185 : vector<376x4xf32>
    %cst_110 = arith.constant 0.000000e+00 : f32
    %187 = vector.broadcast %cst_110 : f32 to vector<8x4xf32>
    %188 = tpu.concatenate %186, %187 in 0 : vector<376x4xf32>, vector<8x4xf32> -> vector<384x4xf32>
    %189 = vector.shape_cast %188 : vector<384x4xf32> to vector<16x24x4xf32>
    %190 = tpu.iota {dimensions = array<i32: 1>} : vector<1x24x1xi32>
    %c16_i32_111 = arith.constant 16 : i32
    %191 = vector.broadcast %c16_i32_111 : i32 to vector<1x24x1xi32>
    %192 = arith.cmpi slt, %190, %191 : vector<1x24x1xi32>
    %cst_112 = arith.constant 0.000000e+00 : f32
    %193 = vector.shape_cast %192 : vector<1x24x1xi1> to vector<1x24x1xi1>
    %194 = vector.broadcast %193 : vector<1x24x1xi1> to vector<16x24x4xi1>
    %195 = vector.broadcast %cst_112 : f32 to vector<16x24x4xf32>
    %196 = arith.select %194, %189, %195 : vector<16x24x4xi1>, vector<16x24x4xf32>
    %cst_113 = arith.constant dense<0.000000e+00> : vector<4xf32>
    %197 = vector.multi_reduction <add>, %196, %cst_113 [0, 1] : vector<16x24x4xf32> to vector<4xf32>
    %198 = vector.shape_cast %197 : vector<4xf32> to vector<1x1x4xf32>
    %199 = arith.mulf %196, %196 : vector<16x24x4xf32>
    %cst_114 = arith.constant dense<0.000000e+00> : vector<4xf32>
    %200 = vector.multi_reduction <add>, %199, %cst_114 [0, 1] : vector<16x24x4xf32> to vector<4xf32>
    %201 = vector.shape_cast %200 : vector<4xf32> to vector<1x1x4xf32>
    %cst_115 = arith.constant 2.560000e+02 : f32
    %202 = vector.broadcast %cst_115 : f32 to vector<1x1x4xf32>
    %203 = arith.divf %198, %202 : vector<1x1x4xf32>
    %cst_116 = arith.constant 2.560000e+02 : f32
    %204 = vector.broadcast %cst_116 : f32 to vector<1x1x4xf32>
    %205 = arith.divf %201, %204 : vector<1x1x4xf32>
    %206 = arith.mulf %203, %203 : vector<1x1x4xf32>
    %207 = arith.subf %205, %206 : vector<1x1x4xf32>
    %208 = vector.broadcast %203 : vector<1x1x4xf32> to vector<16x24x4xf32>
    %209 = arith.subf %189, %208 : vector<16x24x4xf32>
    %cst_117 = arith.constant 9.99999974E-6 : f32
    %210 = vector.broadcast %cst_117 : f32 to vector<1x1x4xf32>
    %211 = arith.addf %207, %210 : vector<1x1x4xf32>
    %212 = math.rsqrt %211 : vector<1x1x4xf32>
    %213 = vector.broadcast %212 : vector<1x1x4xf32> to vector<16x24x4xf32>
    %214 = arith.mulf %209, %213 : vector<16x24x4xf32>
    %215 = vector.extract_strided_slice %214 {offsets = [0, 0, 0], sizes = [16, 16, 4], strides = [1, 1, 1]} : vector<16x24x4xf32> to vector<16x16x4xf32>
    %216 = arith.addf %1, %215 : vector<16x16x4xf32>
    %c0_118 = arith.constant 0 : index
    %c0_119 = arith.constant 0 : index
    %c0_120 = arith.constant 0 : index
    %c0_121 = arith.constant 0 : index
    %217 = vector.load %arg6[%c0_118, %c0_119, %c0_120, %c0_121] : memref<1x16x16x4xf32, #tpu.memory_space<vmem>>, vector<1x16x16x4xf32>
    %218 = vector.shape_cast %217 : vector<1x16x16x4xf32> to vector<16x16x4xf32>
    %219 = vector.shape_cast %216 : vector<16x16x4xf32> to vector<1x16x16x4xf32>
    tpu.vector_store %arg6[%c0_118, %c0_119, %c0_120, %c0_121], %219 {strides = array<i32>} : memref<1x16x16x4xf32, #tpu.memory_space<vmem>>, vector<1x16x16x4xf32>,
    return
  }
  func.func @transform_0(%arg0: i32) -> (i32, i32, i32, i32) {
    %c0_i32 = arith.constant 0 : i32
    %c0_i32_0 = arith.constant 0 : i32
    %c0_i32_1 = arith.constant 0 : i32
    %c0_i32_2 = arith.constant 0 : i32
    return %arg0, %c0_i32, %c0_i32_0, %c0_i32_1 : i32, i32, i32, i32
  }
  func.func @transform_1(%arg0: i32) -> (i32, i32, i32, i32) {
    %c0_i32 = arith.constant 0 : i32
    %c0_i32_0 = arith.constant 0 : i32
    %c0_i32_1 = arith.constant 0 : i32
    %c0_i32_2 = arith.constant 0 : i32
    %c0_i32_3 = arith.constant 0 : i32
    return %c0_i32, %c0_i32_0, %c0_i32_1, %c0_i32_2 : i32, i32, i32, i32
  }
  func.func @transform_2(%arg0: i32) -> (i32, i32) {
    %c0_i32 = arith.constant 0 : i32
    %c0_i32_0 = arith.constant 0 : i32
    %c0_i32_1 = arith.constant 0 : i32
    return %c0_i32, %c0_i32_0 : i32, i32
  }
  func.func @transform_3(%arg0: i32) -> (i32, i32, i32, i32) {
    %c0_i32 = arith.constant 0 : i32
    %c0_i32_0 = arith.constant 0 : i32
    %c0_i32_1 = arith.constant 0 : i32
    %c0_i32_2 = arith.constant 0 : i32
    %c0_i32_3 = arith.constant 0 : i32
    return %c0_i32, %c0_i32_0, %c0_i32_1, %c0_i32_2 : i32, i32, i32, i32
  }
  func.func @transform_4(%arg0: i32) -> (i32, i32) {
    %c0_i32 = arith.constant 0 : i32
    %c0_i32_0 = arith.constant 0 : i32
    %c0_i32_1 = arith.constant 0 : i32
    return %c0_i32, %c0_i32_0 : i32, i32
  }
  func.func @transform_5(%arg0: i32) -> (i32, i32, i32, i32) {
    %c0_i32 = arith.constant 0 : i32
    %c0_i32_0 = arith.constant 0 : i32
    %c0_i32_1 = arith.constant 0 : i32
    %c0_i32_2 = arith.constant 0 : i32
    return %arg0, %c0_i32, %c0_i32_0, %c0_i32_1 : i32, i32, i32, i32
  }
}

</mosaic_0001>

<bundles_post_ra>
// kernel: tpu_custom_call.1
= control target key start
LH: loop header
LB: loop body
LE: loop exit
PB: predicated region body
PF: predicated region fallthrough
CT: control target
= control target key end

     0   :  { %s17169_s18 = smov 0   ;;  %s22324_s0 = inlined_call_operand.vmem [shape: f32[2,16,16,4], index: 0, kind: input, shape index: {}]   ;;  %s22325_s1 = inlined_call_operand.vmem [shape: f32[3,3,4,4], index: 1, kind: input, shape index: {}]   ;;  %s22326_s2 = inlined_call_operand.vmem [shape: f32[1,4], index: 2, kind: input, shape index: {}]   ;;  %s22327_s3 = inlined_call_operand.vmem [shape: f32[3,3,4,4], index: 3, kind: input, shape index: {}]   ;;  %s22328_s4 = inlined_call_operand.vmem [shape: f32[1,4], index: 4, kind: input, shape index: {}]   ;;  %s22329_s5 = inlined_call_operand.vmem [shape: f32[2,16,16,4], index: 5, kind: output, shape index: {}]  }
   0x1 LB: > { %s11678_s19 = sadd.s32 4294967295, %s17135_s18   ;;  %p11682_p0 = scmp.ge.s32.totalorder %s17135_s18, 1  ;;  %s17135_s18 = sphi %s17169_s18, %s15_s18  }
   0x2   : > { %p187_p1 = scmp.lt.s32.totalorder %s17135_s18, 3 }
   0x4   : > { %p188_p2 = pnand %p11682_p0, %p187_p1 }
   0x6   : > { %191 = sbr.rel (%p188_p2) target bundleno = 4007 (0xfa7), region = 40 }
   0xd   : > { %v257_v0 = vld [vmem:[%s22325_s1] sm:$0xf]  ;;  %vm880_vm0 = vcmask 1043456   ;;  %p215_p3 = scmp.lt.s32.totalorder %s11678_s19, 1  ;;  %v22330_v1 = vmov 0.0   ;;  %vm17138_vm1 = vmmov 0  }
   0xe   : > { %13421 = vmatprep.subr.mxu0 %v22330_v1  ;;  %13423 = vmatprep.mubr.msk.f32.mxu0 %vm17138_vm1, %v22330_v1  ;;  %vm341_vm2 = vcmask 1040384   ;;  %vm519_vm3 = vcmask 31744   ;;  %vm502_vm4 = vcmask 1041408   ;;  %v258_v47 = vld [vmem:[%s22325_s1 + $0x4] sm:$0xf]  ;;  %vm575_vm5 = vcmask 31745  }
   0xf   : > { %13422 = vmatpush3.msk.msra.mxu0 %vm880_vm0, %v257_v0  ;;  %s22596_s19 = smov (!%p215_p3, %s11678_s19), 1  ;;  %14708 = vmatprep.subr.mxu1 %v22330_v1  ;;  %vm631_vm6 = vcmask 31746  }
  0x10   : > { %13564 = vmatprep.subr.mxu0 %v22330_v1  ;;  %14710 = vmatprep.mubr.msk.f32.mxu1 %vm17138_vm1, %v22330_v1  ;;  %s12555_s22 = sshll.u32 %s22596_s19, 8 }
  0x11   : > { %s17196_s25 = scalar_lea.vmem %s22324_s0, %s12555_s22  ;;  %s22203_s23 = scalar_lea.vmem %s22329_s5, %s12555_s22 }
  0x12   : > { %v227_v2 = vld [vmem:[%s17196_s25 + $0x10] sm:$0xff]  ;;  %v228_v3 = vld [vmem:[%s17196_s25 + $0x18] sm:$0xff]  ;;  %v225_v4 = vld [vmem:[%s17196_s25] sm:$0xff] }
  0x13   : > { %v294_v5 = vrot.slane %v227_v2, 1  ;;  %v345_v6 = vrot.slane %v227_v2, 7  ;;  %v346_v7 = vrot.slane %v228_v3, 7  ;;  %v439_v8 = vrot.slane %v228_v3, 5  ;;  %v226_v9 = vld [vmem:[%s17196_s25 + $0x8] sm:$0xff]  ;;  %v229_v10 = vld [vmem:[%s17196_s25 + $0x20] sm:$0xff] }
  0x14   : > { %v293_v11 = vrot.slane %v225_v4, 1  ;;  %v342_v12 = vrot.slane %v225_v4, 7  ;;  %v343_v13 = vrot.slane %v226_v9, 7  ;;  %v438_v14 = vrot.slane %v226_v9, 5  ;;  %v230_v15 = vld [vmem:[%s17196_s25 + $0x28] sm:$0xff]  ;;  %v231_v20 = vld [vmem:[%s17196_s25 + $0x30] sm:$0xff] }
  0x15   : > { %v17205_v16 = vsel %vm341_vm2, %v294_v5, %v345_v6  ;;  %v347_v17 = vsel %vm341_vm2, %v345_v6, %v346_v7  ;;  %v487_v18 = vsel %vm341_vm2, %v346_v7, %v439_v8  ;;  %v295_v19 = vrot.slane %v229_v10, 1  ;;  %v232_v21 = vld [vmem:[%s17196_s25 + $0x38] sm:$0xff]  ;;  %v17230_v26 = vld [vmem:[%s17196_s25 + $0x40] sm:$0xff]  ;;  %v234_v35 = vld [vmem:[%s17196_s25 + $0x48] sm:$0xff] }
  0x16   : > { %520 = vst.msk [vmem:[#allocation2] sm:$0xff] %vm519_vm3, %v17205_v16  ;;  %526 = vst.msk [vmem:[#allocation2 + $0x30] sm:$0xff] %vm519_vm3, %v17205_v16  ;;  %v504_v22 = vsel %vm502_vm4, %v487_v18, 0.0  ;;  %v470_v23 = vsel %vm341_vm2, %v293_v11, %v342_v12  ;;  %v344_v24 = vsel %vm341_vm2, %v342_v12, %v343_v13  ;;  %v486_v25 = vsel %vm341_vm2, %v343_v13, %v438_v14  ;;  %v235_v40 = vld [vmem:[%s17196_s25 + $0x50] sm:$0xff]  ;;  %v236_v41 = vld [vmem:[%s17196_s25 + $0x58] sm:$0xff] }
  0x17   : > { %582 = vst.msk [vmem:[#allocation2 + $0x1df] sm:$0xff] %vm519_vm3, %v17205_v16  ;;  %638 = vst.msk [vmem:[#allocation2 + $0x38e] sm:$0xff] %vm519_vm3, %v17205_v16  ;;  %v503_v27 = vsel %vm502_vm4, %v486_v25, 0.0  ;;  %v348_v28 = vrot.slane %v229_v10, 7  ;;  %v349_v29 = vrot.slane %v230_v15, 7  ;;  %v440_v30 = vrot.slane %v230_v15, 5 }
  0x18   : > { %521 = vst.msk [vmem:[#allocation2 + $0x8] sm:$0xff] %vm519_vm3, %v347_v17  ;;  %527 = vst.msk [vmem:[#allocation2 + $0x38] sm:$0xff] %vm519_vm3, %v347_v17  ;;  %v296_v31 = vrot.slane %v231_v20, 1  ;;  %v351_v32 = vrot.slane %v231_v20, 7  ;;  %v352_v33 = vrot.slane %v232_v21, 7  ;;  %v441_v34 = vrot.slane %v232_v21, 5 }
  0x19   : > { %577 = vst.msk [vmem:[#allocation2 + $0x1b7] sm:$0xff] %vm519_vm3, %v347_v17  ;;  %583 = vst.msk [vmem:[#allocation2 + $0x1e7] sm:$0xff] %vm519_vm3, %v347_v17  ;;  %v472_v36 = vsel %vm341_vm2, %v295_v19, %v348_v28  ;;  %v350_v37 = vsel %vm341_vm2, %v348_v28, %v349_v29  ;;  %v488_v38 = vsel %vm341_vm2, %v349_v29, %v440_v30  ;;  %v297_v39 = vrot.slane %v17230_v26, 1  ;;  %v17266_v46 = vld [vmem:[%s17196_s25 + $0x60] sm:$0xff]  ;;  %v238_v56 = vld [vmem:[%s17196_s25 + $0x68] sm:$0xff] }
  0x1a   : > { %633 = vst.msk [vmem:[#allocation2 + $0x366] sm:$0xff] %vm519_vm3, %v347_v17  ;;  %639 = vst.msk [vmem:[#allocation2 + $0x396] sm:$0xff] %vm519_vm3, %v347_v17  ;;  %v505_v42 = vsel %vm502_vm4, %v488_v38, 0.0  ;;  %v473_v43 = vsel %vm341_vm2, %v296_v31, %v351_v32  ;;  %v353_v44 = vsel %vm341_vm2, %v351_v32, %v352_v33  ;;  %v489_v45 = vsel %vm341_vm2, %v352_v33, %v441_v34  ;;  %v239_v62 = vld [vmem:[%s17196_s25 + $0x70] sm:$0xff]  ;;  %v17292_v63 = vld [vmem:[%s17196_s25 + $0x78] sm:$0xff] }
  0x1b   : > { %522 = vst.msk [vmem:[#allocation2 + $0x10] sm:$0xff] %vm519_vm3, %v504_v22  ;;  %528 = vst.msk [vmem:[#allocation2 + $0x40] sm:$0xff] %vm519_vm3, %v504_v22  ;;  %v506_v48 = vsel %vm502_vm4, %v489_v45, 0.0  ;;  %v354_v49 = vrot.slane %v17230_v26, 7  ;;  %v355_v50 = vrot.slane %v234_v35, 7  ;;  %v442_v51 = vrot.slane %v234_v35, 5 }
  0x1c   : > { %578 = vst.msk [vmem:[#allocation2 + $0x1bf] sm:$0xff] %vm519_vm3, %v504_v22  ;;  %584 = vst.msk [vmem:[#allocation2 + $0x1ef] sm:$0xff] %vm519_vm3, %v504_v22  ;;  %v298_v52 = vrot.slane %v235_v40, 1  ;;  %v357_v53 = vrot.slane %v235_v40, 7  ;;  %v358_v54 = vrot.slane %v236_v41, 7  ;;  %v443_v55 = vrot.slane %v236_v41, 5 }
  0x1d   : > { %634 = vst.msk [vmem:[#allocation2 + $0x36e] sm:$0xff] %vm519_vm3, %v504_v22  ;;  %640 = vst.msk [vmem:[#allocation2 + $0x39e] sm:$0xff] %vm519_vm3, %v504_v22  ;;  %v692_v57 = vld [vmem:[#allocation2] sm:$0xff]  ;;  %v474_v58 = vsel %vm341_vm2, %v297_v39, %v354_v49  ;;  %v356_v59 = vsel %vm341_vm2, %v354_v49, %v355_v50  ;;  %v490_v60 = vsel %vm341_vm2, %v355_v50, %v442_v51  ;;  %v299_v61 = vrot.slane %v17266_v46, 1  ;;  %v242_v14 = vld [vmem:[%s17196_s25 + $0x88] sm:$0xff] }
  0x1e   : > { %523 = vst.msk [vmem:[#allocation2 + $0x18] sm:$0xff] %vm519_vm3, %v470_v23  ;;  %579 = vst.msk [vmem:[#allocation2 + $0x1c7] sm:$0xff] %vm519_vm3, %v470_v23  ;;  %13424 = vmatmul.mubr.msk.f32.vlgmr.msra.gmra.mrb[0].mxu0 %vm519_vm3, %v692_v57  ;;  %v507_v0 = vsel %vm502_vm4, %v490_v60, 0.0  ;;  %v475_v2 = vsel %vm341_vm2, %v298_v52, %v357_v53  ;;  %v359_v3 = vsel %vm341_vm2, %v357_v53, %v358_v54  ;;  %v17306_v5 = vld [vmem:[%s17196_s25 + $0x80] sm:$0xff]  ;;  %v360_v8 = vrot.slane %v17266_v46, 7  ;;  %v17333_v20 = vld [vmem:[%s17196_s25 + $0x90] sm:$0xff] }
  0x1f   : > { %635 = vst.msk [vmem:[#allocation2 + $0x376] sm:$0xff] %vm519_vm3, %v470_v23  ;;  %524 = vst.msk [vmem:[#allocation2 + $0x20] sm:$0xff] %vm519_vm3, %v344_v24  ;;  %v491_v4 = vsel %vm341_vm2, %v358_v54, %v443_v55  ;;  %13565 = vmatpush3.msk.msra.mxu0 %vm880_vm0, %v258_v47  ;;  %13426 = vmatprep.mubr.msk.f32.mxu0 %vm17138_vm1, %v22330_v1  ;;  %v693_v6 = vld [vmem:[#allocation2 + $0x8] sm:$0xff]  ;;  %v361_v9 = vrot.slane %v238_v56, 7  ;;  %v444_v10 = vrot.slane %v238_v56, 5  ;;  %v300_v11 = vrot.slane %v239_v62, 1 }
  0x20   : > { %580 = vst.msk [vmem:[#allocation2 + $0x1cf] sm:$0xff] %vm519_vm3, %v344_v24  ;;  %636 = vst.msk [vmem:[#allocation2 + $0x37e] sm:$0xff] %vm519_vm3, %v344_v24  ;;  %v508_v7 = vsel %vm502_vm4, %v491_v4, 0.0  ;;  %v363_v12 = vrot.slane %v239_v62, 7  ;;  %v364_v13 = vrot.slane %v17292_v63, 7  ;;  %13707 = vmatprep.subr.mxu0 %v22330_v1  ;;  %v476_v15 = vsel %vm341_vm2, %v299_v61, %v360_v8  ;;  %v244_v25 = vld [vmem:[%s17196_s25 + $0x98] sm:$0xff] }
  0x21   : > { %525 = vst.msk [vmem:[#allocation2 + $0x28] sm:$0xff] %vm519_vm3, %v503_v27  ;;  %581 = vst.msk [vmem:[#allocation2 + $0x1d7] sm:$0xff] %vm519_vm3, %v503_v27  ;;  %v362_v17 = vsel %vm341_vm2, %v360_v8, %v361_v9  ;;  %v445_v18 = vrot.slane %v17292_v63, 5  ;;  %v301_v19 = vrot.slane %v17306_v5, 1  ;;  %v492_v21 = vsel %vm341_vm2, %v361_v9, %v444_v10  ;;  %v245_v31 = vld [vmem:[%s17196_s25 + $0xa0] sm:$0xff]  ;;  %v247_v41 = vld [vmem:[%s17196_s25 + $0xb0] sm:$0xff] }
  0x22   : > { %637 = vst.msk [vmem:[#allocation2 + $0x386] sm:$0xff] %vm519_vm3, %v503_v27  ;;  %529 = vst.msk [vmem:[#allocation2 + $0x48] sm:$0xff] %vm519_vm3, %v472_v36  ;;  %13427 = vmatmul.mubr.msk.f32.gmra.mrb[2].mxu0 %vm519_vm3, %v693_v6  ;;  %v477_v22 = vsel %vm341_vm2, %v300_v11, %v363_v12  ;;  %v365_v23 = vsel %vm341_vm2, %v363_v12, %v364_v13  ;;  %v366_v24 = vrot.slane %v17306_v5, 7  ;;  %v694_v26 = vld [vmem:[#allocation2 + $0x10] sm:$0xff]  ;;  %v509_v27 = vsel %vm502_vm4, %v492_v21, 0.0  ;;  %v248_v51 = vld [vmem:[%s17196_s25 + $0xb8] sm:$0xff] }
  0x23   : > { %585 = vst.msk [vmem:[#allocation2 + $0x1f7] sm:$0xff] %vm519_vm3, %v472_v36  ;;  %641 = vst.msk [vmem:[#allocation2 + $0x3a6] sm:$0xff] %vm519_vm3, %v472_v36  ;;  %13429 = vmatprep.mubr.msk.f32.mxu0 %vm17138_vm1, %v22330_v1  ;;  %v493_v28 = vsel %vm341_vm2, %v364_v13, %v445_v18  ;;  %v367_v29 = vrot.slane %v242_v14, 7  ;;  %v446_v30 = vrot.slane %v242_v14, 5  ;;  %v302_v34 = vrot.slane %v17333_v20, 1  ;;  %v246_v36 = vld [vmem:[%s17196_s25 + $0xa8] sm:$0xff] }
  0x24   : > { %530 = vst.msk [vmem:[#allocation2 + $0x50] sm:$0xff] %vm519_vm3, %v350_v37  ;;  %586 = vst.msk [vmem:[#allocation2 + $0x1ff] sm:$0xff] %vm519_vm3, %v350_v37  ;;  %v510_v32 = vsel %vm502_vm4, %v493_v28, 0.0  ;;  %v478_v33 = vsel %vm341_vm2, %v301_v19, %v366_v24  ;;  %v369_v35 = vrot.slane %v17333_v20, 7  ;;  %v370_v39 = vrot.slane %v244_v25, 7  ;;  %v250_v8 = vld [vmem:[%s17196_s25 + $0xc8] sm:$0xff] }
  0x25   : > { %642 = vst.msk [vmem:[#allocation2 + $0x3ae] sm:$0xff] %vm519_vm3, %v350_v37  ;;  %531 = vst.msk [vmem:[#allocation2 + $0x58] sm:$0xff] %vm519_vm3, %v505_v42  ;;  %v368_v37 = vsel %vm341_vm2, %v366_v24, %v367_v29  ;;  %v494_v38 = vsel %vm341_vm2, %v367_v29, %v446_v30  ;;  %v447_v40 = vrot.slane %v244_v25, 5  ;;  %v372_v45 = vrot.slane %v245_v31, 7  ;;  %v695_v46 = vld [vmem:[#allocation2 + $0x18] sm:$0xff]  ;;  %v698_v9 = vld [vmem:[#allocation2 + $0x30] sm:$0xff] }
  0x26   : > { %587 = vst.msk [vmem:[#allocation2 + $0x207] sm:$0xff] %vm519_vm3, %v505_v42  ;;  %643 = vst.msk [vmem:[#allocation2 + $0x3b6] sm:$0xff] %vm519_vm3, %v505_v42  ;;  %13430 = vmatmul.mubr.msk.f32.gmra.mrb[4].mxu0 %vm519_vm3, %v694_v26  ;;  %v511_v42 = vsel %vm502_vm4, %v494_v38, 0.0  ;;  %v371_v47 = vsel %vm341_vm2, %v369_v35, %v370_v39  ;;  %v373_v49 = vrot.slane %v246_v36, 7  ;;  %v448_v50 = vrot.slane %v246_v36, 5  ;;  %v696_v62 = vld [vmem:[#allocation2 + $0x20] sm:$0xff] }
  0x27   : > { %532 = vst.msk [vmem:[#allocation2 + $0x60] sm:$0xff] %vm519_vm3, %v473_v43  ;;  %588 = vst.msk [vmem:[#allocation2 + $0x20f] sm:$0xff] %vm519_vm3, %v473_v43  ;;  %13432 = vmatprep.mubr.msk.f32.mxu0 %vm17138_vm1, %v22330_v1  ;;  %v304_v54 = vrot.slane %v247_v41, 1  ;;  %v375_v55 = vrot.slane %v247_v41, 7  ;;  %v449_v61 = vrot.slane %v248_v51, 5  ;;  %v379_v10 = vrot.slane %v250_v8, 7 }
  0x28   : > { %644 = vst.msk [vmem:[#allocation2 + $0x3be] sm:$0xff] %vm519_vm3, %v473_v43  ;;  %533 = vst.msk [vmem:[#allocation2 + $0x68] sm:$0xff] %vm519_vm3, %v353_v44  ;;  %v479_v43 = vsel %vm341_vm2, %v302_v34, %v369_v35  ;;  %v374_v56 = vsel %vm341_vm2, %v372_v45, %v373_v49  ;;  %v496_v57 = vsel %vm341_vm2, %v373_v49, %v448_v50  ;;  %v697_v4 = vld [vmem:[#allocation2 + $0x28] sm:$0xff]  ;;  %v450_v12 = vrot.slane %v250_v8, 5  ;;  %v699_v13 = vld [vmem:[#allocation2 + $0x38] sm:$0xff] }
  0x29   : > { %589 = vst.msk [vmem:[#allocation2 + $0x217] sm:$0xff] %vm519_vm3, %v353_v44  ;;  %645 = vst.msk [vmem:[#allocation2 + $0x3c6] sm:$0xff] %vm519_vm3, %v353_v44  ;;  %v303_v44 = vrot.slane %v245_v31, 1  ;;  %v481_v60 = vsel %vm341_vm2, %v304_v54, %v375_v55  ;;  %v700_v18 = vld [vmem:[#allocation2 + $0x40] sm:$0xff]  ;;  %v17489_v35 = vld [vmem:[%s17196_s25 + $0xe8] sm:$0xff] }
  0x2a   : > { %534 = vst.msk [vmem:[#allocation2 + $0x70] sm:$0xff] %vm519_vm3, %v506_v48  ;;  %590 = vst.msk [vmem:[#allocation2 + $0x21f] sm:$0xff] %vm519_vm3, %v506_v48  ;;  %13433 = vmatmul.mubr.msk.f32.gmra.mrb[6].mxu0 %vm519_vm3, %v695_v46  ;;  %v498_v14 = vsel %vm341_vm2, %v379_v10, %v450_v12  ;;  %v253_v30 = vld [vmem:[%s17196_s25 + $0xe0] sm:$0xff]  ;;  %v1232_v12 = vld [vmem:[#allocation2 + $0x1b8] sm:$0xff] }
  0x2b   : > { %646 = vst.msk [vmem:[#allocation2 + $0x3ce] sm:$0xff] %vm519_vm3, %v506_v48  ;;  %535 = vst.msk [vmem:[#allocation2 + $0x78] sm:$0xff] %vm519_vm3, %v474_v58  ;;  %v495_v48 = vsel %vm341_vm2, %v370_v39, %v447_v40  ;;  %v480_v53 = vsel %vm341_vm2, %v303_v44, %v372_v45  ;;  %13435 = vmatprep.mubr.msk.f32.mxu0 %vm17138_vm1, %v22330_v1 }
  0x2c   : > { %591 = vst.msk [vmem:[#allocation2 + $0x227] sm:$0xff] %vm519_vm3, %v474_v58  ;;  %647 = vst.msk [vmem:[#allocation2 + $0x3d6] sm:$0xff] %vm519_vm3, %v474_v58  ;;  %v512_v52 = vsel %vm502_vm4, %v495_v48, 0.0  ;;  %v376_v58 = vrot.slane %v248_v51, 7  ;;  %v703_v31 = vld [vmem:[#allocation2 + $0x58] sm:$0xff] }
  0x2d   : > { %536 = vst.msk [vmem:[#allocation2 + $0x80] sm:$0xff] %vm519_vm3, %v356_v59  ;;  %592 = vst.msk [vmem:[#allocation2 + $0x22f] sm:$0xff] %vm519_vm3, %v356_v59 }
  0x2e   : > { %648 = vst.msk [vmem:[#allocation2 + $0x3de] sm:$0xff] %vm519_vm3, %v356_v59  ;;  %537 = vst.msk [vmem:[#allocation2 + $0x88] sm:$0xff] %vm519_vm3, %v507_v0  ;;  %v513_v59 = vsel %vm502_vm4, %v496_v57, 0.0  ;;  %v377_v63 = vsel %vm341_vm2, %v375_v55, %v376_v58  ;;  %13436 = vmatmul.mubr.msk.f32.gmra.mrb[8].mxu0 %vm519_vm3, %v696_v62  ;;  %v704_v36 = vld [vmem:[#allocation2 + $0x60] sm:$0xff] }
  0x2f   : > { %593 = vst.msk [vmem:[#allocation2 + $0x237] sm:$0xff] %vm519_vm3, %v507_v0  ;;  %649 = vst.msk [vmem:[#allocation2 + $0x3e6] sm:$0xff] %vm519_vm3, %v507_v0  ;;  %v497_v0 = vsel %vm341_vm2, %v376_v58, %v449_v61  ;;  %13438 = vmatprep.mubr.msk.f32.mxu0 %vm17138_vm1, %v22330_v1  ;;  %v705_v39 = vld [vmem:[#allocation2 + $0x68] sm:$0xff] }
  0x30   : > { %538 = vst.msk [vmem:[#allocation2 + $0x90] sm:$0xff] %vm519_vm3, %v475_v2  ;;  %594 = vst.msk [vmem:[#allocation2 + $0x23f] sm:$0xff] %vm519_vm3, %v475_v2 }
  0x31   : > { %650 = vst.msk [vmem:[#allocation2 + $0x3ee] sm:$0xff] %vm519_vm3, %v475_v2  ;;  %539 = vst.msk [vmem:[#allocation2 + $0x98] sm:$0xff] %vm519_vm3, %v359_v3  ;;  %v514_v2 = vsel %vm502_vm4, %v497_v0, 0.0  ;;  %v706_v40 = vld [vmem:[#allocation2 + $0x70] sm:$0xff] }
  0x32   : > { %595 = vst.msk [vmem:[#allocation2 + $0x247] sm:$0xff] %vm519_vm3, %v359_v3  ;;  %651 = vst.msk [vmem:[#allocation2 + $0x3f6] sm:$0xff] %vm519_vm3, %v359_v3  ;;  %v249_v3 = vld [vmem:[%s17196_s25 + $0xc0] sm:$0xff]  ;;  %13439 = vmatmul.mubr.msk.f32.gmra.mrb[10].mxu0 %vm519_vm3, %v697_v4  ;;  %v707_v41 = vld [vmem:[#allocation2 + $0x78] sm:$0xff] }
  0x33   : > { %540 = vst.msk [vmem:[#allocation2 + $0xa0] sm:$0xff] %vm519_vm3, %v508_v7  ;;  %596 = vst.msk [vmem:[#allocation2 + $0x24f] sm:$0xff] %vm519_vm3, %v508_v7  ;;  %v305_v5 = vrot.slane %v249_v3, 1  ;;  %v378_v6 = vrot.slane %v249_v3, 7  ;;  %13441 = vmatprep.mubr.msk.f32.mxu0 %vm17138_vm1, %v22330_v1 }
  0x34   : > { %652 = vst.msk [vmem:[#allocation2 + $0x3fe] sm:$0xff] %vm519_vm3, %v508_v7  ;;  %541 = vst.msk [vmem:[#allocation2 + $0xa8] sm:$0xff] %vm519_vm3, %v476_v15 }
  0x35   : > { %597 = vst.msk [vmem:[#allocation2 + $0x257] sm:$0xff] %vm519_vm3, %v476_v15  ;;  %653 = vst.msk [vmem:[#allocation2 + $0x406] sm:$0xff] %vm519_vm3, %v476_v15  ;;  %v482_v7 = vsel %vm341_vm2, %v305_v5, %v378_v6  ;;  %v380_v11 = vsel %vm341_vm2, %v378_v6, %v379_v10  ;;  %v515_v15 = vsel %vm502_vm4, %v498_v14, 0.0  ;;  %v1234_v14 = vld [vmem:[#allocation2 + $0x1c8] sm:$0xff] }
  0x36   : > { %542 = vst.msk [vmem:[#allocation2 + $0xb0] sm:$0xff] %vm519_vm3, %v362_v17  ;;  %598 = vst.msk [vmem:[#allocation2 + $0x25f] sm:$0xff] %vm519_vm3, %v362_v17  ;;  %13442 = vmatmul.mubr.msk.f32.gmra.mrb[12].mxu0 %vm519_vm3, %v698_v9 }
  0x37   : > { %654 = vst.msk [vmem:[#allocation2 + $0x40e] sm:$0xff] %vm519_vm3, %v362_v17  ;;  %544 = vst.msk [vmem:[#allocation2 + $0xc0] sm:$0xff] %vm519_vm3, %v477_v22  ;;  %13444 = vmatprep.mubr.msk.f32.mxu0 %vm17138_vm1, %v22330_v1  ;;  %v251_v17 = vld [vmem:[%s17196_s25 + $0xd0] sm:$0xff] }
  0x38   : > { %600 = vst.msk [vmem:[#allocation2 + $0x26f] sm:$0xff] %vm519_vm3, %v477_v22  ;;  %656 = vst.msk [vmem:[#allocation2 + $0x41e] sm:$0xff] %vm519_vm3, %v477_v22  ;;  %v306_v19 = vrot.slane %v251_v17, 1  ;;  %v381_v20 = vrot.slane %v251_v17, 7  ;;  %v252_v22 = vld [vmem:[%s17196_s25 + $0xd8] sm:$0xff]  ;;  %v710_v44 = vld [vmem:[#allocation2 + $0x90] sm:$0xff] }
  0x39   : > { %545 = vst.msk [vmem:[#allocation2 + $0xc8] sm:$0xff] %vm519_vm3, %v365_v23  ;;  %601 = vst.msk [vmem:[#allocation2 + $0x277] sm:$0xff] %vm519_vm3, %v365_v23  ;;  %v382_v24 = vrot.slane %v252_v22, 7  ;;  %v451_v26 = vrot.slane %v252_v22, 5  ;;  %v711_v45 = vld [vmem:[#allocation2 + $0x98] sm:$0xff] }
  0x3a   : > { %657 = vst.msk [vmem:[#allocation2 + $0x426] sm:$0xff] %vm519_vm3, %v365_v23  ;;  %543 = vst.msk [vmem:[#allocation2 + $0xb8] sm:$0xff] %vm519_vm3, %v509_v27  ;;  %13445 = vmatmul.mubr.msk.f32.gmra.mrb[14].mxu0 %vm519_vm3, %v699_v13  ;;  %v483_v21 = vsel %vm341_vm2, %v306_v19, %v381_v20  ;;  %v701_v23 = vld [vmem:[#allocation2 + $0x48] sm:$0xff]  ;;  %v712_v46 = vld [vmem:[#allocation2 + $0xa0] sm:$0xff] }
  0x3b   : > { %599 = vst.msk [vmem:[#allocation2 + $0x267] sm:$0xff] %vm519_vm3, %v509_v27  ;;  %655 = vst.msk [vmem:[#allocation2 + $0x416] sm:$0xff] %vm519_vm3, %v509_v27  ;;  %13447 = vmatprep.mubr.msk.f32.mxu0 %vm17138_vm1, %v22330_v1  ;;  %v383_v25 = vsel %vm341_vm2, %v381_v20, %v382_v24  ;;  %v702_v27 = vld [vmem:[#allocation2 + $0x50] sm:$0xff]  ;;  %v499_v28 = vsel %vm341_vm2, %v382_v24, %v451_v26  ;;  %v1233_v13 = vld [vmem:[#allocation2 + $0x1c0] sm:$0xff] }
  0x3c   : > { %546 = vst.msk [vmem:[#allocation2 + $0xd0] sm:$0xff] %vm519_vm3, %v510_v32  ;;  %602 = vst.msk [vmem:[#allocation2 + $0x27f] sm:$0xff] %vm519_vm3, %v510_v32  ;;  %v516_v29 = vsel %vm502_vm4, %v499_v28, 0.0  ;;  %v1236_v17 = vld [vmem:[#allocation2 + $0x1d8] sm:$0xff]  ;;  %v1238_v19 = vld [vmem:[#allocation2 + $0x1e8] sm:$0xff]  ;;  %v452_v28 = vrot.slane %v17489_v35, 5 }
  0x3d   : > { %658 = vst.msk [vmem:[#allocation2 + $0x42e] sm:$0xff] %vm519_vm3, %v510_v32  ;;  %547 = vst.msk [vmem:[#allocation2 + $0xd8] sm:$0xff] %vm519_vm3, %v478_v33  ;;  %v307_v32 = vrot.slane %v253_v30, 1  ;;  %v714_v48 = vld [vmem:[#allocation2 + $0xb0] sm:$0xff]  ;;  %v1241_v24 = vld [vmem:[#allocation2 + $0x200] sm:$0xff] }
  0x3e   : > { %603 = vst.msk [vmem:[#allocation2 + $0x287] sm:$0xff] %vm519_vm3, %v478_v33  ;;  %659 = vst.msk [vmem:[#allocation2 + $0x436] sm:$0xff] %vm519_vm3, %v478_v33  ;;  %13448 = vmatmul.mubr.msk.f32.gmra.mrb[16].mxu0 %vm519_vm3, %v700_v18  ;;  %v384_v33 = vrot.slane %v253_v30, 7  ;;  %v716_v50 = vld [vmem:[#allocation2 + $0xc0] sm:$0xff]  ;;  %v1239_v20 = vld [vmem:[#allocation2 + $0x1f0] sm:$0xff] }
  0x3f   : > { %548 = vst.msk [vmem:[#allocation2 + $0xe0] sm:$0xff] %vm519_vm3, %v368_v37  ;;  %604 = vst.msk [vmem:[#allocation2 + $0x28f] sm:$0xff] %vm519_vm3, %v368_v37  ;;  %13450 = vmatprep.mubr.msk.f32.mxu0 %vm17138_vm1, %v22330_v1  ;;  %v1237_v18 = vld [vmem:[#allocation2 + $0x1e0] sm:$0xff] }
  0x40   : > { %660 = vst.msk [vmem:[#allocation2 + $0x43e] sm:$0xff] %vm519_vm3, %v368_v37  ;;  %549 = vst.msk [vmem:[#allocation2 + $0xe8] sm:$0xff] %vm519_vm3, %v511_v42  ;;  %v484_v34 = vsel %vm341_vm2, %v307_v32, %v384_v33  ;;  %v385_v37 = vrot.slane %v17489_v35, 7  ;;  %v717_v51 = vld [vmem:[#allocation2 + $0xc8] sm:$0xff]  ;;  %v1244_v32 = vld [vmem:[#allocation2 + $0x218] sm:$0xff] }
  0x41   : > { %605 = vst.msk [vmem:[#allocation2 + $0x297] sm:$0xff] %vm519_vm3, %v511_v42  ;;  %661 = vst.msk [vmem:[#allocation2 + $0x446] sm:$0xff] %vm519_vm3, %v511_v42  ;;  %v708_v42 = vld [vmem:[#allocation2 + $0x80] sm:$0xff]  ;;  %v715_v49 = vld [vmem:[#allocation2 + $0xb8] sm:$0xff] }
  0x42   : > { %550 = vst.msk [vmem:[#allocation2 + $0xf0] sm:$0xff] %vm519_vm3, %v479_v43  ;;  %606 = vst.msk [vmem:[#allocation2 + $0x29f] sm:$0xff] %vm519_vm3, %v479_v43  ;;  %13451 = vmatmul.mubr.msk.f32.gmra.mrb[18].mxu0 %vm519_vm3, %v701_v23  ;;  %v386_v38 = vsel %vm341_vm2, %v384_v33, %v385_v37  ;;  %v1240_v23 = vld [vmem:[#allocation2 + $0x1f8] sm:$0xff]  ;;  %v500_v30 = vsel %vm341_vm2, %v385_v37, %v452_v28  ;;  %v1245_v33 = vld [vmem:[#allocation2 + $0x220] sm:$0xff] }
  0x43   : > { %662 = vst.msk [vmem:[#allocation2 + $0x44e] sm:$0xff] %vm519_vm3, %v479_v43  ;;  %551 = vst.msk [vmem:[#allocation2 + $0xf8] sm:$0xff] %vm519_vm3, %v371_v47  ;;  %13453 = vmatprep.mubr.msk.f32.mxu0 %vm17138_vm1, %v22330_v1  ;;  %v709_v43 = vld [vmem:[#allocation2 + $0x88] sm:$0xff]  ;;  %v1247_v37 = vld [vmem:[#allocation2 + $0x230] sm:$0xff] }
  0x44   : > { %607 = vst.msk [vmem:[#allocation2 + $0x2a7] sm:$0xff] %vm519_vm3, %v371_v47  ;;  %663 = vst.msk [vmem:[#allocation2 + $0x456] sm:$0xff] %vm519_vm3, %v371_v47  ;;  %v713_v47 = vld [vmem:[#allocation2 + $0xa8] sm:$0xff] }
  0x45   : > { %552 = vst.msk [vmem:[#allocation2 + $0x100] sm:$0xff] %vm519_vm3, %v512_v52  ;;  %608 = vst.msk [vmem:[#allocation2 + $0x2af] sm:$0xff] %vm519_vm3, %v512_v52 }
  0x46   : > { %664 = vst.msk [vmem:[#allocation2 + $0x45e] sm:$0xff] %vm519_vm3, %v512_v52  ;;  %553 = vst.msk [vmem:[#allocation2 + $0x108] sm:$0xff] %vm519_vm3, %v480_v53  ;;  %13454 = vmatmul.mubr.msk.f32.gmra.mrb[20].mxu0 %vm519_vm3, %v702_v27  ;;  %v718_v52 = vld [vmem:[#allocation2 + $0xd0] sm:$0xff]  ;;  %v720_v54 = vld [vmem:[#allocation2 + $0xe0] sm:$0xff] }
  0x47   : > { %609 = vst.msk [vmem:[#allocation2 + $0x2b7] sm:$0xff] %vm519_vm3, %v480_v53  ;;  %665 = vst.msk [vmem:[#allocation2 + $0x466] sm:$0xff] %vm519_vm3, %v480_v53  ;;  %13456 = vmatprep.mubr.msk.f32.mxu0 %vm17138_vm1, %v22330_v1  ;;  %v719_v53 = vld [vmem:[#allocation2 + $0xd8] sm:$0xff]  ;;  %v721_v55 = vld [vmem:[#allocation2 + $0xe8] sm:$0xff] }
  0x48   : > { %554 = vst.msk [vmem:[#allocation2 + $0x110] sm:$0xff] %vm519_vm3, %v374_v56  ;;  %610 = vst.msk [vmem:[#allocation2 + $0x2bf] sm:$0xff] %vm519_vm3, %v374_v56 }
  0x49   : > { %666 = vst.msk [vmem:[#allocation2 + $0x46e] sm:$0xff] %vm519_vm3, %v374_v56  ;;  %555 = vst.msk [vmem:[#allocation2 + $0x118] sm:$0xff] %vm519_vm3, %v513_v59  ;;  %v722_v56 = vld [vmem:[#allocation2 + $0xf0] sm:$0xff] }
  0x4a   : > { %611 = vst.msk [vmem:[#allocation2 + $0x2c7] sm:$0xff] %vm519_vm3, %v513_v59  ;;  %667 = vst.msk [vmem:[#allocation2 + $0x476] sm:$0xff] %vm519_vm3, %v513_v59  ;;  %13457 = vmatmul.mubr.msk.f32.gmra.mrb[22].mxu0 %vm519_vm3, %v703_v31  ;;  %v723_v57 = vld [vmem:[#allocation2 + $0xf8] sm:$0xff]  ;;  %v517_v31 = vsel %vm502_vm4, %v500_v30, 0.0  ;;  %v1771_v30 = vld [vmem:[#allocation2 + $0x370] sm:$0xff] }
  0x4b   : > { %556 = vst.msk [vmem:[#allocation2 + $0x120] sm:$0xff] %vm519_vm3, %v481_v60  ;;  %612 = vst.msk [vmem:[#allocation2 + $0x2cf] sm:$0xff] %vm519_vm3, %v481_v60  ;;  %13459 = vmatprep.mubr.msk.f32.mxu0 %vm17138_vm1, %v22330_v1 }
  0x4c   : > { %668 = vst.msk [vmem:[#allocation2 + $0x47e] sm:$0xff] %vm519_vm3, %v481_v60  ;;  %557 = vst.msk [vmem:[#allocation2 + $0x128] sm:$0xff] %vm519_vm3, %v377_v63  ;;  %v724_v58 = vld [vmem:[#allocation2 + $0x100] sm:$0xff] }
  0x4d   : > { %613 = vst.msk [vmem:[#allocation2 + $0x2d7] sm:$0xff] %vm519_vm3, %v377_v63  ;;  %669 = vst.msk [vmem:[#allocation2 + $0x486] sm:$0xff] %vm519_vm3, %v377_v63  ;;  %v725_v59 = vld [vmem:[#allocation2 + $0x108] sm:$0xff] }
  0x4e   : > { %558 = vst.msk [vmem:[#allocation2 + $0x130] sm:$0xff] %vm519_vm3, %v514_v2  ;;  %614 = vst.msk [vmem:[#allocation2 + $0x2df] sm:$0xff] %vm519_vm3, %v514_v2  ;;  %13460 = vmatmul.mubr.msk.f32.gmra.mrb[24].mxu0 %vm519_vm3, %v704_v36  ;;  %v1246_v36 = vld [vmem:[#allocation2 + $0x228] sm:$0xff] }
  0x4f   : > { %670 = vst.msk [vmem:[#allocation2 + $0x48e] sm:$0xff] %vm519_vm3, %v514_v2  ;;  %559 = vst.msk [vmem:[#allocation2 + $0x138] sm:$0xff] %vm519_vm3, %v482_v7  ;;  %13462 = vmatprep.mubr.msk.f32.mxu0 %vm17138_vm1, %v22330_v1  ;;  %v726_v60 = vld [vmem:[#allocation2 + $0x110] sm:$0xff] }
  0x50   : > { %615 = vst.msk [vmem:[#allocation2 + $0x2e7] sm:$0xff] %vm519_vm3, %v482_v7  ;;  %671 = vst.msk [vmem:[#allocation2 + $0x496] sm:$0xff] %vm519_vm3, %v482_v7  ;;  %v727_v61 = vld [vmem:[#allocation2 + $0x118] sm:$0xff] }
  0x51   : > { %560 = vst.msk [vmem:[#allocation2 + $0x140] sm:$0xff] %vm519_vm3, %v380_v11  ;;  %616 = vst.msk [vmem:[#allocation2 + $0x2ef] sm:$0xff] %vm519_vm3, %v380_v11 }
  0x52   : > { %672 = vst.msk [vmem:[#allocation2 + $0x49e] sm:$0xff] %vm519_vm3, %v380_v11  ;;  %561 = vst.msk [vmem:[#allocation2 + $0x148] sm:$0xff] %vm519_vm3, %v515_v15  ;;  %13463 = vmatmul.mubr.msk.f32.gmra.mrb[26].mxu0 %vm519_vm3, %v705_v39  ;;  %v728_v62 = vld [vmem:[#allocation2 + $0x120] sm:$0xff]  ;;  %v259_v11 = vld [vmem:[%s22325_s1 + $0x8] sm:$0xf] }
  0x53   : > { %617 = vst.msk [vmem:[#allocation2 + $0x2f7] sm:$0xff] %vm519_vm3, %v515_v15  ;;  %673 = vst.msk [vmem:[#allocation2 + $0x4a6] sm:$0xff] %vm519_vm3, %v515_v15  ;;  %13465 = vmatprep.mubr.msk.f32.mxu0 %vm17138_vm1, %v22330_v1  ;;  %v729_v63 = vld [vmem:[#allocation2 + $0x128] sm:$0xff]  ;;  %v1235_v15 = vld [vmem:[#allocation2 + $0x1d0] sm:$0xff] }
  0x54   : > { %562 = vst.msk [vmem:[#allocation2 + $0x150] sm:$0xff] %vm519_vm3, %v483_v21  ;;  %618 = vst.msk [vmem:[#allocation2 + $0x2ff] sm:$0xff] %vm519_vm3, %v483_v21 }
  0x55   : > { %674 = vst.msk [vmem:[#allocation2 + $0x4ae] sm:$0xff] %vm519_vm3, %v483_v21  ;;  %563 = vst.msk [vmem:[#allocation2 + $0x158] sm:$0xff] %vm519_vm3, %v383_v25  ;;  %v730_v0 = vld [vmem:[#allocation2 + $0x130] sm:$0xff] }
  0x56   : > { %619 = vst.msk [vmem:[#allocation2 + $0x307] sm:$0xff] %vm519_vm3, %v383_v25  ;;  %675 = vst.msk [vmem:[#allocation2 + $0x4b6] sm:$0xff] %vm519_vm3, %v383_v25  ;;  %13466 = vmatmul.mubr.msk.f32.gmra.mrb[28].mxu0 %vm519_vm3, %v706_v40  ;;  %v731_v2 = vld [vmem:[#allocation2 + $0x138] sm:$0xff]  ;;  %v1242_v25 = vld [vmem:[#allocation2 + $0x208] sm:$0xff] }
  0x57   : > { %564 = vst.msk [vmem:[#allocation2 + $0x160] sm:$0xff] %vm519_vm3, %v516_v29  ;;  %620 = vst.msk [vmem:[#allocation2 + $0x30f] sm:$0xff] %vm519_vm3, %v516_v29  ;;  %13468 = vmatprep.mubr.msk.f32.mxu0 %vm17138_vm1, %v22330_v1  ;;  %v1249_v40 = vld [vmem:[#allocation2 + $0x240] sm:$0xff] }
  0x58   : > { %676 = vst.msk [vmem:[#allocation2 + $0x4be] sm:$0xff] %vm519_vm3, %v516_v29  ;;  %565 = vst.msk [vmem:[#allocation2 + $0x168] sm:$0xff] %vm519_vm3, %v484_v34  ;;  %v732_v3 = vld [vmem:[#allocation2 + $0x140] sm:$0xff]  ;;  %v1243_v29 = vld [vmem:[#allocation2 + $0x210] sm:$0xff] }
  0x59   : > { %571 = vst.msk [vmem:[#allocation2 + $0x198] sm:$0xff] %vm519_vm3, %v484_v34  ;;  %621 = vst.msk [vmem:[#allocation2 + $0x317] sm:$0xff] %vm519_vm3, %v484_v34  ;;  %v733_v4 = vld [vmem:[#allocation2 + $0x148] sm:$0xff] }
  0x5a   : > { %627 = vst.msk [vmem:[#allocation2 + $0x347] sm:$0xff] %vm519_vm3, %v484_v34  ;;  %677 = vst.msk [vmem:[#allocation2 + $0x4c6] sm:$0xff] %vm519_vm3, %v484_v34  ;;  %13469 = vmatmul.mubr.msk.f32.gmra.mrb[30].mxu0 %vm519_vm3, %v707_v41  ;;  %v1250_v41 = vld [vmem:[#allocation2 + $0x248] sm:$0xff] }
  0x5b   : > { %683 = vst.msk [vmem:[#allocation2 + $0x4f6] sm:$0xff] %vm519_vm3, %v484_v34  ;;  %566 = vst.msk [vmem:[#allocation2 + $0x170] sm:$0xff] %vm519_vm3, %v386_v38  ;;  %13471 = vmatprep.mubr.msk.f32.mxu0 %vm17138_vm1, %v22330_v1  ;;  %v734_v5 = vld [vmem:[#allocation2 + $0x150] sm:$0xff] }
  0x5c   : > { %572 = vst.msk [vmem:[#allocation2 + $0x1a0] sm:$0xff] %vm519_vm3, %v386_v38  ;;  %622 = vst.msk [vmem:[#allocation2 + $0x31f] sm:$0xff] %vm519_vm3, %v386_v38  ;;  %v735_v6 = vld [vmem:[#allocation2 + $0x158] sm:$0xff] }
  0x5d   : > { %628 = vst.msk [vmem:[#allocation2 + $0x34f] sm:$0xff] %vm519_vm3, %v386_v38  ;;  %678 = vst.msk [vmem:[#allocation2 + $0x4ce] sm:$0xff] %vm519_vm3, %v386_v38 }
  0x5e   : > { %684 = vst.msk [vmem:[#allocation2 + $0x4fe] sm:$0xff] %vm519_vm3, %v386_v38  ;;  %13472 = vmatmul.mubr.msk.f32.gmra.mrb[32].mxu0 %vm519_vm3, %v708_v42  ;;  %v736_v7 = vld [vmem:[#allocation2 + $0x160] sm:$0xff]  ;;  %623 = vst.msk [vmem:[#allocation2 + $0x327] sm:$0xff] %vm519_vm3, %v517_v31  ;;  %v1251_v42 = vld [vmem:[#allocation2 + $0x250] sm:$0xff] }
  0x5f   : > { %576 = vst.msk [vmem:[#allocation2 + $0x1af] sm:$0xfe] %vm575_vm5, %v17205_v16  ;;  %13474 = vmatprep.mubr.msk.f32.mxu0 %vm17138_vm1, %v22330_v1  ;;  %v737_v8 = vld [vmem:[#allocation2 + $0x168] sm:$0xff] }
  0x60   : > { %567 = vst.msk [vmem:[#allocation2 + $0x178] sm:$0xff] %vm519_vm3, %v517_v31  ;;  %629 = vst.msk [vmem:[#allocation2 + $0x357] sm:$0xff] %vm519_vm3, %v517_v31 }
  0x61   : > { %679 = vst.msk [vmem:[#allocation2 + $0x4d6] sm:$0xff] %vm519_vm3, %v517_v31  ;;  %685 = vst.msk [vmem:[#allocation2 + $0x506] sm:$0xff] %vm519_vm3, %v517_v31  ;;  %v1772_v31 = vld [vmem:[#allocation2 + $0x378] sm:$0xff] }
  0x62   : > { %13475 = vmatmul.mubr.msk.f32.gmra.mrb[34].mxu0 %vm519_vm3, %v709_v43  ;;  %v738_v9 = vld [vmem:[#allocation2 + $0x170] sm:$0xff]  ;;  %632 = vst.msk [vmem:[#allocation2 + $0x35e] sm:$0xfc] %vm631_vm6, %v17205_v16  ;;  %v1248_v16 = vld [vmem:[#allocation2 + $0x238] sm:$0xff] }
  0x63   : > { %13477 = vmatprep.mubr.msk.f32.mxu0 %vm17138_vm1, %v22330_v1 }
  0x66   : > { %13478 = vmatmul.mubr.msk.f32.gmra.mrb[36].mxu0 %vm519_vm3, %v710_v44  ;;  %v1231_v10 = vld [vmem:[#allocation2 + $0x1b0] sm:$0xff] }
  0x67   : > { %13480 = vmatprep.mubr.msk.f32.mxu0 %vm17138_vm1, %v22330_v1 }
  0x6a   : > { %13481 = vmatmul.mubr.msk.f32.gmra.mrb[38].mxu0 %vm519_vm3, %v711_v45  ;;  %v1252_v45 = vld [vmem:[#allocation2 + $0x258] sm:$0xff] }
  0x6b   : > { %13483 = vmatprep.mubr.msk.f32.mxu0 %vm17138_vm1, %v22330_v1 }
  0x6e   : > { %13484 = vmatmul.mubr.msk.f32.gmra.mrb[40].mxu0 %vm519_vm3, %v712_v46  ;;  %v1253_v46 = vld [vmem:[#allocation2 + $0x260] sm:$0xff] }
  0x6f   : > { %13486 = vmatprep.mubr.msk.f32.mxu0 %vm17138_vm1, %v22330_v1 }
  0x72   : > { %13487 = vmatmul.mubr.msk.f32.gmra.mrb[42].mxu0 %vm519_vm3, %v713_v47  ;;  %v1254_v47 = vld [vmem:[#allocation2 + $0x268] sm:$0xff] }
  0x73   : > { %13489 = vmatprep.mubr.msk.f32.mxu0 %vm17138_vm1, %v22330_v1 }
  0x76   : > { %13490 = vmatmul.mubr.msk.f32.gmra.mrb[44].mxu0 %vm519_vm3, %v714_v48 }
  0x77   : > { %13492 = vmatprep.mubr.msk.f32.mxu0 %vm17138_vm1, %v22330_v1 }
  0x7a   : > { %13493 = vmatmul.mubr.msk.f32.gmra.mrb[46].mxu0 %vm519_vm3, %v715_v49 }
  0x7b   : > { %13495 = vmatprep.mubr.msk.f32.mxu0 %vm17138_vm1, %v22330_v1 }
  0x7e   : > { %13496 = vmatmul.mubr.msk.f32.gmra.mrb[48].mxu0 %vm519_vm3, %v716_v50  ;;  %v1255_v50 = vld [vmem:[#allocation2 + $0x270] sm:$0xff] }
  0x7f   : > { %13498 = vmatprep.mubr.msk.f32.mxu0 %vm17138_vm1, %v22330_v1 }
  0x82   : > { %13499 = vmatmul.mubr.msk.f32.gmra.mrb[50].mxu0 %vm519_vm3, %v717_v51  ;;  %v1256_v51 = vld [vmem:[#allocation2 + $0x278] sm:$0xff] }
  0x83   : > { %13501 = vmatprep.mubr.msk.f32.mxu0 %vm17138_vm1, %v22330_v1 }
  0x86   : > { %13502 = vmatmul.mubr.msk.f32.gmra.mrb[52].mxu0 %vm519_vm3, %v718_v52  ;;  %v1257_v52 = vld [vmem:[#allocation2 + $0x280] sm:$0xff] }
  0x87   : > { %13504 = vmatprep.mubr.msk.f32.mxu0 %vm17138_vm1, %v22330_v1 }
  0x8a   : > { %13505 = vmatmul.mubr.msk.f32.gmra.mrb[54].mxu0 %vm519_vm3, %v719_v53 }
  0x8b   : > { %13507 = vmatprep.mubr.msk.f32.mxu0 %vm17138_vm1, %v22330_v1 }
  0x8e   : > { %13508 = vmatmul.mubr.msk.f32.gmra.mrb[56].mxu0 %vm519_vm3, %v720_v54 }
  0x8f   : > { %13510 = vmatprep.mubr.msk.f32.mxu0 %vm17138_vm1, %v22330_v1 }
  0x92   : > { %13511 = vmatmul.mubr.msk.f32.gmra.mrb[58].mxu0 %vm519_vm3, %v721_v55  ;;  %v1258_v55 = vld [vmem:[#allocation2 + $0x288] sm:$0xff] }
  0x93   : > { %13513 = vmatprep.mubr.msk.f32.mxu0 %vm17138_vm1, %v22330_v1 }
  0x96   : > { %13514 = vmatmul.mubr.msk.f32.gmra.mrb[60].mxu0 %vm519_vm3, %v722_v56  ;;  %v1259_v56 = vld [vmem:[#allocation2 + $0x290] sm:$0xff] }
  0x97   : > { %13516 = vmatprep.mubr.msk.f32.mxu0 %vm17138_vm1, %v22330_v1 }
  0x9a   : > { %13517 = vmatmul.mubr.msk.f32.gmra.mrb[62].mxu0 %vm519_vm3, %v723_v57  ;;  %v1260_v57 = vld [vmem:[#allocation2 + $0x298] sm:$0xff] }
  0x9b   : > { %13519 = vmatprep.mubr.msk.f32.mxu0 %vm17138_vm1, %v22330_v1 }
  0x9e   : > { %13520 = vmatmul.mubr.msk.f32.gmra.mrb[64].mxu0 %vm519_vm3, %v724_v58 }
  0x9f   : > { %13522 = vmatprep.mubr.msk.f32.mxu0 %vm17138_vm1, %v22330_v1 }
  0xa2   : > { %13523 = vmatmul.mubr.msk.f32.gmra.mrb[66].mxu0 %vm519_vm3, %v725_v59 }
  0xa3   : > { %13525 = vmatprep.mubr.msk.f32.mxu0 %vm17138_vm1, %v22330_v1 }
  0xa6   : > { %13526 = vmatmul.mubr.msk.f32.gmra.mrb[68].mxu0 %vm519_vm3, %v726_v60  ;;  %v1261_v60 = vld [vmem:[#allocation2 + $0x2a0] sm:$0xff] }
  0xa7   : > { %13528 = vmatprep.mubr.msk.f32.mxu0 %vm17138_vm1, %v22330_v1 }
  0xaa   : > { %13529 = vmatmul.mubr.msk.f32.gmra.mrb[70].mxu0 %vm519_vm3, %v727_v61  ;;  %v1262_v61 = vld [vmem:[#allocation2 + $0x2a8] sm:$0xff] }
  0xab   : > { %13531 = vmatprep.mubr.msk.f32.mxu0 %vm17138_vm1, %v22330_v1 }
  0xae   : > { %13532 = vmatmul.mubr.msk.f32.gmra.mrb[72].mxu0 %vm519_vm3, %v728_v62  ;;  %v1263_v62 = vld [vmem:[#allocation2 + $0x2b0] sm:$0xff] }
  0xaf   : > { %13534 = vmatprep.mubr.msk.f32.mxu0 %vm17138_vm1, %v22330_v1 }
  0xb2   : > { %13535 = vmatmul.mubr.msk.f32.gmra.mrb[74].mxu0 %vm519_vm3, %v729_v63 }
  0xb3   : > { %13537 = vmatprep.mubr.msk.f32.mxu0 %vm17138_vm1, %v22330_v1 }
  0xb6   : > { %13538 = vmatmul.mubr.msk.f32.gmra.mrb[76].mxu0 %vm519_vm3, %v730_v0 }
  0xb7   : > { %13540 = vmatprep.mubr.msk.f32.mxu0 %vm17138_vm1, %v22330_v1 }
  0xba   : > { %13541 = vmatmul.mubr.msk.f32.gmra.mrb[78].mxu0 %vm519_vm3, %v731_v2  ;;  %v1264_v2 = vld [vmem:[#allocation2 + $0x2b8] sm:$0xff] }
  0xbb   : > { %13543 = vmatprep.mubr.msk.f32.mxu0 %vm17138_vm1, %v22330_v1 }
  0xbe   : > { %13544 = vmatmul.mubr.msk.f32.gmra.mrb[80].mxu0 %vm519_vm3, %v732_v3  ;;  %v1265_v3 = vld [vmem:[#allocation2 + $0x2c0] sm:$0xff] }
  0xbf   : > { %13546 = vmatprep.mubr.msk.f32.mxu0 %vm17138_vm1, %v22330_v1 }
  0xc2   : > { %13547 = vmatmul.mubr.msk.f32.gmra.mrb[82].mxu0 %vm519_vm3, %v733_v4  ;;  %v1266_v4 = vld [vmem:[#allocation2 + $0x2c8] sm:$0xff] }
  0xc3   : > { %13549 = vmatprep.mubr.msk.f32.mxu0 %vm17138_vm1, %v22330_v1 }
  0xc6   : > { %13550 = vmatmul.mubr.msk.f32.gmra.mrb[84].mxu0 %vm519_vm3, %v734_v5 }
  0xc7   : > { %13552 = vmatprep.mubr.msk.f32.mxu0 %vm17138_vm1, %v22330_v1 }
  0xca   : > { %13553 = vmatmul.mubr.msk.f32.gmra.mrb[86].mxu0 %vm519_vm3, %v735_v6 }
  0xcb   : > { %13555 = vmatprep.mubr.msk.f32.mxu0 %vm17138_vm1, %v22330_v1 }
  0xce   : > { %13556 = vmatmul.mubr.msk.f32.gmra.mrb[88].mxu0 %vm519_vm3, %v736_v7  ;;  %v1267_v7 = vld [vmem:[#allocation2 + $0x2d0] sm:$0xff] }
  0xcf   : > { %13558 = vmatprep.mubr.msk.f32.mxu0 %vm17138_vm1, %v22330_v1 }
  0xd2   : > { %13559 = vmatmul.mubr.msk.f32.gmra.mrb[90].mxu0 %vm519_vm3, %v737_v8  ;;  %v1268_v8 = vld [vmem:[#allocation2 + $0x2d8] sm:$0xff] }
  0xd3   : > { %13561 = vmatprep.mubr.msk.f32.mxu0 %vm17138_vm1, %v22330_v1 }
  0xd6   : > { %13562 = vmatmul.mubr.msk.f32.gmra.mrb[92].mxu0 %vm519_vm3, %v738_v9  ;;  %v1269_v9 = vld [vmem:[#allocation2 + $0x2e0] sm:$0xff] }
  0xd7   : > { %13566 = vmatprep.mubr.msk.f32.mxu0 %vm17138_vm1, %v22330_v1 }
  0xda   : > { %13567 = vmatmul.mubr.msk.f32.vlgmr.msra.gmra.mrb[0].mxu0 %vm519_vm3, %v1231_v10 }
  0xdb   : > { %13708 = vmatpush3.msk.msra.mxu0 %vm880_vm0, %v259_v11  ;;  %13569 = vmatprep.mubr.msk.f32.mxu0 %vm17138_vm1, %v22330_v1 }
  0xdc   : > { %13850 = vmatprep.subr.mxu0 %v22330_v1 }
  0xde   : > { %13570 = vmatmul.mubr.msk.f32.gmra.mrb[2].mxu0 %vm519_vm3, %v1232_v12  ;;  %v1270_v12 = vld [vmem:[#allocation2 + $0x2e8] sm:$0xff] }
  0xdf   : > { %13572 = vmatprep.mubr.msk.f32.mxu0 %vm17138_vm1, %v22330_v1 }
  0xe2   : > { %13573 = vmatmul.mubr.msk.f32.gmra.mrb[94].mxu0 %vm519_vm3, %v1233_v13  ;;  %v1271_v13 = vld [vmem:[#allocation2 + $0x2f0] sm:$0xff] }
  0xe3   : > { %13575 = vmatprep.mubr.msk.f32.mxu0 %vm17138_vm1, %v22330_v1 }
  0xe6   : > { %13576 = vmatmul.mubr.msk.f32.gmra.mrb[6].mxu0 %vm519_vm3, %v1234_v14  ;;  %v1272_v14 = vld [vmem:[#allocation2 + $0x2f8] sm:$0xff] }
  0xe7   : > { %13578 = vmatprep.mubr.msk.f32.mxu0 %vm17138_vm1, %v22330_v1 }
  0xea   : > { %13579 = vmatmul.mubr.msk.f32.gmra.mrb[8].mxu0 %vm519_vm3, %v1235_v15 }
  0xeb   : > { %13581 = vmatprep.mubr.msk.f32.mxu0 %vm17138_vm1, %v22330_v1 }
  0xee   : > { %13582 = vmatmul.mubr.msk.f32.gmra.mrb[96].mxu0 %vm519_vm3, %v1236_v17 }
  0xef   : > { %13584 = vmatprep.mubr.msk.f32.mxu0 %vm17138_vm1, %v22330_v1 }
  0xf2   : > { %13585 = vmatmul.mubr.msk.f32.gmra.mrb[12].mxu0 %vm519_vm3, %v1237_v18  ;;  %v1273_v18 = vld [vmem:[#allocation2 + $0x300] sm:$0xff] }
  0xf3   : > { %13587 = vmatprep.mubr.msk.f32.mxu0 %vm17138_vm1, %v22330_v1 }
  0xf6   : > { %13588 = vmatmul.mubr.msk.f32.gmra.mrb[14].mxu0 %vm519_vm3, %v1238_v19  ;;  %v1274_v19 = vld [vmem:[#allocation2 + $0x308] sm:$0xff] }
  0xf7   : > { %13590 = vmatprep.mubr.msk.f32.mxu0 %vm17138_vm1, %v22330_v1 }
  0xf9   : > { %v960_v21 = vpop.f32.mrb[4].mxu0 }
  0xfa   : > { %v13431_v22 = vpop.f32.mrb[5].mxu0  ;;  %13591 = vmatmul.mubr.msk.f32.gmra.mrb[98].mxu0 %vm519_vm3, %v1239_v20  ;;  %v1275_v20 = vld [vmem:[#allocation2 + $0x310] sm:$0xff] }
  0xfb   : > { %13593 = vmatprep.mubr.msk.f32.mxu0 %vm17138_vm1, %v22330_v1 }
  0xfe   : > { %13594 = vmatmul.mubr.msk.f32.gmra.mrb[18].mxu0 %vm519_vm3, %v1240_v23  ;;  %v1276_v23 = vld [vmem:[#allocation2 + $0x318] sm:$0xff] }
  0xff   : > { %13596 = vmatprep.mubr.msk.f32.mxu0 %vm17138_vm1, %v22330_v1 }
 0x102   : > { %13597 = vmatmul.mubr.msk.f32.gmra.mrb[20].mxu0 %vm519_vm3, %v1241_v24  ;;  %v1277_v24 = vld [vmem:[#allocation2 + $0x320] sm:$0xff] }
 0x103   : > { %13599 = vmatprep.mubr.msk.f32.mxu0 %vm17138_vm1, %v22330_v1 }
 0x105   : > { %v975_v26 = vpop.f32.mrb[10].mxu0 }
 0x106   : > { %v13440_v27 = vpop.f32.mrb[11].mxu0  ;;  %13600 = vmatmul.mubr.msk.f32.gmra.mrb[100].mxu0 %vm519_vm3, %v1242_v25  ;;  %v1769_v25 = vld [vmem:[#allocation2 + $0x360] sm:$0xff]  ;;  %v260_v26 = vld [vmem:[%s22325_s1 + $0xc] sm:$0xf] }
 0x107   : > { %13602 = vmatprep.mubr.msk.f32.mxu0 %vm17138_vm1, %v22330_v1 }
 0x10a   : > { %13603 = vmatmul.mubr.msk.f32.gmra.mrb[24].mxu0 %vm519_vm3, %v1243_v29  ;;  %v1770_v29 = vld [vmem:[#allocation2 + $0x368] sm:$0xff] }
 0x10b   : > { %13605 = vmatprep.mubr.msk.f32.mxu0 %vm17138_vm1, %v22330_v1 }
 0x10e   : > { %13606 = vmatmul.mubr.msk.f32.gmra.mrb[26].mxu0 %vm519_vm3, %v1244_v32 }
 0x10f   : > { %13608 = vmatprep.mubr.msk.f32.mxu0 %vm17138_vm1, %v22330_v1 }
 0x111   : > { %v990_v34 = vpop.f32.mrb[16].mxu0 }
 0x112   : > { %v13449_v35 = vpop.f32.mrb[17].mxu0  ;;  %13609 = vmatmul.mubr.msk.f32.gmra.mrb[102].mxu0 %vm519_vm3, %v1245_v33  ;;  %v1773_v34 = vld [vmem:[#allocation2 + $0x380] sm:$0xff] }
 0x113   : > { %13611 = vmatprep.mubr.msk.f32.mxu0 %vm17138_vm1, %v22330_v1  ;;  %v1774_v35 = vld [vmem:[#allocation2 + $0x388] sm:$0xff] }
 0x116   : > { %13612 = vmatmul.mubr.msk.f32.gmra.mrb[30].mxu0 %vm519_vm3, %v1246_v36  ;;  %v1775_v36 = vld [vmem:[#allocation2 + $0x390] sm:$0xff] }
 0x117   : > { %13614 = vmatprep.mubr.msk.f32.mxu0 %vm17138_vm1, %v22330_v1 }
 0x11a   : > { %13615 = vmatmul.mubr.msk.f32.gmra.mrb[32].mxu0 %vm519_vm3, %v1247_v37  ;;  %v1776_v37 = vld [vmem:[#allocation2 + $0x398] sm:$0xff] }
 0x11b   : > { %13617 = vmatprep.mubr.msk.f32.mxu0 %vm17138_vm1, %v22330_v1 }
 0x11d   : > { %v1005_v38 = vpop.f32.mrb[22].mxu0 }
 0x11e   : > { %v13458_v39 = vpop.f32.mrb[23].mxu0  ;;  %13618 = vmatmul.mubr.msk.f32.gmra.mrb[104].mxu0 %vm519_vm3, %v1248_v16  ;;  %v1777_v16 = vld [vmem:[#allocation2 + $0x3a0] sm:$0xff] }
 0x11f   : > { %13620 = vmatprep.mubr.msk.f32.mxu0 %vm17138_vm1, %v22330_v1 }
 0x122   : > { %13621 = vmatmul.mubr.msk.f32.gmra.mrb[36].mxu0 %vm519_vm3, %v1249_v40  ;;  %v1778_v40 = vld [vmem:[#allocation2 + $0x3a8] sm:$0xff] }
 0x123   : > { %13623 = vmatprep.mubr.msk.f32.mxu0 %vm17138_vm1, %v22330_v1 }
 0x126   : > { %13624 = vmatmul.mubr.msk.f32.gmra.mrb[38].mxu0 %vm519_vm3, %v1250_v41  ;;  %v1779_v41 = vld [vmem:[#allocation2 + $0x3b0] sm:$0xff] }
 0x127   : > { %13626 = vmatprep.mubr.msk.f32.mxu0 %vm17138_vm1, %v22330_v1 }
 0x129   : > { %v1020_v43 = vpop.f32.mrb[28].mxu0 }
 0x12a   : > { %v13467_v44 = vpop.f32.mrb[29].mxu0  ;;  %13627 = vmatmul.mubr.msk.f32.gmra.mrb[106].mxu0 %vm519_vm3, %v1251_v42  ;;  %v1780_v42 = vld [vmem:[#allocation2 + $0x3b8] sm:$0xff] }
 0x12b   : > { %13629 = vmatprep.mubr.msk.f32.mxu0 %vm17138_vm1, %v22330_v1 }
 0x12e   : > { %13630 = vmatmul.mubr.msk.f32.gmra.mrb[42].mxu0 %vm519_vm3, %v1252_v45  ;;  %v1781_v45 = vld [vmem:[#allocation2 + $0x3c0] sm:$0xff] }
 0x12f   : > { %13632 = vmatprep.mubr.msk.f32.mxu0 %vm17138_vm1, %v22330_v1 }
 0x132   : > { %13633 = vmatmul.mubr.msk.f32.gmra.mrb[44].mxu0 %vm519_vm3, %v1253_v46  ;;  %v1782_v46 = vld [vmem:[#allocation2 + $0x3c8] sm:$0xff] }
 0x133   : > { %13635 = vmatprep.mubr.msk.f32.mxu0 %vm17138_vm1, %v22330_v1 }
 0x135   : > { %v1035_v48 = vpop.f32.mrb[34].mxu0 }
 0x136   : > { %v13476_v49 = vpop.f32.mrb[35].mxu0  ;;  %13636 = vmatmul.mubr.msk.f32.gmra.mrb[108].mxu0 %vm519_vm3, %v1254_v47  ;;  %v1783_v47 = vld [vmem:[#allocation2 + $0x3d0] sm:$0xff] }
 0x137   : > { %13638 = vmatprep.mubr.msk.f32.mxu0 %vm17138_vm1, %v22330_v1 }
 0x13a   : > { %13639 = vmatmul.mubr.msk.f32.gmra.mrb[48].mxu0 %vm519_vm3, %v1255_v50  ;;  %v1784_v50 = vld [vmem:[#allocation2 + $0x3d8] sm:$0xff] }
 0x13b   : > { %13641 = vmatprep.mubr.msk.f32.mxu0 %vm17138_vm1, %v22330_v1 }
 0x13e   : > { %13642 = vmatmul.mubr.msk.f32.gmra.mrb[50].mxu0 %vm519_vm3, %v1256_v51  ;;  %v1785_v51 = vld [vmem:[#allocation2 + $0x3e0] sm:$0xff] }
 0x13f   : > { %13644 = vmatprep.mubr.msk.f32.mxu0 %vm17138_vm1, %v22330_v1 }
 0x141   : > { %v1050_v53 = vpop.f32.mrb[40].mxu0 }
 0x142   : > { %v13485_v54 = vpop.f32.mrb[41].mxu0  ;;  %13645 = vmatmul.mubr.msk.f32.gmra.mrb[110].mxu0 %vm519_vm3, %v1257_v52  ;;  %v1786_v52 = vld [vmem:[#allocation2 + $0x3e8] sm:$0xff] }
 0x143   : > { %13647 = vmatprep.mubr.msk.f32.mxu0 %vm17138_vm1, %v22330_v1 }
 0x146   : > { %13648 = vmatmul.mubr.msk.f32.gmra.mrb[54].mxu0 %vm519_vm3, %v1258_v55  ;;  %v1787_v55 = vld [vmem:[#allocation2 + $0x3f0] sm:$0xff] }
 0x147   : > { %13650 = vmatprep.mubr.msk.f32.mxu0 %vm17138_vm1, %v22330_v1 }
 0x14a   : > { %13651 = vmatmul.mubr.msk.f32.gmra.mrb[56].mxu0 %vm519_vm3, %v1259_v56  ;;  %v1788_v56 = vld [vmem:[#allocation2 + $0x3f8] sm:$0xff] }
 0x14b   : > { %13653 = vmatprep.mubr.msk.f32.mxu0 %vm17138_vm1, %v22330_v1 }
 0x14d   : > { %v1065_v58 = vpop.f32.mrb[46].mxu0 }
 0x14e   : > { %v13494_v59 = vpop.f32.mrb[47].mxu0  ;;  %13654 = vmatmul.mubr.msk.f32.gmra.mrb[112].mxu0 %vm519_vm3, %v1260_v57  ;;  %v1789_v57 = vld [vmem:[#allocation2 + $0x400] sm:$0xff] }
 0x14f   : > { %13656 = vmatprep.mubr.msk.f32.mxu0 %vm17138_vm1, %v22330_v1 }
 0x152   : > { %13657 = vmatmul.mubr.msk.f32.gmra.mrb[60].mxu0 %vm519_vm3, %v1261_v60  ;;  %v1790_v60 = vld [vmem:[#allocation2 + $0x408] sm:$0xff] }
 0x153   : > { %13659 = vmatprep.mubr.msk.f32.mxu0 %vm17138_vm1, %v22330_v1 }
 0x156   : > { %13660 = vmatmul.mubr.msk.f32.gmra.mrb[62].mxu0 %vm519_vm3, %v1262_v61  ;;  %v1791_v61 = vld [vmem:[#allocation2 + $0x410] sm:$0xff] }
 0x157   : > { %13662 = vmatprep.mubr.msk.f32.mxu0 %vm17138_vm1, %v22330_v1 }
 0x159   : > { %v1080_v63 = vpop.f32.mrb[52].mxu0 }
 0x15a   : > { %v13503_v0 = vpop.f32.mrb[53].mxu0  ;;  %13663 = vmatmul.mubr.msk.f32.gmra.mrb[114].mxu0 %vm519_vm3, %v1263_v62  ;;  %v1792_v62 = vld [vmem:[#allocation2 + $0x418] sm:$0xff] }
 0x15b   : > { %13665 = vmatprep.mubr.msk.f32.mxu0 %vm17138_vm1, %v22330_v1 }
 0x15e   : > { %13666 = vmatmul.mubr.msk.f32.gmra.mrb[66].mxu0 %vm519_vm3, %v1264_v2  ;;  %v1793_v2 = vld [vmem:[#allocation2 + $0x420] sm:$0xff] }
 0x15f   : > { %13668 = vmatprep.mubr.msk.f32.mxu0 %vm17138_vm1, %v22330_v1 }
 0x162   : > { %13669 = vmatmul.mubr.msk.f32.gmra.mrb[68].mxu0 %vm519_vm3, %v1265_v3  ;;  %v1794_v3 = vld [vmem:[#allocation2 + $0x428] sm:$0xff] }
 0x163   : > { %13671 = vmatprep.mubr.msk.f32.mxu0 %vm17138_vm1, %v22330_v1 }
 0x165   : > { %v1095_v5 = vpop.f32.mrb[58].mxu0 }
 0x166   : > { %v13512_v6 = vpop.f32.mrb[59].mxu0  ;;  %13672 = vmatmul.mubr.msk.f32.gmra.mrb[116].mxu0 %vm519_vm3, %v1266_v4  ;;  %v1795_v4 = vld [vmem:[#allocation2 + $0x430] sm:$0xff] }
 0x167   : > { %13674 = vmatprep.mubr.msk.f32.mxu0 %vm17138_vm1, %v22330_v1 }
 0x16a   : > { %13675 = vmatmul.mubr.msk.f32.gmra.mrb[72].mxu0 %vm519_vm3, %v1267_v7  ;;  %v1796_v7 = vld [vmem:[#allocation2 + $0x438] sm:$0xff] }
 0x16b   : > { %13677 = vmatprep.mubr.msk.f32.mxu0 %vm17138_vm1, %v22330_v1 }
 0x16e   : > { %13678 = vmatmul.mubr.msk.f32.gmra.mrb[74].mxu0 %vm519_vm3, %v1268_v8  ;;  %v1797_v8 = vld [vmem:[#allocation2 + $0x440] sm:$0xff] }
 0x16f   : > { %13680 = vmatprep.mubr.msk.f32.mxu0 %vm17138_vm1, %v22330_v1 }
 0x171   : > { %v1110_v10 = vpop.f32.mrb[64].mxu0 }
 0x172   : > { %v13521_v11 = vpop.f32.mrb[65].mxu0  ;;  %13681 = vmatmul.mubr.msk.f32.gmra.mrb[118].mxu0 %vm519_vm3, %v1269_v9  ;;  %v1798_v9 = vld [vmem:[#allocation2 + $0x448] sm:$0xff] }
 0x173   : > { %13683 = vmatprep.mubr.msk.f32.mxu0 %vm17138_vm1, %v22330_v1 }
 0x176   : > { %13684 = vmatmul.mubr.msk.f32.gmra.mrb[78].mxu0 %vm519_vm3, %v1270_v12  ;;  %v1799_v12 = vld [vmem:[#allocation2 + $0x450] sm:$0xff] }
 0x177   : > { %13686 = vmatprep.mubr.msk.f32.mxu0 %vm17138_vm1, %v22330_v1 }
 0x17a   : > { %13687 = vmatmul.mubr.msk.f32.gmra.mrb[80].mxu0 %vm519_vm3, %v1271_v13  ;;  %v1800_v13 = vld [vmem:[#allocation2 + $0x458] sm:$0xff] }
 0x17b   : > { %13689 = vmatprep.mubr.msk.f32.mxu0 %vm17138_vm1, %v22330_v1 }
 0x17d   : > { %v1125_v15 = vpop.f32.mrb[70].mxu0 }
 0x17e   : > { %v13530_v17 = vpop.f32.mrb[71].mxu0  ;;  %13690 = vmatmul.mubr.msk.f32.gmra.mrb[120].mxu0 %vm519_vm3, %v1272_v14  ;;  %v1801_v14 = vld [vmem:[#allocation2 + $0x460] sm:$0xff] }
 0x17f   : > { %13692 = vmatprep.mubr.msk.f32.mxu0 %vm17138_vm1, %v22330_v1 }
 0x182   : > { %13693 = vmatmul.mubr.msk.f32.gmra.mrb[84].mxu0 %vm519_vm3, %v1273_v18  ;;  %v1802_v18 = vld [vmem:[#allocation2 + $0x468] sm:$0xff] }
 0x183   : > { %13695 = vmatprep.mubr.msk.f32.mxu0 %vm17138_vm1, %v22330_v1 }
 0x186   : > { %13696 = vmatmul.mubr.msk.f32.gmra.mrb[86].mxu0 %vm519_vm3, %v1274_v19  ;;  %v1803_v19 = vld [vmem:[#allocation2 + $0x470] sm:$0xff] }
 0x187   : > { %13698 = vmatprep.mubr.msk.f32.mxu0 %vm17138_vm1, %v22330_v1 }
 0x189   : > { %v1140_v21 = vpop.f32.mrb[76].mxu0 }
 0x18a   : > { %v13539_v22 = vpop.f32.mrb[77].mxu0  ;;  %13699 = vmatmul.mubr.msk.f32.gmra.mrb[122].mxu0 %vm519_vm3, %v1275_v20  ;;  %v1804_v20 = vld [vmem:[#allocation2 + $0x478] sm:$0xff] }
 0x18b   : > { %13701 = vmatprep.mubr.msk.f32.mxu0 %vm17138_vm1, %v22330_v1 }
 0x18e   : > { %13702 = vmatmul.mubr.msk.f32.gmra.mrb[90].mxu0 %vm519_vm3, %v1276_v23  ;;  %v1805_v23 = vld [vmem:[#allocation2 + $0x480] sm:$0xff] }
 0x18f   : > { %13704 = vmatprep.mubr.msk.f32.mxu0 %vm17138_vm1, %v22330_v1 }
 0x192   : > { %13705 = vmatmul.mubr.msk.f32.gmra.mrb[92].mxu0 %vm519_vm3, %v1277_v24  ;;  %v1806_v24 = vld [vmem:[#allocation2 + $0x488] sm:$0xff] }
 0x193   : > { %13709 = vmatprep.mubr.msk.f32.mxu0 %vm17138_vm1, %v22330_v1 }
 0x195   : > { %v1155_v27 = vpop.f32.mrb[82].mxu0 }
 0x196   : > { %v13548_v28 = vpop.f32.mrb[83].mxu0  ;;  %13710 = vmatmul.mubr.msk.f32.vlgmr.msra.gmra.mrb[0].mxu0 %vm519_vm3, %v1769_v25  ;;  %v1807_v25 = vld [vmem:[#allocation2 + $0x490] sm:$0xff] }
 0x197   : > { %13851 = vmatpush3.msk.msra.mxu0 %vm880_vm0, %v260_v26  ;;  %13712 = vmatprep.mubr.msk.f32.mxu0 %vm17138_vm1, %v22330_v1  ;;  %v1808_v28 = vld [vmem:[#allocation2 + $0x498] sm:$0xff] }
 0x198   : > { %13993 = vmatprep.subr.mxu0 %v22330_v1 }
 0x19a   : > { %13713 = vmatmul.mubr.msk.f32.gmra.mrb[2].mxu0 %vm519_vm3, %v1770_v29  ;;  %v1809_v29 = vld [vmem:[#allocation2 + $0x4a0] sm:$0xff] }
 0x19b   : > { %13715 = vmatprep.mubr.msk.f32.mxu0 %vm17138_vm1, %v22330_v1 }
 0x19e   : > { %13716 = vmatmul.mubr.msk.f32.gmra.mrb[124].mxu0 %vm519_vm3, %v1771_v30  ;;  %v1810_v30 = vld [vmem:[#allocation2 + $0x4a8] sm:$0xff] }
 0x19f   : > { %13718 = vmatprep.mubr.msk.f32.mxu0 %vm17138_vm1, %v22330_v1 }
 0x1a1   : > { %v1170_v32 = vpop.f32.mrb[88].mxu0 }
 0x1a2   : > { %v13557_v33 = vpop.f32.mrb[89].mxu0  ;;  %13719 = vmatmul.mubr.msk.f32.gmra.mrb[6].mxu0 %vm519_vm3, %v1772_v31 }
 0x1a3   : > { %13721 = vmatprep.mubr.msk.f32.mxu0 %vm17138_vm1, %v22330_v1  ;;  %v1811_v33 = vld [vmem:[#allocation2 + $0x4b0] sm:$0xff] }
 0x1a6   : > { %13722 = vmatmul.mubr.msk.f32.gmra.mrb[8].mxu0 %vm519_vm3, %v1773_v34  ;;  %v1812_v34 = vld [vmem:[#allocation2 + $0x4b8] sm:$0xff] }
 0x1a7   : > { %13724 = vmatprep.mubr.msk.f32.mxu0 %vm17138_vm1, %v22330_v1 }
 0x1aa   : > { %13725 = vmatmul.mubr.msk.f32.gmra.mrb[126].mxu0 %vm519_vm3, %v1774_v35  ;;  %v1813_v35 = vld [vmem:[#allocation2 + $0x4c0] sm:$0xff] }
 0x1ab   : > { %13727 = vmatprep.mubr.msk.f32.mxu0 %vm17138_vm1, %v22330_v1 }
 0x1ae   : > { %13728 = vmatmul.mubr.msk.f32.gmra.mrb[12].mxu0 %vm519_vm3, %v1775_v36 }
 0x1af   : > { %13730 = vmatprep.mubr.msk.f32.mxu0 %vm17138_vm1, %v22330_v1 }
 0x1b2   : > { %13731 = vmatmul.mubr.msk.f32.gmra.mrb[14].mxu0 %vm519_vm3, %v1776_v37 }
 0x1b3   : > { %13733 = vmatprep.mubr.msk.f32.mxu0 %vm17138_vm1, %v22330_v1 }
 0x1b5   : > { %v1498_v38 = vpop.f32.mrb[94].mxu0 }
 0x1b6   : > { %v13574_v39 = vpop.f32.mrb[95].mxu0  ;;  %13734 = vmatmul.mubr.msk.f32.gmra.mrb[128].mxu0 %vm519_vm3, %v1777_v16  ;;  %v1814_v16 = vld [vmem:[#allocation2 + $0x4c8] sm:$0xff]  ;;  %v1815_v38 = vld [vmem:[#allocation2 + $0x4d0] sm:$0xff] }
 0x1b7   : > { %13736 = vmatprep.mubr.msk.f32.mxu0 %vm17138_vm1, %v22330_v1  ;;  %v2307_v39 = vld [vmem:[#allocation2 + $0x18] sm:$0xff] }
 0x1ba   : > { %13737 = vmatmul.mubr.msk.f32.gmra.mrb[18].mxu0 %vm519_vm3, %v1778_v40  ;;  %v261_v40 = vld [vmem:[%s22325_s1 + $0x10] sm:$0xf] }
 0x1bb   : > { %13739 = vmatprep.mubr.msk.f32.mxu0 %vm17138_vm1, %v22330_v1 }
 0x1be   : > { %13740 = vmatmul.mubr.msk.f32.gmra.mrb[20].mxu0 %vm519_vm3, %v1779_v41 }
 0x1bf   : > { %13742 = vmatprep.mubr.msk.f32.mxu0 %vm17138_vm1, %v22330_v1 }
 0x1c1   : > { %v1513_v43 = vpop.f32.mrb[96].mxu0 }
 0x1c2   : > { %v13583_v44 = vpop.f32.mrb[97].mxu0  ;;  %13743 = vmatmul.mubr.msk.f32.gmra.mrb[130].mxu0 %vm519_vm3, %v1780_v42  ;;  %v2308_v43 = vld [vmem:[#allocation2 + $0x20] sm:$0xff] }
 0x1c3   : > { %13745 = vmatprep.mubr.msk.f32.mxu0 %vm17138_vm1, %v22330_v1  ;;  %v2309_v44 = vld [vmem:[#allocation2 + $0x28] sm:$0xff] }
 0x1c6   : > { %13746 = vmatmul.mubr.msk.f32.gmra.mrb[24].mxu0 %vm519_vm3, %v1781_v45  ;;  %v2310_v45 = vld [vmem:[#allocation2 + $0x30] sm:$0xff] }
 0x1c7   : > { %13748 = vmatprep.mubr.msk.f32.mxu0 %vm17138_vm1, %v22330_v1 }
 0x1ca   : > { %13749 = vmatmul.mubr.msk.f32.gmra.mrb[26].mxu0 %vm519_vm3, %v1782_v46 }
 0x1cb   : > { %13751 = vmatprep.mubr.msk.f32.mxu0 %vm17138_vm1, %v22330_v1 }
 0x1cd   : > { %v1528_v48 = vpop.f32.mrb[98].mxu0 }
 0x1ce   : > { %v13592_v49 = vpop.f32.mrb[99].mxu0  ;;  %13752 = vmatmul.mubr.msk.f32.gmra.mrb[132].mxu0 %vm519_vm3, %v1783_v47  ;;  %v2311_v48 = vld [vmem:[#allocation2 + $0x38] sm:$0xff] }
 0x1cf   : > { %13754 = vmatprep.mubr.msk.f32.mxu0 %vm17138_vm1, %v22330_v1  ;;  %v2312_v49 = vld [vmem:[#allocation2 + $0x40] sm:$0xff] }
 0x1d2   : > { %13755 = vmatmul.mubr.msk.f32.gmra.mrb[30].mxu0 %vm519_vm3, %v1784_v50  ;;  %v2313_v50 = vld [vmem:[#allocation2 + $0x48] sm:$0xff] }
 0x1d3   : > { %13757 = vmatprep.mubr.msk.f32.mxu0 %vm17138_vm1, %v22330_v1 }
 0x1d6   : > { %13758 = vmatmul.mubr.msk.f32.gmra.mrb[32].mxu0 %vm519_vm3, %v1785_v51  ;;  %v2314_v51 = vld [vmem:[#allocation2 + $0x50] sm:$0xff] }
 0x1d7   : > { %13760 = vmatprep.mubr.msk.f32.mxu0 %vm17138_vm1, %v22330_v1 }
 0x1d9   : > { %v1543_v53 = vpop.f32.mrb[100].mxu0 }
 0x1da   : > { %v13601_v54 = vpop.f32.mrb[101].mxu0  ;;  %13761 = vmatmul.mubr.msk.f32.gmra.mrb[134].mxu0 %vm519_vm3, %v1786_v52  ;;  %v2315_v52 = vld [vmem:[#allocation2 + $0x58] sm:$0xff] }
 0x1db   : > { %13763 = vmatprep.mubr.msk.f32.mxu0 %vm17138_vm1, %v22330_v1 }
 0x1de   : > { %13764 = vmatmul.mubr.msk.f32.gmra.mrb[36].mxu0 %vm519_vm3, %v1787_v55  ;;  %v2316_v55 = vld [vmem:[#allocation2 + $0x60] sm:$0xff] }
 0x1df   : > { %13766 = vmatprep.mubr.msk.f32.mxu0 %vm17138_vm1, %v22330_v1 }
 0x1e2   : > { %13767 = vmatmul.mubr.msk.f32.gmra.mrb[38].mxu0 %vm519_vm3, %v1788_v56  ;;  %v2317_v56 = vld [vmem:[#allocation2 + $0x68] sm:$0xff] }
 0x1e3   : > { %13769 = vmatprep.mubr.msk.f32.mxu0 %vm17138_vm1, %v22330_v1 }
 0x1e5   : > { %v1558_v58 = vpop.f32.mrb[102].mxu0 }
 0x1e6   : > { %v13610_v59 = vpop.f32.mrb[103].mxu0  ;;  %13770 = vmatmul.mubr.msk.f32.gmra.mrb[136].mxu0 %vm519_vm3, %v1789_v57  ;;  %v255_v57 = vld [vmem:[%s17196_s25 + $0xf0] sm:$0xff] }
 0x1e7   : > { %13772 = vmatprep.mubr.msk.f32.mxu0 %vm17138_vm1, %v22330_v1  ;;  %v2318_v58 = vld [vmem:[#allocation2 + $0x70] sm:$0xff]  ;;  %v308_v59 = vrot.slane %v255_v57, 1 }
 0x1ea   : > { %13773 = vmatmul.mubr.msk.f32.gmra.mrb[42].mxu0 %vm519_vm3, %v1790_v60  ;;  %v387_v60 = vrot.slane %v255_v57, 7 }
 0x1eb   : > { %13775 = vmatprep.mubr.msk.f32.mxu0 %vm17138_vm1, %v22330_v1 }
 0x1ee   : > { %13776 = vmatmul.mubr.msk.f32.gmra.mrb[44].mxu0 %vm519_vm3, %v1791_v61 }
 0x1ef   : > { %13778 = vmatprep.mubr.msk.f32.mxu0 %vm17138_vm1, %v22330_v1 }
 0x1f1   : > { %v1573_v63 = vpop.f32.mrb[104].mxu0 }
 0x1f2   : > { %v13619_v0 = vpop.f32.mrb[105].mxu0  ;;  %13779 = vmatmul.mubr.msk.f32.gmra.mrb[138].mxu0 %vm519_vm3, %v1792_v62  ;;  %v485_v62 = vsel %vm341_vm2, %v308_v59, %v387_v60 }
 0x1f3   : > { %13781 = vmatprep.mubr.msk.f32.mxu0 %vm17138_vm1, %v22330_v1  ;;  %568 = vst.msk [vmem:[#allocation2 + $0x180] sm:$0xff] %vm519_vm3, %v485_v62  ;;  %624 = vst.msk [vmem:[#allocation2 + $0x32f] sm:$0xff] %vm519_vm3, %v485_v62  ;;  %v17959_v0 = vld [vmem:[%s17196_s25 + $0xf8] sm:$0xff] }
 0x1f4   : > { %680 = vst.msk [vmem:[#allocation2 + $0x4de] sm:$0xff] %vm519_vm3, %v485_v62  ;;  %v262_v62 = vld [vmem:[%s22325_s1 + $0x14] sm:$0xf] }
 0x1f6   : > { %13782 = vmatmul.mubr.msk.f32.gmra.mrb[48].mxu0 %vm519_vm3, %v1793_v2  ;;  %v2319_v2 = vld [vmem:[#allocation2 + $0x78] sm:$0xff] }
 0x1f7   : > { %13784 = vmatprep.mubr.msk.f32.mxu0 %vm17138_vm1, %v22330_v1 }
 0x1fa   : > { %13785 = vmatmul.mubr.msk.f32.gmra.mrb[50].mxu0 %vm519_vm3, %v1794_v3  ;;  %v388_v3 = vrot.slane %v17959_v0, 7  ;;  %v2352_v59 = vld [vmem:[#allocation2 + $0x180] sm:$0xff] }
 0x1fb   : > { %13787 = vmatprep.mubr.msk.f32.mxu0 %vm17138_vm1, %v22330_v1 }
 0x1fd   : > { %v1588_v5 = vpop.f32.mrb[106].mxu0 }
 0x1fe   : > { %v13628_v6 = vpop.f32.mrb[107].mxu0  ;;  %13788 = vmatmul.mubr.msk.f32.gmra.mrb[140].mxu0 %vm519_vm3, %v1795_v4  ;;  %v389_v4 = vsel %vm341_vm2, %v387_v60, %v388_v3  ;;  %v2320_v5 = vld [vmem:[#allocation2 + $0x80] sm:$0xff] }
 0x1ff   : > { %13790 = vmatprep.mubr.msk.f32.mxu0 %vm17138_vm1, %v22330_v1  ;;  %569 = vst.msk [vmem:[#allocation2 + $0x188] sm:$0xff] %vm519_vm3, %v389_v4  ;;  %625 = vst.msk [vmem:[#allocation2 + $0x337] sm:$0xff] %vm519_vm3, %v389_v4  ;;  %v2321_v6 = vld [vmem:[#allocation2 + $0x88] sm:$0xff] }
 0x200   : > { %681 = vst.msk [vmem:[#allocation2 + $0x4e6] sm:$0xff] %vm519_vm3, %v389_v4  ;;  %v2846_v4 = vld [vmem:[#allocation2 + $0x1d0] sm:$0xff] }
 0x202   : > { %13791 = vmatmul.mubr.msk.f32.gmra.mrb[54].mxu0 %vm519_vm3, %v1796_v7 }
 0x203   : > { %13793 = vmatprep.mubr.msk.f32.mxu0 %vm17138_vm1, %v22330_v1 }
 0x206   : > { %13794 = vmatmul.mubr.msk.f32.gmra.mrb[56].mxu0 %vm519_vm3, %v1797_v8  ;;  %v2353_v60 = vld [vmem:[#allocation2 + $0x188] sm:$0xff] }
 0x207   : > { %13796 = vmatprep.mubr.msk.f32.mxu0 %vm17138_vm1, %v22330_v1 }
 0x209   : > { %v1603_v10 = vpop.f32.mrb[108].mxu0 }
 0x20a   : > { %v13637_v11 = vpop.f32.mrb[109].mxu0  ;;  %13797 = vmatmul.mubr.msk.f32.gmra.mrb[142].mxu0 %vm519_vm3, %v1798_v9  ;;  %v2322_v9 = vld [vmem:[#allocation2 + $0x90] sm:$0xff]  ;;  %v2323_v10 = vld [vmem:[#allocation2 + $0x98] sm:$0xff] }
 0x20b   : > { %13799 = vmatprep.mubr.msk.f32.mxu0 %vm17138_vm1, %v22330_v1  ;;  %v2324_v11 = vld [vmem:[#allocation2 + $0xa0] sm:$0xff] }
 0x20e   : > { %13800 = vmatmul.mubr.msk.f32.gmra.mrb[60].mxu0 %vm519_vm3, %v1799_v12 }
 0x20f   : > { %13802 = vmatprep.mubr.msk.f32.mxu0 %vm17138_vm1, %v22330_v1 }
 0x212   : > { %13803 = vmatmul.mubr.msk.f32.gmra.mrb[62].mxu0 %vm519_vm3, %v1800_v13 }
 0x213   : > { %13805 = vmatprep.mubr.msk.f32.mxu0 %vm17138_vm1, %v22330_v1 }
 0x215   : > { %v1618_v15 = vpop.f32.mrb[110].mxu0 }
 0x216   : > { %v13646_v17 = vpop.f32.mrb[111].mxu0  ;;  %13806 = vmatmul.mubr.msk.f32.gmra.mrb[144].mxu0 %vm519_vm3, %v1801_v14  ;;  %v2325_v14 = vld [vmem:[#allocation2 + $0xa8] sm:$0xff]  ;;  %v2326_v15 = vld [vmem:[#allocation2 + $0xb0] sm:$0xff] }
 0x217   : > { %13808 = vmatprep.mubr.msk.f32.mxu0 %vm17138_vm1, %v22330_v1  ;;  %v2327_v17 = vld [vmem:[#allocation2 + $0xb8] sm:$0xff] }
 0x21a   : > { %13809 = vmatmul.mubr.msk.f32.gmra.mrb[66].mxu0 %vm519_vm3, %v1802_v18 }
 0x21b   : > { %13811 = vmatprep.mubr.msk.f32.mxu0 %vm17138_vm1, %v22330_v1 }
 0x21e   : > { %13812 = vmatmul.mubr.msk.f32.gmra.mrb[68].mxu0 %vm519_vm3, %v1803_v19 }
 0x21f   : > { %13814 = vmatprep.mubr.msk.f32.mxu0 %vm17138_vm1, %v22330_v1 }
 0x221   : > { %v1633_v21 = vpop.f32.mrb[112].mxu0 }
 0x222   : > { %v13655_v22 = vpop.f32.mrb[113].mxu0  ;;  %13815 = vmatmul.mubr.msk.f32.gmra.mrb[146].mxu0 %vm519_vm3, %v1804_v20  ;;  %v2328_v20 = vld [vmem:[#allocation2 + $0xc0] sm:$0xff]  ;;  %v2329_v21 = vld [vmem:[#allocation2 + $0xc8] sm:$0xff] }
 0x223   : > { %13817 = vmatprep.mubr.msk.f32.mxu0 %vm17138_vm1, %v22330_v1  ;;  %v2330_v22 = vld [vmem:[#allocation2 + $0xd0] sm:$0xff] }
 0x226   : > { %13818 = vmatmul.mubr.msk.f32.gmra.mrb[72].mxu0 %vm519_vm3, %v1805_v23 }
 0x227   : > { %13820 = vmatprep.mubr.msk.f32.mxu0 %vm17138_vm1, %v22330_v1 }
 0x22a   : > { %13821 = vmatmul.mubr.msk.f32.gmra.mrb[74].mxu0 %vm519_vm3, %v1806_v24 }
 0x22b   : > { %13823 = vmatprep.mubr.msk.f32.mxu0 %vm17138_vm1, %v22330_v1 }
 0x22d   : > { %v1648_v26 = vpop.f32.mrb[114].mxu0 }
 0x22e   : > { %v13664_v27 = vpop.f32.mrb[115].mxu0  ;;  %13824 = vmatmul.mubr.msk.f32.gmra.mrb[148].mxu0 %vm519_vm3, %v1807_v25  ;;  %v2331_v25 = vld [vmem:[#allocation2 + $0xd8] sm:$0xff]  ;;  %v2332_v26 = vld [vmem:[#allocation2 + $0xe0] sm:$0xff] }
 0x22f   : > { %13826 = vmatprep.mubr.msk.f32.mxu0 %vm17138_vm1, %v22330_v1  ;;  %v2333_v27 = vld [vmem:[#allocation2 + $0xe8] sm:$0xff] }
 0x232   : > { %13827 = vmatmul.mubr.msk.f32.gmra.mrb[78].mxu0 %vm519_vm3, %v1808_v28 }
 0x233   : > { %13829 = vmatprep.mubr.msk.f32.mxu0 %vm17138_vm1, %v22330_v1 }
 0x236   : > { %13830 = vmatmul.mubr.msk.f32.gmra.mrb[80].mxu0 %vm519_vm3, %v1809_v29 }
 0x237   : > { %13832 = vmatprep.mubr.msk.f32.mxu0 %vm17138_vm1, %v22330_v1 }
 0x239   : > { %v1663_v31 = vpop.f32.mrb[116].mxu0 }
 0x23a   : > { %v13673_v32 = vpop.f32.mrb[117].mxu0  ;;  %13833 = vmatmul.mubr.msk.f32.gmra.mrb[150].mxu0 %vm519_vm3, %v1810_v30  ;;  %v2334_v30 = vld [vmem:[#allocation2 + $0xf0] sm:$0xff]  ;;  %v2335_v31 = vld [vmem:[#allocation2 + $0xf8] sm:$0xff] }
 0x23b   : > { %13835 = vmatprep.mubr.msk.f32.mxu0 %vm17138_vm1, %v22330_v1  ;;  %v2336_v32 = vld [vmem:[#allocation2 + $0x100] sm:$0xff] }
 0x23e   : > { %13836 = vmatmul.mubr.msk.f32.gmra.mrb[84].mxu0 %vm519_vm3, %v1811_v33 }
 0x23f   : > { %13838 = vmatprep.mubr.msk.f32.mxu0 %vm17138_vm1, %v22330_v1 }
 0x242   : > { %13839 = vmatmul.mubr.msk.f32.gmra.mrb[86].mxu0 %vm519_vm3, %v1812_v34 }
 0x243   : > { %13841 = vmatprep.mubr.msk.f32.mxu0 %vm17138_vm1, %v22330_v1 }
 0x245   : > { %v1678_v36 = vpop.f32.mrb[118].mxu0 }
 0x246   : > { %v13682_v37 = vpop.f32.mrb[119].mxu0  ;;  %13842 = vmatmul.mubr.msk.f32.gmra.mrb[152].mxu0 %vm519_vm3, %v1813_v35  ;;  %v2337_v35 = vld [vmem:[#allocation2 + $0x108] sm:$0xff]  ;;  %v2338_v36 = vld [vmem:[#allocation2 + $0x110] sm:$0xff] }
 0x247   : > { %13844 = vmatprep.mubr.msk.f32.mxu0 %vm17138_vm1, %v22330_v1  ;;  %v2339_v37 = vld [vmem:[#allocation2 + $0x118] sm:$0xff] }
 0x24a   : > { %13845 = vmatmul.mubr.msk.f32.gmra.mrb[90].mxu0 %vm519_vm3, %v1814_v16 }
 0x24b   : > { %13847 = vmatprep.mubr.msk.f32.mxu0 %vm17138_vm1, %v22330_v1 }
 0x24e   : > { %13848 = vmatmul.mubr.msk.f32.gmra.mrb[92].mxu0 %vm519_vm3, %v1815_v38 }
 0x24f   : > { %13852 = vmatprep.mubr.msk.f32.mxu0 %vm17138_vm1, %v22330_v1 }
 0x251   : > { %v1693_v41 = vpop.f32.mrb[120].mxu0 }
 0x252   : > { %v13691_v42 = vpop.f32.mrb[121].mxu0  ;;  %13853 = vmatmul.mubr.msk.f32.vlgmr.msra.gmra.mrb[0].mxu0 %vm519_vm3, %v2307_v39  ;;  %v2340_v39 = vld [vmem:[#allocation2 + $0x120] sm:$0xff]  ;;  %v2342_v41 = vld [vmem:[#allocation2 + $0x130] sm:$0xff] }
 0x253   : > { %13994 = vmatpush3.msk.msra.mxu0 %vm880_vm0, %v261_v40  ;;  %13855 = vmatprep.mubr.msk.f32.mxu0 %vm17138_vm1, %v22330_v1  ;;  %v2341_v40 = vld [vmem:[#allocation2 + $0x128] sm:$0xff] }
 0x254   : > { %14136 = vmatprep.subr.mxu0 %v22330_v1 }
 0x256   : > { %13856 = vmatmul.mubr.msk.f32.gmra.mrb[2].mxu0 %vm519_vm3, %v2308_v43 }
 0x257   : > { %13858 = vmatprep.mubr.msk.f32.mxu0 %vm17138_vm1, %v22330_v1 }
 0x25a   : > { %13859 = vmatmul.mubr.msk.f32.gmra.mrb[154].mxu0 %vm519_vm3, %v2309_v44  ;;  %v2343_v44 = vld [vmem:[#allocation2 + $0x138] sm:$0xff] }
 0x25b   : > { %13861 = vmatprep.mubr.msk.f32.mxu0 %vm17138_vm1, %v22330_v1 }
 0x25d   : > { %v1708_v46 = vpop.f32.mrb[122].mxu0 }
 0x25e   : > { %v13700_v47 = vpop.f32.mrb[123].mxu0  ;;  %13862 = vmatmul.mubr.msk.f32.gmra.mrb[6].mxu0 %vm519_vm3, %v2310_v45  ;;  %v2344_v45 = vld [vmem:[#allocation2 + $0x140] sm:$0xff]  ;;  %v2345_v46 = vld [vmem:[#allocation2 + $0x148] sm:$0xff] }
 0x25f   : > { %13864 = vmatprep.mubr.msk.f32.mxu0 %vm17138_vm1, %v22330_v1 }
 0x262   : > { %13865 = vmatmul.mubr.msk.f32.gmra.mrb[8].mxu0 %vm519_vm3, %v2311_v48 }
 0x263   : > { %13867 = vmatprep.mubr.msk.f32.mxu0 %vm17138_vm1, %v22330_v1 }
 0x266   : > { %13868 = vmatmul.mubr.msk.f32.gmra.mrb[156].mxu0 %vm519_vm3, %v2312_v49  ;;  %v2346_v49 = vld [vmem:[#allocation2 + $0x150] sm:$0xff] }
 0x267   : > { %13870 = vmatprep.mubr.msk.f32.mxu0 %vm17138_vm1, %v22330_v1 }
 0x26a   : > { %13871 = vmatmul.mubr.msk.f32.gmra.mrb[12].mxu0 %vm519_vm3, %v2313_v50  ;;  %v2347_v50 = vld [vmem:[#allocation2 + $0x158] sm:$0xff] }
 0x26b   : > { %13873 = vmatprep.mubr.msk.f32.mxu0 %vm17138_vm1, %v22330_v1 }
 0x26e   : > { %13874 = vmatmul.mubr.msk.f32.gmra.mrb[14].mxu0 %vm519_vm3, %v2314_v51  ;;  %v2348_v51 = vld [vmem:[#allocation2 + $0x160] sm:$0xff] }
 0x26f   : > { %13876 = vmatprep.mubr.msk.f32.mxu0 %vm17138_vm1, %v22330_v1 }
 0x271   : > { %v2036_v53 = vpop.f32.mrb[124].mxu0 }
 0x272   : > { %v13717_v54 = vpop.f32.mrb[125].mxu0  ;;  %13877 = vmatmul.mubr.msk.f32.gmra.mrb[158].mxu0 %vm519_vm3, %v2315_v52 }
 0x273   : > { %13879 = vmatprep.mubr.msk.f32.mxu0 %vm17138_vm1, %v22330_v1  ;;  %v2349_v54 = vld [vmem:[#allocation2 + $0x168] sm:$0xff] }
 0x276   : > { %13880 = vmatmul.mubr.msk.f32.gmra.mrb[18].mxu0 %vm519_vm3, %v2316_v55  ;;  %v2350_v55 = vld [vmem:[#allocation2 + $0x170] sm:$0xff] }
 0x277   : > { %13882 = vmatprep.mubr.msk.f32.mxu0 %vm17138_vm1, %v22330_v1 }
 0x27a   : > { %13883 = vmatmul.mubr.msk.f32.gmra.mrb[20].mxu0 %vm519_vm3, %v2317_v56  ;;  %v2351_v56 = vld [vmem:[#allocation2 + $0x178] sm:$0xff] }
 0x27b   : > { %13885 = vmatprep.mubr.msk.f32.mxu0 %vm17138_vm1, %v22330_v1 }
 0x27d   : > { %v2051_v61 = vpop.f32.mrb[126].mxu0 }
 0x27e   : > { %v13726_v63 = vpop.f32.mrb[127].mxu0  ;;  %13886 = vmatmul.mubr.msk.f32.gmra.mrb[160].mxu0 %vm519_vm3, %v2318_v58  ;;  %v2845_v61 = vld [vmem:[#allocation2 + $0x1c8] sm:$0xff] }
 0x27f   : > { %13888 = vmatprep.mubr.msk.f32.mxu0 %vm17138_vm1, %v22330_v1 }
 0x282   : > { %13889 = vmatmul.mubr.msk.f32.gmra.mrb[24].mxu0 %vm519_vm3, %v2319_v2 }
 0x283   : > { %13891 = vmatprep.mubr.msk.f32.mxu0 %vm17138_vm1, %v22330_v1 }
 0x286   : > { %13892 = vmatmul.mubr.msk.f32.gmra.mrb[26].mxu0 %vm519_vm3, %v2320_v5  ;;  %v2847_v5 = vld [vmem:[#allocation2 + $0x1d8] sm:$0xff] }
 0x287   : > { %13894 = vmatprep.mubr.msk.f32.mxu0 %vm17138_vm1, %v22330_v1 }
 0x289   : > { %v2066_v7 = vpop.f32.mrb[128].mxu0 }
 0x28a   : > { %v13735_v8 = vpop.f32.mrb[129].mxu0  ;;  %13895 = vmatmul.mubr.msk.f32.gmra.mrb[162].mxu0 %vm519_vm3, %v2321_v6  ;;  %v2848_v6 = vld [vmem:[#allocation2 + $0x1e0] sm:$0xff] }
 0x28b   : > { %13897 = vmatprep.mubr.msk.f32.mxu0 %vm17138_vm1, %v22330_v1 }
 0x28e   : > { %13898 = vmatmul.mubr.msk.f32.gmra.mrb[30].mxu0 %vm519_vm3, %v2322_v9  ;;  %v2849_v9 = vld [vmem:[#allocation2 + $0x1e8] sm:$0xff] }
 0x28f   : > { %13900 = vmatprep.mubr.msk.f32.mxu0 %vm17138_vm1, %v22330_v1 }
 0x292   : > { %13901 = vmatmul.mubr.msk.f32.gmra.mrb[32].mxu0 %vm519_vm3, %v2323_v10  ;;  %v2850_v10 = vld [vmem:[#allocation2 + $0x1f0] sm:$0xff] }
 0x293   : > { %13903 = vmatprep.mubr.msk.f32.mxu0 %vm17138_vm1, %v22330_v1 }
 0x295   : > { %v2081_v12 = vpop.f32.mrb[130].mxu0 }
 0x296   : > { %v13744_v13 = vpop.f32.mrb[131].mxu0  ;;  %13904 = vmatmul.mubr.msk.f32.gmra.mrb[164].mxu0 %vm519_vm3, %v2324_v11  ;;  %v2851_v11 = vld [vmem:[#allocation2 + $0x1f8] sm:$0xff]  ;;  %v2852_v12 = vld [vmem:[#allocation2 + $0x200] sm:$0xff] }
 0x297   : > { %13906 = vmatprep.mubr.msk.f32.mxu0 %vm17138_vm1, %v22330_v1  ;;  %v2853_v13 = vld [vmem:[#allocation2 + $0x208] sm:$0xff] }
 0x29a   : > { %13907 = vmatmul.mubr.msk.f32.gmra.mrb[36].mxu0 %vm519_vm3, %v2325_v14 }
 0x29b   : > { %13909 = vmatprep.mubr.msk.f32.mxu0 %vm17138_vm1, %v22330_v1 }
 0x29e   : > { %13910 = vmatmul.mubr.msk.f32.gmra.mrb[38].mxu0 %vm519_vm3, %v2326_v15 }
 0x29f   : > { %13912 = vmatprep.mubr.msk.f32.mxu0 %vm17138_vm1, %v22330_v1 }
 0x2a1   : > { %v2096_v18 = vpop.f32.mrb[132].mxu0 }
 0x2a2   : > { %v13753_v19 = vpop.f32.mrb[133].mxu0  ;;  %13913 = vmatmul.mubr.msk.f32.gmra.mrb[166].mxu0 %vm519_vm3, %v2327_v17  ;;  %v2854_v17 = vld [vmem:[#allocation2 + $0x210] sm:$0xff]  ;;  %v2855_v18 = vld [vmem:[#allocation2 + $0x218] sm:$0xff] }
 0x2a3   : > { %13915 = vmatprep.mubr.msk.f32.mxu0 %vm17138_vm1, %v22330_v1  ;;  %v2856_v19 = vld [vmem:[#allocation2 + $0x220] sm:$0xff] }
 0x2a6   : > { %13916 = vmatmul.mubr.msk.f32.gmra.mrb[42].mxu0 %vm519_vm3, %v2328_v20 }
 0x2a7   : > { %13918 = vmatprep.mubr.msk.f32.mxu0 %vm17138_vm1, %v22330_v1 }
 0x2aa   : > { %13919 = vmatmul.mubr.msk.f32.gmra.mrb[44].mxu0 %vm519_vm3, %v2329_v21 }
 0x2ab   : > { %13921 = vmatprep.mubr.msk.f32.mxu0 %vm17138_vm1, %v22330_v1 }
 0x2ad   : > { %v2111_v23 = vpop.f32.mrb[134].mxu0 }
 0x2ae   : > { %v13762_v24 = vpop.f32.mrb[135].mxu0  ;;  %13922 = vmatmul.mubr.msk.f32.gmra.mrb[168].mxu0 %vm519_vm3, %v2330_v22  ;;  %v453_v22 = vrot.slane %v17959_v0, 5  ;;  %v2857_v23 = vld [vmem:[#allocation2 + $0x228] sm:$0xff]  ;;  %v2859_v0 = vld [vmem:[#allocation2 + $0x238] sm:$0xff] }
 0x2af   : > { %13924 = vmatprep.mubr.msk.f32.mxu0 %vm17138_vm1, %v22330_v1 }
 0x2b0   : > { %v501_v24 = vsel %vm341_vm2, %v388_v3, %v453_v22 }
 0x2b2   : > { %13925 = vmatmul.mubr.msk.f32.gmra.mrb[48].mxu0 %vm519_vm3, %v2331_v25  ;;  %v518_v25 = vsel %vm502_vm4, %v501_v24, 0.0  ;;  %v3385_v24 = vld [vmem:[#allocation2 + $0x388] sm:$0xff] }
 0x2b3   : > { %13927 = vmatprep.mubr.msk.f32.mxu0 %vm17138_vm1, %v22330_v1  ;;  %570 = vst.msk [vmem:[#allocation2 + $0x190] sm:$0xff] %vm519_vm3, %v518_v25  ;;  %626 = vst.msk [vmem:[#allocation2 + $0x33f] sm:$0xff] %vm519_vm3, %v518_v25 }
 0x2b4   : > { %682 = vst.msk [vmem:[#allocation2 + $0x4ee] sm:$0xff] %vm519_vm3, %v518_v25  ;;  %v18246_v25 = vld [vmem:[#allocation2 + $0x390] sm:$0xff] }
 0x2b6   : > { %13928 = vmatmul.mubr.msk.f32.gmra.mrb[50].mxu0 %vm519_vm3, %v2332_v26  ;;  %v2858_v26 = vld [vmem:[#allocation2 + $0x230] sm:$0xff] }
 0x2b7   : > { %13930 = vmatprep.mubr.msk.f32.mxu0 %vm17138_vm1, %v22330_v1 }
 0x2b9   : > { %v2126_v28 = vpop.f32.mrb[136].mxu0 }
 0x2ba   : > { %v13771_v29 = vpop.f32.mrb[137].mxu0  ;;  %13931 = vmatmul.mubr.msk.f32.gmra.mrb[170].mxu0 %vm519_vm3, %v2333_v27  ;;  %v2860_v28 = vld [vmem:[#allocation2 + $0x240] sm:$0xff] }
 0x2bb   : > { %13933 = vmatprep.mubr.msk.f32.mxu0 %vm17138_vm1, %v22330_v1  ;;  %v2861_v29 = vld [vmem:[#allocation2 + $0x248] sm:$0xff] }
 0x2be   : > { %13934 = vmatmul.mubr.msk.f32.gmra.mrb[54].mxu0 %vm519_vm3, %v2334_v30  ;;  %v2862_v30 = vld [vmem:[#allocation2 + $0x250] sm:$0xff] }
 0x2bf   : > { %13936 = vmatprep.mubr.msk.f32.mxu0 %vm17138_vm1, %v22330_v1 }
 0x2c2   : > { %13937 = vmatmul.mubr.msk.f32.gmra.mrb[56].mxu0 %vm519_vm3, %v2335_v31 }
 0x2c3   : > { %13939 = vmatprep.mubr.msk.f32.mxu0 %vm17138_vm1, %v22330_v1 }
 0x2c5   : > { %v2141_v33 = vpop.f32.mrb[138].mxu0 }
 0x2c6   : > { %v13780_v34 = vpop.f32.mrb[139].mxu0  ;;  %13940 = vmatmul.mubr.msk.f32.gmra.mrb[172].mxu0 %vm519_vm3, %v2336_v32  ;;  %v2863_v33 = vld [vmem:[#allocation2 + $0x258] sm:$0xff] }
 0x2c7   : > { %13942 = vmatprep.mubr.msk.f32.mxu0 %vm17138_vm1, %v22330_v1  ;;  %v2864_v34 = vld [vmem:[#allocation2 + $0x260] sm:$0xff] }
 0x2ca   : > { %13943 = vmatmul.mubr.msk.f32.gmra.mrb[60].mxu0 %vm519_vm3, %v2337_v35  ;;  %v2865_v35 = vld [vmem:[#allocation2 + $0x268] sm:$0xff] }
 0x2cb   : > { %13945 = vmatprep.mubr.msk.f32.mxu0 %vm17138_vm1, %v22330_v1 }
 0x2ce   : > { %13946 = vmatmul.mubr.msk.f32.gmra.mrb[62].mxu0 %vm519_vm3, %v2338_v36 }
 0x2cf   : > { %13948 = vmatprep.mubr.msk.f32.mxu0 %vm17138_vm1, %v22330_v1 }
 0x2d1   : > { %v2156_v16 = vpop.f32.mrb[140].mxu0 }
 0x2d2   : > { %v13789_v38 = vpop.f32.mrb[141].mxu0  ;;  %13949 = vmatmul.mubr.msk.f32.gmra.mrb[174].mxu0 %vm519_vm3, %v2339_v37  ;;  %v2866_v16 = vld [vmem:[#allocation2 + $0x270] sm:$0xff] }
 0x2d3   : > { %13951 = vmatprep.mubr.msk.f32.mxu0 %vm17138_vm1, %v22330_v1  ;;  %v2867_v38 = vld [vmem:[#allocation2 + $0x278] sm:$0xff] }
 0x2d6   : > { %13952 = vmatmul.mubr.msk.f32.gmra.mrb[66].mxu0 %vm519_vm3, %v2340_v39  ;;  %v2868_v39 = vld [vmem:[#allocation2 + $0x280] sm:$0xff] }
 0x2d7   : > { %13954 = vmatprep.mubr.msk.f32.mxu0 %vm17138_vm1, %v22330_v1 }
 0x2da   : > { %13955 = vmatmul.mubr.msk.f32.gmra.mrb[68].mxu0 %vm519_vm3, %v2341_v40 }
 0x2db   : > { %13957 = vmatprep.mubr.msk.f32.mxu0 %vm17138_vm1, %v22330_v1 }
 0x2dd   : > { %v2171_v42 = vpop.f32.mrb[142].mxu0 }
 0x2de   : > { %v13798_v43 = vpop.f32.mrb[143].mxu0  ;;  %13958 = vmatmul.mubr.msk.f32.gmra.mrb[176].mxu0 %vm519_vm3, %v2342_v41  ;;  %v2869_v42 = vld [vmem:[#allocation2 + $0x288] sm:$0xff] }
 0x2df   : > { %13960 = vmatprep.mubr.msk.f32.mxu0 %vm17138_vm1, %v22330_v1  ;;  %v2870_v43 = vld [vmem:[#allocation2 + $0x290] sm:$0xff] }
 0x2e2   : > { %13961 = vmatmul.mubr.msk.f32.gmra.mrb[72].mxu0 %vm519_vm3, %v2343_v44  ;;  %v2871_v44 = vld [vmem:[#allocation2 + $0x298] sm:$0xff] }
 0x2e3   : > { %13963 = vmatprep.mubr.msk.f32.mxu0 %vm17138_vm1, %v22330_v1 }
 0x2e6   : > { %13964 = vmatmul.mubr.msk.f32.gmra.mrb[74].mxu0 %vm519_vm3, %v2344_v45 }
 0x2e7   : > { %13966 = vmatprep.mubr.msk.f32.mxu0 %vm17138_vm1, %v22330_v1 }
 0x2e9   : > { %v2186_v47 = vpop.f32.mrb[144].mxu0 }
 0x2ea   : > { %v13807_v48 = vpop.f32.mrb[145].mxu0  ;;  %13967 = vmatmul.mubr.msk.f32.gmra.mrb[178].mxu0 %vm519_vm3, %v2345_v46  ;;  %v2872_v47 = vld [vmem:[#allocation2 + $0x2a0] sm:$0xff] }
 0x2eb   : > { %13969 = vmatprep.mubr.msk.f32.mxu0 %vm17138_vm1, %v22330_v1  ;;  %v2873_v48 = vld [vmem:[#allocation2 + $0x2a8] sm:$0xff] }
 0x2ee   : > { %13970 = vmatmul.mubr.msk.f32.gmra.mrb[78].mxu0 %vm519_vm3, %v2346_v49  ;;  %v2874_v49 = vld [vmem:[#allocation2 + $0x2b0] sm:$0xff] }
 0x2ef   : > { %13972 = vmatprep.mubr.msk.f32.mxu0 %vm17138_vm1, %v22330_v1 }
 0x2f2   : > { %13973 = vmatmul.mubr.msk.f32.gmra.mrb[80].mxu0 %vm519_vm3, %v2347_v50 }
 0x2f3   : > { %13975 = vmatprep.mubr.msk.f32.mxu0 %vm17138_vm1, %v22330_v1 }
 0x2f5   : > { %v2201_v52 = vpop.f32.mrb[146].mxu0 }
 0x2f6   : > { %v13816_v53 = vpop.f32.mrb[147].mxu0  ;;  %13976 = vmatmul.mubr.msk.f32.gmra.mrb[180].mxu0 %vm519_vm3, %v2348_v51  ;;  %v2875_v52 = vld [vmem:[#allocation2 + $0x2b8] sm:$0xff] }
 0x2f7   : > { %13978 = vmatprep.mubr.msk.f32.mxu0 %vm17138_vm1, %v22330_v1  ;;  %v2876_v53 = vld [vmem:[#allocation2 + $0x2c0] sm:$0xff] }
 0x2fa   : > { %13979 = vmatmul.mubr.msk.f32.gmra.mrb[84].mxu0 %vm519_vm3, %v2349_v54  ;;  %v2877_v54 = vld [vmem:[#allocation2 + $0x2c8] sm:$0xff] }
 0x2fb   : > { %13981 = vmatprep.mubr.msk.f32.mxu0 %vm17138_vm1, %v22330_v1 }
 0x2fe   : > { %13982 = vmatmul.mubr.msk.f32.gmra.mrb[86].mxu0 %vm519_vm3, %v2350_v55 }
 0x2ff   : > { %13984 = vmatprep.mubr.msk.f32.mxu0 %vm17138_vm1, %v22330_v1 }
 0x301   : > { %v2216_v57 = vpop.f32.mrb[148].mxu0 }
 0x302   : > { %v13825_v58 = vpop.f32.mrb[149].mxu0  ;;  %13985 = vmatmul.mubr.msk.f32.gmra.mrb[182].mxu0 %vm519_vm3, %v2351_v56  ;;  %v2878_v57 = vld [vmem:[#allocation2 + $0x2d0] sm:$0xff] }
 0x303   : > { %13987 = vmatprep.mubr.msk.f32.mxu0 %vm17138_vm1, %v22330_v1  ;;  %v2879_v58 = vld [vmem:[#allocation2 + $0x2d8] sm:$0xff] }
 0x306   : > { %13988 = vmatmul.mubr.msk.f32.gmra.mrb[90].mxu0 %vm519_vm3, %v2352_v59  ;;  %v2880_v59 = vld [vmem:[#allocation2 + $0x2e0] sm:$0xff] }
 0x307   : > { %13990 = vmatprep.mubr.msk.f32.mxu0 %vm17138_vm1, %v22330_v1 }
 0x30a   : > { %13991 = vmatmul.mubr.msk.f32.gmra.mrb[92].mxu0 %vm519_vm3, %v2353_v60 }
 0x30b   : > { %13995 = vmatprep.mubr.msk.f32.mxu0 %vm17138_vm1, %v22330_v1 }
 0x30d   : > { %v2231_v63 = vpop.f32.mrb[150].mxu0 }
 0x30e   : > { %v13834_v2 = vpop.f32.mrb[151].mxu0  ;;  %13996 = vmatmul.mubr.msk.f32.vlgmr.msra.gmra.mrb[0].mxu0 %vm519_vm3, %v2845_v61  ;;  %v2882_v63 = vld [vmem:[#allocation2 + $0x2f0] sm:$0xff] }
 0x30f   : > { %14137 = vmatpush3.msk.msra.mxu0 %vm880_vm0, %v262_v62  ;;  %13998 = vmatprep.mubr.msk.f32.mxu0 %vm17138_vm1, %v22330_v1  ;;  %v2881_v62 = vld [vmem:[#allocation2 + $0x2e8] sm:$0xff]  ;;  %v2883_v2 = vld [vmem:[#allocation2 + $0x2f8] sm:$0xff] }
 0x310   : > { %14279 = vmatprep.subr.mxu0 %v22330_v1 }
 0x312   : > { %13999 = vmatmul.mubr.msk.f32.gmra.mrb[2].mxu0 %vm519_vm3, %v2846_v4 }
 0x313   : > { %14001 = vmatprep.mubr.msk.f32.mxu0 %vm17138_vm1, %v22330_v1 }
 0x316   : > { %14002 = vmatmul.mubr.msk.f32.gmra.mrb[184].mxu0 %vm519_vm3, %v2847_v5 }
 0x317   : > { %14004 = vmatprep.mubr.msk.f32.mxu0 %vm17138_vm1, %v22330_v1 }
 0x319   : > { %v2246_v7 = vpop.f32.mrb[152].mxu0 }
 0x31a   : > { %v13843_v8 = vpop.f32.mrb[153].mxu0  ;;  %14005 = vmatmul.mubr.msk.f32.gmra.mrb[6].mxu0 %vm519_vm3, %v2848_v6  ;;  %v2884_v6 = vld [vmem:[#allocation2 + $0x300] sm:$0xff]  ;;  %v2885_v7 = vld [vmem:[#allocation2 + $0x308] sm:$0xff] }
 0x31b   : > { %14007 = vmatprep.mubr.msk.f32.mxu0 %vm17138_vm1, %v22330_v1  ;;  %v2886_v8 = vld [vmem:[#allocation2 + $0x310] sm:$0xff] }
 0x31e   : > { %14008 = vmatmul.mubr.msk.f32.gmra.mrb[8].mxu0 %vm519_vm3, %v2849_v9 }
 0x31f   : > { %14010 = vmatprep.mubr.msk.f32.mxu0 %vm17138_vm1, %v22330_v1 }
 0x322   : > { %14011 = vmatmul.mubr.msk.f32.gmra.mrb[186].mxu0 %vm519_vm3, %v2850_v10 }
 0x323   : > { %14013 = vmatprep.mubr.msk.f32.mxu0 %vm17138_vm1, %v22330_v1 }
 0x326   : > { %14014 = vmatmul.mubr.msk.f32.gmra.mrb[12].mxu0 %vm519_vm3, %v2851_v11  ;;  %v2887_v11 = vld [vmem:[#allocation2 + $0x318] sm:$0xff] }
 0x327   : > { %14016 = vmatprep.mubr.msk.f32.mxu0 %vm17138_vm1, %v22330_v1 }
 0x32a   : > { %14017 = vmatmul.mubr.msk.f32.gmra.mrb[14].mxu0 %vm519_vm3, %v2852_v12  ;;  %v2888_v12 = vld [vmem:[#allocation2 + $0x320] sm:$0xff] }
 0x32b   : > { %14019 = vmatprep.mubr.msk.f32.mxu0 %vm17138_vm1, %v22330_v1 }
 0x32d   : > { %v2574_v14 = vpop.f32.mrb[154].mxu0 }
 0x32e   : > { %v13860_v15 = vpop.f32.mrb[155].mxu0  ;;  %14020 = vmatmul.mubr.msk.f32.gmra.mrb[188].mxu0 %vm519_vm3, %v2853_v13  ;;  %v2889_v13 = vld [vmem:[#allocation2 + $0x328] sm:$0xff] }
 0x32f   : > { %14022 = vmatprep.mubr.msk.f32.mxu0 %vm17138_vm1, %v22330_v1 }
 0x332   : > { %14023 = vmatmul.mubr.msk.f32.gmra.mrb[18].mxu0 %vm519_vm3, %v2854_v17  ;;  %v2890_v17 = vld [vmem:[#allocation2 + $0x330] sm:$0xff] }
 0x333   : > { %14025 = vmatprep.mubr.msk.f32.mxu0 %vm17138_vm1, %v22330_v1 }
 0x336   : > { %14026 = vmatmul.mubr.msk.f32.gmra.mrb[20].mxu0 %vm519_vm3, %v2855_v18  ;;  %v18226_v18 = vld [vmem:[#allocation2 + $0x338] sm:$0xff] }
 0x337   : > { %14028 = vmatprep.mubr.msk.f32.mxu0 %vm17138_vm1, %v22330_v1 }
 0x339   : > { %v2589_v20 = vpop.f32.mrb[156].mxu0 }
 0x33a   : > { %v13869_v21 = vpop.f32.mrb[157].mxu0  ;;  %14029 = vmatmul.mubr.msk.f32.gmra.mrb[190].mxu0 %vm519_vm3, %v2856_v19  ;;  %v3383_v19 = vld [vmem:[#allocation2 + $0x378] sm:$0xff] }
 0x33b   : > { %14031 = vmatprep.mubr.msk.f32.mxu0 %vm17138_vm1, %v22330_v1  ;;  %v263_v20 = vld [vmem:[%s22325_s1 + $0x18] sm:$0xf] }
 0x33e   : > { %14032 = vmatmul.mubr.msk.f32.gmra.mrb[24].mxu0 %vm519_vm3, %v2857_v23  ;;  %v3384_v23 = vld [vmem:[#allocation2 + $0x380] sm:$0xff] }
 0x33f   : > { %14034 = vmatprep.mubr.msk.f32.mxu0 %vm17138_vm1, %v22330_v1 }
 0x342   : > { %14035 = vmatmul.mubr.msk.f32.gmra.mrb[26].mxu0 %vm519_vm3, %v2858_v26 }
 0x343   : > { %14037 = vmatprep.mubr.msk.f32.mxu0 %vm17138_vm1, %v22330_v1 }
 0x345   : > { %v2604_v3 = vpop.f32.mrb[158].mxu0 }
 0x346   : > { %v13878_v27 = vpop.f32.mrb[159].mxu0  ;;  %14038 = vmatmul.mubr.msk.f32.gmra.mrb[192].mxu0 %vm519_vm3, %v2859_v0  ;;  %v18252_v3 = vld [vmem:[#allocation2 + $0x398] sm:$0xff] }
 0x347   : > { %14040 = vmatprep.mubr.msk.f32.mxu0 %vm17138_vm1, %v22330_v1  ;;  %v18258_v27 = vld [vmem:[#allocation2 + $0x3a0] sm:$0xff] }
 0x34a   : > { %14041 = vmatmul.mubr.msk.f32.gmra.mrb[30].mxu0 %vm519_vm3, %v2860_v28  ;;  %v18264_v28 = vld [vmem:[#allocation2 + $0x3a8] sm:$0xff] }
 0x34b   : > { %14043 = vmatprep.mubr.msk.f32.mxu0 %vm17138_vm1, %v22330_v1 }
 0x34e   : > { %14044 = vmatmul.mubr.msk.f32.gmra.mrb[32].mxu0 %vm519_vm3, %v2861_v29  ;;  %v18270_v29 = vld [vmem:[#allocation2 + $0x3b0] sm:$0xff] }
 0x34f   : > { %14046 = vmatprep.mubr.msk.f32.mxu0 %vm17138_vm1, %v22330_v1 }
 0x351   : > { %v2619_v31 = vpop.f32.mrb[160].mxu0 }
 0x352   : > { %v13887_v32 = vpop.f32.mrb[161].mxu0  ;;  %14047 = vmatmul.mubr.msk.f32.gmra.mrb[194].mxu0 %vm519_vm3, %v2862_v30  ;;  %v18276_v30 = vld [vmem:[#allocation2 + $0x3b8] sm:$0xff] }
 0x353   : > { %14049 = vmatprep.mubr.msk.f32.mxu0 %vm17138_vm1, %v22330_v1 }
 0x356   : > { %14050 = vmatmul.mubr.msk.f32.gmra.mrb[36].mxu0 %vm519_vm3, %v2863_v33  ;;  %v18282_v33 = vld [vmem:[#allocation2 + $0x3c0] sm:$0xff] }
 0x357   : > { %14052 = vmatprep.mubr.msk.f32.mxu0 %vm17138_vm1, %v22330_v1 }
 0x35a   : > { %14053 = vmatmul.mubr.msk.f32.gmra.mrb[38].mxu0 %vm519_vm3, %v2864_v34  ;;  %v18288_v34 = vld [vmem:[#allocation2 + $0x3c8] sm:$0xff] }
 0x35b   : > { %14055 = vmatprep.mubr.msk.f32.mxu0 %vm17138_vm1, %v22330_v1 }
 0x35d   : > { %v2634_v36 = vpop.f32.mrb[162].mxu0 }
 0x35e   : > { %v13896_v37 = vpop.f32.mrb[163].mxu0  ;;  %14056 = vmatmul.mubr.msk.f32.gmra.mrb[196].mxu0 %vm519_vm3, %v2865_v35  ;;  %v18294_v35 = vld [vmem:[#allocation2 + $0x3d0] sm:$0xff] }
 0x35f   : > { %14058 = vmatprep.mubr.msk.f32.mxu0 %vm17138_vm1, %v22330_v1 }
 0x362   : > { %14059 = vmatmul.mubr.msk.f32.gmra.mrb[42].mxu0 %vm519_vm3, %v2866_v16  ;;  %v18300_v16 = vld [vmem:[#allocation2 + $0x3d8] sm:$0xff] }
 0x363   : > { %14061 = vmatprep.mubr.msk.f32.mxu0 %vm17138_vm1, %v22330_v1 }
 0x366   : > { %14062 = vmatmul.mubr.msk.f32.gmra.mrb[44].mxu0 %vm519_vm3, %v2867_v38  ;;  %v18306_v38 = vld [vmem:[#allocation2 + $0x3e0] sm:$0xff] }
 0x367   : > { %14064 = vmatprep.mubr.msk.f32.mxu0 %vm17138_vm1, %v22330_v1 }
 0x369   : > { %v2649_v40 = vpop.f32.mrb[164].mxu0 }
 0x36a   : > { %v13905_v41 = vpop.f32.mrb[165].mxu0  ;;  %14065 = vmatmul.mubr.msk.f32.gmra.mrb[198].mxu0 %vm519_vm3, %v2868_v39  ;;  %v18312_v39 = vld [vmem:[#allocation2 + $0x3e8] sm:$0xff] }
 0x36b   : > { %14067 = vmatprep.mubr.msk.f32.mxu0 %vm17138_vm1, %v22330_v1 }
 0x36e   : > { %14068 = vmatmul.mubr.msk.f32.gmra.mrb[48].mxu0 %vm519_vm3, %v2869_v42  ;;  %v18318_v42 = vld [vmem:[#allocation2 + $0x3f0] sm:$0xff] }
 0x36f   : > { %14070 = vmatprep.mubr.msk.f32.mxu0 %vm17138_vm1, %v22330_v1 }
 0x372   : > { %14071 = vmatmul.mubr.msk.f32.gmra.mrb[50].mxu0 %vm519_vm3, %v2870_v43  ;;  %v18324_v43 = vld [vmem:[#allocation2 + $0x3f8] sm:$0xff] }
 0x373   : > { %14073 = vmatprep.mubr.msk.f32.mxu0 %vm17138_vm1, %v22330_v1 }
 0x375   : > { %v2664_v45 = vpop.f32.mrb[166].mxu0 }
 0x376   : > { %v13914_v46 = vpop.f32.mrb[167].mxu0  ;;  %14074 = vmatmul.mubr.msk.f32.gmra.mrb[200].mxu0 %vm519_vm3, %v2871_v44  ;;  %v18330_v44 = vld [vmem:[#allocation2 + $0x400] sm:$0xff] }
 0x377   : > { %14076 = vmatprep.mubr.msk.f32.mxu0 %vm17138_vm1, %v22330_v1 }
 0x37a   : > { %14077 = vmatmul.mubr.msk.f32.gmra.mrb[54].mxu0 %vm519_vm3, %v2872_v47  ;;  %v18336_v47 = vld [vmem:[#allocation2 + $0x408] sm:$0xff] }
 0x37b   : > { %14079 = vmatprep.mubr.msk.f32.mxu0 %vm17138_vm1, %v22330_v1 }
 0x37e   : > { %14080 = vmatmul.mubr.msk.f32.gmra.mrb[56].mxu0 %vm519_vm3, %v2873_v48  ;;  %v18342_v48 = vld [vmem:[#allocation2 + $0x410] sm:$0xff] }
 0x37f   : > { %14082 = vmatprep.mubr.msk.f32.mxu0 %vm17138_vm1, %v22330_v1 }
 0x381   : > { %v2679_v50 = vpop.f32.mrb[168].mxu0 }
 0x382   : > { %v13923_v51 = vpop.f32.mrb[169].mxu0  ;;  %14083 = vmatmul.mubr.msk.f32.gmra.mrb[202].mxu0 %vm519_vm3, %v2874_v49  ;;  %v18348_v49 = vld [vmem:[#allocation2 + $0x418] sm:$0xff] }
 0x383   : > { %14085 = vmatprep.mubr.msk.f32.mxu0 %vm17138_vm1, %v22330_v1 }
 0x386   : > { %14086 = vmatmul.mubr.msk.f32.gmra.mrb[60].mxu0 %vm519_vm3, %v2875_v52  ;;  %v18354_v52 = vld [vmem:[#allocation2 + $0x420] sm:$0xff] }
 0x387   : > { %14088 = vmatprep.mubr.msk.f32.mxu0 %vm17138_vm1, %v22330_v1 }
 0x38a   : > { %14089 = vmatmul.mubr.msk.f32.gmra.mrb[62].mxu0 %vm519_vm3, %v2876_v53  ;;  %v18360_v53 = vld [vmem:[#allocation2 + $0x428] sm:$0xff] }
 0x38b   : > { %14091 = vmatprep.mubr.msk.f32.mxu0 %vm17138_vm1, %v22330_v1 }
 0x38d   : > { %v2694_v55 = vpop.f32.mrb[170].mxu0 }
 0x38e   : > { %v13932_v56 = vpop.f32.mrb[171].mxu0  ;;  %14092 = vmatmul.mubr.msk.f32.gmra.mrb[204].mxu0 %vm519_vm3, %v2877_v54  ;;  %v18366_v54 = vld [vmem:[#allocation2 + $0x430] sm:$0xff] }
 0x38f   : > { %14094 = vmatprep.mubr.msk.f32.mxu0 %vm17138_vm1, %v22330_v1 }
 0x392   : > { %14095 = vmatmul.mubr.msk.f32.gmra.mrb[66].mxu0 %vm519_vm3, %v2878_v57  ;;  %v18372_v57 = vld [vmem:[#allocation2 + $0x438] sm:$0xff] }
 0x393   : > { %14097 = vmatprep.mubr.msk.f32.mxu0 %vm17138_vm1, %v22330_v1 }
 0x396   : > { %14098 = vmatmul.mubr.msk.f32.gmra.mrb[68].mxu0 %vm519_vm3, %v2879_v58  ;;  %v18378_v58 = vld [vmem:[#allocation2 + $0x440] sm:$0xff] }
 0x397   : > { %14100 = vmatprep.mubr.msk.f32.mxu0 %vm17138_vm1, %v22330_v1 }
 0x399   : > { %v2709_v60 = vpop.f32.mrb[172].mxu0 }
 0x39a   : > { %v13941_v61 = vpop.f32.mrb[173].mxu0  ;;  %14101 = vmatmul.mubr.msk.f32.gmra.mrb[206].mxu0 %vm519_vm3, %v2880_v59  ;;  %v18384_v59 = vld [vmem:[#allocation2 + $0x448] sm:$0xff] }
 0x39b   : > { %14103 = vmatprep.mubr.msk.f32.mxu0 %vm17138_vm1, %v22330_v1 }
 0x39e   : > { %14104 = vmatmul.mubr.msk.f32.gmra.mrb[72].mxu0 %vm519_vm3, %v2881_v62  ;;  %v18390_v62 = vld [vmem:[#allocation2 + $0x450] sm:$0xff] }
 0x39f   : > { %14106 = vmatprep.mubr.msk.f32.mxu0 %vm17138_vm1, %v22330_v1 }
 0x3a2   : > { %14107 = vmatmul.mubr.msk.f32.gmra.mrb[74].mxu0 %vm519_vm3, %v2882_v63  ;;  %v18396_v63 = vld [vmem:[#allocation2 + $0x458] sm:$0xff] }
 0x3a3   : > { %14109 = vmatprep.mubr.msk.f32.mxu0 %vm17138_vm1, %v22330_v1 }
 0x3a5   : > { %v2724_v4 = vpop.f32.mrb[174].mxu0 }
 0x3a6   : > { %v13950_v5 = vpop.f32.mrb[175].mxu0  ;;  %14110 = vmatmul.mubr.msk.f32.gmra.mrb[208].mxu0 %vm519_vm3, %v2883_v2  ;;  %v18402_v2 = vld [vmem:[#allocation2 + $0x460] sm:$0xff] }
 0x3a7   : > { %14112 = vmatprep.mubr.msk.f32.mxu0 %vm17138_vm1, %v22330_v1 }
 0x3aa   : > { %14113 = vmatmul.mubr.msk.f32.gmra.mrb[78].mxu0 %vm519_vm3, %v2884_v6  ;;  %v18408_v6 = vld [vmem:[#allocation2 + $0x468] sm:$0xff] }
 0x3ab   : > { %14115 = vmatprep.mubr.msk.f32.mxu0 %vm17138_vm1, %v22330_v1 }
 0x3ae   : > { %14116 = vmatmul.mubr.msk.f32.gmra.mrb[80].mxu0 %vm519_vm3, %v2885_v7  ;;  %v18414_v7 = vld [vmem:[#allocation2 + $0x470] sm:$0xff] }
 0x3af   : > { %14118 = vmatprep.mubr.msk.f32.mxu0 %vm17138_vm1, %v22330_v1 }
 0x3b1   : > { %v2739_v9 = vpop.f32.mrb[176].mxu0 }
 0x3b2   : > { %v13959_v10 = vpop.f32.mrb[177].mxu0  ;;  %14119 = vmatmul.mubr.msk.f32.gmra.mrb[210].mxu0 %vm519_vm3, %v2886_v8  ;;  %v18420_v8 = vld [vmem:[#allocation2 + $0x478] sm:$0xff] }
 0x3b3   : > { %14121 = vmatprep.mubr.msk.f32.mxu0 %vm17138_vm1, %v22330_v1 }
 0x3b6   : > { %14122 = vmatmul.mubr.msk.f32.gmra.mrb[84].mxu0 %vm519_vm3, %v2887_v11  ;;  %v18426_v11 = vld [vmem:[#allocation2 + $0x480] sm:$0xff] }
 0x3b7   : > { %14124 = vmatprep.mubr.msk.f32.mxu0 %vm17138_vm1, %v22330_v1 }
 0x3ba   : > { %14125 = vmatmul.mubr.msk.f32.gmra.mrb[86].mxu0 %vm519_vm3, %v2888_v12  ;;  %v18432_v12 = vld [vmem:[#allocation2 + $0x488] sm:$0xff] }
 0x3bb   : > { %14127 = vmatprep.mubr.msk.f32.mxu0 %vm17138_vm1, %v22330_v1 }
 0x3bd   : > { %v2754_v14 = vpop.f32.mrb[178].mxu0 }
 0x3be   : > { %v13968_v15 = vpop.f32.mrb[179].mxu0  ;;  %14128 = vmatmul.mubr.msk.f32.gmra.mrb[212].mxu0 %vm519_vm3, %v2889_v13  ;;  %v18438_v13 = vld [vmem:[#allocation2 + $0x490] sm:$0xff] }
 0x3bf   : > { %14130 = vmatprep.mubr.msk.f32.mxu0 %vm17138_vm1, %v22330_v1 }
 0x3c2   : > { %14131 = vmatmul.mubr.msk.f32.gmra.mrb[90].mxu0 %vm519_vm3, %v2890_v17  ;;  %v18444_v17 = vld [vmem:[#allocation2 + $0x498] sm:$0xff] }
 0x3c3   : > { %14133 = vmatprep.mubr.msk.f32.mxu0 %vm17138_vm1, %v22330_v1 }
 0x3c6   : > { %14134 = vmatmul.mubr.msk.f32.gmra.mrb[92].mxu0 %vm519_vm3, %v18226_v18 }
 0x3c7   : > { %14138 = vmatprep.mubr.msk.f32.mxu0 %vm17138_vm1, %v22330_v1 }
 0x3c9   : > { %v2769_v21 = vpop.f32.mrb[180].mxu0 }
 0x3ca   : > { %v13977_v22 = vpop.f32.mrb[181].mxu0  ;;  %14139 = vmatmul.mubr.msk.f32.vlgmr.msra.gmra.mrb[0].mxu0 %vm519_vm3, %v3383_v19  ;;  %v18450_v19 = vld [vmem:[#allocation2 + $0x4a0] sm:$0xff] }
 0x3cb   : > { %14280 = vmatpush3.msk.msra.mxu0 %vm880_vm0, %v263_v20  ;;  %14141 = vmatprep.mubr.msk.f32.mxu0 %vm17138_vm1, %v22330_v1  ;;  %v18456_v20 = vld [vmem:[#allocation2 + $0x4a8] sm:$0xff] }
 0x3cc   : > { %14422 = vmatprep.subr.mxu0 %v22330_v1 }
 0x3ce   : > { %14142 = vmatmul.mubr.msk.f32.gmra.mrb[2].mxu0 %vm519_vm3, %v3384_v23  ;;  %v18462_v23 = vld [vmem:[#allocation2 + $0x4b0] sm:$0xff] }
 0x3cf   : > { %14144 = vmatprep.mubr.msk.f32.mxu0 %vm17138_vm1, %v22330_v1 }
 0x3d2   : > { %14145 = vmatmul.mubr.msk.f32.gmra.mrb[214].mxu0 %vm519_vm3, %v3385_v24  ;;  %v18468_v24 = vld [vmem:[#allocation2 + $0x4b8] sm:$0xff] }
 0x3d3   : > { %14147 = vmatprep.mubr.msk.f32.mxu0 %vm17138_vm1, %v22330_v1 }
 0x3d5   : > { %v2784_v26 = vpop.f32.mrb[182].mxu0 }
 0x3d6   : > { %v13986_v0 = vpop.f32.mrb[183].mxu0  ;;  %14148 = vmatmul.mubr.msk.f32.gmra.mrb[6].mxu0 %vm519_vm3, %v18246_v25  ;;  %v18474_v26 = vld [vmem:[#allocation2 + $0x4c0] sm:$0xff] }
 0x3d7   : > { %14150 = vmatprep.mubr.msk.f32.mxu0 %vm17138_vm1, %v22330_v1 }
 0x3da   : > { %14151 = vmatmul.mubr.msk.f32.gmra.mrb[8].mxu0 %vm519_vm3, %v18252_v3 }
 0x3db   : > { %14153 = vmatprep.mubr.msk.f32.mxu0 %vm17138_vm1, %v22330_v1 }
 0x3de   : > { %14154 = vmatmul.mubr.msk.f32.gmra.mrb[216].mxu0 %vm519_vm3, %v18258_v27 }
 0x3df   : > { %14156 = vmatprep.mubr.msk.f32.mxu0 %vm17138_vm1, %v22330_v1 }
 0x3e2   : > { %14157 = vmatmul.mubr.msk.f32.gmra.mrb[12].mxu0 %vm519_vm3, %v18264_v28 }
 0x3e3   : > { %14159 = vmatprep.mubr.msk.f32.mxu0 %vm17138_vm1, %v22330_v1 }
 0x3e6   : > { %14160 = vmatmul.mubr.msk.f32.gmra.mrb[14].mxu0 %vm519_vm3, %v18270_v29 }
 0x3e7   : > { %14162 = vmatprep.mubr.msk.f32.mxu0 %vm17138_vm1, %v22330_v1 }
 0x3e9   : > { %v3112_v31 = vpop.f32.mrb[184].mxu0 }
 0x3ea   : > { %v14003_v32 = vpop.f32.mrb[185].mxu0  ;;  %14163 = vmatmul.mubr.msk.f32.gmra.mrb[218].mxu0 %vm519_vm3, %v18276_v30 }
 0x3eb   : > { %14165 = vmatprep.mubr.msk.f32.mxu0 %vm17138_vm1, %v22330_v1  ;;  %v18480_v32 = vld [vmem:[#allocation2 + $0x4c8] sm:$0xff] }
 0x3ee   : > { %14166 = vmatmul.mubr.msk.f32.gmra.mrb[18].mxu0 %vm519_vm3, %v18282_v33 }
 0x3ef   : > { %14168 = vmatprep.mubr.msk.f32.mxu0 %vm17138_vm1, %v22330_v1 }
 0x3f2   : > { %14169 = vmatmul.mubr.msk.f32.gmra.mrb[20].mxu0 %vm519_vm3, %v18288_v34 }
 0x3f3   : > { %14171 = vmatprep.mubr.msk.f32.mxu0 %vm17138_vm1, %v22330_v1 }
 0x3f5   : > { %v3127_v36 = vpop.f32.mrb[186].mxu0 }
 0x3f6   : > { %v14012_v37 = vpop.f32.mrb[187].mxu0  ;;  %14172 = vmatmul.mubr.msk.f32.gmra.mrb[220].mxu0 %vm519_vm3, %v18294_v35  ;;  %v18486_v36 = vld [vmem:[#allocation2 + $0x4d0] sm:$0xff] }
 0x3f7   : > { %14174 = vmatprep.mubr.msk.f32.mxu0 %vm17138_vm1, %v22330_v1  ;;  %v18492_v37 = vld [vmem:[#allocation2 + $0x4d8] sm:$0xff] }
 0x3fa   : > { %14175 = vmatmul.mubr.msk.f32.gmra.mrb[24].mxu0 %vm519_vm3, %v18300_v16 }
 0x3fb   : > { %14177 = vmatprep.mubr.msk.f32.mxu0 %vm17138_vm1, %v22330_v1 }
 0x3fe   : > { %14178 = vmatmul.mubr.msk.f32.gmra.mrb[26].mxu0 %vm519_vm3, %v18306_v38 }
 0x3ff   : > { %14180 = vmatprep.mubr.msk.f32.mxu0 %vm17138_vm1, %v22330_v1 }
 0x401   : > { %v3142_v40 = vpop.f32.mrb[188].mxu0 }
 0x402   : > { %v14021_v41 = vpop.f32.mrb[189].mxu0  ;;  %14181 = vmatmul.mubr.msk.f32.gmra.mrb[222].mxu0 %vm519_vm3, %v18312_v39 }
 0x403   : > { %14183 = vmatprep.mubr.msk.f32.mxu0 %vm17138_vm1, %v22330_v1 }
 0x406   : > { %14184 = vmatmul.mubr.msk.f32.gmra.mrb[30].mxu0 %vm519_vm3, %v18318_v42 }
 0x407   : > { %14186 = vmatprep.mubr.msk.f32.mxu0 %vm17138_vm1, %v22330_v1 }
 0x40a   : > { %14187 = vmatmul.mubr.msk.f32.gmra.mrb[32].mxu0 %vm519_vm3, %v18324_v43 }
 0x40b   : > { %14189 = vmatprep.mubr.msk.f32.mxu0 %vm17138_vm1, %v22330_v1 }
 0x40d   : > { %v3157_v45 = vpop.f32.mrb[190].mxu0 }
 0x40e   : > { %v14030_v46 = vpop.f32.mrb[191].mxu0  ;;  %14190 = vmatmul.mubr.msk.f32.gmra.mrb[224].mxu0 %vm519_vm3, %v18330_v44  ;;  %v18498_v45 = vld [vmem:[#allocation2 + $0x4e0] sm:$0xff] }
 0x40f   : > { %14192 = vmatprep.mubr.msk.f32.mxu0 %vm17138_vm1, %v22330_v1  ;;  %v18504_v46 = vld [vmem:[#allocation2 + $0x4e8] sm:$0xff] }
 0x412   : > { %14193 = vmatmul.mubr.msk.f32.gmra.mrb[36].mxu0 %vm519_vm3, %v18336_v47 }
 0x413   : > { %14195 = vmatprep.mubr.msk.f32.mxu0 %vm17138_vm1, %v22330_v1 }
 0x416   : > { %14196 = vmatmul.mubr.msk.f32.gmra.mrb[38].mxu0 %vm519_vm3, %v18342_v48 }
 0x417   : > { %14198 = vmatprep.mubr.msk.f32.mxu0 %vm17138_vm1, %v22330_v1 }
 0x419   : > { %v3172_v50 = vpop.f32.mrb[192].mxu0 }
 0x41a   : > { %v14039_v51 = vpop.f32.mrb[193].mxu0  ;;  %14199 = vmatmul.mubr.msk.f32.gmra.mrb[226].mxu0 %vm519_vm3, %v18348_v49  ;;  %v3921_v50 = vld [vmem:[#allocation2 + $0x30] sm:$0xff] }
 0x41b   : > { %14201 = vmatprep.mubr.msk.f32.mxu0 %vm17138_vm1, %v22330_v1  ;;  %v264_v51 = vld [vmem:[%s22325_s1 + $0x1c] sm:$0xf] }
 0x41e   : > { %14202 = vmatmul.mubr.msk.f32.gmra.mrb[42].mxu0 %vm519_vm3, %v18354_v52 }
 0x41f   : > { %14204 = vmatprep.mubr.msk.f32.mxu0 %vm17138_vm1, %v22330_v1 }
 0x422   : > { %14205 = vmatmul.mubr.msk.f32.gmra.mrb[44].mxu0 %vm519_vm3, %v18360_v53 }
 0x423   : > { %14207 = vmatprep.mubr.msk.f32.mxu0 %vm17138_vm1, %v22330_v1 }
 0x425   : > { %v3187_v55 = vpop.f32.mrb[194].mxu0 }
 0x426   : > { %v14048_v56 = vpop.f32.mrb[195].mxu0  ;;  %14208 = vmatmul.mubr.msk.f32.gmra.mrb[228].mxu0 %vm519_vm3, %v18366_v54 }
 0x427   : > { %14210 = vmatprep.mubr.msk.f32.mxu0 %vm17138_vm1, %v22330_v1 }
 0x42a   : > { %14211 = vmatmul.mubr.msk.f32.gmra.mrb[48].mxu0 %vm519_vm3, %v18372_v57 }
 0x42b   : > { %14213 = vmatprep.mubr.msk.f32.mxu0 %vm17138_vm1, %v22330_v1 }
 0x42e   : > { %14214 = vmatmul.mubr.msk.f32.gmra.mrb[50].mxu0 %vm519_vm3, %v18378_v58 }
 0x42f   : > { %14216 = vmatprep.mubr.msk.f32.mxu0 %vm17138_vm1, %v22330_v1 }
 0x431   : > { %v3202_v60 = vpop.f32.mrb[196].mxu0 }
 0x432   : > { %v14057_v61 = vpop.f32.mrb[197].mxu0  ;;  %14217 = vmatmul.mubr.msk.f32.gmra.mrb[230].mxu0 %vm519_vm3, %v18384_v59  ;;  %v3922_v60 = vld [vmem:[#allocation2 + $0x38] sm:$0xff] }
 0x433   : > { %14219 = vmatprep.mubr.msk.f32.mxu0 %vm17138_vm1, %v22330_v1  ;;  %v3923_v61 = vld [vmem:[#allocation2 + $0x40] sm:$0xff] }
 0x436   : > { %14220 = vmatmul.mubr.msk.f32.gmra.mrb[54].mxu0 %vm519_vm3, %v18390_v62 }
 0x437   : > { %14222 = vmatprep.mubr.msk.f32.mxu0 %vm17138_vm1, %v22330_v1 }
 0x43a   : > { %14223 = vmatmul.mubr.msk.f32.gmra.mrb[56].mxu0 %vm519_vm3, %v18396_v63 }
 0x43b   : > { %14225 = vmatprep.mubr.msk.f32.mxu0 %vm17138_vm1, %v22330_v1 }
 0x43d   : > { %v3217_v4 = vpop.f32.mrb[198].mxu0 }
 0x43e   : > { %v14066_v5 = vpop.f32.mrb[199].mxu0  ;;  %14226 = vmatmul.mubr.msk.f32.gmra.mrb[232].mxu0 %vm519_vm3, %v18402_v2  ;;  %v3924_v4 = vld [vmem:[#allocation2 + $0x48] sm:$0xff] }
 0x43f   : > { %14228 = vmatprep.mubr.msk.f32.mxu0 %vm17138_vm1, %v22330_v1 }
 0x442   : > { %14229 = vmatmul.mubr.msk.f32.gmra.mrb[60].mxu0 %vm519_vm3, %v18408_v6 }
 0x443   : > { %14231 = vmatprep.mubr.msk.f32.mxu0 %vm17138_vm1, %v22330_v1 }
 0x446   : > { %14232 = vmatmul.mubr.msk.f32.gmra.mrb[62].mxu0 %vm519_vm3, %v18414_v7 }
 0x447   : > { %14234 = vmatprep.mubr.msk.f32.mxu0 %vm17138_vm1, %v22330_v1 }
 0x449   : > { %v3232_v9 = vpop.f32.mrb[200].mxu0 }
 0x44a   : > { %v14075_v10 = vpop.f32.mrb[201].mxu0  ;;  %14235 = vmatmul.mubr.msk.f32.gmra.mrb[234].mxu0 %vm519_vm3, %v18420_v8 }
 0x44b   : > { %14237 = vmatprep.mubr.msk.f32.mxu0 %vm17138_vm1, %v22330_v1  ;;  %v3925_v10 = vld [vmem:[#allocation2 + $0x50] sm:$0xff] }
 0x44e   : > { %14238 = vmatmul.mubr.msk.f32.gmra.mrb[66].mxu0 %vm519_vm3, %v18426_v11 }
 0x44f   : > { %14240 = vmatprep.mubr.msk.f32.mxu0 %vm17138_vm1, %v22330_v1 }
 0x452   : > { %14241 = vmatmul.mubr.msk.f32.gmra.mrb[68].mxu0 %vm519_vm3, %v18432_v12 }
 0x453   : > { %14243 = vmatprep.mubr.msk.f32.mxu0 %vm17138_vm1, %v22330_v1 }
 0x455   : > { %v3247_v14 = vpop.f32.mrb[202].mxu0 }
 0x456   : > { %v14084_v15 = vpop.f32.mrb[203].mxu0  ;;  %14244 = vmatmul.mubr.msk.f32.gmra.mrb[236].mxu0 %vm519_vm3, %v18438_v13  ;;  %v3926_v14 = vld [vmem:[#allocation2 + $0x58] sm:$0xff] }
 0x457   : > { %14246 = vmatprep.mubr.msk.f32.mxu0 %vm17138_vm1, %v22330_v1  ;;  %v3927_v15 = vld [vmem:[#allocation2 + $0x60] sm:$0xff] }
 0x45a   : > { %14247 = vmatmul.mubr.msk.f32.gmra.mrb[72].mxu0 %vm519_vm3, %v18444_v17 }
 0x45b   : > { %14249 = vmatprep.mubr.msk.f32.mxu0 %vm17138_vm1, %v22330_v1 }
 0x45e   : > { %14250 = vmatmul.mubr.msk.f32.gmra.mrb[74].mxu0 %vm519_vm3, %v18450_v19 }
 0x45f   : > { %14252 = vmatprep.mubr.msk.f32.mxu0 %vm17138_vm1, %v22330_v1 }
 0x461   : > { %v3262_v21 = vpop.f32.mrb[204].mxu0 }
 0x462   : > { %v14093_v22 = vpop.f32.mrb[205].mxu0  ;;  %14253 = vmatmul.mubr.msk.f32.gmra.mrb[238].mxu0 %vm519_vm3, %v18456_v20  ;;  %v3928_v21 = vld [vmem:[#allocation2 + $0x68] sm:$0xff] }
 0x463   : > { %14255 = vmatprep.mubr.msk.f32.mxu0 %vm17138_vm1, %v22330_v1  ;;  %v3929_v22 = vld [vmem:[#allocation2 + $0x70] sm:$0xff] }
 0x466   : > { %14256 = vmatmul.mubr.msk.f32.gmra.mrb[78].mxu0 %vm519_vm3, %v18462_v23 }
 0x467   : > { %14258 = vmatprep.mubr.msk.f32.mxu0 %vm17138_vm1, %v22330_v1 }
 0x46a   : > { %14259 = vmatmul.mubr.msk.f32.gmra.mrb[80].mxu0 %vm519_vm3, %v18468_v24 }
 0x46b   : > { %14261 = vmatprep.mubr.msk.f32.mxu0 %vm17138_vm1, %v22330_v1 }
 0x46d   : > { %v3277_v0 = vpop.f32.mrb[206].mxu0 }
 0x46e   : > { %v14102_v31 = vpop.f32.mrb[207].mxu0  ;;  %14262 = vmatmul.mubr.msk.f32.gmra.mrb[240].mxu0 %vm519_vm3, %v18474_v26 }
 0x46f   : > { %14264 = vmatprep.mubr.msk.f32.mxu0 %vm17138_vm1, %v22330_v1 }
 0x472   : > { %14265 = vmatmul.mubr.msk.f32.gmra.mrb[84].mxu0 %vm519_vm3, %v18480_v32 }
 0x473   : > { %14267 = vmatprep.mubr.msk.f32.mxu0 %vm17138_vm1, %v22330_v1 }
 0x476   : > { %14268 = vmatmul.mubr.msk.f32.gmra.mrb[86].mxu0 %vm519_vm3, %v18486_v36 }
 0x477   : > { %14270 = vmatprep.mubr.msk.f32.mxu0 %vm17138_vm1, %v22330_v1 }
 0x479   : > { %v3292_v40 = vpop.f32.mrb[208].mxu0 }
 0x47a   : > { %v14111_v41 = vpop.f32.mrb[209].mxu0  ;;  %14271 = vmatmul.mubr.msk.f32.gmra.mrb[242].mxu0 %vm519_vm3, %v18492_v37  ;;  %v3930_v40 = vld [vmem:[#allocation2 + $0x78] sm:$0xff] }
 0x47b   : > { %14273 = vmatprep.mubr.msk.f32.mxu0 %vm17138_vm1, %v22330_v1  ;;  %v3931_v41 = vld [vmem:[#allocation2 + $0x80] sm:$0xff] }
 0x47e   : > { %14274 = vmatmul.mubr.msk.f32.gmra.mrb[90].mxu0 %vm519_vm3, %v18498_v45 }
 0x47f   : > { %14276 = vmatprep.mubr.msk.f32.mxu0 %vm17138_vm1, %v22330_v1 }
 0x482   : > { %14277 = vmatmul.mubr.msk.f32.gmra.mrb[92].mxu0 %vm519_vm3, %v18504_v46 }
 0x483   : > { %14281 = vmatprep.mubr.msk.f32.mxu0 %vm17138_vm1, %v22330_v1 }
 0x485   : > { %v3307_v55 = vpop.f32.mrb[210].mxu0 }
 0x486   : > { %v14120_v56 = vpop.f32.mrb[211].mxu0  ;;  %14282 = vmatmul.mubr.msk.f32.vlgmr.msra.gmra.mrb[0].mxu0 %vm519_vm3, %v3921_v50  ;;  %v3932_v50 = vld [vmem:[#allocation2 + $0x88] sm:$0xff] }
 0x487   : > { %14423 = vmatpush3.msk.msra.mxu0 %vm880_vm0, %v264_v51  ;;  %14284 = vmatprep.mubr.msk.f32.mxu0 %vm17138_vm1, %v22330_v1  ;;  %v3933_v56 = vld [vmem:[#allocation2 + $0x90] sm:$0xff] }
 0x488   : > { %14565 = vmatprep.subr.mxu0 %v22330_v1 }
 0x48a   : > { %14285 = vmatmul.mubr.msk.f32.gmra.mrb[2].mxu0 %vm519_vm3, %v3922_v60  ;;  %v3934_v60 = vld [vmem:[#allocation2 + $0x98] sm:$0xff] }
 0x48b   : > { %14287 = vmatprep.mubr.msk.f32.mxu0 %vm17138_vm1, %v22330_v1 }
 0x48e   : > { %14288 = vmatmul.mubr.msk.f32.gmra.mrb[244].mxu0 %vm519_vm3, %v3923_v61  ;;  %v3935_v61 = vld [vmem:[#allocation2 + $0xa0] sm:$0xff] }
 0x48f   : > { %14290 = vmatprep.mubr.msk.f32.mxu0 %vm17138_vm1, %v22330_v1 }
 0x491   : > { %v3322_v5 = vpop.f32.mrb[212].mxu0 }
 0x492   : > { %v14129_v9 = vpop.f32.mrb[213].mxu0  ;;  %14291 = vmatmul.mubr.msk.f32.gmra.mrb[6].mxu0 %vm519_vm3, %v3924_v4 }
 0x493   : > { %14293 = vmatprep.mubr.msk.f32.mxu0 %vm17138_vm1, %v22330_v1  ;;  %v3936_v9 = vld [vmem:[#allocation2 + $0xa8] sm:$0xff] }
 0x496   : > { %14294 = vmatmul.mubr.msk.f32.gmra.mrb[8].mxu0 %vm519_vm3, %v3925_v10  ;;  %v3937_v10 = vld [vmem:[#allocation2 + $0xb0] sm:$0xff] }
 0x497   : > { %14296 = vmatprep.mubr.msk.f32.mxu0 %vm17138_vm1, %v22330_v1 }
 0x49a   : > { %14297 = vmatmul.mubr.msk.f32.gmra.mrb[246].mxu0 %vm519_vm3, %v3926_v14  ;;  %v3938_v14 = vld [vmem:[#allocation2 + $0xb8] sm:$0xff] }
 0x49b   : > { %14299 = vmatprep.mubr.msk.f32.mxu0 %vm17138_vm1, %v22330_v1 }
 0x49e   : > { %14300 = vmatmul.mubr.msk.f32.gmra.mrb[12].mxu0 %vm519_vm3, %v3927_v15 }
 0x49f   : > { %14302 = vmatprep.mubr.msk.f32.mxu0 %vm17138_vm1, %v22330_v1 }
 0x4a2   : > { %14303 = vmatmul.mubr.msk.f32.gmra.mrb[14].mxu0 %vm519_vm3, %v3928_v21 }
 0x4a3   : > { %14305 = vmatprep.mubr.msk.f32.mxu0 %vm17138_vm1, %v22330_v1 }
 0x4a5   : > { %v3650_v0 = vpop.f32.mrb[214].mxu0 }
 0x4a6   : > { %v14146_v31 = vpop.f32.mrb[215].mxu0  ;;  %14306 = vmatmul.mubr.msk.f32.gmra.mrb[248].mxu0 %vm519_vm3, %v3929_v22  ;;  %v3939_v22 = vld [vmem:[#allocation2 + $0xc0] sm:$0xff]  ;;  %v3940_v0 = vld [vmem:[#allocation2 + $0xc8] sm:$0xff] }
 0x4a7   : > { %14308 = vmatprep.mubr.msk.f32.mxu0 %vm17138_vm1, %v22330_v1  ;;  %v3941_v31 = vld [vmem:[#allocation2 + $0xd0] sm:$0xff] }
 0x4aa   : > { %14309 = vmatmul.mubr.msk.f32.gmra.mrb[18].mxu0 %vm519_vm3, %v3930_v40 }
 0x4ab   : > { %14311 = vmatprep.mubr.msk.f32.mxu0 %vm17138_vm1, %v22330_v1 }
 0x4ae   : > { %14312 = vmatmul.mubr.msk.f32.gmra.mrb[20].mxu0 %vm519_vm3, %v3931_v41 }
 0x4af   : > { %14314 = vmatprep.mubr.msk.f32.mxu0 %vm17138_vm1, %v22330_v1 }
 0x4b1   : > { %v3665_v51 = vpop.f32.mrb[216].mxu0 }
 0x4b2   : > { %v14155_v55 = vpop.f32.mrb[217].mxu0  ;;  %14315 = vmatmul.mubr.msk.f32.gmra.mrb[250].mxu0 %vm519_vm3, %v3932_v50  ;;  %v3942_v50 = vld [vmem:[#allocation2 + $0xd8] sm:$0xff]  ;;  %v3943_v51 = vld [vmem:[#allocation2 + $0xe0] sm:$0xff] }
 0x4b3   : > { %14317 = vmatprep.mubr.msk.f32.mxu0 %vm17138_vm1, %v22330_v1  ;;  %v3944_v55 = vld [vmem:[#allocation2 + $0xe8] sm:$0xff] }
 0x4b6   : > { %14318 = vmatmul.mubr.msk.f32.gmra.mrb[24].mxu0 %vm519_vm3, %v3933_v56 }
 0x4b7   : > { %14320 = vmatprep.mubr.msk.f32.mxu0 %vm17138_vm1, %v22330_v1 }
 0x4ba   : > { %14321 = vmatmul.mubr.msk.f32.gmra.mrb[26].mxu0 %vm519_vm3, %v3934_v60 }
 0x4bb   : > { %14323 = vmatprep.mubr.msk.f32.mxu0 %vm17138_vm1, %v22330_v1 }
 0x4bd   : > { %v3680_v4 = vpop.f32.mrb[218].mxu0 }
 0x4be   : > { %v14164_v5 = vpop.f32.mrb[219].mxu0  ;;  %14324 = vmatmul.mubr.msk.f32.gmra.mrb[252].mxu0 %vm519_vm3, %v3935_v61  ;;  %v3945_v61 = vld [vmem:[#allocation2 + $0xf0] sm:$0xff]  ;;  %v3946_v4 = vld [vmem:[#allocation2 + $0xf8] sm:$0xff] }
 0x4bf   : > { %14326 = vmatprep.mubr.msk.f32.mxu0 %vm17138_vm1, %v22330_v1  ;;  %v3947_v5 = vld [vmem:[#allocation2 + $0x100] sm:$0xff] }
 0x4c2   : > { %14327 = vmatmul.mubr.msk.f32.gmra.mrb[30].mxu0 %vm519_vm3, %v3936_v9 }
 0x4c3   : > { %14329 = vmatprep.mubr.msk.f32.mxu0 %vm17138_vm1, %v22330_v1 }
 0x4c6   : > { %14330 = vmatmul.mubr.msk.f32.gmra.mrb[32].mxu0 %vm519_vm3, %v3937_v10 }
 0x4c7   : > { %14332 = vmatprep.mubr.msk.f32.mxu0 %vm17138_vm1, %v22330_v1 }
 0x4c9   : > { %v3695_v15 = vpop.f32.mrb[220].mxu0 }
 0x4ca   : > { %v14173_v21 = vpop.f32.mrb[221].mxu0  ;;  %14333 = vmatmul.mubr.msk.f32.gmra.mrb[254].mxu0 %vm519_vm3, %v3938_v14  ;;  %v3948_v14 = vld [vmem:[#allocation2 + $0x108] sm:$0xff]  ;;  %v3949_v15 = vld [vmem:[#allocation2 + $0x110] sm:$0xff] }
 0x4cb   : > { %14335 = vmatprep.mubr.msk.f32.mxu0 %vm17138_vm1, %v22330_v1  ;;  %v3950_v21 = vld [vmem:[#allocation2 + $0x118] sm:$0xff] }
 0x4ce   : > { %14336 = vmatmul.mubr.msk.f32.gmra.mrb[36].mxu0 %vm519_vm3, %v3939_v22 }
 0x4cf   : > { %14338 = vmatprep.mubr.msk.f32.mxu0 %vm17138_vm1, %v22330_v1 }
 0x4d2   : > { %14339 = vmatmul.mubr.msk.f32.gmra.mrb[38].mxu0 %vm519_vm3, %v3940_v0 }
 0x4d3   : > { %14341 = vmatprep.mubr.msk.f32.mxu0 %vm17138_vm1, %v22330_v1 }
 0x4d5   : > { %v3710_v40 = vpop.f32.mrb[222].mxu0 }
 0x4d6   : > { %v14182_v41 = vpop.f32.mrb[223].mxu0  ;;  %14342 = vmatmul.mubr.msk.f32.gmra.mrb[4].mxu0 %vm519_vm3, %v3941_v31  ;;  %v3951_v31 = vld [vmem:[#allocation2 + $0x120] sm:$0xff]  ;;  %v3952_v40 = vld [vmem:[#allocation2 + $0x128] sm:$0xff] }
 0x4d7   : > { %14344 = vmatprep.mubr.msk.f32.mxu0 %vm17138_vm1, %v22330_v1  ;;  %v3953_v41 = vld [vmem:[#allocation2 + $0x130] sm:$0xff] }
 0x4da   : > { %14345 = vmatmul.mubr.msk.f32.gmra.mrb[42].mxu0 %vm519_vm3, %v3942_v50 }
 0x4db   : > { %14347 = vmatprep.mubr.msk.f32.mxu0 %vm17138_vm1, %v22330_v1 }
 0x4de   : > { %14348 = vmatmul.mubr.msk.f32.gmra.mrb[44].mxu0 %vm519_vm3, %v3943_v51 }
 0x4df   : > { %14350 = vmatprep.mubr.msk.f32.mxu0 %vm17138_vm1, %v22330_v1 }
 0x4e1   : > { %v3725_v56 = vpop.f32.mrb[224].mxu0 }
 0x4e2   : > { %v14191_v60 = vpop.f32.mrb[225].mxu0  ;;  %14351 = vmatmul.mubr.msk.f32.gmra.mrb[10].mxu0 %vm519_vm3, %v3944_v55  ;;  %v3954_v55 = vld [vmem:[#allocation2 + $0x138] sm:$0xff]  ;;  %v3955_v56 = vld [vmem:[#allocation2 + $0x140] sm:$0xff] }
 0x4e3   : > { %14353 = vmatprep.mubr.msk.f32.mxu0 %vm17138_vm1, %v22330_v1  ;;  %v3956_v60 = vld [vmem:[#allocation2 + $0x148] sm:$0xff] }
 0x4e6   : > { %14354 = vmatmul.mubr.msk.f32.gmra.mrb[48].mxu0 %vm519_vm3, %v3945_v61 }
 0x4e7   : > { %14356 = vmatprep.mubr.msk.f32.mxu0 %vm17138_vm1, %v22330_v1 }
 0x4ea   : > { %14357 = vmatmul.mubr.msk.f32.gmra.mrb[50].mxu0 %vm519_vm3, %v3946_v4 }
 0x4eb   : > { %14359 = vmatprep.mubr.msk.f32.mxu0 %vm17138_vm1, %v22330_v1 }
 0x4ed   : > { %v3740_v9 = vpop.f32.mrb[226].mxu0 }
 0x4ee   : > { %v14200_v10 = vpop.f32.mrb[227].mxu0  ;;  %14360 = vmatmul.mubr.msk.f32.gmra.mrb[16].mxu0 %vm519_vm3, %v3947_v5  ;;  %v3957_v5 = vld [vmem:[#allocation2 + $0x150] sm:$0xff]  ;;  %v3958_v9 = vld [vmem:[#allocation2 + $0x158] sm:$0xff] }
 0x4ef   : > { %14362 = vmatprep.mubr.msk.f32.mxu0 %vm17138_vm1, %v22330_v1  ;;  %v3959_v10 = vld [vmem:[#allocation2 + $0x160] sm:$0xff] }
 0x4f2   : > { %14363 = vmatmul.mubr.msk.f32.gmra.mrb[54].mxu0 %vm519_vm3, %v3948_v14 }
 0x4f3   : > { %14365 = vmatprep.mubr.msk.f32.mxu0 %vm17138_vm1, %v22330_v1 }
 0x4f6   : > { %14366 = vmatmul.mubr.msk.f32.gmra.mrb[56].mxu0 %vm519_vm3, %v3949_v15 }
 0x4f7   : > { %14368 = vmatprep.mubr.msk.f32.mxu0 %vm17138_vm1, %v22330_v1 }
 0x4f9   : > { %v3755_v22 = vpop.f32.mrb[228].mxu0 }
 0x4fa   : > { %v14209_v0 = vpop.f32.mrb[229].mxu0  ;;  %14369 = vmatmul.mubr.msk.f32.gmra.mrb[22].mxu0 %vm519_vm3, %v3950_v21  ;;  %v3960_v21 = vld [vmem:[#allocation2 + $0x168] sm:$0xff]  ;;  %v3961_v22 = vld [vmem:[#allocation2 + $0x170] sm:$0xff] }
 0x4fb   : > { %14371 = vmatprep.mubr.msk.f32.mxu0 %vm17138_vm1, %v22330_v1  ;;  %v3962_v0 = vld [vmem:[#allocation2 + $0x178] sm:$0xff] }
 0x4fe   : > { %14372 = vmatmul.mubr.msk.f32.gmra.mrb[60].mxu0 %vm519_vm3, %v3951_v31 }
 0x4ff   : > { %14374 = vmatprep.mubr.msk.f32.mxu0 %vm17138_vm1, %v22330_v1 }
 0x502   : > { %14375 = vmatmul.mubr.msk.f32.gmra.mrb[62].mxu0 %vm519_vm3, %v3952_v40 }
 0x503   : > { %14377 = vmatprep.mubr.msk.f32.mxu0 %vm17138_vm1, %v22330_v1 }
 0x505   : > { %v3770_v50 = vpop.f32.mrb[230].mxu0 }
 0x506   : > { %v14218_v51 = vpop.f32.mrb[231].mxu0  ;;  %14378 = vmatmul.mubr.msk.f32.gmra.mrb[28].mxu0 %vm519_vm3, %v3953_v41  ;;  %v3963_v41 = vld [vmem:[#allocation2 + $0x180] sm:$0xff]  ;;  %v3964_v50 = vld [vmem:[#allocation2 + $0x188] sm:$0xff] }
 0x507   : > { %14380 = vmatprep.mubr.msk.f32.mxu0 %vm17138_vm1, %v22330_v1  ;;  %v3965_v51 = vld [vmem:[#allocation2 + $0x190] sm:$0xff] }
 0x50a   : > { %14381 = vmatmul.mubr.msk.f32.gmra.mrb[66].mxu0 %vm519_vm3, %v3954_v55 }
 0x50b   : > { %14383 = vmatprep.mubr.msk.f32.mxu0 %vm17138_vm1, %v22330_v1 }
 0x50e   : > { %14384 = vmatmul.mubr.msk.f32.gmra.mrb[68].mxu0 %vm519_vm3, %v3955_v56 }
 0x50f   : > { %14386 = vmatprep.mubr.msk.f32.mxu0 %vm17138_vm1, %v22330_v1 }
 0x511   : > { %v3785_v61 = vpop.f32.mrb[232].mxu0 }
 0x512   : > { %v14227_v4 = vpop.f32.mrb[233].mxu0  ;;  %14387 = vmatmul.mubr.msk.f32.gmra.mrb[34].mxu0 %vm519_vm3, %v3956_v60  ;;  %v3966_v60 = vld [vmem:[#allocation2 + $0x198] sm:$0xff]  ;;  %v3967_v61 = vld [vmem:[#allocation2 + $0x1a0] sm:$0xff] }
 0x513   : > { %14389 = vmatprep.mubr.msk.f32.mxu0 %vm17138_vm1, %v22330_v1  ;;  %v4459_v4 = vld [vmem:[#allocation2 + $0x1e0] sm:$0xff] }
 0x516   : > { %14390 = vmatmul.mubr.msk.f32.gmra.mrb[72].mxu0 %vm519_vm3, %v3957_v5  ;;  %v265_v5 = vld [vmem:[%s22325_s1 + $0x20] sm:$0xf] }
 0x517   : > { %14392 = vmatprep.mubr.msk.f32.mxu0 %vm17138_vm1, %v22330_v1 }
 0x51a   : > { %14393 = vmatmul.mubr.msk.f32.gmra.mrb[74].mxu0 %vm519_vm3, %v3958_v9 }
 0x51b   : > { %14395 = vmatprep.mubr.msk.f32.mxu0 %vm17138_vm1, %v22330_v1 }
 0x51d   : > { %v3800_v14 = vpop.f32.mrb[234].mxu0 }
 0x51e   : > { %v14236_v15 = vpop.f32.mrb[235].mxu0  ;;  %14396 = vmatmul.mubr.msk.f32.gmra.mrb[40].mxu0 %vm519_vm3, %v3959_v10  ;;  %v4460_v14 = vld [vmem:[#allocation2 + $0x1e8] sm:$0xff] }
 0x51f   : > { %14398 = vmatprep.mubr.msk.f32.mxu0 %vm17138_vm1, %v22330_v1  ;;  %v4461_v15 = vld [vmem:[#allocation2 + $0x1f0] sm:$0xff] }
 0x522   : > { %14399 = vmatmul.mubr.msk.f32.gmra.mrb[78].mxu0 %vm519_vm3, %v3960_v21  ;;  %v4462_v21 = vld [vmem:[#allocation2 + $0x1f8] sm:$0xff] }
 0x523   : > { %14401 = vmatprep.mubr.msk.f32.mxu0 %vm17138_vm1, %v22330_v1 }
 0x526   : > { %14402 = vmatmul.mubr.msk.f32.gmra.mrb[80].mxu0 %vm519_vm3, %v3961_v22 }
 0x527   : > { %14404 = vmatprep.mubr.msk.f32.mxu0 %vm17138_vm1, %v22330_v1 }
 0x529   : > { %v3815_v31 = vpop.f32.mrb[236].mxu0 }
 0x52a   : > { %v14245_v40 = vpop.f32.mrb[237].mxu0  ;;  %14405 = vmatmul.mubr.msk.f32.gmra.mrb[46].mxu0 %vm519_vm3, %v3962_v0  ;;  %v4463_v31 = vld [vmem:[#allocation2 + $0x200] sm:$0xff] }
 0x52b   : > { %14407 = vmatprep.mubr.msk.f32.mxu0 %vm17138_vm1, %v22330_v1  ;;  %v4464_v40 = vld [vmem:[#allocation2 + $0x208] sm:$0xff] }
 0x52e   : > { %14408 = vmatmul.mubr.msk.f32.gmra.mrb[84].mxu0 %vm519_vm3, %v3963_v41  ;;  %v4465_v41 = vld [vmem:[#allocation2 + $0x210] sm:$0xff] }
 0x52f   : > { %14410 = vmatprep.mubr.msk.f32.mxu0 %vm17138_vm1, %v22330_v1 }
 0x532   : > { %14411 = vmatmul.mubr.msk.f32.gmra.mrb[86].mxu0 %vm519_vm3, %v3964_v50  ;;  %v4466_v50 = vld [vmem:[#allocation2 + $0x218] sm:$0xff] }
 0x533   : > { %14413 = vmatprep.mubr.msk.f32.mxu0 %vm17138_vm1, %v22330_v1 }
 0x535   : > { %v3830_v55 = vpop.f32.mrb[238].mxu0 }
 0x536   : > { %v14254_v56 = vpop.f32.mrb[239].mxu0  ;;  %14414 = vmatmul.mubr.msk.f32.gmra.mrb[52].mxu0 %vm519_vm3, %v3965_v51  ;;  %v4467_v51 = vld [vmem:[#allocation2 + $0x220] sm:$0xff] }
 0x537   : > { %14416 = vmatprep.mubr.msk.f32.mxu0 %vm17138_vm1, %v22330_v1 }
 0x53a   : > { %14417 = vmatmul.mubr.msk.f32.gmra.mrb[90].mxu0 %vm519_vm3, %v3966_v60  ;;  %v4468_v60 = vld [vmem:[#allocation2 + $0x228] sm:$0xff] }
 0x53b   : > { %14419 = vmatprep.mubr.msk.f32.mxu0 %vm17138_vm1, %v22330_v1 }
 0x53e   : > { %14420 = vmatmul.mubr.msk.f32.gmra.mrb[92].mxu0 %vm519_vm3, %v3967_v61  ;;  %v4469_v61 = vld [vmem:[#allocation2 + $0x230] sm:$0xff] }
 0x53f   : > { %14424 = vmatprep.mubr.msk.f32.mxu0 %vm17138_vm1, %v22330_v1 }
 0x541   : > { %v3845_v9 = vpop.f32.mrb[240].mxu0 }
 0x542   : > { %v14263_v10 = vpop.f32.mrb[241].mxu0  ;;  %14425 = vmatmul.mubr.msk.f32.vlgmr.msra.gmra.mrb[0].mxu0 %vm519_vm3, %v4459_v4  ;;  %v4470_v4 = vld [vmem:[#allocation2 + $0x238] sm:$0xff] }
 0x543   : > { %14566 = vmatpush3.msk.msra.mxu0 %vm880_vm0, %v265_v5  ;;  %14427 = vmatprep.mubr.msk.f32.mxu0 %vm17138_vm1, %v22330_v1  ;;  %v4471_v10 = vld [vmem:[#allocation2 + $0x240] sm:$0xff] }
 0x546   : > { %14428 = vmatmul.mubr.msk.f32.gmra.mrb[2].mxu0 %vm519_vm3, %v4460_v14  ;;  %v4472_v14 = vld [vmem:[#allocation2 + $0x248] sm:$0xff] }
 0x547   : > { %14430 = vmatprep.mubr.msk.f32.mxu0 %vm17138_vm1, %v22330_v1 }
 0x54a   : > { %14431 = vmatmul.mubr.msk.f32.gmra.mrb[58].mxu0 %vm519_vm3, %v4461_v15  ;;  %v4473_v15 = vld [vmem:[#allocation2 + $0x250] sm:$0xff] }
 0x54b   : > { %14433 = vmatprep.mubr.msk.f32.mxu0 %vm17138_vm1, %v22330_v1 }
 0x54d   : > { %v3860_v22 = vpop.f32.mrb[242].mxu0 }
 0x54e   : > { %v14272_v0 = vpop.f32.mrb[243].mxu0  ;;  %14434 = vmatmul.mubr.msk.f32.gmra.mrb[6].mxu0 %vm519_vm3, %v4462_v21 }
 0x54f   : > { %14436 = vmatprep.mubr.msk.f32.mxu0 %vm17138_vm1, %v22330_v1  ;;  %v4474_v0 = vld [vmem:[#allocation2 + $0x258] sm:$0xff] }
 0x552   : > { %14437 = vmatmul.mubr.msk.f32.gmra.mrb[8].mxu0 %vm519_vm3, %v4463_v31  ;;  %v4475_v31 = vld [vmem:[#allocation2 + $0x260] sm:$0xff] }
 0x553   : > { %14439 = vmatprep.mubr.msk.f32.mxu0 %vm17138_vm1, %v22330_v1 }
 0x556   : > { %14440 = vmatmul.mubr.msk.f32.gmra.mrb[64].mxu0 %vm519_vm3, %v4464_v40  ;;  %v4476_v40 = vld [vmem:[#allocation2 + $0x268] sm:$0xff] }
 0x557   : > { %14442 = vmatprep.mubr.msk.f32.mxu0 %vm17138_vm1, %v22330_v1 }
 0x55a   : > { %14443 = vmatmul.mubr.msk.f32.gmra.mrb[12].mxu0 %vm519_vm3, %v4465_v41 }
 0x55b   : > { %14445 = vmatprep.mubr.msk.f32.mxu0 %vm17138_vm1, %v22330_v1 }
 0x55e   : > { %14446 = vmatmul.mubr.msk.f32.gmra.mrb[14].mxu0 %vm519_vm3, %v4466_v50 }
 0x55f   : > { %14448 = vmatprep.mubr.msk.f32.mxu0 %vm17138_vm1, %v22330_v1 }
 0x561   : > { %v4188_v55 = vpop.f32.mrb[244].mxu0 }
 0x562   : > { %v14289_v56 = vpop.f32.mrb[245].mxu0  ;;  %14449 = vmatmul.mubr.msk.f32.gmra.mrb[70].mxu0 %vm519_vm3, %v4467_v51  ;;  %v4477_v51 = vld [vmem:[#allocation2 + $0x270] sm:$0xff]  ;;  %v4478_v55 = vld [vmem:[#allocation2 + $0x278] sm:$0xff] }
 0x563   : > { %14451 = vmatprep.mubr.msk.f32.mxu0 %vm17138_vm1, %v22330_v1  ;;  %v4479_v56 = vld [vmem:[#allocation2 + $0x280] sm:$0xff] }
 0x566   : > { %14452 = vmatmul.mubr.msk.f32.gmra.mrb[18].mxu0 %vm519_vm3, %v4468_v60 }
 0x567   : > { %14454 = vmatprep.mubr.msk.f32.mxu0 %vm17138_vm1, %v22330_v1 }
 0x56a   : > { %14455 = vmatmul.mubr.msk.f32.gmra.mrb[20].mxu0 %vm519_vm3, %v4469_v61 }
 0x56b   : > { %14457 = vmatprep.mubr.msk.f32.mxu0 %vm17138_vm1, %v22330_v1 }
 0x56d   : > { %v4203_v5 = vpop.f32.mrb[246].mxu0 }
 0x56e   : > { %v14298_v9 = vpop.f32.mrb[247].mxu0  ;;  %14458 = vmatmul.mubr.msk.f32.gmra.mrb[76].mxu0 %vm519_vm3, %v4470_v4  ;;  %v4480_v4 = vld [vmem:[#allocation2 + $0x288] sm:$0xff]  ;;  %v4481_v5 = vld [vmem:[#allocation2 + $0x290] sm:$0xff] }
 0x56f   : > { %14460 = vmatprep.mubr.msk.f32.mxu0 %vm17138_vm1, %v22330_v1  ;;  %v4482_v9 = vld [vmem:[#allocation2 + $0x298] sm:$0xff] }
 0x572   : > { %14461 = vmatmul.mubr.msk.f32.gmra.mrb[24].mxu0 %vm519_vm3, %v4471_v10 }
 0x573   : > { %14463 = vmatprep.mubr.msk.f32.mxu0 %vm17138_vm1, %v22330_v1 }
 0x576   : > { %14464 = vmatmul.mubr.msk.f32.gmra.mrb[26].mxu0 %vm519_vm3, %v4472_v14 }
 0x577   : > { %14466 = vmatprep.mubr.msk.f32.mxu0 %vm17138_vm1, %v22330_v1 }
 0x579   : > { %v4218_v21 = vpop.f32.mrb[248].mxu0 }
 0x57a   : > { %v14307_v22 = vpop.f32.mrb[249].mxu0  ;;  %14467 = vmatmul.mubr.msk.f32.gmra.mrb[82].mxu0 %vm519_vm3, %v4473_v15  ;;  %v4483_v15 = vld [vmem:[#allocation2 + $0x2a0] sm:$0xff]  ;;  %v4484_v21 = vld [vmem:[#allocation2 + $0x2a8] sm:$0xff] }
 0x57b   : > { %14469 = vmatprep.mubr.msk.f32.mxu0 %vm17138_vm1, %v22330_v1  ;;  %v4485_v22 = vld [vmem:[#allocation2 + $0x2b0] sm:$0xff] }
 0x57e   : > { %14470 = vmatmul.mubr.msk.f32.gmra.mrb[30].mxu0 %vm519_vm3, %v4474_v0 }
 0x57f   : > { %14472 = vmatprep.mubr.msk.f32.mxu0 %vm17138_vm1, %v22330_v1 }
 0x582   : > { %14473 = vmatmul.mubr.msk.f32.gmra.mrb[32].mxu0 %vm519_vm3, %v4475_v31 }
 0x583   : > { %14475 = vmatprep.mubr.msk.f32.mxu0 %vm17138_vm1, %v22330_v1 }
 0x585   : > { %v4233_v41 = vpop.f32.mrb[250].mxu0 }
 0x586   : > { %v14316_v50 = vpop.f32.mrb[251].mxu0  ;;  %14476 = vmatmul.mubr.msk.f32.gmra.mrb[88].mxu0 %vm519_vm3, %v4476_v40  ;;  %v4486_v40 = vld [vmem:[#allocation2 + $0x2b8] sm:$0xff]  ;;  %v4487_v41 = vld [vmem:[#allocation2 + $0x2c0] sm:$0xff] }
 0x587   : > { %14478 = vmatprep.mubr.msk.f32.mxu0 %vm17138_vm1, %v22330_v1  ;;  %v4488_v50 = vld [vmem:[#allocation2 + $0x2c8] sm:$0xff] }
 0x58a   : > { %14479 = vmatmul.mubr.msk.f32.gmra.mrb[36].mxu0 %vm519_vm3, %v4477_v51 }
 0x58b   : > { %14481 = vmatprep.mubr.msk.f32.mxu0 %vm17138_vm1, %v22330_v1 }
 0x58e   : > { %14482 = vmatmul.mubr.msk.f32.gmra.mrb[38].mxu0 %vm519_vm3, %v4478_v55 }
 0x58f   : > { %14484 = vmatprep.mubr.msk.f32.mxu0 %vm17138_vm1, %v22330_v1 }
 0x591   : > { %v4248_v60 = vpop.f32.mrb[252].mxu0 }
 0x592   : > { %v14325_v61 = vpop.f32.mrb[253].mxu0  ;;  %14485 = vmatmul.mubr.msk.f32.gmra.mrb[94].mxu0 %vm519_vm3, %v4479_v56  ;;  %v4489_v56 = vld [vmem:[#allocation2 + $0x2d0] sm:$0xff]  ;;  %v4490_v60 = vld [vmem:[#allocation2 + $0x2d8] sm:$0xff] }
 0x593   : > { %14487 = vmatprep.mubr.msk.f32.mxu0 %vm17138_vm1, %v22330_v1  ;;  %v4491_v61 = vld [vmem:[#allocation2 + $0x2e0] sm:$0xff] }
 0x596   : > { %14488 = vmatmul.mubr.msk.f32.gmra.mrb[42].mxu0 %vm519_vm3, %v4480_v4 }
 0x597   : > { %14490 = vmatprep.mubr.msk.f32.mxu0 %vm17138_vm1, %v22330_v1 }
 0x59a   : > { %14491 = vmatmul.mubr.msk.f32.gmra.mrb[44].mxu0 %vm519_vm3, %v4481_v5 }
 0x59b   : > { %14493 = vmatprep.mubr.msk.f32.mxu0 %vm17138_vm1, %v22330_v1 }
 0x59d   : > { %v4263_v10 = vpop.f32.mrb[254].mxu0 }
 0x59e   : > { %v14334_v14 = vpop.f32.mrb[255].mxu0  ;;  %14494 = vmatmul.mubr.msk.f32.gmra.mrb[96].mxu0 %vm519_vm3, %v4482_v9  ;;  %v4492_v9 = vld [vmem:[#allocation2 + $0x2e8] sm:$0xff]  ;;  %v4493_v10 = vld [vmem:[#allocation2 + $0x2f0] sm:$0xff] }
 0x59f   : > { %14496 = vmatprep.mubr.msk.f32.mxu0 %vm17138_vm1, %v22330_v1  ;;  %v4494_v14 = vld [vmem:[#allocation2 + $0x2f8] sm:$0xff] }
 0x5a2   : > { %14497 = vmatmul.mubr.msk.f32.gmra.mrb[48].mxu0 %vm519_vm3, %v4483_v15 }
 0x5a3   : > { %14499 = vmatprep.mubr.msk.f32.mxu0 %vm17138_vm1, %v22330_v1 }
 0x5a6   : > { %14500 = vmatmul.mubr.msk.f32.gmra.mrb[50].mxu0 %vm519_vm3, %v4484_v21 }
 0x5a7   : > { %14502 = vmatprep.mubr.msk.f32.mxu0 %vm17138_vm1, %v22330_v1 }
 0x5a9   : > { %v4278_v0 = vpop.f32.mrb[4].mxu0 }
 0x5aa   : > { %v14343_v31 = vpop.f32.mrb[5].mxu0  ;;  %14503 = vmatmul.mubr.msk.f32.gmra.mrb[98].mxu0 %vm519_vm3, %v4485_v22  ;;  %v4495_v22 = vld [vmem:[#allocation2 + $0x300] sm:$0xff]  ;;  %v4496_v0 = vld [vmem:[#allocation2 + $0x308] sm:$0xff] }
 0x5ab   : > { %14505 = vmatprep.mubr.msk.f32.mxu0 %vm17138_vm1, %v22330_v1  ;;  %v4497_v31 = vld [vmem:[#allocation2 + $0x310] sm:$0xff] }
 0x5ae   : > { %14506 = vmatmul.mubr.msk.f32.gmra.mrb[54].mxu0 %vm519_vm3, %v4486_v40 }
 0x5af   : > { %14508 = vmatprep.mubr.msk.f32.mxu0 %vm17138_vm1, %v22330_v1 }
 0x5b2   : > { %14509 = vmatmul.mubr.msk.f32.gmra.mrb[56].mxu0 %vm519_vm3, %v4487_v41 }
 0x5b3   : > { %14511 = vmatprep.mubr.msk.f32.mxu0 %vm17138_vm1, %v22330_v1 }
 0x5b5   : > { %v4293_v51 = vpop.f32.mrb[10].mxu0 }
 0x5b6   : > { %v14352_v55 = vpop.f32.mrb[11].mxu0  ;;  %14512 = vmatmul.mubr.msk.f32.gmra.mrb[100].mxu0 %vm519_vm3, %v4488_v50  ;;  %v4498_v50 = vld [vmem:[#allocation2 + $0x318] sm:$0xff]  ;;  %v4499_v51 = vld [vmem:[#allocation2 + $0x320] sm:$0xff] }
 0x5b7   : > { %14514 = vmatprep.mubr.msk.f32.mxu0 %vm17138_vm1, %v22330_v1  ;;  %v4500_v55 = vld [vmem:[#allocation2 + $0x328] sm:$0xff] }
 0x5ba   : > { %14515 = vmatmul.mubr.msk.f32.gmra.mrb[60].mxu0 %vm519_vm3, %v4489_v56 }
 0x5bb   : > { %14517 = vmatprep.mubr.msk.f32.mxu0 %vm17138_vm1, %v22330_v1 }
 0x5be   : > { %14518 = vmatmul.mubr.msk.f32.gmra.mrb[62].mxu0 %vm519_vm3, %v4490_v60 }
 0x5bf   : > { %14520 = vmatprep.mubr.msk.f32.mxu0 %vm17138_vm1, %v22330_v1 }
 0x5c1   : > { %v4308_v4 = vpop.f32.mrb[16].mxu0 }
 0x5c2   : > { %v14361_v5 = vpop.f32.mrb[17].mxu0  ;;  %14521 = vmatmul.mubr.msk.f32.gmra.mrb[102].mxu0 %vm519_vm3, %v4491_v61  ;;  %v4501_v61 = vld [vmem:[#allocation2 + $0x330] sm:$0xff]  ;;  %v4503_v4 = vld [vmem:[#allocation2 + $0x340] sm:$0xff] }
 0x5c3   : > { %14523 = vmatprep.mubr.msk.f32.mxu0 %vm17138_vm1, %v22330_v1 }
 0x5c6   : > { %14524 = vmatmul.mubr.msk.f32.gmra.mrb[66].mxu0 %vm519_vm3, %v4492_v9 }
 0x5c7   : > { %14526 = vmatprep.mubr.msk.f32.mxu0 %vm17138_vm1, %v22330_v1 }
 0x5ca   : > { %14527 = vmatmul.mubr.msk.f32.gmra.mrb[68].mxu0 %vm519_vm3, %v4493_v10  ;;  %v4504_v10 = vld [vmem:[#allocation2 + $0x348] sm:$0xff] }
 0x5cb   : > { %14529 = vmatprep.mubr.msk.f32.mxu0 %vm17138_vm1, %v22330_v1 }
 0x5cd   : > { %v4323_v15 = vpop.f32.mrb[22].mxu0 }
 0x5ce   : > { %v14370_v21 = vpop.f32.mrb[23].mxu0  ;;  %14530 = vmatmul.mubr.msk.f32.gmra.mrb[104].mxu0 %vm519_vm3, %v4494_v14  ;;  %v4505_v14 = vld [vmem:[#allocation2 + $0x350] sm:$0xff] }
 0x5cf   : > { %14532 = vmatprep.mubr.msk.f32.mxu0 %vm17138_vm1, %v22330_v1 }
 0x5d2   : > { %14533 = vmatmul.mubr.msk.f32.gmra.mrb[72].mxu0 %vm519_vm3, %v4495_v22 }
 0x5d3   : > { %14535 = vmatprep.mubr.msk.f32.mxu0 %vm17138_vm1, %v22330_v1 }
 0x5d6   : > { %14536 = vmatmul.mubr.msk.f32.gmra.mrb[74].mxu0 %vm519_vm3, %v4496_v0 }
 0x5d7   : > { %14538 = vmatprep.mubr.msk.f32.mxu0 %vm17138_vm1, %v22330_v1 }
 0x5d9   : > { %v4338_v40 = vpop.f32.mrb[28].mxu0 }
 0x5da   : > { %v14379_v41 = vpop.f32.mrb[29].mxu0  ;;  %14539 = vmatmul.mubr.msk.f32.gmra.mrb[106].mxu0 %vm519_vm3, %v4497_v31 }
 0x5db   : > { %14541 = vmatprep.mubr.msk.f32.mxu0 %vm17138_vm1, %v22330_v1 }
 0x5de   : > { %14542 = vmatmul.mubr.msk.f32.gmra.mrb[78].mxu0 %vm519_vm3, %v4498_v50 }
 0x5df   : > { %14544 = vmatprep.mubr.msk.f32.mxu0 %vm17138_vm1, %v22330_v1 }
 0x5e2   : > { %14545 = vmatmul.mubr.msk.f32.gmra.mrb[80].mxu0 %vm519_vm3, %v4499_v51 }
 0x5e3   : > { %14547 = vmatprep.mubr.msk.f32.mxu0 %vm17138_vm1, %v22330_v1 }
 0x5e5   : > { %v4353_v56 = vpop.f32.mrb[34].mxu0 }
 0x5e6   : > { %v14388_v60 = vpop.f32.mrb[35].mxu0  ;;  %14548 = vmatmul.mubr.msk.f32.gmra.mrb[108].mxu0 %vm519_vm3, %v4500_v55 }
 0x5e7   : > { %14550 = vmatprep.mubr.msk.f32.mxu0 %vm17138_vm1, %v22330_v1 }
 0x5ea   : > { %14551 = vmatmul.mubr.msk.f32.gmra.mrb[84].mxu0 %vm519_vm3, %v4501_v61 }
 0x5eb   : > { %14553 = vmatprep.mubr.msk.f32.mxu0 %vm17138_vm1, %v22330_v1 }
 0x5ee   : > { %14554 = vmatmul.mubr.msk.f32.gmra.mrb[86].mxu0 %vm519_vm3, %v18226_v18 }
 0x5ef   : > { %14556 = vmatprep.mubr.msk.f32.mxu0 %vm17138_vm1, %v22330_v1 }
 0x5f1   : > { %v4368_v5 = vpop.f32.mrb[40].mxu0 }
 0x5f2   : > { %v14397_v9 = vpop.f32.mrb[41].mxu0  ;;  %14557 = vmatmul.mubr.msk.f32.gmra.mrb[110].mxu0 %vm519_vm3, %v4503_v4 }
 0x5f3   : > { %14559 = vmatprep.mubr.msk.f32.mxu0 %vm17138_vm1, %v22330_v1 }
 0x5f6   : > { %14560 = vmatmul.mubr.msk.f32.gmra.mrb[90].mxu0 %vm519_vm3, %v4504_v10 }
 0x5f7   : > { %14562 = vmatprep.mubr.msk.f32.mxu0 %vm17138_vm1, %v22330_v1 }
 0x5fa   : > { %14563 = vmatmul.mubr.msk.f32.gmra.mrb[92].mxu0 %vm519_vm3, %v4505_v14 }
 0x5fb   : > { %14567 = vmatprep.mubr.msk.f32.mxu0 %vm17138_vm1, %v22330_v1 }
 0x5fd   : > { %v4383_v18 = vpop.f32.mrb[46].mxu0 }
 0x5fe   : > { %v14406_v15 = vpop.f32.mrb[47].mxu0  ;;  %14568 = vmatmul.mubr.msk.f32.vlgmr.msra.gmra.mrb[0].mxu0 %vm519_vm3, %v18246_v25 }
 0x5ff   : > { %14570 = vmatprep.mubr.msk.f32.mxu0 %vm17138_vm1, %v22330_v1 }
 0x602   : > { %14571 = vmatmul.mubr.msk.f32.gmra.mrb[2].mxu0 %vm519_vm3, %v18252_v3 }
 0x603   : > { %14573 = vmatprep.mubr.msk.f32.mxu0 %vm17138_vm1, %v22330_v1 }
 0x606   : > { %14574 = vmatmul.mubr.msk.f32.gmra.mrb[112].mxu0 %vm519_vm3, %v18258_v27 }
 0x607   : > { %14576 = vmatprep.mubr.msk.f32.mxu0 %vm17138_vm1, %v22330_v1 }
 0x609   : > { %v4398_v21 = vpop.f32.mrb[52].mxu0 }
 0x60a   : > { %v14415_v22 = vpop.f32.mrb[53].mxu0  ;;  %14577 = vmatmul.mubr.msk.f32.gmra.mrb[6].mxu0 %vm519_vm3, %v18264_v28 }
 0x60b   : > { %14579 = vmatprep.mubr.msk.f32.mxu0 %vm17138_vm1, %v22330_v1 }
 0x60e   : > { %14580 = vmatmul.mubr.msk.f32.gmra.mrb[8].mxu0 %vm519_vm3, %v18270_v29 }
 0x60f   : > { %14582 = vmatprep.mubr.msk.f32.mxu0 %vm17138_vm1, %v22330_v1 }
 0x612   : > { %14583 = vmatmul.mubr.msk.f32.gmra.mrb[114].mxu0 %vm519_vm3, %v18276_v30 }
 0x613   : > { %14585 = vmatprep.mubr.msk.f32.mxu0 %vm17138_vm1, %v22330_v1 }
 0x616   : > { %14586 = vmatmul.mubr.msk.f32.gmra.mrb[12].mxu0 %vm519_vm3, %v18282_v33 }
 0x617   : > { %14588 = vmatprep.mubr.msk.f32.mxu0 %vm17138_vm1, %v22330_v1 }
 0x61a   : > { %14589 = vmatmul.mubr.msk.f32.gmra.mrb[14].mxu0 %vm519_vm3, %v18288_v34 }
 0x61b   : > { %14591 = vmatprep.mubr.msk.f32.mxu0 %vm17138_vm1, %v22330_v1 }
 0x61d   : > { %v4726_v25 = vpop.f32.mrb[58].mxu0 }
 0x61e   : > { %v14432_v3 = vpop.f32.mrb[59].mxu0  ;;  %14592 = vmatmul.mubr.msk.f32.gmra.mrb[116].mxu0 %vm519_vm3, %v18294_v35 }
 0x61f   : > { %14594 = vmatprep.mubr.msk.f32.mxu0 %vm17138_vm1, %v22330_v1 }
 0x622   : > { %14595 = vmatmul.mubr.msk.f32.gmra.mrb[18].mxu0 %vm519_vm3, %v18300_v16 }
 0x623   : > { %14597 = vmatprep.mubr.msk.f32.mxu0 %vm17138_vm1, %v22330_v1 }
 0x626   : > { %14598 = vmatmul.mubr.msk.f32.gmra.mrb[20].mxu0 %vm519_vm3, %v18306_v38 }
 0x627   : > { %14600 = vmatprep.mubr.msk.f32.mxu0 %vm17138_vm1, %v22330_v1 }
 0x629   : > { %v4741_v27 = vpop.f32.mrb[64].mxu0 }
 0x62a   : > { %v14441_v28 = vpop.f32.mrb[65].mxu0  ;;  %14601 = vmatmul.mubr.msk.f32.gmra.mrb[118].mxu0 %vm519_vm3, %v18312_v39 }
 0x62b   : > { %14603 = vmatprep.mubr.msk.f32.mxu0 %vm17138_vm1, %v22330_v1 }
 0x62e   : > { %14604 = vmatmul.mubr.msk.f32.gmra.mrb[24].mxu0 %vm519_vm3, %v18318_v42 }
 0x62f   : > { %14606 = vmatprep.mubr.msk.f32.mxu0 %vm17138_vm1, %v22330_v1 }
 0x632   : > { %14607 = vmatmul.mubr.msk.f32.gmra.mrb[26].mxu0 %vm519_vm3, %v18324_v43 }
 0x633   : > { %14609 = vmatprep.mubr.msk.f32.mxu0 %vm17138_vm1, %v22330_v1 }
 0x635   : > { %v4756_v29 = vpop.f32.mrb[70].mxu0 }
 0x636   : > { %v14450_v30 = vpop.f32.mrb[71].mxu0  ;;  %14610 = vmatmul.mubr.msk.f32.gmra.mrb[120].mxu0 %vm519_vm3, %v18330_v44 }
 0x637   : > { %14612 = vmatprep.mubr.msk.f32.mxu0 %vm17138_vm1, %v22330_v1 }
 0x63a   : > { %14613 = vmatmul.mubr.msk.f32.gmra.mrb[30].mxu0 %vm519_vm3, %v18336_v47 }
 0x63b   : > { %14615 = vmatprep.mubr.msk.f32.mxu0 %vm17138_vm1, %v22330_v1 }
 0x63e   : > { %14616 = vmatmul.mubr.msk.f32.gmra.mrb[32].mxu0 %vm519_vm3, %v18342_v48 }
 0x63f   : > { %14618 = vmatprep.mubr.msk.f32.mxu0 %vm17138_vm1, %v22330_v1 }
 0x641   : > { %v4771_v33 = vpop.f32.mrb[76].mxu0 }
 0x642   : > { %v14459_v34 = vpop.f32.mrb[77].mxu0  ;;  %14619 = vmatmul.mubr.msk.f32.gmra.mrb[122].mxu0 %vm519_vm3, %v18348_v49 }
 0x643   : > { %14621 = vmatprep.mubr.msk.f32.mxu0 %vm17138_vm1, %v22330_v1 }
 0x646   : > { %14622 = vmatmul.mubr.msk.f32.gmra.mrb[36].mxu0 %vm519_vm3, %v18354_v52 }
 0x647   : > { %14624 = vmatprep.mubr.msk.f32.mxu0 %vm17138_vm1, %v22330_v1 }
 0x64a   : > { %14625 = vmatmul.mubr.msk.f32.gmra.mrb[38].mxu0 %vm519_vm3, %v18360_v53 }
 0x64b   : > { %14627 = vmatprep.mubr.msk.f32.mxu0 %vm17138_vm1, %v22330_v1 }
 0x64d   : > { %v4786_v35 = vpop.f32.mrb[82].mxu0 }
 0x64e   : > { %v14468_v16 = vpop.f32.mrb[83].mxu0  ;;  %14628 = vmatmul.mubr.msk.f32.gmra.mrb[124].mxu0 %vm519_vm3, %v18366_v54 }
 0x64f   : > { %14630 = vmatprep.mubr.msk.f32.mxu0 %vm17138_vm1, %v22330_v1 }
 0x652   : > { %14631 = vmatmul.mubr.msk.f32.gmra.mrb[42].mxu0 %vm519_vm3, %v18372_v57 }
 0x653   : > { %14633 = vmatprep.mubr.msk.f32.mxu0 %vm17138_vm1, %v22330_v1 }
 0x656   : > { %14634 = vmatmul.mubr.msk.f32.gmra.mrb[44].mxu0 %vm519_vm3, %v18378_v58 }
 0x657   : > { %14636 = vmatprep.mubr.msk.f32.mxu0 %vm17138_vm1, %v22330_v1 }
 0x659   : > { %v4801_v38 = vpop.f32.mrb[88].mxu0 }
 0x65a   : > { %v14477_v39 = vpop.f32.mrb[89].mxu0  ;;  %14637 = vmatmul.mubr.msk.f32.gmra.mrb[126].mxu0 %vm519_vm3, %v18384_v59 }
 0x65b   : > { %14639 = vmatprep.mubr.msk.f32.mxu0 %vm17138_vm1, %v22330_v1 }
 0x65e   : > { %14640 = vmatmul.mubr.msk.f32.gmra.mrb[48].mxu0 %vm519_vm3, %v18390_v62  ;;  %v5041_v62 = vld [vmem:[#allocation2 + $0x4f0] sm:$0xff] }
 0x65f   : > { %14642 = vmatprep.mubr.msk.f32.mxu0 %vm17138_vm1, %v22330_v1 }
 0x662   : > { %14643 = vmatmul.mubr.msk.f32.gmra.mrb[50].mxu0 %vm519_vm3, %v18396_v63 }
 0x663   : > { %14645 = vmatprep.mubr.msk.f32.mxu0 %vm17138_vm1, %v22330_v1 }
 0x665   : > { %v4816_v42 = vpop.f32.mrb[94].mxu0 }
 0x666   : > { %v14486_v43 = vpop.f32.mrb[95].mxu0  ;;  %14646 = vmatmul.mubr.msk.f32.gmra.mrb[128].mxu0 %vm519_vm3, %v18402_v2 }
 0x667   : > { %14648 = vmatprep.mubr.msk.f32.mxu0 %vm17138_vm1, %v22330_v1 }
 0x66a   : > { %14649 = vmatmul.mubr.msk.f32.gmra.mrb[54].mxu0 %vm519_vm3, %v18408_v6  ;;  %v5042_v6 = vld [vmem:[#allocation2 + $0x4f8] sm:$0xff] }
 0x66b   : > { %14651 = vmatprep.mubr.msk.f32.mxu0 %vm17138_vm1, %v22330_v1 }
 0x66e   : > { %14652 = vmatmul.mubr.msk.f32.gmra.mrb[56].mxu0 %vm519_vm3, %v18414_v7  ;;  %v5043_v7 = vld [vmem:[#allocation2 + $0x500] sm:$0xff] }
 0x66f   : > { %14654 = vmatprep.mubr.msk.f32.mxu0 %vm17138_vm1, %v22330_v1 }
 0x671   : > { %v4831_v44 = vpop.f32.mrb[96].mxu0 }
 0x672   : > { %v14495_v47 = vpop.f32.mrb[97].mxu0  ;;  %14655 = vmatmul.mubr.msk.f32.gmra.mrb[130].mxu0 %vm519_vm3, %v18420_v8 }
 0x673   : > { %14657 = vmatprep.mubr.msk.f32.mxu0 %vm17138_vm1, %v22330_v1 }
 0x676   : > { %14658 = vmatmul.mubr.msk.f32.gmra.mrb[60].mxu0 %vm519_vm3, %v18426_v11 }
 0x677   : > { %14660 = vmatprep.mubr.msk.f32.mxu0 %vm17138_vm1, %v22330_v1 }
 0x67a   : > { %14661 = vmatmul.mubr.msk.f32.gmra.mrb[62].mxu0 %vm519_vm3, %v18432_v12 }
 0x67b   : > { %14663 = vmatprep.mubr.msk.f32.mxu0 %vm17138_vm1, %v22330_v1 }
 0x67d   : > { %v4846_v48 = vpop.f32.mrb[98].mxu0 }
 0x67e   : > { %v14504_v49 = vpop.f32.mrb[99].mxu0  ;;  %14664 = vmatmul.mubr.msk.f32.gmra.mrb[132].mxu0 %vm519_vm3, %v18438_v13 }
 0x67f   : > { %14666 = vmatprep.mubr.msk.f32.mxu0 %vm17138_vm1, %v22330_v1  ;;  %v19004_v49 = vld [vmem:[%s22326_s2] ss:$0 sm:$0xff] }
 0x682   : > { %14667 = vmatmul.mubr.msk.f32.gmra.mrb[66].mxu0 %vm519_vm3, %v18444_v17 }
 0x683   : > { %14669 = vmatprep.mubr.msk.f32.mxu0 %vm17138_vm1, %v22330_v1 }
 0x686   : > { %14670 = vmatmul.mubr.msk.f32.gmra.mrb[68].mxu0 %vm519_vm3, %v18450_v19 }
 0x687   : > { %14672 = vmatprep.mubr.msk.f32.mxu0 %vm17138_vm1, %v22330_v1 }
 0x689   : > { %v4861_v52 = vpop.f32.mrb[100].mxu0 }
 0x68a   : > { %v14513_v53 = vpop.f32.mrb[101].mxu0  ;;  %14673 = vmatmul.mubr.msk.f32.gmra.mrb[134].mxu0 %vm519_vm3, %v18456_v20 }
 0x68b   : > { %14675 = vmatprep.mubr.msk.f32.mxu0 %vm17138_vm1, %v22330_v1 }
 0x68e   : > { %14676 = vmatmul.mubr.msk.f32.gmra.mrb[72].mxu0 %vm519_vm3, %v18462_v23 }
 0x68f   : > { %14678 = vmatprep.mubr.msk.f32.mxu0 %vm17138_vm1, %v22330_v1 }
 0x692   : > { %14679 = vmatmul.mubr.msk.f32.gmra.mrb[74].mxu0 %vm519_vm3, %v18468_v24 }
 0x693   : > { %14681 = vmatprep.mubr.msk.f32.mxu0 %vm17138_vm1, %v22330_v1 }
 0x695   : > { %v4876_v54 = vpop.f32.mrb[102].mxu0 }
 0x696   : > { %v14522_v57 = vpop.f32.mrb[103].mxu0  ;;  %14682 = vmatmul.mubr.msk.f32.gmra.mrb[136].mxu0 %vm519_vm3, %v18474_v26 }
 0x697   : > { %14684 = vmatprep.mubr.msk.f32.mxu0 %vm17138_vm1, %v22330_v1 }
 0x69a   : > { %14685 = vmatmul.mubr.msk.f32.gmra.mrb[78].mxu0 %vm519_vm3, %v18480_v32 }
 0x69b   : > { %14687 = vmatprep.mubr.msk.f32.mxu0 %vm17138_vm1, %v22330_v1 }
 0x69e   : > { %14688 = vmatmul.mubr.msk.f32.gmra.mrb[80].mxu0 %vm519_vm3, %v18486_v36 }
 0x69f   : > { %14690 = vmatprep.mubr.msk.f32.mxu0 %vm17138_vm1, %v22330_v1 }
 0x6a1   : > { %v4891_v58 = vpop.f32.mrb[104].mxu0 }
 0x6a2   : > { %v14531_v59 = vpop.f32.mrb[105].mxu0  ;;  %14691 = vmatmul.mubr.msk.f32.gmra.mrb[138].mxu0 %vm519_vm3, %v18492_v37 }
 0x6a3   : > { %14693 = vmatprep.mubr.msk.f32.mxu0 %vm17138_vm1, %v22330_v1 }
 0x6a6   : > { %14694 = vmatmul.mubr.msk.f32.gmra.mrb[84].mxu0 %vm519_vm3, %v18498_v45 }
 0x6a7   : > { %14696 = vmatprep.mubr.msk.f32.mxu0 %vm17138_vm1, %v22330_v1 }
 0x6aa   : > { %14697 = vmatmul.mubr.msk.f32.gmra.mrb[86].mxu0 %vm519_vm3, %v18504_v46 }
 0x6ab   : > { %14699 = vmatprep.mubr.msk.f32.mxu0 %vm17138_vm1, %v22330_v1 }
 0x6ad   : > { %v4906_v63 = vpop.f32.mrb[106].mxu0 }
 0x6ae   : > { %v14540_v2 = vpop.f32.mrb[107].mxu0  ;;  %14700 = vmatmul.mubr.msk.f32.gmra.mrb[140].mxu0 %vm519_vm3, %v5041_v62 }
 0x6af   : > { %14702 = vmatprep.mubr.msk.f32.mxu0 %vm17138_vm1, %v22330_v1 }
 0x6b2   : > { %14703 = vmatmul.mubr.msk.f32.gmra.mrb[90].mxu0 %vm519_vm3, %v5042_v6 }
 0x6b3   : > { %14705 = vmatprep.mubr.msk.f32.mxu0 %vm17138_vm1, %v22330_v1 }
 0x6b6   : > { %14706 = vmatmul.mubr.msk.f32.gmra.mrb[92].mxu0 %vm519_vm3, %v5043_v7 }
 0x6b9   : > { %v4921_v8 = vpop.f32.mrb[108].mxu0 }
 0x6ba   : > { %v14549_v11 = vpop.f32.mrb[109].mxu0 }
 0x6c5   : > { %v4936_v12 = vpop.f32.mrb[110].mxu0 }
 0x6c6   : > { %v14558_v13 = vpop.f32.mrb[111].mxu0 }
 0x6d1   : > { %v5254_v17 = vpop.f32.mrb[0].mxu0 }
 0x6d2   : > { %v14569_v19 = vpop.f32.mrb[1].mxu0  ;;  %v19010_v54 = vadd.f32 %v19004_v49, %v5254_v17 }
 0x6d4   : > { %v5695_v2 = vmul.f32 %v19010_v54, %v19010_v54  ;;  %v5595_v13 = vsel %vm519_vm3, %v19010_v54, 0.0 }
 0x6d5   : > { %v5259_v20 = vpop.f32.mrb[2].mxu0 }
 0x6d6   : > { %v14572_v23 = vpop.f32.mrb[3].mxu0  ;;  %v19007_v53 = vadd.f32 %v19004_v49, %v5259_v20 }
 0x6d8   : > { %v5696_v62 = vmul.f32 %v19007_v53, %v19007_v53  ;;  %v5596_v7 = vsel %vm519_vm3, %v19007_v53, 0.0 }
 0x6d9   : > { %v5264_v24 = vpop.f32.mrb[112].mxu0 }
 0x6da   : > { %v14575_v26 = vpop.f32.mrb[113].mxu0  ;;  %v5743_v17 = vsel %vm519_vm3, %v5696_v62, 0.0  ;;  %v5742_v24 = vsel %vm519_vm3, %v5695_v2, 0.0 }
 0x6db   : > { %v5597_v26 = vadd.f32 %v5596_v7, %v5595_v13 }
 0x6dd   : > { %v5269_v32 = vpop.f32.mrb[6].mxu0 }
 0x6de   : > { %v14578_v36 = vpop.f32.mrb[7].mxu0  ;;  %v19015_v58 = vadd.f32 %v19004_v49, %v5269_v32 }
 0x6e0   : > { %v5698_v8 = vmul.f32 %v19015_v58, %v19015_v58  ;;  %v5600_v19 = vsel %vm519_vm3, %v19015_v58, 0.0 }
 0x6e1   : > { %v5274_v37 = vpop.f32.mrb[8].mxu0 }
 0x6e2   : > { %v14581_v45 = vpop.f32.mrb[9].mxu0  ;;  %v19020_v63 = vadd.f32 %v19004_v49, %v5274_v37  ;;  %v5747_v36 = vsel %vm519_vm3, %v5698_v8, 0.0 }
 0x6e4   : > { %v5699_v20 = vmul.f32 %v19020_v63, %v19020_v63  ;;  %v5602_v37 = vsel %vm519_vm3, %v19020_v63, 0.0 }
 0x6e5   : > { %v5279_v46 = vpop.f32.mrb[114].mxu0 }
 0x6e6   : > { %v14584_v0 = vpop.f32.mrb[115].mxu0 }
 0x6e9   : > { %v5284_v31 = vpop.f32.mrb[12].mxu0 }
 0x6ea   : > { %v14587_v40 = vpop.f32.mrb[13].mxu0  ;;  %v19031_v11 = vadd.f32 %v19004_v49, %v5284_v31  ;;  %v5744_v31 = vadd.f32 %v5743_v17, %v5742_v24 }
 0x6eb   : > { %v5601_v40 = vadd.f32 %v5600_v19, %v5597_v26 }
 0x6ec   : > { %v5701_v45 = vmul.f32 %v19031_v11, %v19031_v11 }
 0x6ed   : > { %v5289_v41 = vpop.f32.mrb[14].mxu0 }
 0x6ee   : > { %v14590_v50 = vpop.f32.mrb[15].mxu0  ;;  %v19041_v23 = vadd.f32 %v19004_v49, %v5289_v41  ;;  %v5749_v41 = vsel %vm519_vm3, %v5699_v20, 0.0 }
 0x6ef   : > { %v5606_v50 = vsel %vm519_vm3, %v19031_v11, 0.0 }
 0x6f1   : > { %v5294_v51 = vpop.f32.mrb[116].mxu0 }
 0x6f2   : > { %v14593_v55 = vpop.f32.mrb[117].mxu0  ;;  %v5702_v51 = vmul.f32 %v19041_v23, %v19041_v23 }
 0x6f5   : > { %v5299_v56 = vpop.f32.mrb[18].mxu0 }
 0x6f6   : > { %v14596_v60 = vpop.f32.mrb[19].mxu0  ;;  %v19050_v46 = vadd.f32 %v19004_v49, %v5299_v56  ;;  %v5753_v56 = vsel %vm519_vm3, %v5701_v45, 0.0 }
 0x6f7   : > { %v5748_v60 = vadd.f32 %v5747_v36, %v5744_v31 }
 0x6f9   : > { %v5304_v61 = vpop.f32.mrb[20].mxu0 }
 0x6fa   : > { %v14599_v4 = vpop.f32.mrb[21].mxu0  ;;  %v19058_v55 = vadd.f32 %v19004_v49, %v5304_v61 }
 0x6fb   : > { %v5603_v4 = vadd.f32 %v5602_v37, %v5601_v40 }
 0x6fd   : > { %v5309_v5 = vpop.f32.mrb[118].mxu0  ;;  %v5607_v61 = vadd.f32 %v5606_v50, %v5603_v4 }
 0x6fe   : > { %v14602_v9 = vpop.f32.mrb[119].mxu0 }
 0x6ff   : > { %v5608_v9 = vsel %vm519_vm3, %v19041_v23, 0.0 }
 0x701   : > { %v18985_v10 = vpop.f32.mrb[24].mxu0 }
 0x702   : > { %v14605_v14 = vpop.f32.mrb[25].mxu0 }
 0x703   : > { %v5704_v14 = vmul.f32 %v19050_v46, %v19050_v46 }
 0x705   : > { %v18987_v18 = vpop.f32.mrb[26].mxu0 }
 0x706   : > { %v14608_v15 = vpop.f32.mrb[27].mxu0 }
 0x707   : > { %v19069_v15 = vadd.f32 %v19004_v49, %v18985_v10  ;;  %v5759_v10 = vsel %vm519_vm3, %v5704_v14, 0.0 }
 0x709   : > { %v5324_v21 = vpop.f32.mrb[120].mxu0  ;;  %v5618_v62 = vsel %vm519_vm3, %v19069_v15, 0.0 }
 0x70a   : > { %v14611_v22 = vpop.f32.mrb[121].mxu0 }
 0x70b   : > { %v5750_v22 = vadd.f32 %v5749_v41, %v5748_v60 }
 0x70d   : > { %v18989_v25 = vpop.f32.mrb[30].mxu0 }
 0x70e   : > { %v14614_v3 = vpop.f32.mrb[31].mxu0 }
 0x70f   : > { %v5755_v3 = vsel %vm519_vm3, %v5702_v51, 0.0 }
 0x711   : > { %v18991_v27 = vpop.f32.mrb[32].mxu0 }
 0x712   : > { %v14617_v28 = vpop.f32.mrb[33].mxu0  ;;  %v19098_v7 = vadd.f32 %v19004_v49, %v18991_v27 }
 0x713   : > { %v5612_v28 = vsel %vm519_vm3, %v19050_v46, 0.0 }
 0x714   : > { %v5711_v37 = vmul.f32 %v19098_v7, %v19098_v7  ;;  %v5626_v41 = vsel %vm519_vm3, %v19098_v7, 0.0 }
 0x715   : > { %v5339_v29 = vpop.f32.mrb[122].mxu0 }
 0x716   : > { %v14620_v30 = vpop.f32.mrb[123].mxu0  ;;  %v5705_v29 = vmul.f32 %v19058_v55, %v19058_v55 }
 0x717   : > { %v19078_v30 = vadd.f32 %v19004_v49, %v18987_v18 }
 0x719   : > { %v18993_v33 = vpop.f32.mrb[36].mxu0  ;;  %v5708_v2 = vmul.f32 %v19078_v30, %v19078_v30  ;;  %v5620_v17 = vsel %vm519_vm3, %v19078_v30, 0.0 }
 0x71a   : > { %v14623_v34 = vpop.f32.mrb[37].mxu0  ;;  %v19107_v20 = vadd.f32 %v19004_v49, %v18993_v33 }
 0x71b   : > { %v5754_v34 = vadd.f32 %v5753_v56, %v5750_v22  ;;  %v5767_v27 = vsel %vm519_vm3, %v5708_v2, 0.0 }
 0x71c   : > { %v5713_v50 = vmul.f32 %v19107_v20, %v19107_v20 }
 0x71d   : > { %v18995_v35 = vpop.f32.mrb[38].mxu0 }
 0x71e   : > { %v14626_v16 = vpop.f32.mrb[39].mxu0  ;;  %v19116_v45 = vadd.f32 %v19004_v49, %v18995_v35  ;;  %v5773_v35 = vsel %vm519_vm3, %v5711_v37, 0.0 }
 0x71f   : > { %v5609_v16 = vadd.f32 %v5608_v9, %v5607_v61  ;;  %v5630_v9 = vsel %vm519_vm3, %v19107_v20, 0.0 }
 0x720   : > { %v5714_v14 = vmul.f32 %v19116_v45, %v19116_v45 }
 0x721   : > { %v5354_v38 = vpop.f32.mrb[124].mxu0  ;;  %v5613_v18 = vadd.f32 %v5612_v28, %v5609_v16  ;;  %v5632_v28 = vsel %vm519_vm3, %v19116_v45, 0.0 }
 0x722   : > { %v14629_v39 = vpop.f32.mrb[125].mxu0 }
 0x723   : > { %v5614_v39 = vsel %vm519_vm3, %v19058_v55, 0.0 }
 0x725   : > { %v18997_v42 = vpop.f32.mrb[42].mxu0 }
 0x726   : > { %v14632_v43 = vpop.f32.mrb[43].mxu0  ;;  %v19125_v51 = vadd.f32 %v19004_v49, %v18997_v42  ;;  %v5777_v42 = vsel %vm519_vm3, %v5713_v50, 0.0 }
 0x727   : > { %v5707_v43 = vmul.f32 %v19069_v15, %v19069_v15 }
 0x729   : > { %v18999_v44 = vpop.f32.mrb[44].mxu0 }
 0x72a   : > { %v14635_v47 = vpop.f32.mrb[45].mxu0 }
 0x72b   : > { %v19089_v47 = vadd.f32 %v19004_v49, %v18989_v25  ;;  %v5765_v25 = vsel %vm519_vm3, %v5707_v43, 0.0  ;;  %v5636_v43 = vsel %vm519_vm3, %v19125_v51, 0.0 }
 0x72d   : > { %v5369_v48 = vpop.f32.mrb[126].mxu0  ;;  %v5710_v19 = vmul.f32 %v19089_v47, %v19089_v47  ;;  %v5624_v36 = vsel %vm519_vm3, %v19089_v47, 0.0 }
 0x72e   : > { %v14638_v52 = vpop.f32.mrb[127].mxu0 }
 0x72f   : > { %v5756_v52 = vadd.f32 %v5755_v3, %v5754_v34  ;;  %v5771_v33 = vsel %vm519_vm3, %v5710_v19, 0.0 }
 0x731   : > { %v19012_v57 = vpop.f32.mrb[48].mxu0  ;;  %v5760_v8 = vadd.f32 %v5759_v10, %v5756_v52 }
 0x732   : > { %v14641_v59 = vpop.f32.mrb[49].mxu0  ;;  %v19143_v34 = vadd.f32 %v19004_v49, %v19012_v57 }
 0x733   : > { %v5761_v59 = vsel %vm519_vm3, %v5705_v29, 0.0  ;;  %v5716_v29 = vmul.f32 %v19125_v51, %v19125_v51 }
 0x734   : > { %v5762_v26 = vadd.f32 %v5761_v59, %v5760_v8  ;;  %v5719_v8 = vmul.f32 %v19143_v34, %v19143_v34  ;;  %v5642_v19 = vsel %vm519_vm3, %v19143_v34, 0.0 }
 0x735   : > { %v19024_v6 = vpop.f32.mrb[50].mxu0  ;;  %v5783_v57 = vsel %vm519_vm3, %v5716_v29, 0.0 }
 0x736   : > { %v14644_v12 = vpop.f32.mrb[51].mxu0  ;;  %v19152_v52 = vadd.f32 %v19004_v49, %v19024_v6 }
 0x737   : > { %v5615_v12 = vadd.f32 %v5614_v39, %v5613_v18 }
 0x738   : > { %v5644_v37 = vsel %vm519_vm3, %v19152_v52, 0.0 }
 0x739   : > { %v5384_v32 = vpop.f32.mrb[128].mxu0 }
 0x73a   : > { %v14647_v0 = vpop.f32.mrb[129].mxu0  ;;  %v5619_v32 = vadd.f32 %v5618_v62, %v5615_v12 }
 0x73b   : > { %v5766_v0 = vadd.f32 %v5765_v25, %v5762_v26 }
 0x73c   : > { %v5621_v31 = vadd.f32 %v5620_v17, %v5619_v32 }
 0x73d   : > { %v19060_v5 = vpop.f32.mrb[54].mxu0  ;;  %v5768_v4 = vadd.f32 %v5767_v27, %v5766_v0 }
 0x73e   : > { %v14650_v21 = vpop.f32.mrb[55].mxu0  ;;  %v5625_v56 = vadd.f32 %v5624_v36, %v5621_v31  ;;  %v19161_v12 = vadd.f32 %v19004_v49, %v19060_v5  ;;  %v5789_v5 = vsel %vm519_vm3, %v5719_v8, 0.0  ;;  %v266_v8 = vld [vmem:[%s22327_s3] sm:$0xf] }
 0x73f   : > { %v19134_v21 = vadd.f32 %v19004_v49, %v18999_v44  ;;  %v5772_v22 = vadd.f32 %v5771_v33, %v5768_v4  ;;  %v5779_v44 = vsel %vm519_vm3, %v5714_v14, 0.0  ;;  %14709 = vmatpush3.msk.msra.mxu1 %vm880_vm0, %v266_v8 }
 0x740   : > { %v5627_v61 = vadd.f32 %v5626_v41, %v5625_v56  ;;  %v5722_v0 = vmul.f32 %v19161_v12, %v19161_v12  ;;  %14851 = vmatprep.subr.mxu1 %v22330_v1 }
 0x741   : > { %v19080_v38 = vpop.f32.mrb[56].mxu0  ;;  %v5774_v10 = vadd.f32 %v5773_v35, %v5772_v22  ;;  %v5638_v2 = vsel %vm519_vm3, %v19134_v21, 0.0 }
 0x742   : > { %v14653_v48 = vpop.f32.mrb[57].mxu0  ;;  %v5631_v39 = vadd.f32 %v5630_v9, %v5627_v61  ;;  %v19170_v26 = vadd.f32 %v19004_v49, %v19080_v38 }
 0x743   : > { %v5717_v48 = vmul.f32 %v19134_v21, %v19134_v21  ;;  %v5778_v18 = vadd.f32 %v5777_v42, %v5774_v10 }
 0x744   : > { %v5633_v59 = vadd.f32 %v5632_v28, %v5631_v39  ;;  %v5723_v4 = vmul.f32 %v19170_v26, %v19170_v26  ;;  %v5650_v22 = vsel %vm519_vm3, %v19170_v26, 0.0 }
 0x745   : > { %v5399_v13 = vpop.f32.mrb[130].mxu0  ;;  %v5780_v25 = vadd.f32 %v5779_v44, %v5778_v18  ;;  %v5785_v6 = vsel %vm519_vm3, %v5717_v48, 0.0 }
 0x746   : > { %v14656_v24 = vpop.f32.mrb[131].mxu0  ;;  %v5637_v17 = vadd.f32 %v5636_v43, %v5633_v59 }
 0x747   : > { %v5720_v24 = vmul.f32 %v19152_v52, %v19152_v52  ;;  %v5784_v32 = vadd.f32 %v5783_v57, %v5780_v25 }
 0x748   : > { %v5639_v27 = vadd.f32 %v5638_v2, %v5637_v17 }
 0x749   : > { %v5404_v40 = vpop.f32.mrb[60].mxu0  ;;  %v5786_v41 = vadd.f32 %v5785_v6, %v5784_v32  ;;  %v5791_v38 = vsel %vm519_vm3, %v5720_v24, 0.0 }
 0x74a   : > { %v14659_v60 = vpop.f32.mrb[61].mxu0  ;;  %v19178_v31 = vadd.f32 %v19004_v49, %v5404_v40  ;;  %v5643_v50 = vadd.f32 %v5642_v19, %v5639_v27  ;;  %v5795_v40 = vsel %vm519_vm3, %v5722_v0, 0.0 }
 0x74b   : > { %v5648_v60 = vsel %vm519_vm3, %v19161_v12, 0.0  ;;  %v5790_v35 = vadd.f32 %v5789_v5, %v5786_v41 }
 0x74c   : > { %v5645_v9 = vadd.f32 %v5644_v37, %v5643_v50  ;;  %v5725_v61 = vmul.f32 %v19178_v31, %v19178_v31  ;;  %v5654_v10 = vsel %vm519_vm3, %v19178_v31, 0.0 }
 0x74d   : > { %v5409_v3 = vpop.f32.mrb[62].mxu0  ;;  %v5792_v29 = vadd.f32 %v5791_v38, %v5790_v35 }
 0x74e   : > { %v14662_v16 = vpop.f32.mrb[63].mxu0  ;;  %v19186_v56 = vadd.f32 %v19004_v49, %v5409_v3  ;;  %v5797_v3 = vsel %vm519_vm3, %v5723_v4, 0.0  ;;  %v5801_v59 = vsel %vm519_vm3, %v5725_v61, 0.0 }
 0x74f   : > { %v5649_v16 = vadd.f32 %v5648_v60, %v5645_v9  ;;  %v5796_v43 = vadd.f32 %v5795_v40, %v5792_v29 }
 0x750   : > { %v5726_v39 = vmul.f32 %v19186_v56, %v19186_v56 }
 0x751   : > { %v5414_v62 = vpop.f32.mrb[132].mxu0  ;;  %v5651_v48 = vadd.f32 %v5650_v22, %v5649_v16 }
 0x752   : > { %v14665_v13 = vpop.f32.mrb[133].mxu0  ;;  %v5656_v62 = vsel %vm519_vm3, %v19186_v56, 0.0  ;;  %v5803_v17 = vsel %vm519_vm3, %v5726_v39, 0.0 }
 0x753   : > { %v5798_v13 = vadd.f32 %v5797_v3, %v5796_v43  ;;  %v5655_v25 = vadd.f32 %v5654_v10, %v5651_v48 }
 0x755   : > { %v5419_v36 = vpop.f32.mrb[66].mxu0  ;;  %v5802_v24 = vadd.f32 %v5801_v59, %v5798_v13  ;;  %v5657_v32 = vadd.f32 %v5656_v62, %v5655_v25 }
 0x756   : > { %v14668_v33 = vpop.f32.mrb[67].mxu0  ;;  %v19194_v42 = vadd.f32 %v19004_v49, %v5419_v36 }
 0x757   : > { %v5804_v33 = vadd.f32 %v5803_v17, %v5802_v24 }
 0x758   : > { %v5728_v57 = vmul.f32 %v19194_v42, %v19194_v42  ;;  %v5660_v6 = vsel %vm519_vm3, %v19194_v42, 0.0 }
 0x759   : > { %v5424_v14 = vpop.f32.mrb[68].mxu0  ;;  %v5661_v41 = vadd.f32 %v5660_v6, %v5657_v32 }
 0x75a   : > { %v14671_v28 = vpop.f32.mrb[69].mxu0  ;;  %v19202_v44 = vadd.f32 %v19004_v49, %v5424_v14  ;;  %v5807_v36 = vsel %vm519_vm3, %v5728_v57, 0.0 }
 0x75b   : > { %v5808_v4 = vadd.f32 %v5807_v36, %v5804_v33 }
 0x75c   : > { %v5729_v19 = vmul.f32 %v19202_v44, %v19202_v44  ;;  %v5662_v5 = vsel %vm519_vm3, %v19202_v44, 0.0 }
 0x75d   : > { %v5429_v18 = vpop.f32.mrb[134].mxu0  ;;  %v5663_v35 = vadd.f32 %v5662_v5, %v5661_v41 }
 0x75e   : > { %v14674_v2 = vpop.f32.mrb[135].mxu0  ;;  %v5809_v50 = vsel %vm519_vm3, %v5729_v19, 0.0 }
 0x75f   : > { %v5810_v61 = vadd.f32 %v5809_v50, %v5808_v4 }
 0x761   : > { %v5434_v27 = vpop.f32.mrb[72].mxu0 }
 0x762   : > { %v19223_v37 = vadd.f32 %v19004_v49, %v5434_v27  ;;  %v14677_v0 = vpop.f32.mrb[73].mxu0 }
 0x764   : > { %v5666_v38 = vsel %vm519_vm3, %v19223_v37, 0.0  ;;  %v5731_v60 = vmul.f32 %v19223_v37, %v19223_v37 }
 0x765   : > { %v5439_v9 = vpop.f32.mrb[74].mxu0  ;;  %v5667_v28 = vadd.f32 %v5666_v38, %v5663_v35 }
 0x766   : > { %v5813_v14 = vsel %vm519_vm3, %v5731_v60, 0.0  ;;  %v19232_v40 = vadd.f32 %v19004_v49, %v5439_v9  ;;  %v14680_v22 = vpop.f32.mrb[75].mxu0 }
 0x767   : > { %v5814_v3 = vadd.f32 %v5813_v14, %v5810_v61 }
 0x768   : > { %v5668_v29 = vsel %vm519_vm3, %v19232_v40, 0.0  ;;  %v5732_v16 = vmul.f32 %v19232_v40, %v19232_v40 }
 0x769   : > { %v5669_v10 = vadd.f32 %v5668_v29, %v5667_v28  ;;  %v5444_v39 = vpop.f32.mrb[136].mxu0 }
 0x76a   : > { %v5815_v43 = vsel %vm519_vm3, %v5732_v16, 0.0  ;;  %v14683_v48 = vpop.f32.mrb[137].mxu0 }
 0x76b   : > { %v5816_v18 = vadd.f32 %v5815_v43, %v5814_v3 }
 0x76d   : > { %v5449_v59 = vpop.f32.mrb[78].mxu0 }
 0x76e   : > { %v19240_v62 = vadd.f32 %v19004_v49, %v5449_v59  ;;  %v14686_v57 = vpop.f32.mrb[79].mxu0 }
 0x770   : > { %v5672_v2 = vsel %vm519_vm3, %v19240_v62, 0.0  ;;  %v5734_v8 = vmul.f32 %v19240_v62, %v19240_v62 }
 0x771   : > { %v5673_v13 = vadd.f32 %v5672_v2, %v5669_v10  ;;  %v5454_v25 = vpop.f32.mrb[80].mxu0 }
 0x772   : > { %v5819_v17 = vsel %vm519_vm3, %v5734_v8, 0.0  ;;  %v19248_v6 = vadd.f32 %v19004_v49, %v5454_v25  ;;  %v14689_v19 = vpop.f32.mrb[81].mxu0 }
 0x773   : > { %v5820_v24 = vadd.f32 %v5819_v17, %v5816_v18 }
 0x774   : > { %v5674_v32 = vsel %vm519_vm3, %v19248_v6, 0.0  ;;  %v5735_v27 = vmul.f32 %v19248_v6, %v19248_v6 }
 0x775   : > { %v5675_v36 = vadd.f32 %v5674_v32, %v5673_v13  ;;  %v5459_v5 = vpop.f32.mrb[138].mxu0 }
 0x776   : > { %v5821_v0 = vsel %vm519_vm3, %v5735_v27, 0.0  ;;  %v14692_v33 = vpop.f32.mrb[139].mxu0 }
 0x777   : > { %v5822_v41 = vadd.f32 %v5821_v0, %v5820_v24 }
 0x779   : > { %v5464_v50 = vpop.f32.mrb[84].mxu0 }
 0x77a   : > { %v19256_v38 = vadd.f32 %v19004_v49, %v5464_v50  ;;  %v14695_v60 = vpop.f32.mrb[85].mxu0 }
 0x77c   : > { %v5678_v4 = vsel %vm519_vm3, %v19256_v38, 0.0  ;;  %v5737_v35 = vmul.f32 %v19256_v38, %v19256_v38 }
 0x77d   : > { %v5679_v9 = vadd.f32 %v5678_v4, %v5675_v36  ;;  %v5469_v14 = vpop.f32.mrb[86].mxu0 }
 0x77e   : > { %v5825_v22 = vsel %vm519_vm3, %v5737_v35, 0.0  ;;  %v19264_v61 = vadd.f32 %v19004_v49, %v5469_v14  ;;  %v14698_v28 = vpop.f32.mrb[87].mxu0 }
 0x77f   : > { %v5826_v29 = vadd.f32 %v5825_v22, %v5822_v41 }
 0x780   : > { %v5680_v16 = vsel %vm519_vm3, %v19264_v61, 0.0  ;;  %v5738_v3 = vmul.f32 %v19264_v61, %v19264_v61 }
 0x781   : > { %v5681_v10 = vadd.f32 %v5680_v16, %v5679_v9  ;;  %v5474_v39 = vpop.f32.mrb[140].mxu0 }
 0x782   : > { %v5827_v43 = vsel %vm519_vm3, %v5738_v3, 0.0  ;;  %v14701_v48 = vpop.f32.mrb[141].mxu0 }
 0x783   : > { %v5828_v18 = vadd.f32 %v5827_v43, %v5826_v29 }
 0x785   : > { %v5479_v59 = vpop.f32.mrb[90].mxu0 }
 0x786   : > { %v19272_v57 = vadd.f32 %v19004_v49, %v5479_v59  ;;  %v14704_v2 = vpop.f32.mrb[91].mxu0 }
 0x788   : > { %v5684_v8 = vsel %vm519_vm3, %v19272_v57, 0.0  ;;  %v5740_v13 = vmul.f32 %v19272_v57, %v19272_v57 }
 0x789   : > { %v5685_v25 = vadd.f32 %v5684_v8, %v5681_v10  ;;  %v5484_v17 = vpop.f32.mrb[92].mxu0 }
 0x78a   : > { %v5831_v19 = vsel %vm519_vm3, %v5740_v13, 0.0  ;;  %v16026_v24 = vadd.f32 %v19004_v49, %v5484_v17  ;;  %v14707_v32 = vpop.f32.mrb[93].mxu0 }
 0x78b   : > { %v5832_v27 = vadd.f32 %v5831_v19, %v5828_v18 }
 0x78c   : > { %v5686_v36 = vsel %vm519_vm3, %v16026_v24, 0.0  ;;  %v5741_v5 = vmul.f32 %v16026_v24, %v16026_v24 }
 0x78d   : > { %v5687_v0 = vadd.f32 %v5686_v36, %v5685_v25 }
 0x78e   : > { %v5833_v33 = vsel %vm519_vm3, %v5741_v5, 0.0 }
 0x78f   : > { %v5689_v41 = vrot.slane %v5687_v0, 4  ;;  %v5834_v50 = vadd.f32 %v5833_v33, %v5832_v27 }
 0x791   : > { %v5690_v60 = vadd.f32 %v5689_v41, %v5687_v0  ;;  %v5836_v4 = vrot.slane %v5834_v50, 4 }
 0x793   : > { %v5691_v35 = vrot.slane %v5690_v60, 2  ;;  %v5837_v9 = vadd.f32 %v5836_v4, %v5834_v50 }
 0x795   : > { %v5692_v14 = vadd.f32 %v5691_v35, %v5690_v60  ;;  %v5838_v22 = vrot.slane %v5837_v9, 2 }
 0x797   : > { %v5693_v28 = vrot.slane %v5692_v14, 1  ;;  %v5839_v29 = vadd.f32 %v5838_v22, %v5837_v9 }
 0x799   : > { %v5694_v16 = vadd.f32 %v5693_v28, %v5692_v14  ;;  %v5840_v49 = vrot.slane %v5839_v29, 1 }
 0x79b   : > { %v5841_v3 = vadd.f32 %v5840_v49, %v5839_v29  ;;  %v19282_v10 = vmul.f32 0.00390625, %v5694_v16 }
 0x79d   : > { %v5844_v39 = vmul.f32 0.00390625, %v5841_v3  ;;  %v5845_v43 = vmul.f32 %v19282_v10, %v19282_v10  ;;  %v5877_v48 = vsub.f32 %v19272_v57, %v19282_v10  ;;  %v5878_v18 = vsub.f32 %v16026_v24, %v19282_v10 }
 0x79e   : > { %v5871_v8 = vsub.f32 %v19223_v37, %v19282_v10  ;;  %v5872_v13 = vsub.f32 %v19232_v40, %v19282_v10  ;;  %v5873_v25 = vsub.f32 %v19240_v62, %v19282_v10  ;;  %v5874_v17 = vsub.f32 %v19248_v6, %v19282_v10 }
 0x79f   : > { %v5846_v59 = vsub.f32 %v5844_v39, %v5845_v43  ;;  %v5875_v57 = vsub.f32 %v19256_v38, %v19282_v10  ;;  %v5876_v19 = vsub.f32 %v19264_v61, %v19282_v10  ;;  %v5847_v24 = vsub.f32 %v19010_v54, %v19282_v10 }
 0x7a0   : > { %v5848_v32 = vsub.f32 %v19007_v53, %v19282_v10  ;;  %v5849_v27 = vsub.f32 %v19015_v58, %v19282_v10  ;;  %v5850_v36 = vsub.f32 %v19020_v63, %v19282_v10  ;;  %v5851_v5 = vsub.f32 %v19031_v11, %v19282_v10 }
 0x7a1   : > { %v5879_v2 = vadd.f32 1e-05, %v5846_v59  ;;  %v5852_v0 = vsub.f32 %v19041_v23, %v19282_v10  ;;  %v5853_v33 = vsub.f32 %v19050_v46, %v19282_v10  ;;  %v5854_v54 = vsub.f32 %v19058_v55, %v19282_v10 }
 0x7a2   : > { %v5855_v53 = vsub.f32 %v19069_v15, %v19282_v10  ;;  %v5856_v58 = vsub.f32 %v19078_v30, %v19282_v10  ;;  %v5857_v63 = vsub.f32 %v19089_v47, %v19282_v10  ;;  %v5858_v11 = vsub.f32 %v19098_v7, %v19282_v10 }
 0x7a3   : > { %17093 = vrsqrt.f32 %v5879_v2  ;;  %v5859_v23 = vsub.f32 %v19107_v20, %v19282_v10  ;;  %v5860_v46 = vsub.f32 %v19116_v45, %v19282_v10  ;;  %v5861_v55 = vsub.f32 %v19125_v51, %v19282_v10 }
 0x7a4   : > { %v5862_v15 = vsub.f32 %v19134_v21, %v19282_v10  ;;  %v5863_v30 = vsub.f32 %v19143_v34, %v19282_v10  ;;  %v5864_v47 = vsub.f32 %v19152_v52, %v19282_v10  ;;  %v5865_v7 = vsub.f32 %v19161_v12, %v19282_v10 }
 0x7a5   : > { %v5866_v20 = vsub.f32 %v19170_v26, %v19282_v10  ;;  %v5867_v45 = vsub.f32 %v19178_v31, %v19282_v10  ;;  %v5868_v51 = vsub.f32 %v19186_v56, %v19282_v10  ;;  %v5869_v21 = vsub.f32 %v19194_v42, %v19282_v10 }
 0x7a6   : > { %v5870_v34 = vsub.f32 %v19202_v44, %v19282_v10 }
 0x7ad   : > { %v17094_v41 = vpop.eup %17093 }
 0x7ae   : > { %v5911_v52 = vmul.f32 %v17094_v41, %v5877_v48  ;;  %v5912_v50 = vmul.f32 %v17094_v41, %v5878_v18  ;;  %v19349_v60 = vmul.f32 %v17094_v41, %v5847_v24  ;;  %v19351_v12 = vmul.f32 %v17094_v41, %v5848_v32 }
 0x7af   : > { %v19353_v26 = vmul.f32 %v17094_v41, %v5849_v27  ;;  %v19355_v4 = vmul.f32 %v17094_v41, %v5850_v36  ;;  %v19357_v31 = vmul.f32 %v17094_v41, %v5851_v5  ;;  %v19359_v35 = vmul.f32 %v17094_v41, %v5852_v0 }
 0x7b0   : > { %v5943_v56 = vmax.f32 %v5911_v52, 0.0  ;;  %v5944_v9 = vmax.f32 %v5912_v50, 0.0  ;;  %v19361_v42 = vmul.f32 %v17094_v41, %v5853_v33  ;;  %v19363_v14 = vmul.f32 %v17094_v41, %v5854_v54 }
 0x7b1   : > { %v19365_v44 = vmul.f32 %v17094_v41, %v5855_v53  ;;  %v19367_v22 = vmul.f32 %v17094_v41, %v5856_v58  ;;  %v19369_v28 = vmul.f32 %v17094_v41, %v5857_v63  ;;  %v19371_v29 = vmul.f32 %v17094_v41, %v5858_v11 }
 0x7b2   : > { %v6054_v16 = vrot.slane %v5943_v56, 7  ;;  %v6055_v49 = vrot.slane %v5944_v9, 7  ;;  %v6120_v3 = vrot.slane %v5944_v9, 5  ;;  %v5976_v39 = vrot.slane %v5943_v56, 1 }
 0x7b3   : > { %v19373_v43 = vmul.f32 %v17094_v41, %v5859_v23  ;;  %v19375_v48 = vmul.f32 %v17094_v41, %v5860_v46  ;;  %v19377_v18 = vmul.f32 %v17094_v41, %v5861_v55  ;;  %v19379_v59 = vmul.f32 %v17094_v41, %v5862_v15 }
 0x7b4   : > { %v6056_v2 = vsel %vm341_vm2, %v6054_v16, %v6055_v49  ;;  %v6168_v24 = vsel %vm341_vm2, %v6055_v49, %v6120_v3  ;;  %v19383_v32 = vmul.f32 %v17094_v41, %v5863_v30  ;;  %v19385_v27 = vmul.f32 %v17094_v41, %v5864_v47 }
 0x7b5   : > { %v6184_v36 = vsel %vm502_vm4, %v6168_v24, 0.0  ;;  %6234 = vst.msk [vmem:[#allocation2 + $0x188] sm:$0xff] %vm519_vm3, %v6056_v2  ;;  %6288 = vst.msk [vmem:[#allocation2 + $0x337] sm:$0xff] %vm519_vm3, %v6056_v2  ;;  %v19391_v5 = vmul.f32 %v17094_v41, %v5865_v7  ;;  %v19393_v0 = vmul.f32 %v17094_v41, %v5866_v20  ;;  %v19395_v33 = vmul.f32 %v17094_v41, %v5867_v45 }
 0x7b6   : > { %6342 = vst.msk [vmem:[#allocation2 + $0x4e6] sm:$0xff] %vm519_vm3, %v6056_v2  ;;  %6235 = vst.msk [vmem:[#allocation2 + $0x190] sm:$0xff] %vm519_vm3, %v6184_v36  ;;  %v19400_v54 = vmul.f32 %v17094_v41, %v5868_v51  ;;  %v19402_v53 = vmul.f32 %v17094_v41, %v5869_v21  ;;  %v19404_v58 = vmul.f32 %v17094_v41, %v5870_v34  ;;  %v5913_v62 = vmax.f32 %v19349_v60, 0.0 }
 0x7b7   : > { %6289 = vst.msk [vmem:[#allocation2 + $0x33f] sm:$0xff] %vm519_vm3, %v6184_v36  ;;  %6343 = vst.msk [vmem:[#allocation2 + $0x4ee] sm:$0xff] %vm519_vm3, %v6184_v36  ;;  %v19409_v63 = vmul.f32 %v17094_v41, %v5871_v8  ;;  %v19414_v11 = vmul.f32 %v17094_v41, %v5872_v13  ;;  %v19419_v23 = vmul.f32 %v17094_v41, %v5873_v25  ;;  %v22337_v13 = vmax.f32 %v19351_v12, 0.0 }
 0x7b8   : > { %v19424_v46 = vmul.f32 %v17094_v41, %v5874_v17  ;;  %v19429_v37 = vmul.f32 %v17094_v41, %v5875_v57  ;;  %v19434_v40 = vmul.f32 %v17094_v41, %v5876_v19  ;;  %v6152_v8 = vsel %vm341_vm2, %v5976_v39, %v6054_v16 }
 0x7b9   : > { %v5915_v6 = vmax.f32 %v19353_v26, 0.0  ;;  %v22340_v25 = vmax.f32 %v19355_v4, 0.0  ;;  %v5917_v17 = vmax.f32 %v19357_v31, 0.0  ;;  %v22338_v38 = vmax.f32 %v19359_v35, 0.0  ;;  %6233 = vst.msk [vmem:[#allocation2 + $0x180] sm:$0xff] %vm519_vm3, %v6152_v8  ;;  %6287 = vst.msk [vmem:[#allocation2 + $0x32f] sm:$0xff] %vm519_vm3, %v6152_v8 }
 0x7ba   : > { %6341 = vst.msk [vmem:[#allocation2 + $0x4de] sm:$0xff] %vm519_vm3, %v6152_v8  ;;  %v5919_v61 = vmax.f32 %v19361_v42, 0.0  ;;  %v22339_v10 = vmax.f32 %v19363_v14, 0.0  ;;  %v5921_v57 = vmax.f32 %v19365_v44, 0.0  ;;  %v22342_v19 = vmax.f32 %v19367_v22, 0.0 }
 0x7bb   : > { %v5923_v55 = vmax.f32 %v19369_v28, 0.0  ;;  %v22341_v15 = vmax.f32 %v19371_v29, 0.0  ;;  %v5925_v30 = vmax.f32 %v19373_v43, 0.0  ;;  %v22345_v47 = vmax.f32 %v19375_v48, 0.0 }
 0x7bc   : > { %v5927_v7 = vmax.f32 %v19377_v18, 0.0  ;;  %v22343_v20 = vmax.f32 %v19379_v59, 0.0  ;;  %v5929_v41 = vmax.f32 %v19383_v32, 0.0  ;;  %v22344_v45 = vmax.f32 %v19385_v27, 0.0 }
 0x7bd   : > { %v5931_v51 = vmax.f32 %v19391_v5, 0.0  ;;  %v22334_v34 = vmax.f32 %v19395_v33, 0.0  ;;  %v22332_v50 = vmax.f32 %v19402_v53, 0.0  ;;  %v22333_v26 = vmax.f32 %v19409_v63, 0.0 }
 0x7be   : > { %v22335_v56 = vmax.f32 %v19419_v23, 0.0  ;;  %v22336_v42 = vmax.f32 %v19429_v37, 0.0  ;;  %v19470_v28 = vrot.slane %v5913_v62, 1  ;;  %v19472_v16 = vrot.slane %v5915_v6, 1 }
 0x7bf   : > { %v19474_v49 = vrot.slane %v5917_v17, 1  ;;  %v19476_v3 = vrot.slane %v5919_v61, 1  ;;  %v19478_v39 = vrot.slane %v5921_v57, 1  ;;  %v19480_v43 = vrot.slane %v5923_v55, 1 }
 0x7c0   : > { %v19482_v18 = vrot.slane %v5925_v30, 1  ;;  %v19484_v2 = vrot.slane %v5927_v7, 1  ;;  %v19488_v24 = vrot.slane %v5929_v41, 1  ;;  %v19492_v36 = vrot.slane %v5931_v51, 1 }
 0x7c1   : > { %v19496_v8 = vrot.slane %v22334_v34, 1  ;;  %v19500_v1 = vrot.slane %v22332_v50, 1  ;;  %v19504_v44 = vrot.slane %v22333_v26, 1  ;;  %v19508_v9 = vrot.slane %v22335_v56, 1 }
 0x7c2   : > { %v19512_v31 = vrot.slane %v22336_v42, 1  ;;  %v19514_v60 = vrot.slane %v5913_v62, 7  ;;  %v19518_v52 = vrot.slane %v22337_v13, 7  ;;  %v19520_v50 = vrot.slane %v5915_v6, 7 }
 0x7c3   : > { %v19524_v26 = vrot.slane %v22340_v25, 7  ;;  %v19526_v34 = vrot.slane %v5917_v17, 7  ;;  %v19530_v56 = vrot.slane %v22338_v38, 7  ;;  %v19532_v42 = vrot.slane %v5919_v61, 7 }
 0x7c4   : > { %v19536_v62 = vrot.slane %v22339_v10, 7  ;;  %v19538_v13 = vrot.slane %v5921_v57, 7  ;;  %v6011_v6 = vsel %vm341_vm2, %v19514_v60, %v19518_v52  ;;  %v19548_v38 = vrot.slane %v22342_v19, 7 }
 0x7c5   : > { %v6014_v17 = vsel %vm341_vm2, %v19520_v50, %v19524_v26  ;;  %v19550_v61 = vrot.slane %v5923_v55, 7  ;;  %v6017_v10 = vsel %vm341_vm2, %v19526_v34, %v19530_v56  ;;  %v19560_v25 = vrot.slane %v22341_v15, 7  ;;  %6189 = vst.msk [vmem:[#allocation2 + $0x20] sm:$0xff] %vm519_vm3, %v6011_v6  ;;  %6243 = vst.msk [vmem:[#allocation2 + $0x1cf] sm:$0xff] %vm519_vm3, %v6011_v6 }
 0x7c6   : > { %v6020_v57 = vsel %vm341_vm2, %v19532_v42, %v19536_v62  ;;  %v19562_v21 = vrot.slane %v5925_v30, 7  ;;  %6186 = vst.msk [vmem:[#allocation2 + $0x8] sm:$0xff] %vm519_vm3, %v6014_v17  ;;  %6192 = vst.msk [vmem:[#allocation2 + $0x38] sm:$0xff] %vm519_vm3, %v6014_v17  ;;  %v6023_v55 = vsel %vm341_vm2, %v19538_v13, %v19548_v38  ;;  %v19578_v30 = vrot.slane %v22345_v47, 7 }
 0x7c7   : > { %6240 = vst.msk [vmem:[#allocation2 + $0x1b7] sm:$0xff] %vm519_vm3, %v6014_v17  ;;  %6246 = vst.msk [vmem:[#allocation2 + $0x1e7] sm:$0xff] %vm519_vm3, %v6014_v17  ;;  %v19580_v15 = vrot.slane %v5927_v7, 7  ;;  %v19584_v19 = vrot.slane %v22343_v20, 7  ;;  %v6026_v7 = vsel %vm341_vm2, %v19550_v61, %v19560_v25  ;;  %v19605_v20 = vrot.slane %v5931_v51, 7 }
 0x7c8   : > { %6294 = vst.msk [vmem:[#allocation2 + $0x366] sm:$0xff] %vm519_vm3, %v6014_v17  ;;  %6297 = vst.msk [vmem:[#allocation2 + $0x37e] sm:$0xff] %vm519_vm3, %v6011_v6  ;;  %v19597_v6 = vrot.slane %v5929_v41, 7  ;;  %v6029_v32 = vsel %vm341_vm2, %v19562_v21, %v19578_v30  ;;  %v22423_v41 = vmax.f32 %v19393_v0, 0.0  ;;  %v22424_v5 = vmax.f32 %v19395_v33, 0.0 }
 0x7c9   : > { %6300 = vst.msk [vmem:[#allocation2 + $0x396] sm:$0xff] %vm519_vm3, %v6014_v17  ;;  %22420 = vst [vmem:[#allocation3_spill] sm:$0xff] %v19578_v30  ;;  %v19601_v17 = vrot.slane %v22344_v45, 7  ;;  %v22425_v45 = vmax.f32 %v19400_v54, 0.0  ;;  %v22428_v33 = vmax.f32 %v19404_v58, 0.0 }
 0x7ca   : > { %22421 = vst [vmem:[#allocation4_spill] sm:$0xff] %v19584_v19  ;;  %6195 = vst.msk [vmem:[#allocation2 + $0x50] sm:$0xff] %vm519_vm3, %v6017_v10  ;;  %v19622_v51 = vrot.slane %v22424_v5, 7 }
 0x7cb   : > { %6198 = vst.msk [vmem:[#allocation2 + $0x68] sm:$0xff] %vm519_vm3, %v6020_v57  ;;  %6249 = vst.msk [vmem:[#allocation2 + $0x1ff] sm:$0xff] %vm519_vm3, %v6017_v10  ;;  %v19632_v47 = vrot.slane %v22425_v45, 7  ;;  %v19640_v5 = vrot.slane %v22428_v33, 7  ;;  %v22430_v45 = vmax.f32 %v19409_v63, 0.0 }
 0x7cc   : > { %6252 = vst.msk [vmem:[#allocation2 + $0x217] sm:$0xff] %vm519_vm3, %v6020_v57  ;;  %6303 = vst.msk [vmem:[#allocation2 + $0x3ae] sm:$0xff] %vm519_vm3, %v6017_v10  ;;  %v6032_v10 = vsel %vm341_vm2, %v19580_v15, %v19584_v19 }
 0x7cd   : > { %6306 = vst.msk [vmem:[#allocation2 + $0x3c6] sm:$0xff] %vm519_vm3, %v6020_v57  ;;  %22422 = vst [vmem:[#allocation5_spill] sm:$0xff] %v19601_v17  ;;  %v19618_v57 = vrot.slane %v22423_v41, 7  ;;  %v22427_v41 = vmax.f32 %v19402_v53, 0.0  ;;  %v6041_v63 = vsel %vm341_vm2, %v19622_v51, %v19632_v47 }
 0x7ce   : > { %6201 = vst.msk [vmem:[#allocation2 + $0x80] sm:$0xff] %vm519_vm3, %v6023_v55  ;;  %6255 = vst.msk [vmem:[#allocation2 + $0x22f] sm:$0xff] %vm519_vm3, %v6023_v55 }
 0x7cf   : > { %6309 = vst.msk [vmem:[#allocation2 + $0x3de] sm:$0xff] %vm519_vm3, %v6023_v55  ;;  %6204 = vst.msk [vmem:[#allocation2 + $0x98] sm:$0xff] %vm519_vm3, %v6026_v7  ;;  %v6035_v55 = vsel %vm341_vm2, %v19597_v6, %v19601_v17  ;;  %v19636_v19 = vrot.slane %v22427_v41, 7  ;;  %v6038_v53 = vsel %vm341_vm2, %v19605_v20, %v19618_v57  ;;  %v22431_v41 = vmax.f32 %v19414_v11, 0.0 }
 0x7d0   : > { %6258 = vst.msk [vmem:[#allocation2 + $0x247] sm:$0xff] %vm519_vm3, %v6026_v7  ;;  %6312 = vst.msk [vmem:[#allocation2 + $0x3f6] sm:$0xff] %vm519_vm3, %v6026_v7  ;;  %v19653_v7 = vrot.slane %v22430_v45, 7  ;;  %v22433_v17 = vmax.f32 %v19419_v23, 0.0  ;;  %v22435_v23 = vmax.f32 %v19429_v37, 0.0  ;;  %v22438_v37 = vmax.f32 %v19355_v4, 0.0 }
 0x7d1   : > { %22426 = vst [vmem:[#allocation6_spill] sm:$0xff] %v19632_v47  ;;  %22429 = vst [vmem:[#allocation7_spill] sm:$0xff] %v19640_v5  ;;  %v19657_v33 = vrot.slane %v22431_v41, 7  ;;  %v22436_v41 = vmax.f32 %v19434_v40, 0.0  ;;  %v22439_v4 = vmax.f32 %v19359_v35, 0.0 }
 0x7d2   : > { %6207 = vst.msk [vmem:[#allocation2 + $0xb0] sm:$0xff] %vm519_vm3, %v6029_v32  ;;  %6210 = vst.msk [vmem:[#allocation2 + $0xc8] sm:$0xff] %vm519_vm3, %v6032_v10  ;;  %v19661_v30 = vrot.slane %v22433_v17, 7  ;;  %v19678_v17 = vrot.slane %v22435_v23, 7  ;;  %v19696_v23 = vrot.slane %v22438_v37, 5  ;;  %v22441_v37 = vmax.f32 %v19367_v22, 0.0 }
 0x7d3   : > { %6261 = vst.msk [vmem:[#allocation2 + $0x25f] sm:$0xff] %vm519_vm3, %v6029_v32  ;;  %6264 = vst.msk [vmem:[#allocation2 + $0x277] sm:$0xff] %vm519_vm3, %v6032_v10  ;;  %v22444_v22 = vmax.f32 %v19379_v59, 0.0  ;;  %v22448_v59 = vmax.f32 %v19404_v58, 0.0 }
 0x7d4   : > { %6315 = vst.msk [vmem:[#allocation2 + $0x40e] sm:$0xff] %vm519_vm3, %v6029_v32  ;;  %6318 = vst.msk [vmem:[#allocation2 + $0x426] sm:$0xff] %vm519_vm3, %v6032_v10  ;;  %v6044_v32 = vsel %vm341_vm2, %v19636_v19, %v19640_v5  ;;  %v22434_v10 = vmax.f32 %v19424_v46, 0.0  ;;  %v19688_v5 = vrot.slane %v22436_v41, 7  ;;  %v22440_v41 = vmax.f32 %v19363_v14, 0.0 }
 0x7d5   : > { %22432 = vst [vmem:[#allocation8_spill] sm:$0xff] %v19657_v33  ;;  %6213 = vst.msk [vmem:[#allocation2 + $0xe0] sm:$0xff] %vm519_vm3, %v6035_v55  ;;  %v22443_v14 = vmax.f32 %v19375_v48, 0.0  ;;  %v22447_v48 = vmax.f32 %v19400_v54, 0.0  ;;  %v22450_v54 = vmax.f32 %v19424_v46, 0.0  ;;  %v6140_v46 = vsel %vm341_vm2, %v19476_v3, %v19532_v42 }
 0x7d6   : > { %6267 = vst.msk [vmem:[#allocation2 + $0x28f] sm:$0xff] %vm519_vm3, %v6035_v55  ;;  %6321 = vst.msk [vmem:[#allocation2 + $0x43e] sm:$0xff] %vm519_vm3, %v6035_v55  ;;  %v19674_v45 = vrot.slane %v22434_v10, 7  ;;  %v6047_v55 = vsel %vm341_vm2, %v19653_v7, %v19657_v33  ;;  %v22437_v10 = vmax.f32 %v19351_v12, 0.0  ;;  %v19717_v33 = vrot.slane %v22441_v37, 5 }
 0x7d7   : > { %6216 = vst.msk [vmem:[#allocation2 + $0xf8] sm:$0xff] %vm519_vm3, %v6038_v53  ;;  %6270 = vst.msk [vmem:[#allocation2 + $0x2a7] sm:$0xff] %vm519_vm3, %v6038_v53  ;;  %v6053_v35 = vsel %vm341_vm2, %v19678_v17, %v19688_v5  ;;  %v19768_v58 = vrot.slane %v22450_v54, 5  ;;  %v6148_v42 = vsel %vm341_vm2, %v19500_v1, %v19636_v19  ;;  %v6150_v1 = vsel %vm341_vm2, %v19508_v9, %v19661_v30  ;;  %v20018_v54 = vld [vmem:[#allocation2 + $0x38] sm:$0xff] }
 0x7d8   : > { %6324 = vst.msk [vmem:[#allocation2 + $0x456] sm:$0xff] %vm519_vm3, %v6038_v53  ;;  %v19692_v47 = vrot.slane %v22437_v10, 5  ;;  %6219 = vst.msk [vmem:[#allocation2 + $0x110] sm:$0xff] %vm519_vm3, %v6041_v63  ;;  %v6050_v12 = vsel %vm341_vm2, %v19661_v30, %v19674_v45  ;;  %v19709_v53 = vrot.slane %v22439_v4, 5  ;;  %v19713_v10 = vrot.slane %v22440_v41, 5 }
 0x7d9   : > { %6222 = vst.msk [vmem:[#allocation2 + $0x128] sm:$0xff] %vm519_vm3, %v6044_v32  ;;  %6273 = vst.msk [vmem:[#allocation2 + $0x2bf] sm:$0xff] %vm519_vm3, %v6041_v63  ;;  %v19731_v4 = vrot.slane %v22443_v14, 5  ;;  %v19735_v41 = vrot.slane %v22444_v22, 5  ;;  %v19750_v14 = vrot.slane %v22447_v48, 5  ;;  %v19754_v22 = vrot.slane %v22448_v59, 5 }
 0x7da   : > { %6276 = vst.msk [vmem:[#allocation2 + $0x2d7] sm:$0xff] %vm519_vm3, %v6044_v32  ;;  %6327 = vst.msk [vmem:[#allocation2 + $0x46e] sm:$0xff] %vm519_vm3, %v6041_v63  ;;  %v22442_v63 = vmax.f32 %v19371_v29, 0.0  ;;  %v22446_v29 = vmax.f32 %v19393_v0, 0.0  ;;  %v6151_v19 = vsel %vm341_vm2, %v19512_v31, %v19678_v17  ;;  %v6354_v48 = vld [vmem:[#allocation2 + $0x8] sm:$0xff] }
 0x7db   : > { %6330 = vst.msk [vmem:[#allocation2 + $0x486] sm:$0xff] %vm519_vm3, %v6044_v32  ;;  %6225 = vst.msk [vmem:[#allocation2 + $0x140] sm:$0xff] %vm519_vm3, %v6047_v55 }
 0x7dc   : > { %6279 = vst.msk [vmem:[#allocation2 + $0x2ef] sm:$0xff] %vm519_vm3, %v6047_v55  ;;  %6333 = vst.msk [vmem:[#allocation2 + $0x49e] sm:$0xff] %vm519_vm3, %v6047_v55  ;;  %v19727_v32 = vrot.slane %v22442_v63, 5  ;;  %v22445_v55 = vmax.f32 %v19385_v27, 0.0  ;;  %v19746_v63 = vrot.slane %v22446_v29, 5  ;;  %v22449_v27 = vmax.f32 %v19414_v11, 0.0 }
 0x7dd   : > { %6228 = vst.msk [vmem:[#allocation2 + $0x158] sm:$0xff] %vm519_vm3, %v6050_v12  ;;  %6282 = vst.msk [vmem:[#allocation2 + $0x307] sm:$0xff] %vm519_vm3, %v6050_v12  ;;  %v6137_v29 = vsel %vm341_vm2, %v19470_v28, %v19514_v60  ;;  %v6139_v11 = vsel %vm341_vm2, %v19474_v49, %v19526_v34  ;;  %v6143_v34 = vsel %vm341_vm2, %v19482_v18, %v19562_v21  ;;  %v22456_v18 = vld [vmem:[#allocation7_spill] sm:$0xff] }
 0x7de   : > { %6336 = vst.msk [vmem:[#allocation2 + $0x4b6] sm:$0xff] %vm519_vm3, %v6050_v12  ;;  %v19742_v37 = vrot.slane %v22445_v55, 5  ;;  %6231 = vst.msk [vmem:[#allocation2 + $0x170] sm:$0xff] %vm519_vm3, %v6053_v35  ;;  %v19764_v0 = vrot.slane %v22449_v27, 5  ;;  %v22451_v12 = vmax.f32 %v19434_v40, 0.0  ;;  %v6141_v40 = vsel %vm341_vm2, %v19478_v39, %v19538_v13  ;;  %v22455_v39 = vld [vmem:[#allocation6_spill] sm:$0xff] }
 0x7df   : > { %6237 = vst.msk [vmem:[#allocation2 + $0x1a0] sm:$0xff] %vm519_vm3, %v6053_v35  ;;  %6285 = vst.msk [vmem:[#allocation2 + $0x31f] sm:$0xff] %vm519_vm3, %v6053_v35  ;;  %v6144_v60 = vsel %vm341_vm2, %v19484_v2, %v19580_v15  ;;  %v6145_v13 = vsel %vm341_vm2, %v19488_v24, %v19597_v6  ;;  %v6146_v15 = vsel %vm341_vm2, %v19492_v36, %v19605_v20  ;;  %v22457_v24 = vld [vmem:[#allocation8_spill] sm:$0xff] }
 0x7e0   : > { %6291 = vst.msk [vmem:[#allocation2 + $0x34f] sm:$0xff] %vm519_vm3, %v6053_v35  ;;  %6339 = vst.msk [vmem:[#allocation2 + $0x4ce] sm:$0xff] %vm519_vm3, %v6053_v35  ;;  %v19772_v55 = vrot.slane %v22451_v12, 5  ;;  %v6147_v21 = vsel %vm341_vm2, %v19496_v8, %v19622_v51  ;;  %v6149_v28 = vsel %vm341_vm2, %v19504_v44, %v19653_v7  ;;  %v6153_v20 = vsel %vm341_vm2, %v19518_v52, %v19692_v47 }
 0x7e1   : > { %6345 = vst.msk [vmem:[#allocation2 + $0x4fe] sm:$0xff] %vm519_vm3, %v6053_v35  ;;  %v6138_v35 = vsel %vm341_vm2, %v19472_v16, %v19520_v50  ;;  %6188 = vst.msk [vmem:[#allocation2 + $0x18] sm:$0xff] %vm519_vm3, %v6137_v29  ;;  %v6142_v50 = vsel %vm341_vm2, %v19480_v43, %v19550_v61  ;;  %v6154_v44 = vsel %vm341_vm2, %v19524_v26, %v19696_v23  ;;  %v22454_v16 = vld [vmem:[#allocation5_spill] sm:$0xff]  ;;  %v6169_v61 = vsel %vm502_vm4, %v6153_v20, 0.0 }
 0x7e2   : > { %6242 = vst.msk [vmem:[#allocation2 + $0x1c7] sm:$0xff] %vm519_vm3, %v6137_v29  ;;  %6296 = vst.msk [vmem:[#allocation2 + $0x376] sm:$0xff] %vm519_vm3, %v6137_v29  ;;  %v6155_v47 = vsel %vm341_vm2, %v19530_v56, %v19709_v53  ;;  %v6156_v52 = vsel %vm341_vm2, %v19536_v62, %v19713_v10  ;;  %v6157_v26 = vsel %vm341_vm2, %v19548_v38, %v19717_v33  ;;  %v22453_v56 = vld [vmem:[#allocation4_spill] sm:$0xff]  ;;  %v6170_v30 = vsel %vm502_vm4, %v6154_v44, 0.0 }
 0x7e3   : > { %6185 = vst.msk [vmem:[#allocation2] sm:$0xff] %vm519_vm3, %v6138_v35  ;;  %6191 = vst.msk [vmem:[#allocation2 + $0x30] sm:$0xff] %vm519_vm3, %v6138_v35  ;;  %v6158_v31 = vsel %vm341_vm2, %v19560_v25, %v19727_v32  ;;  %v22452_v25 = vld [vmem:[#allocation3_spill] sm:$0xff]  ;;  %v6160_v9 = vsel %vm341_vm2, %v22453_v56, %v19735_v41  ;;  %v6161_v49 = vsel %vm341_vm2, %v22454_v16, %v19742_v37  ;;  %v6171_v6 = vsel %vm502_vm4, %v6155_v47, 0.0  ;;  %v20144_v47 = vld [vmem:[#allocation2 + $0xe0] sm:$0xff] }
 0x7e4   : > { %6194 = vst.msk [vmem:[#allocation2 + $0x48] sm:$0xff] %vm519_vm3, %v6139_v11  ;;  %6197 = vst.msk [vmem:[#allocation2 + $0x60] sm:$0xff] %vm519_vm3, %v6140_v46  ;;  %v6159_v38 = vsel %vm341_vm2, %v22452_v25, %v19731_v4  ;;  %v6162_v3 = vsel %vm341_vm2, %v19618_v57, %v19746_v63  ;;  %v6163_v43 = vsel %vm341_vm2, %v22455_v39, %v19750_v14  ;;  %v267_v57 = vld [vmem:[%s22327_s3 + $0x4] sm:$0xf]  ;;  %v6172_v51 = vsel %vm502_vm4, %v6156_v52, 0.0  ;;  %v20180_v56 = vld [vmem:[#allocation2 + $0x110] sm:$0xff] }
 0x7e5   : > { %6200 = vst.msk [vmem:[#allocation2 + $0x78] sm:$0xff] %vm519_vm3, %v6141_v40  ;;  %6245 = vst.msk [vmem:[#allocation2 + $0x1df] sm:$0xff] %vm519_vm3, %v6138_v35  ;;  %v6164_v2 = vsel %vm341_vm2, %v22456_v18, %v19754_v22  ;;  %v6165_v36 = vsel %vm341_vm2, %v22457_v24, %v19764_v0  ;;  %v6166_v8 = vsel %vm341_vm2, %v19674_v45, %v19768_v58  ;;  %v6173_v7 = vsel %vm502_vm4, %v6157_v26, 0.0  ;;  %v20000_v22 = vld [vmem:[#allocation2 + $0x20] sm:$0xff]  ;;  %v20234_v24 = vld [vmem:[#allocation2 + $0x158] sm:$0xff] }
 0x7e6   : > { %6239 = vst.msk [vmem:[#allocation2 + $0x1af] sm:$0xfe] %vm575_vm5, %v6138_v35  ;;  %v6167_v62 = vsel %vm341_vm2, %v19688_v5, %v19772_v55  ;;  %v6174_v33 = vsel %vm502_vm4, %v6158_v31, 0.0  ;;  %v6175_v45 = vsel %vm502_vm4, %v6159_v38, 0.0  ;;  %v6176_v17 = vsel %vm502_vm4, %v6160_v9, 0.0  ;;  %v20036_v55 = vld [vmem:[#allocation2 + $0x50] sm:$0xff] }
 0x7e7   : > { %6248 = vst.msk [vmem:[#allocation2 + $0x1f7] sm:$0xff] %vm519_vm3, %v6139_v11  ;;  %6251 = vst.msk [vmem:[#allocation2 + $0x20f] sm:$0xff] %vm519_vm3, %v6140_v46  ;;  %v6177_v23 = vsel %vm502_vm4, %v6161_v49, 0.0  ;;  %v6178_v53 = vsel %vm502_vm4, %v6162_v3, 0.0  ;;  %v6179_v10 = vsel %vm502_vm4, %v6163_v43, 0.0  ;;  %v6180_v32 = vsel %vm502_vm4, %v6164_v2, 0.0 }
 0x7e8   : > { %6254 = vst.msk [vmem:[#allocation2 + $0x227] sm:$0xff] %vm519_vm3, %v6141_v40  ;;  %6299 = vst.msk [vmem:[#allocation2 + $0x38e] sm:$0xff] %vm519_vm3, %v6138_v35  ;;  %v6181_v4 = vsel %vm502_vm4, %v6165_v36, 0.0  ;;  %v6182_v41 = vsel %vm502_vm4, %v6166_v8, 0.0  ;;  %v6183_v37 = vsel %vm502_vm4, %v6167_v62, 0.0  ;;  %v22458_v63 = vmov 0.0  }
 0x7e9   : > { %6293 = vst.msk [vmem:[#allocation2 + $0x35e] sm:$0xfc] %vm631_vm6, %v6138_v35  ;;  %v19994_v59 = vld [vmem:[#allocation2 + $0x18] sm:$0xff]  ;;  %v20198_v49 = vld [vmem:[#allocation2 + $0x128] sm:$0xff]  ;;  %v20216_v43 = vld [vmem:[#allocation2 + $0x140] sm:$0xff] }
 0x7ea   : > { %6302 = vst.msk [vmem:[#allocation2 + $0x3a6] sm:$0xff] %vm519_vm3, %v6139_v11  ;;  %6305 = vst.msk [vmem:[#allocation2 + $0x3be] sm:$0xff] %vm519_vm3, %v6140_v46  ;;  %v6353_v5 = vld [vmem:[#allocation2] sm:$0xff]  ;;  %v20012_v0 = vld [vmem:[#allocation2 + $0x30] sm:$0xff] }
 0x7eb   : > { %6308 = vst.msk [vmem:[#allocation2 + $0x3d6] sm:$0xff] %vm519_vm3, %v6141_v40  ;;  %6203 = vst.msk [vmem:[#allocation2 + $0x90] sm:$0xff] %vm519_vm3, %v6142_v50  ;;  %14711 = vmatmul.mubr.msk.f32.vlgmr.msra.gmra.mrb[0].mxu1 %vm519_vm3, %v6353_v5  ;;  %v20030_v12 = vld [vmem:[#allocation2 + $0x48] sm:$0xff]  ;;  %v20048_v35 = vld [vmem:[#allocation2 + $0x60] sm:$0xff] }
 0x7ec   : > { %6206 = vst.msk [vmem:[#allocation2 + $0xa8] sm:$0xff] %vm519_vm3, %v6143_v34  ;;  %6209 = vst.msk [vmem:[#allocation2 + $0xc0] sm:$0xff] %vm519_vm3, %v6144_v60  ;;  %14852 = vmatpush3.msk.msra.mxu1 %vm880_vm0, %v267_v57  ;;  %14713 = vmatprep.mubr.msk.f32.mxu1 %vm17138_vm1, %v22458_v63  ;;  %v20054_v11 = vld [vmem:[#allocation2 + $0x68] sm:$0xff]  ;;  %v20066_v40 = vld [vmem:[#allocation2 + $0x78] sm:$0xff] }
 0x7ed   : > { %6212 = vst.msk [vmem:[#allocation2 + $0xd8] sm:$0xff] %vm519_vm3, %v6145_v13  ;;  %6257 = vst.msk [vmem:[#allocation2 + $0x23f] sm:$0xff] %vm519_vm3, %v6142_v50  ;;  %14994 = vmatprep.subr.mxu1 %v22458_v63  ;;  %v20162_v31 = vld [vmem:[#allocation2 + $0xf8] sm:$0xff]  ;;  %v20252_v62 = vld [vmem:[#allocation2 + $0x170] sm:$0xff] }
 0x7ee   : > { %6260 = vst.msk [vmem:[#allocation2 + $0x257] sm:$0xff] %vm519_vm3, %v6143_v34  ;;  %6263 = vst.msk [vmem:[#allocation2 + $0x26f] sm:$0xff] %vm519_vm3, %v6144_v60 }
 0x7ef   : > { %6266 = vst.msk [vmem:[#allocation2 + $0x287] sm:$0xff] %vm519_vm3, %v6145_v13  ;;  %6311 = vst.msk [vmem:[#allocation2 + $0x3ee] sm:$0xff] %vm519_vm3, %v6142_v50  ;;  %14714 = vmatmul.mubr.msk.f32.gmra.mrb[2].mxu1 %vm519_vm3, %v6354_v48  ;;  %v20072_v50 = vld [vmem:[#allocation2 + $0x80] sm:$0xff]  ;;  %v20320_v48 = vld [vmem:[#allocation2 + $0x210] sm:$0xff] }
 0x7f0   : > { %6314 = vst.msk [vmem:[#allocation2 + $0x406] sm:$0xff] %vm519_vm3, %v6143_v34  ;;  %6317 = vst.msk [vmem:[#allocation2 + $0x41e] sm:$0xff] %vm519_vm3, %v6144_v60  ;;  %14716 = vmatprep.mubr.msk.f32.mxu1 %vm17138_vm1, %v22458_v63 }
 0x7f1   : > { %6320 = vst.msk [vmem:[#allocation2 + $0x436] sm:$0xff] %vm519_vm3, %v6145_v13  ;;  %6215 = vst.msk [vmem:[#allocation2 + $0xf0] sm:$0xff] %vm519_vm3, %v6146_v15  ;;  %v20090_v13 = vld [vmem:[#allocation2 + $0x98] sm:$0xff] }
 0x7f2   : > { %6218 = vst.msk [vmem:[#allocation2 + $0x108] sm:$0xff] %vm519_vm3, %v6147_v21  ;;  %6221 = vst.msk [vmem:[#allocation2 + $0x120] sm:$0xff] %vm519_vm3, %v6148_v42  ;;  %v20084_v60 = vld [vmem:[#allocation2 + $0x90] sm:$0xff] }
 0x7f3   : > { %6224 = vst.msk [vmem:[#allocation2 + $0x138] sm:$0xff] %vm519_vm3, %v6149_v28  ;;  %6269 = vst.msk [vmem:[#allocation2 + $0x29f] sm:$0xff] %vm519_vm3, %v6146_v15 }
 0x7f4   : > { %6272 = vst.msk [vmem:[#allocation2 + $0x2b7] sm:$0xff] %vm519_vm3, %v6147_v21  ;;  %6275 = vst.msk [vmem:[#allocation2 + $0x2cf] sm:$0xff] %vm519_vm3, %v6148_v42  ;;  %v20138_v44 = vld [vmem:[#allocation2 + $0xd8] sm:$0xff] }
 0x7f5   : > { %6278 = vst.msk [vmem:[#allocation2 + $0x2e7] sm:$0xff] %vm519_vm3, %v6149_v28  ;;  %6323 = vst.msk [vmem:[#allocation2 + $0x44e] sm:$0xff] %vm519_vm3, %v6146_v15 }
 0x7f6   : > { %6326 = vst.msk [vmem:[#allocation2 + $0x466] sm:$0xff] %vm519_vm3, %v6147_v21  ;;  %6329 = vst.msk [vmem:[#allocation2 + $0x47e] sm:$0xff] %vm519_vm3, %v6148_v42  ;;  %v20102_v21 = vld [vmem:[#allocation2 + $0xa8] sm:$0xff]  ;;  %v20108_v42 = vld [vmem:[#allocation2 + $0xb0] sm:$0xff] }
 0x7f7   : > { %6332 = vst.msk [vmem:[#allocation2 + $0x496] sm:$0xff] %vm519_vm3, %v6149_v28  ;;  %6227 = vst.msk [vmem:[#allocation2 + $0x150] sm:$0xff] %vm519_vm3, %v6150_v1 }
 0x7f8   : > { %6230 = vst.msk [vmem:[#allocation2 + $0x168] sm:$0xff] %vm519_vm3, %v6151_v19  ;;  %6236 = vst.msk [vmem:[#allocation2 + $0x198] sm:$0xff] %vm519_vm3, %v6151_v19  ;;  %v20156_v26 = vld [vmem:[#allocation2 + $0xf0] sm:$0xff] }
 0x7f9   : > { %6281 = vst.msk [vmem:[#allocation2 + $0x2ff] sm:$0xff] %vm519_vm3, %v6150_v1  ;;  %6284 = vst.msk [vmem:[#allocation2 + $0x317] sm:$0xff] %vm519_vm3, %v6151_v19  ;;  %v20174_v38 = vld [vmem:[#allocation2 + $0x108] sm:$0xff]  ;;  %v20192_v16 = vld [vmem:[#allocation2 + $0x120] sm:$0xff] }
 0x7fa   : > { %6290 = vst.msk [vmem:[#allocation2 + $0x347] sm:$0xff] %vm519_vm3, %v6151_v19  ;;  %6335 = vst.msk [vmem:[#allocation2 + $0x4ae] sm:$0xff] %vm519_vm3, %v6150_v1  ;;  %v20120_v1 = vld [vmem:[#allocation2 + $0xc0] sm:$0xff]  ;;  %v20210_v39 = vld [vmem:[#allocation2 + $0x138] sm:$0xff] }
 0x7fb   : > { %6338 = vst.msk [vmem:[#allocation2 + $0x4c6] sm:$0xff] %vm519_vm3, %v6151_v19  ;;  %6344 = vst.msk [vmem:[#allocation2 + $0x4f6] sm:$0xff] %vm519_vm3, %v6151_v19  ;;  %v20126_v19 = vld [vmem:[#allocation2 + $0xc8] sm:$0xff] }
 0x7fc   : > { %6187 = vst.msk [vmem:[#allocation2 + $0x10] sm:$0xff] %vm519_vm3, %v6170_v30  ;;  %6190 = vst.msk [vmem:[#allocation2 + $0x28] sm:$0xff] %vm519_vm3, %v6169_v61 }
 0x7fd   : > { %6193 = vst.msk [vmem:[#allocation2 + $0x40] sm:$0xff] %vm519_vm3, %v6170_v30  ;;  %6196 = vst.msk [vmem:[#allocation2 + $0x58] sm:$0xff] %vm519_vm3, %v6171_v6 }
 0x7fe   : > { %6241 = vst.msk [vmem:[#allocation2 + $0x1bf] sm:$0xff] %vm519_vm3, %v6170_v30  ;;  %6244 = vst.msk [vmem:[#allocation2 + $0x1d7] sm:$0xff] %vm519_vm3, %v6169_v61  ;;  %v20228_v2 = vld [vmem:[#allocation2 + $0x150] sm:$0xff] }
 0x7ff   : > { %6247 = vst.msk [vmem:[#allocation2 + $0x1ef] sm:$0xff] %vm519_vm3, %v6170_v30  ;;  %6250 = vst.msk [vmem:[#allocation2 + $0x207] sm:$0xff] %vm519_vm3, %v6171_v6  ;;  %v20246_v8 = vld [vmem:[#allocation2 + $0x168] sm:$0xff] }
 0x800   : > { %6295 = vst.msk [vmem:[#allocation2 + $0x36e] sm:$0xff] %vm519_vm3, %v6170_v30  ;;  %6298 = vst.msk [vmem:[#allocation2 + $0x386] sm:$0xff] %vm519_vm3, %v6169_v61  ;;  %v268_v61 = vld [vmem:[%s22327_s3 + $0x8] sm:$0xf] }
 0x801   : > { %6301 = vst.msk [vmem:[#allocation2 + $0x39e] sm:$0xff] %vm519_vm3, %v6170_v30  ;;  %6304 = vst.msk [vmem:[#allocation2 + $0x3b6] sm:$0xff] %vm519_vm3, %v6171_v6  ;;  %v6891_v30 = vld [vmem:[#allocation2 + $0x1b0] sm:$0xff] }
 0x802   : > { %6199 = vst.msk [vmem:[#allocation2 + $0x70] sm:$0xff] %vm519_vm3, %v6172_v51  ;;  %6202 = vst.msk [vmem:[#allocation2 + $0x88] sm:$0xff] %vm519_vm3, %v6173_v7 }
 0x803   : > { %6205 = vst.msk [vmem:[#allocation2 + $0xa0] sm:$0xff] %vm519_vm3, %v6174_v33  ;;  %6208 = vst.msk [vmem:[#allocation2 + $0xb8] sm:$0xff] %vm519_vm3, %v6175_v45  ;;  %v6355_v14 = vld [vmem:[#allocation2 + $0x10] sm:$0xff]  ;;  %v20006_v27 = vld [vmem:[#allocation2 + $0x28] sm:$0xff] }
 0x804   : > { %6253 = vst.msk [vmem:[#allocation2 + $0x21f] sm:$0xff] %vm519_vm3, %v6172_v51  ;;  %6256 = vst.msk [vmem:[#allocation2 + $0x237] sm:$0xff] %vm519_vm3, %v6173_v7  ;;  %14717 = vmatmul.mubr.msk.f32.gmra.mrb[4].mxu1 %vm519_vm3, %v6355_v14  ;;  %v20024_v58 = vld [vmem:[#allocation2 + $0x40] sm:$0xff]  ;;  %v20042_v29 = vld [vmem:[#allocation2 + $0x58] sm:$0xff] }
 0x805   : > { %6259 = vst.msk [vmem:[#allocation2 + $0x24f] sm:$0xff] %vm519_vm3, %v6174_v33  ;;  %6262 = vst.msk [vmem:[#allocation2 + $0x267] sm:$0xff] %vm519_vm3, %v6175_v45  ;;  %14719 = vmatprep.mubr.msk.f32.mxu1 %vm17138_vm1, %v22458_v63  ;;  %v6892_v6 = vld [vmem:[#allocation2 + $0x1b8] sm:$0xff]  ;;  %v6893_v57 = vld [vmem:[#allocation2 + $0x1c0] sm:$0xff] }
 0x806   : > { %6307 = vst.msk [vmem:[#allocation2 + $0x3ce] sm:$0xff] %vm519_vm3, %v6172_v51  ;;  %6310 = vst.msk [vmem:[#allocation2 + $0x3e6] sm:$0xff] %vm519_vm3, %v6173_v7  ;;  %v20272_v51 = vld [vmem:[#allocation2 + $0x1c8] sm:$0xff]  ;;  %v20278_v7 = vld [vmem:[#allocation2 + $0x1d0] sm:$0xff] }
 0x807   : > { %6313 = vst.msk [vmem:[#allocation2 + $0x3fe] sm:$0xff] %vm519_vm3, %v6174_v33  ;;  %6316 = vst.msk [vmem:[#allocation2 + $0x416] sm:$0xff] %vm519_vm3, %v6175_v45  ;;  %v20284_v33 = vld [vmem:[#allocation2 + $0x1d8] sm:$0xff]  ;;  %v6897_v45 = vld [vmem:[#allocation2 + $0x1e0] sm:$0xff] }
 0x808   : > { %6211 = vst.msk [vmem:[#allocation2 + $0xd0] sm:$0xff] %vm519_vm3, %v6176_v17  ;;  %6214 = vst.msk [vmem:[#allocation2 + $0xe8] sm:$0xff] %vm519_vm3, %v6177_v23  ;;  %14720 = vmatmul.mubr.msk.f32.gmra.mrb[6].mxu1 %vm519_vm3, %v19994_v59  ;;  %v6898_v5 = vld [vmem:[#allocation2 + $0x1e8] sm:$0xff] }
 0x809   : > { %6217 = vst.msk [vmem:[#allocation2 + $0x100] sm:$0xff] %vm519_vm3, %v6178_v53  ;;  %6220 = vst.msk [vmem:[#allocation2 + $0x118] sm:$0xff] %vm519_vm3, %v6179_v10  ;;  %14722 = vmatprep.mubr.msk.f32.mxu1 %vm17138_vm1, %v22458_v63  ;;  %v20060_v46 = vld [vmem:[#allocation2 + $0x70] sm:$0xff]  ;;  %v20078_v34 = vld [vmem:[#allocation2 + $0x88] sm:$0xff] }
 0x80a   : > { %6265 = vst.msk [vmem:[#allocation2 + $0x27f] sm:$0xff] %vm519_vm3, %v6176_v17  ;;  %6268 = vst.msk [vmem:[#allocation2 + $0x297] sm:$0xff] %vm519_vm3, %v6177_v23  ;;  %v20096_v15 = vld [vmem:[#allocation2 + $0xa0] sm:$0xff]  ;;  %v20114_v28 = vld [vmem:[#allocation2 + $0xb8] sm:$0xff] }
 0x80b   : > { %6271 = vst.msk [vmem:[#allocation2 + $0x2af] sm:$0xff] %vm519_vm3, %v6178_v53  ;;  %6274 = vst.msk [vmem:[#allocation2 + $0x2c7] sm:$0xff] %vm519_vm3, %v6179_v10  ;;  %v20326_v14 = vld [vmem:[#allocation2 + $0x218] sm:$0xff] }
 0x80c   : > { %6319 = vst.msk [vmem:[#allocation2 + $0x42e] sm:$0xff] %vm519_vm3, %v6176_v17  ;;  %6322 = vst.msk [vmem:[#allocation2 + $0x446] sm:$0xff] %vm519_vm3, %v6177_v23  ;;  %14723 = vmatmul.mubr.msk.f32.gmra.mrb[8].mxu1 %vm519_vm3, %v20000_v22  ;;  %v20296_v23 = vld [vmem:[#allocation2 + $0x1f0] sm:$0xff] }
 0x80d   : > { %6325 = vst.msk [vmem:[#allocation2 + $0x45e] sm:$0xff] %vm519_vm3, %v6178_v53  ;;  %6328 = vst.msk [vmem:[#allocation2 + $0x476] sm:$0xff] %vm519_vm3, %v6179_v10  ;;  %14725 = vmatprep.mubr.msk.f32.mxu1 %vm17138_vm1, %v22458_v63  ;;  %v20302_v10 = vld [vmem:[#allocation2 + $0x1f8] sm:$0xff] }
 0x80e   : > { %6223 = vst.msk [vmem:[#allocation2 + $0x130] sm:$0xff] %vm519_vm3, %v6180_v32  ;;  %6226 = vst.msk [vmem:[#allocation2 + $0x148] sm:$0xff] %vm519_vm3, %v6181_v4 }
 0x80f   : > { %6229 = vst.msk [vmem:[#allocation2 + $0x160] sm:$0xff] %vm519_vm3, %v6182_v41  ;;  %6232 = vst.msk [vmem:[#allocation2 + $0x178] sm:$0xff] %vm519_vm3, %v6183_v37  ;;  %v20132_v20 = vld [vmem:[#allocation2 + $0xd0] sm:$0xff]  ;;  %v20150_v52 = vld [vmem:[#allocation2 + $0xe8] sm:$0xff] }
 0x810   : > { %6277 = vst.msk [vmem:[#allocation2 + $0x2df] sm:$0xff] %vm519_vm3, %v6180_v32  ;;  %6280 = vst.msk [vmem:[#allocation2 + $0x2f7] sm:$0xff] %vm519_vm3, %v6181_v4  ;;  %14726 = vmatmul.mubr.msk.f32.gmra.mrb[10].mxu1 %vm519_vm3, %v20006_v27  ;;  %v20168_v25 = vld [vmem:[#allocation2 + $0x100] sm:$0xff]  ;;  %v20186_v9 = vld [vmem:[#allocation2 + $0x118] sm:$0xff] }
 0x811   : > { %6283 = vst.msk [vmem:[#allocation2 + $0x30f] sm:$0xff] %vm519_vm3, %v6182_v41  ;;  %6286 = vst.msk [vmem:[#allocation2 + $0x327] sm:$0xff] %vm519_vm3, %v6183_v37  ;;  %14728 = vmatprep.mubr.msk.f32.mxu1 %vm17138_vm1, %v22458_v63 }
 0x812   : > { %6292 = vst.msk [vmem:[#allocation2 + $0x357] sm:$0xff] %vm519_vm3, %v6183_v37  ;;  %6331 = vst.msk [vmem:[#allocation2 + $0x48e] sm:$0xff] %vm519_vm3, %v6180_v32  ;;  %v20308_v32 = vld [vmem:[#allocation2 + $0x200] sm:$0xff] }
 0x813   : > { %6334 = vst.msk [vmem:[#allocation2 + $0x4a6] sm:$0xff] %vm519_vm3, %v6181_v4  ;;  %6337 = vst.msk [vmem:[#allocation2 + $0x4be] sm:$0xff] %vm519_vm3, %v6182_v41  ;;  %v20314_v41 = vld [vmem:[#allocation2 + $0x208] sm:$0xff] }
 0x814   : > { %6340 = vst.msk [vmem:[#allocation2 + $0x4d6] sm:$0xff] %vm519_vm3, %v6183_v37  ;;  %6346 = vst.msk [vmem:[#allocation2 + $0x506] sm:$0xff] %vm519_vm3, %v6183_v37  ;;  %14729 = vmatmul.mubr.msk.f32.gmra.mrb[12].mxu1 %vm519_vm3, %v20012_v0 }
 0x815   : > { %14731 = vmatprep.mubr.msk.f32.mxu1 %vm17138_vm1, %v22458_v63  ;;  %v20204_v3 = vld [vmem:[#allocation2 + $0x130] sm:$0xff]  ;;  %v20222_v18 = vld [vmem:[#allocation2 + $0x148] sm:$0xff] }
 0x816   : > { %v20240_v36 = vld [vmem:[#allocation2 + $0x160] sm:$0xff] }
 0x818   : > { %14732 = vmatmul.mubr.msk.f32.gmra.mrb[14].mxu1 %vm519_vm3, %v20018_v54 }
 0x819   : > { %14734 = vmatprep.mubr.msk.f32.mxu1 %vm17138_vm1, %v22458_v63 }
 0x81c   : > { %14735 = vmatmul.mubr.msk.f32.gmra.mrb[16].mxu1 %vm519_vm3, %v20024_v58 }
 0x81d   : > { %14737 = vmatprep.mubr.msk.f32.mxu1 %vm17138_vm1, %v22458_v63 }
 0x820   : > { %14738 = vmatmul.mubr.msk.f32.gmra.mrb[18].mxu1 %vm519_vm3, %v20030_v12 }
 0x821   : > { %14740 = vmatprep.mubr.msk.f32.mxu1 %vm17138_vm1, %v22458_v63 }
 0x824   : > { %14741 = vmatmul.mubr.msk.f32.gmra.mrb[20].mxu1 %vm519_vm3, %v20036_v55 }
 0x825   : > { %14743 = vmatprep.mubr.msk.f32.mxu1 %vm17138_vm1, %v22458_v63 }
 0x828   : > { %14744 = vmatmul.mubr.msk.f32.gmra.mrb[22].mxu1 %vm519_vm3, %v20042_v29 }
 0x829   : > { %14746 = vmatprep.mubr.msk.f32.mxu1 %vm17138_vm1, %v22458_v63 }
 0x82c   : > { %14747 = vmatmul.mubr.msk.f32.gmra.mrb[24].mxu1 %vm519_vm3, %v20048_v35 }
 0x82d   : > { %14749 = vmatprep.mubr.msk.f32.mxu1 %vm17138_vm1, %v22458_v63 }
 0x830   : > { %14750 = vmatmul.mubr.msk.f32.gmra.mrb[26].mxu1 %vm519_vm3, %v20054_v11 }
 0x831   : > { %14752 = vmatprep.mubr.msk.f32.mxu1 %vm17138_vm1, %v22458_v63 }
 0x834   : > { %14753 = vmatmul.mubr.msk.f32.gmra.mrb[28].mxu1 %vm519_vm3, %v20060_v46 }
 0x835   : > { %14755 = vmatprep.mubr.msk.f32.mxu1 %vm17138_vm1, %v22458_v63 }
 0x838   : > { %14756 = vmatmul.mubr.msk.f32.gmra.mrb[30].mxu1 %vm519_vm3, %v20066_v40 }
 0x839   : > { %14758 = vmatprep.mubr.msk.f32.mxu1 %vm17138_vm1, %v22458_v63 }
 0x83c   : > { %14759 = vmatmul.mubr.msk.f32.gmra.mrb[32].mxu1 %vm519_vm3, %v20072_v50 }
 0x83d   : > { %14761 = vmatprep.mubr.msk.f32.mxu1 %vm17138_vm1, %v22458_v63 }
 0x840   : > { %14762 = vmatmul.mubr.msk.f32.gmra.mrb[34].mxu1 %vm519_vm3, %v20078_v34 }
 0x841   : > { %14764 = vmatprep.mubr.msk.f32.mxu1 %vm17138_vm1, %v22458_v63 }
 0x844   : > { %14765 = vmatmul.mubr.msk.f32.gmra.mrb[36].mxu1 %vm519_vm3, %v20084_v60 }
 0x845   : > { %14767 = vmatprep.mubr.msk.f32.mxu1 %vm17138_vm1, %v22458_v63 }
 0x848   : > { %14768 = vmatmul.mubr.msk.f32.gmra.mrb[38].mxu1 %vm519_vm3, %v20090_v13 }
 0x849   : > { %14770 = vmatprep.mubr.msk.f32.mxu1 %vm17138_vm1, %v22458_v63 }
 0x84c   : > { %14771 = vmatmul.mubr.msk.f32.gmra.mrb[40].mxu1 %vm519_vm3, %v20096_v15 }
 0x84d   : > { %14773 = vmatprep.mubr.msk.f32.mxu1 %vm17138_vm1, %v22458_v63 }
 0x850   : > { %14774 = vmatmul.mubr.msk.f32.gmra.mrb[42].mxu1 %vm519_vm3, %v20102_v21 }
 0x851   : > { %14776 = vmatprep.mubr.msk.f32.mxu1 %vm17138_vm1, %v22458_v63 }
 0x854   : > { %14777 = vmatmul.mubr.msk.f32.gmra.mrb[44].mxu1 %vm519_vm3, %v20108_v42 }
 0x855   : > { %14779 = vmatprep.mubr.msk.f32.mxu1 %vm17138_vm1, %v22458_v63 }
 0x858   : > { %14780 = vmatmul.mubr.msk.f32.gmra.mrb[46].mxu1 %vm519_vm3, %v20114_v28 }
 0x859   : > { %14782 = vmatprep.mubr.msk.f32.mxu1 %vm17138_vm1, %v22458_v63 }
 0x85c   : > { %14783 = vmatmul.mubr.msk.f32.gmra.mrb[48].mxu1 %vm519_vm3, %v20120_v1 }
 0x85d   : > { %14785 = vmatprep.mubr.msk.f32.mxu1 %vm17138_vm1, %v22458_v63 }
 0x860   : > { %14786 = vmatmul.mubr.msk.f32.gmra.mrb[50].mxu1 %vm519_vm3, %v20126_v19 }
 0x861   : > { %14788 = vmatprep.mubr.msk.f32.mxu1 %vm17138_vm1, %v22458_v63 }
 0x864   : > { %14789 = vmatmul.mubr.msk.f32.gmra.mrb[52].mxu1 %vm519_vm3, %v20132_v20 }
 0x865   : > { %14791 = vmatprep.mubr.msk.f32.mxu1 %vm17138_vm1, %v22458_v63 }
 0x868   : > { %14792 = vmatmul.mubr.msk.f32.gmra.mrb[54].mxu1 %vm519_vm3, %v20138_v44 }
 0x869   : > { %14794 = vmatprep.mubr.msk.f32.mxu1 %vm17138_vm1, %v22458_v63 }
 0x86c   : > { %14795 = vmatmul.mubr.msk.f32.gmra.mrb[56].mxu1 %vm519_vm3, %v20144_v47 }
 0x86d   : > { %14797 = vmatprep.mubr.msk.f32.mxu1 %vm17138_vm1, %v22458_v63 }
 0x870   : > { %14798 = vmatmul.mubr.msk.f32.gmra.mrb[58].mxu1 %vm519_vm3, %v20150_v52 }
 0x871   : > { %14800 = vmatprep.mubr.msk.f32.mxu1 %vm17138_vm1, %v22458_v63 }
 0x874   : > { %14801 = vmatmul.mubr.msk.f32.gmra.mrb[60].mxu1 %vm519_vm3, %v20156_v26 }
 0x875   : > { %14803 = vmatprep.mubr.msk.f32.mxu1 %vm17138_vm1, %v22458_v63 }
 0x878   : > { %14804 = vmatmul.mubr.msk.f32.gmra.mrb[62].mxu1 %vm519_vm3, %v20162_v31 }
 0x879   : > { %14806 = vmatprep.mubr.msk.f32.mxu1 %vm17138_vm1, %v22458_v63 }
 0x87c   : > { %14807 = vmatmul.mubr.msk.f32.gmra.mrb[64].mxu1 %vm519_vm3, %v20168_v25 }
 0x87d   : > { %14809 = vmatprep.mubr.msk.f32.mxu1 %vm17138_vm1, %v22458_v63 }
 0x880   : > { %14810 = vmatmul.mubr.msk.f32.gmra.mrb[66].mxu1 %vm519_vm3, %v20174_v38 }
 0x881   : > { %14812 = vmatprep.mubr.msk.f32.mxu1 %vm17138_vm1, %v22458_v63 }
 0x884   : > { %14813 = vmatmul.mubr.msk.f32.gmra.mrb[68].mxu1 %vm519_vm3, %v20180_v56 }
 0x885   : > { %14815 = vmatprep.mubr.msk.f32.mxu1 %vm17138_vm1, %v22458_v63 }
 0x888   : > { %14816 = vmatmul.mubr.msk.f32.gmra.mrb[70].mxu1 %vm519_vm3, %v20186_v9 }
 0x889   : > { %14818 = vmatprep.mubr.msk.f32.mxu1 %vm17138_vm1, %v22458_v63 }
 0x88c   : > { %14819 = vmatmul.mubr.msk.f32.gmra.mrb[72].mxu1 %vm519_vm3, %v20192_v16 }
 0x88d   : > { %14821 = vmatprep.mubr.msk.f32.mxu1 %vm17138_vm1, %v22458_v63 }
 0x890   : > { %14822 = vmatmul.mubr.msk.f32.gmra.mrb[74].mxu1 %vm519_vm3, %v20198_v49 }
 0x891   : > { %14824 = vmatprep.mubr.msk.f32.mxu1 %vm17138_vm1, %v22458_v63 }
 0x894   : > { %14825 = vmatmul.mubr.msk.f32.gmra.mrb[76].mxu1 %vm519_vm3, %v20204_v3 }
 0x895   : > { %14827 = vmatprep.mubr.msk.f32.mxu1 %vm17138_vm1, %v22458_v63 }
 0x898   : > { %14828 = vmatmul.mubr.msk.f32.gmra.mrb[78].mxu1 %vm519_vm3, %v20210_v39 }
 0x899   : > { %14830 = vmatprep.mubr.msk.f32.mxu1 %vm17138_vm1, %v22458_v63 }
 0x89c   : > { %14831 = vmatmul.mubr.msk.f32.gmra.mrb[80].mxu1 %vm519_vm3, %v20216_v43 }
 0x89d   : > { %14833 = vmatprep.mubr.msk.f32.mxu1 %vm17138_vm1, %v22458_v63 }
 0x8a0   : > { %14834 = vmatmul.mubr.msk.f32.gmra.mrb[82].mxu1 %vm519_vm3, %v20222_v18 }
 0x8a1   : > { %14836 = vmatprep.mubr.msk.f32.mxu1 %vm17138_vm1, %v22458_v63 }
 0x8a4   : > { %14837 = vmatmul.mubr.msk.f32.gmra.mrb[84].mxu1 %vm519_vm3, %v20228_v2 }
 0x8a5   : > { %14839 = vmatprep.mubr.msk.f32.mxu1 %vm17138_vm1, %v22458_v63 }
 0x8a8   : > { %14840 = vmatmul.mubr.msk.f32.gmra.mrb[86].mxu1 %vm519_vm3, %v20234_v24 }
 0x8a9   : > { %14842 = vmatprep.mubr.msk.f32.mxu1 %vm17138_vm1, %v22458_v63 }
 0x8ac   : > { %14843 = vmatmul.mubr.msk.f32.gmra.mrb[88].mxu1 %vm519_vm3, %v20240_v36 }
 0x8ad   : > { %14845 = vmatprep.mubr.msk.f32.mxu1 %vm17138_vm1, %v22458_v63 }
 0x8b0   : > { %14846 = vmatmul.mubr.msk.f32.gmra.mrb[90].mxu1 %vm519_vm3, %v20246_v8 }
 0x8b1   : > { %14848 = vmatprep.mubr.msk.f32.mxu1 %vm17138_vm1, %v22458_v63 }
 0x8b4   : > { %14849 = vmatmul.mubr.msk.f32.gmra.mrb[92].mxu1 %vm519_vm3, %v20252_v62 }
 0x8b5   : > { %14853 = vmatprep.mubr.msk.f32.mxu1 %vm17138_vm1, %v22458_v63 }
 0x8b8   : > { %14854 = vmatmul.mubr.msk.f32.vlgmr.msra.gmra.mrb[0].mxu1 %vm519_vm3, %v6891_v30  ;;  %v20332_v30 = vld [vmem:[#allocation2 + $0x220] sm:$0xff] }
 0x8b9   : > { %14995 = vmatpush3.msk.msra.mxu1 %vm880_vm0, %v268_v61  ;;  %14856 = vmatprep.mubr.msk.f32.mxu1 %vm17138_vm1, %v22458_v63 }
 0x8ba   : > { %15137 = vmatprep.subr.mxu1 %v22458_v63 }
 0x8bc   : > { %14857 = vmatmul.mubr.msk.f32.gmra.mrb[2].mxu1 %vm519_vm3, %v6892_v6 }
 0x8bd   : > { %14859 = vmatprep.mubr.msk.f32.mxu1 %vm17138_vm1, %v22458_v63 }
 0x8c0   : > { %14860 = vmatmul.mubr.msk.f32.gmra.mrb[94].mxu1 %vm519_vm3, %v6893_v57  ;;  %v20338_v57 = vld [vmem:[#allocation2 + $0x228] sm:$0xff] }
 0x8c1   : > { %14862 = vmatprep.mubr.msk.f32.mxu1 %vm17138_vm1, %v22458_v63 }
 0x8c4   : > { %14863 = vmatmul.mubr.msk.f32.gmra.mrb[6].mxu1 %vm519_vm3, %v20272_v51 }
 0x8c5   : > { %14865 = vmatprep.mubr.msk.f32.mxu1 %vm17138_vm1, %v22458_v63 }
 0x8c8   : > { %14866 = vmatmul.mubr.msk.f32.gmra.mrb[8].mxu1 %vm519_vm3, %v20278_v7 }
 0x8c9   : > { %14868 = vmatprep.mubr.msk.f32.mxu1 %vm17138_vm1, %v22458_v63 }
 0x8cc   : > { %14869 = vmatmul.mubr.msk.f32.gmra.mrb[96].mxu1 %vm519_vm3, %v20284_v33 }
 0x8cd   : > { %14871 = vmatprep.mubr.msk.f32.mxu1 %vm17138_vm1, %v22458_v63 }
 0x8d0   : > { %14872 = vmatmul.mubr.msk.f32.gmra.mrb[12].mxu1 %vm519_vm3, %v6897_v45  ;;  %v20344_v45 = vld [vmem:[#allocation2 + $0x230] sm:$0xff] }
 0x8d1   : > { %14874 = vmatprep.mubr.msk.f32.mxu1 %vm17138_vm1, %v22458_v63 }
 0x8d4   : > { %14875 = vmatmul.mubr.msk.f32.gmra.mrb[14].mxu1 %vm519_vm3, %v6898_v5 }
 0x8d5   : > { %14877 = vmatprep.mubr.msk.f32.mxu1 %vm17138_vm1, %v22458_v63 }
 0x8d7   : > { %v6620_v17 = vpop.f32.mrb[4].mxu1 }
 0x8d8   : > { %v14718_v53 = vpop.f32.mrb[5].mxu1  ;;  %14878 = vmatmul.mubr.msk.f32.gmra.mrb[98].mxu1 %vm519_vm3, %v20296_v23  ;;  %v20350_v17 = vld [vmem:[#allocation2 + $0x238] sm:$0xff] }
 0x8d9   : > { %14880 = vmatprep.mubr.msk.f32.mxu1 %vm17138_vm1, %v22458_v63 }
 0x8dc   : > { %14881 = vmatmul.mubr.msk.f32.gmra.mrb[18].mxu1 %vm519_vm3, %v20302_v10 }
 0x8dd   : > { %14883 = vmatprep.mubr.msk.f32.mxu1 %vm17138_vm1, %v22458_v63 }
 0x8e0   : > { %14884 = vmatmul.mubr.msk.f32.gmra.mrb[20].mxu1 %vm519_vm3, %v20308_v32 }
 0x8e1   : > { %14886 = vmatprep.mubr.msk.f32.mxu1 %vm17138_vm1, %v22458_v63 }
 0x8e3   : > { %v6635_v4 = vpop.f32.mrb[10].mxu1 }
 0x8e4   : > { %v14727_v37 = vpop.f32.mrb[11].mxu1  ;;  %14887 = vmatmul.mubr.msk.f32.gmra.mrb[100].mxu1 %vm519_vm3, %v20314_v41  ;;  %v20356_v4 = vld [vmem:[#allocation2 + $0x240] sm:$0xff] }
 0x8e5   : > { %14889 = vmatprep.mubr.msk.f32.mxu1 %vm17138_vm1, %v22458_v63  ;;  %22459 = vst [vmem:[#allocation3_spill] sm:$0xff] %v20356_v4  ;;  %v20362_v37 = vld [vmem:[#allocation2 + $0x248] sm:$0xff] }
 0x8e6   : > { %22460 = vst [vmem:[#allocation4_spill] sm:$0xff] %v20362_v37 }
 0x8e8   : > { %14890 = vmatmul.mubr.msk.f32.gmra.mrb[24].mxu1 %vm519_vm3, %v20320_v48 }
 0x8e9   : > { %14892 = vmatprep.mubr.msk.f32.mxu1 %vm17138_vm1, %v22458_v63 }
 0x8ec   : > { %14893 = vmatmul.mubr.msk.f32.gmra.mrb[26].mxu1 %vm519_vm3, %v20326_v14 }
 0x8ed   : > { %14895 = vmatprep.mubr.msk.f32.mxu1 %vm17138_vm1, %v22458_v63 }
 0x8ef   : > { %v6650_v61 = vpop.f32.mrb[16].mxu1 }
 0x8f0   : > { %v14736_v6 = vpop.f32.mrb[17].mxu1  ;;  %14896 = vmatmul.mubr.msk.f32.gmra.mrb[102].mxu1 %vm519_vm3, %v20332_v30 }
 0x8f1   : > { %14898 = vmatprep.mubr.msk.f32.mxu1 %vm17138_vm1, %v22458_v63  ;;  %v20368_v6 = vld [vmem:[#allocation2 + $0x250] sm:$0xff] }
 0x8f2   : > { %22461 = vst [vmem:[#allocation5_spill] sm:$0xff] %v20368_v6 }
 0x8f4   : > { %14899 = vmatmul.mubr.msk.f32.gmra.mrb[30].mxu1 %vm519_vm3, %v20338_v57 }
 0x8f5   : > { %14901 = vmatprep.mubr.msk.f32.mxu1 %vm17138_vm1, %v22458_v63 }
 0x8f8   : > { %14902 = vmatmul.mubr.msk.f32.gmra.mrb[32].mxu1 %vm519_vm3, %v20344_v45 }
 0x8f9   : > { %14904 = vmatprep.mubr.msk.f32.mxu1 %vm17138_vm1, %v22458_v63 }
 0x8fb   : > { %v6665_v5 = vpop.f32.mrb[22].mxu1 }
 0x8fc   : > { %v14745_v53 = vpop.f32.mrb[23].mxu1  ;;  %14905 = vmatmul.mubr.msk.f32.gmra.mrb[104].mxu1 %vm519_vm3, %v20350_v17 }
 0x8fd   : > { %14907 = vmatprep.mubr.msk.f32.mxu1 %vm17138_vm1, %v22458_v63  ;;  %v20374_v53 = vld [vmem:[#allocation2 + $0x258] sm:$0xff] }
 0x8fe   : > { %22462 = vst [vmem:[#allocation6_spill] sm:$0xff] %v20374_v53 }
 0x900   : > { %14908 = vmatmul.mubr.msk.f32.gmra.mrb[36].mxu1 %vm519_vm3, %v20356_v4 }
 0x901   : > { %14910 = vmatprep.mubr.msk.f32.mxu1 %vm17138_vm1, %v22458_v63 }
 0x904   : > { %14911 = vmatmul.mubr.msk.f32.gmra.mrb[38].mxu1 %vm519_vm3, %v20362_v37  ;;  %v20380_v37 = vld [vmem:[#allocation2 + $0x260] sm:$0xff] }
 0x905   : > { %14913 = vmatprep.mubr.msk.f32.mxu1 %vm17138_vm1, %v22458_v63  ;;  %22463 = vst [vmem:[#allocation7_spill] sm:$0xff] %v20380_v37 }
 0x907   : > { %v6680_v61 = vpop.f32.mrb[28].mxu1 }
 0x908   : > { %v14754_v5 = vpop.f32.mrb[29].mxu1  ;;  %14914 = vmatmul.mubr.msk.f32.gmra.mrb[106].mxu1 %vm519_vm3, %v20368_v6 }
 0x909   : > { %14916 = vmatprep.mubr.msk.f32.mxu1 %vm17138_vm1, %v22458_v63  ;;  %v20386_v5 = vld [vmem:[#allocation2 + $0x268] sm:$0xff] }
 0x90a   : > { %22464 = vst [vmem:[#allocation8_spill] sm:$0xff] %v20386_v5 }
 0x90c   : > { %14917 = vmatmul.mubr.msk.f32.gmra.mrb[42].mxu1 %vm519_vm3, %v20374_v53  ;;  %v20392_v53 = vld [vmem:[#allocation2 + $0x270] sm:$0xff] }
 0x90d   : > { %14919 = vmatprep.mubr.msk.f32.mxu1 %vm17138_vm1, %v22458_v63  ;;  %22465 = vst [vmem:[#allocation9_spill] sm:$0xff] %v20392_v53 }
 0x910   : > { %14920 = vmatmul.mubr.msk.f32.gmra.mrb[44].mxu1 %vm519_vm3, %v20380_v37  ;;  %v20398_v37 = vld [vmem:[#allocation2 + $0x278] sm:$0xff] }
 0x911   : > { %14922 = vmatprep.mubr.msk.f32.mxu1 %vm17138_vm1, %v22458_v63  ;;  %22466 = vst [vmem:[#allocation10_spill] sm:$0xff] %v20398_v37 }
 0x913   : > { %v6695_v61 = vpop.f32.mrb[34].mxu1 }
 0x914   : > { %v14763_v6 = vpop.f32.mrb[35].mxu1  ;;  %14923 = vmatmul.mubr.msk.f32.gmra.mrb[108].mxu1 %vm519_vm3, %v20386_v5  ;;  %v20404_v61 = vld [vmem:[#allocation2 + $0x280] sm:$0xff] }
 0x915   : > { %14925 = vmatprep.mubr.msk.f32.mxu1 %vm17138_vm1, %v22458_v63  ;;  %22467 = vst [vmem:[#allocation11_spill] sm:$0xff] %v20404_v61 }
 0x918   : > { %14926 = vmatmul.mubr.msk.f32.gmra.mrb[48].mxu1 %vm519_vm3, %v20392_v53  ;;  %v20410_v53 = vld [vmem:[#allocation2 + $0x288] sm:$0xff] }
 0x919   : > { %14928 = vmatprep.mubr.msk.f32.mxu1 %vm17138_vm1, %v22458_v63  ;;  %22468 = vst [vmem:[#allocation12_spill] sm:$0xff] %v20410_v53 }
 0x91c   : > { %14929 = vmatmul.mubr.msk.f32.gmra.mrb[50].mxu1 %vm519_vm3, %v20398_v37  ;;  %v20416_v37 = vld [vmem:[#allocation2 + $0x290] sm:$0xff] }
 0x91d   : > { %14931 = vmatprep.mubr.msk.f32.mxu1 %vm17138_vm1, %v22458_v63  ;;  %22469 = vst [vmem:[#allocation13_spill] sm:$0xff] %v20416_v37 }
 0x91f   : > { %v6710_v6 = vpop.f32.mrb[40].mxu1 }
 0x920   : > { %v14772_v5 = vpop.f32.mrb[41].mxu1  ;;  %14932 = vmatmul.mubr.msk.f32.gmra.mrb[110].mxu1 %vm519_vm3, %v20404_v61  ;;  %v20422_v6 = vld [vmem:[#allocation2 + $0x298] sm:$0xff] }
 0x921   : > { %14934 = vmatprep.mubr.msk.f32.mxu1 %vm17138_vm1, %v22458_v63  ;;  %22470 = vst [vmem:[#allocation14_spill] sm:$0xff] %v20422_v6 }
 0x924   : > { %14935 = vmatmul.mubr.msk.f32.gmra.mrb[54].mxu1 %vm519_vm3, %v20410_v53  ;;  %v20428_v53 = vld [vmem:[#allocation2 + $0x2a0] sm:$0xff] }
 0x925   : > { %14937 = vmatprep.mubr.msk.f32.mxu1 %vm17138_vm1, %v22458_v63  ;;  %22471 = vst [vmem:[#allocation15_spill] sm:$0xff] %v20428_v53 }
 0x928   : > { %14938 = vmatmul.mubr.msk.f32.gmra.mrb[56].mxu1 %vm519_vm3, %v20416_v37  ;;  %v20434_v37 = vld [vmem:[#allocation2 + $0x2a8] sm:$0xff] }
 0x929   : > { %14940 = vmatprep.mubr.msk.f32.mxu1 %vm17138_vm1, %v22458_v63  ;;  %22472 = vst [vmem:[#allocation16_spill] sm:$0xff] %v20434_v37 }
 0x92b   : > { %v6725_v5 = vpop.f32.mrb[46].mxu1 }
 0x92c   : > { %v14781_v61 = vpop.f32.mrb[47].mxu1  ;;  %14941 = vmatmul.mubr.msk.f32.gmra.mrb[112].mxu1 %vm519_vm3, %v20422_v6  ;;  %v20440_v5 = vld [vmem:[#allocation2 + $0x2b0] sm:$0xff] }
 0x92d   : > { %14943 = vmatprep.mubr.msk.f32.mxu1 %vm17138_vm1, %v22458_v63  ;;  %22473 = vst [vmem:[#allocation17_spill] sm:$0xff] %v20440_v5 }
 0x930   : > { %14944 = vmatmul.mubr.msk.f32.gmra.mrb[60].mxu1 %vm519_vm3, %v20428_v53  ;;  %v20446_v53 = vld [vmem:[#allocation2 + $0x2b8] sm:$0xff] }
 0x931   : > { %14946 = vmatprep.mubr.msk.f32.mxu1 %vm17138_vm1, %v22458_v63  ;;  %22474 = vst [vmem:[#allocation18_spill] sm:$0xff] %v20446_v53 }
 0x934   : > { %14947 = vmatmul.mubr.msk.f32.gmra.mrb[62].mxu1 %vm519_vm3, %v20434_v37  ;;  %v20452_v37 = vld [vmem:[#allocation2 + $0x2c0] sm:$0xff] }
 0x935   : > { %14949 = vmatprep.mubr.msk.f32.mxu1 %vm17138_vm1, %v22458_v63  ;;  %22475 = vst [vmem:[#allocation19_spill] sm:$0xff] %v20452_v37 }
 0x937   : > { %v6740_v61 = vpop.f32.mrb[52].mxu1 }
 0x938   : > { %v14790_v6 = vpop.f32.mrb[53].mxu1  ;;  %14950 = vmatmul.mubr.msk.f32.gmra.mrb[114].mxu1 %vm519_vm3, %v20440_v5  ;;  %v20458_v61 = vld [vmem:[#allocation2 + $0x2c8] sm:$0xff] }
 0x939   : > { %14952 = vmatprep.mubr.msk.f32.mxu1 %vm17138_vm1, %v22458_v63  ;;  %22476 = vst [vmem:[#allocation20_spill] sm:$0xff] %v20458_v61 }
 0x93c   : > { %14953 = vmatmul.mubr.msk.f32.gmra.mrb[66].mxu1 %vm519_vm3, %v20446_v53  ;;  %v20464_v53 = vld [vmem:[#allocation2 + $0x2d0] sm:$0xff] }
 0x93d   : > { %14955 = vmatprep.mubr.msk.f32.mxu1 %vm17138_vm1, %v22458_v63  ;;  %22477 = vst [vmem:[#allocation21_spill] sm:$0xff] %v20464_v53 }
 0x940   : > { %14956 = vmatmul.mubr.msk.f32.gmra.mrb[68].mxu1 %vm519_vm3, %v20452_v37  ;;  %v20470_v37 = vld [vmem:[#allocation2 + $0x2d8] sm:$0xff] }
 0x941   : > { %14958 = vmatprep.mubr.msk.f32.mxu1 %vm17138_vm1, %v22458_v63  ;;  %22478 = vst [vmem:[#allocation22_spill] sm:$0xff] %v20470_v37 }
 0x943   : > { %v6755_v6 = vpop.f32.mrb[58].mxu1 }
 0x944   : > { %v14799_v5 = vpop.f32.mrb[59].mxu1  ;;  %14959 = vmatmul.mubr.msk.f32.gmra.mrb[116].mxu1 %vm519_vm3, %v20458_v61  ;;  %v20476_v6 = vld [vmem:[#allocation2 + $0x2e0] sm:$0xff] }
 0x945   : > { %14961 = vmatprep.mubr.msk.f32.mxu1 %vm17138_vm1, %v22458_v63  ;;  %22479 = vst [vmem:[#allocation23_spill] sm:$0xff] %v20476_v6 }
 0x948   : > { %14962 = vmatmul.mubr.msk.f32.gmra.mrb[72].mxu1 %vm519_vm3, %v20464_v53  ;;  %v20482_v53 = vld [vmem:[#allocation2 + $0x2e8] sm:$0xff] }
 0x949   : > { %14964 = vmatprep.mubr.msk.f32.mxu1 %vm17138_vm1, %v22458_v63  ;;  %22480 = vst [vmem:[#allocation24_spill] sm:$0xff] %v20482_v53 }
 0x94c   : > { %14965 = vmatmul.mubr.msk.f32.gmra.mrb[74].mxu1 %vm519_vm3, %v20470_v37  ;;  %v20488_v37 = vld [vmem:[#allocation2 + $0x2f0] sm:$0xff] }
 0x94d   : > { %14967 = vmatprep.mubr.msk.f32.mxu1 %vm17138_vm1, %v22458_v63  ;;  %22481 = vst [vmem:[#allocation25_spill] sm:$0xff] %v20488_v37 }
 0x94f   : > { %v6770_v5 = vpop.f32.mrb[64].mxu1 }
 0x950   : > { %v14808_v61 = vpop.f32.mrb[65].mxu1  ;;  %14968 = vmatmul.mubr.msk.f32.gmra.mrb[118].mxu1 %vm519_vm3, %v20476_v6  ;;  %v20494_v5 = vld [vmem:[#allocation2 + $0x2f8] sm:$0xff] }
 0x951   : > { %14970 = vmatprep.mubr.msk.f32.mxu1 %vm17138_vm1, %v22458_v63  ;;  %22482 = vst [vmem:[#allocation26_spill] sm:$0xff] %v20494_v5 }
 0x954   : > { %14971 = vmatmul.mubr.msk.f32.gmra.mrb[78].mxu1 %vm519_vm3, %v20482_v53  ;;  %v20500_v53 = vld [vmem:[#allocation2 + $0x300] sm:$0xff] }
 0x955   : > { %14973 = vmatprep.mubr.msk.f32.mxu1 %vm17138_vm1, %v22458_v63  ;;  %22483 = vst [vmem:[#allocation27_spill] sm:$0xff] %v20500_v53 }
 0x958   : > { %14974 = vmatmul.mubr.msk.f32.gmra.mrb[80].mxu1 %vm519_vm3, %v20488_v37  ;;  %v20506_v37 = vld [vmem:[#allocation2 + $0x308] sm:$0xff] }
 0x959   : > { %14976 = vmatprep.mubr.msk.f32.mxu1 %vm17138_vm1, %v22458_v63  ;;  %22484 = vst [vmem:[#allocation28_spill] sm:$0xff] %v20506_v37 }
 0x95b   : > { %v6785_v61 = vpop.f32.mrb[70].mxu1 }
 0x95c   : > { %v14817_v6 = vpop.f32.mrb[71].mxu1  ;;  %14977 = vmatmul.mubr.msk.f32.gmra.mrb[120].mxu1 %vm519_vm3, %v20494_v5  ;;  %v20512_v61 = vld [vmem:[#allocation2 + $0x310] sm:$0xff] }
 0x95d   : > { %14979 = vmatprep.mubr.msk.f32.mxu1 %vm17138_vm1, %v22458_v63  ;;  %22485 = vst [vmem:[#allocation29_spill] sm:$0xff] %v20512_v61 }
 0x960   : > { %14980 = vmatmul.mubr.msk.f32.gmra.mrb[84].mxu1 %vm519_vm3, %v20500_v53  ;;  %v20518_v53 = vld [vmem:[#allocation2 + $0x318] sm:$0xff] }
 0x961   : > { %14982 = vmatprep.mubr.msk.f32.mxu1 %vm17138_vm1, %v22458_v63  ;;  %22486 = vst [vmem:[#allocation30_spill] sm:$0xff] %v20518_v53 }
 0x964   : > { %14983 = vmatmul.mubr.msk.f32.gmra.mrb[86].mxu1 %vm519_vm3, %v20506_v37  ;;  %v20524_v37 = vld [vmem:[#allocation2 + $0x320] sm:$0xff] }
 0x965   : > { %14985 = vmatprep.mubr.msk.f32.mxu1 %vm17138_vm1, %v22458_v63  ;;  %22487 = vst [vmem:[#allocation31_spill] sm:$0xff] %v20524_v37 }
 0x967   : > { %v6800_v6 = vpop.f32.mrb[76].mxu1 }
 0x968   : > { %v14826_v5 = vpop.f32.mrb[77].mxu1  ;;  %14986 = vmatmul.mubr.msk.f32.gmra.mrb[122].mxu1 %vm519_vm3, %v20512_v61  ;;  %v7429_v61 = vld [vmem:[#allocation2 + $0x360] sm:$0xff] }
 0x969   : > { %14988 = vmatprep.mubr.msk.f32.mxu1 %vm17138_vm1, %v22458_v63  ;;  %v269_v5 = vld [vmem:[%s22327_s3 + $0xc] sm:$0xf] }
 0x96c   : > { %14989 = vmatmul.mubr.msk.f32.gmra.mrb[90].mxu1 %vm519_vm3, %v20518_v53  ;;  %v7431_v53 = vld [vmem:[#allocation2 + $0x370] sm:$0xff] }
 0x96d   : > { %14991 = vmatprep.mubr.msk.f32.mxu1 %vm17138_vm1, %v22458_v63 }
 0x970   : > { %14992 = vmatmul.mubr.msk.f32.gmra.mrb[92].mxu1 %vm519_vm3, %v20524_v37  ;;  %v7430_v37 = vld [vmem:[#allocation2 + $0x368] sm:$0xff] }
 0x971   : > { %14996 = vmatprep.mubr.msk.f32.mxu1 %vm17138_vm1, %v22458_v63 }
 0x973   : > { %v6815_v6 = vpop.f32.mrb[82].mxu1 }
 0x974   : > { %v14835_v4 = vpop.f32.mrb[83].mxu1  ;;  %14997 = vmatmul.mubr.msk.f32.vlgmr.msra.gmra.mrb[0].mxu1 %vm519_vm3, %v7429_v61  ;;  %v20544_v61 = vld [vmem:[#allocation2 + $0x378] sm:$0xff]  ;;  %v7435_v6 = vld [vmem:[#allocation2 + $0x390] sm:$0xff] }
 0x975   : > { %15138 = vmatpush3.msk.msra.mxu1 %vm880_vm0, %v269_v5  ;;  %14999 = vmatprep.mubr.msk.f32.mxu1 %vm17138_vm1, %v22458_v63  ;;  %22488 = vst [vmem:[#allocation32_spill] sm:$0xff] %v20544_v61 }
 0x976   : > { %15280 = vmatprep.subr.mxu1 %v22458_v63 }
 0x978   : > { %15000 = vmatmul.mubr.msk.f32.gmra.mrb[2].mxu1 %vm519_vm3, %v7430_v37  ;;  %v20550_v37 = vld [vmem:[#allocation2 + $0x380] sm:$0xff] }
 0x979   : > { %15002 = vmatprep.mubr.msk.f32.mxu1 %vm17138_vm1, %v22458_v63  ;;  %22489 = vst [vmem:[#allocation33_spill] sm:$0xff] %v20550_v37 }
 0x97c   : > { %15003 = vmatmul.mubr.msk.f32.gmra.mrb[124].mxu1 %vm519_vm3, %v7431_v53  ;;  %v20556_v53 = vld [vmem:[#allocation2 + $0x388] sm:$0xff] }
 0x97d   : > { %15005 = vmatprep.mubr.msk.f32.mxu1 %vm17138_vm1, %v22458_v63 }
 0x97f   : > { %v6830_v4 = vpop.f32.mrb[88].mxu1 }
 0x980   : > { %v14844_v5 = vpop.f32.mrb[89].mxu1  ;;  %15006 = vmatmul.mubr.msk.f32.gmra.mrb[6].mxu1 %vm519_vm3, %v20544_v61  ;;  %v7436_v4 = vld [vmem:[#allocation2 + $0x398] sm:$0xff] }
 0x981   : > { %15008 = vmatprep.mubr.msk.f32.mxu1 %vm17138_vm1, %v22458_v63 }
 0x984   : > { %15009 = vmatmul.mubr.msk.f32.gmra.mrb[8].mxu1 %vm519_vm3, %v20550_v37  ;;  %v20568_v37 = vld [vmem:[#allocation2 + $0x3a0] sm:$0xff] }
 0x985   : > { %15011 = vmatprep.mubr.msk.f32.mxu1 %vm17138_vm1, %v22458_v63  ;;  %22490 = vst [vmem:[#allocation34_spill] sm:$0xff] %v20568_v37 }
 0x988   : > { %15012 = vmatmul.mubr.msk.f32.gmra.mrb[126].mxu1 %vm519_vm3, %v20556_v53 }
 0x989   : > { %15014 = vmatprep.mubr.msk.f32.mxu1 %vm17138_vm1, %v22458_v63 }
 0x98c   : > { %15015 = vmatmul.mubr.msk.f32.gmra.mrb[12].mxu1 %vm519_vm3, %v7435_v6  ;;  %v20574_v6 = vld [vmem:[#allocation2 + $0x3a8] sm:$0xff] }
 0x98d   : > { %15017 = vmatprep.mubr.msk.f32.mxu1 %vm17138_vm1, %v22458_v63  ;;  %22491 = vst [vmem:[#allocation35_spill] sm:$0xff] %v20574_v6 }
 0x990   : > { %15018 = vmatmul.mubr.msk.f32.gmra.mrb[14].mxu1 %vm519_vm3, %v7436_v4  ;;  %v20580_v4 = vld [vmem:[#allocation2 + $0x3b0] sm:$0xff] }
 0x991   : > { %15020 = vmatprep.mubr.msk.f32.mxu1 %vm17138_vm1, %v22458_v63  ;;  %22492 = vst [vmem:[#allocation36_spill] sm:$0xff] %v20580_v4 }
 0x993   : > { %v7158_v5 = vpop.f32.mrb[94].mxu1 }
 0x994   : > { %v14861_v61 = vpop.f32.mrb[95].mxu1  ;;  %15021 = vmatmul.mubr.msk.f32.gmra.mrb[128].mxu1 %vm519_vm3, %v20568_v37  ;;  %v20586_v5 = vld [vmem:[#allocation2 + $0x3b8] sm:$0xff] }
 0x995   : > { %15023 = vmatprep.mubr.msk.f32.mxu1 %vm17138_vm1, %v22458_v63  ;;  %22493 = vst [vmem:[#allocation37_spill] sm:$0xff] %v20586_v5 }
 0x998   : > { %15024 = vmatmul.mubr.msk.f32.gmra.mrb[18].mxu1 %vm519_vm3, %v20574_v6  ;;  %v20592_v6 = vld [vmem:[#allocation2 + $0x3c0] sm:$0xff] }
 0x999   : > { %15026 = vmatprep.mubr.msk.f32.mxu1 %vm17138_vm1, %v22458_v63  ;;  %22494 = vst [vmem:[#allocation38_spill] sm:$0xff] %v20592_v6 }
 0x99c   : > { %15027 = vmatmul.mubr.msk.f32.gmra.mrb[20].mxu1 %vm519_vm3, %v20580_v4  ;;  %v20598_v4 = vld [vmem:[#allocation2 + $0x3c8] sm:$0xff] }
 0x99d   : > { %15029 = vmatprep.mubr.msk.f32.mxu1 %vm17138_vm1, %v22458_v63  ;;  %22495 = vst [vmem:[#allocation39_spill] sm:$0xff] %v20598_v4 }
 0x99f   : > { %v7173_v61 = vpop.f32.mrb[96].mxu1 }
 0x9a0   : > { %v14870_v37 = vpop.f32.mrb[97].mxu1  ;;  %15030 = vmatmul.mubr.msk.f32.gmra.mrb[130].mxu1 %vm519_vm3, %v20586_v5  ;;  %v20604_v61 = vld [vmem:[#allocation2 + $0x3d0] sm:$0xff] }
 0x9a1   : > { %15032 = vmatprep.mubr.msk.f32.mxu1 %vm17138_vm1, %v22458_v63  ;;  %22496 = vst [vmem:[#allocation40_spill] sm:$0xff] %v20604_v61 }
 0x9a4   : > { %15033 = vmatmul.mubr.msk.f32.gmra.mrb[24].mxu1 %vm519_vm3, %v20592_v6  ;;  %v20610_v6 = vld [vmem:[#allocation2 + $0x3d8] sm:$0xff] }
 0x9a5   : > { %15035 = vmatprep.mubr.msk.f32.mxu1 %vm17138_vm1, %v22458_v63  ;;  %22497 = vst [vmem:[#allocation41_spill] sm:$0xff] %v20610_v6 }
 0x9a8   : > { %15036 = vmatmul.mubr.msk.f32.gmra.mrb[26].mxu1 %vm519_vm3, %v20598_v4  ;;  %v20616_v4 = vld [vmem:[#allocation2 + $0x3e0] sm:$0xff] }
 0x9a9   : > { %15038 = vmatprep.mubr.msk.f32.mxu1 %vm17138_vm1, %v22458_v63  ;;  %22498 = vst [vmem:[#allocation42_spill] sm:$0xff] %v20616_v4 }
 0x9ab   : > { %v7188_v37 = vpop.f32.mrb[98].mxu1 }
 0x9ac   : > { %v14879_v5 = vpop.f32.mrb[99].mxu1  ;;  %15039 = vmatmul.mubr.msk.f32.gmra.mrb[132].mxu1 %vm519_vm3, %v20604_v61  ;;  %v20622_v37 = vld [vmem:[#allocation2 + $0x3e8] sm:$0xff] }
 0x9ad   : > { %15041 = vmatprep.mubr.msk.f32.mxu1 %vm17138_vm1, %v22458_v63  ;;  %22499 = vst [vmem:[#allocation43_spill] sm:$0xff] %v20622_v37 }
 0x9b0   : > { %15042 = vmatmul.mubr.msk.f32.gmra.mrb[30].mxu1 %vm519_vm3, %v20610_v6  ;;  %v20628_v6 = vld [vmem:[#allocation2 + $0x3f0] sm:$0xff] }
 0x9b1   : > { %15044 = vmatprep.mubr.msk.f32.mxu1 %vm17138_vm1, %v22458_v63  ;;  %22500 = vst [vmem:[#allocation44_spill] sm:$0xff] %v20628_v6 }
 0x9b4   : > { %15045 = vmatmul.mubr.msk.f32.gmra.mrb[32].mxu1 %vm519_vm3, %v20616_v4  ;;  %v20634_v4 = vld [vmem:[#allocation2 + $0x3f8] sm:$0xff] }
 0x9b5   : > { %15047 = vmatprep.mubr.msk.f32.mxu1 %vm17138_vm1, %v22458_v63  ;;  %22501 = vst [vmem:[#allocation45_spill] sm:$0xff] %v20634_v4 }
 0x9b7   : > { %v7203_v5 = vpop.f32.mrb[100].mxu1 }
 0x9b8   : > { %v14888_v61 = vpop.f32.mrb[101].mxu1  ;;  %15048 = vmatmul.mubr.msk.f32.gmra.mrb[134].mxu1 %vm519_vm3, %v20622_v37  ;;  %v20640_v5 = vld [vmem:[#allocation2 + $0x400] sm:$0xff] }
 0x9b9   : > { %15050 = vmatprep.mubr.msk.f32.mxu1 %vm17138_vm1, %v22458_v63  ;;  %22502 = vst [vmem:[#allocation46_spill] sm:$0xff] %v20640_v5 }
 0x9bc   : > { %15051 = vmatmul.mubr.msk.f32.gmra.mrb[36].mxu1 %vm519_vm3, %v20628_v6  ;;  %v20646_v6 = vld [vmem:[#allocation2 + $0x408] sm:$0xff] }
 0x9bd   : > { %15053 = vmatprep.mubr.msk.f32.mxu1 %vm17138_vm1, %v22458_v63  ;;  %22503 = vst [vmem:[#allocation47_spill] sm:$0xff] %v20646_v6 }
 0x9c0   : > { %15054 = vmatmul.mubr.msk.f32.gmra.mrb[38].mxu1 %vm519_vm3, %v20634_v4  ;;  %v20652_v4 = vld [vmem:[#allocation2 + $0x410] sm:$0xff] }
 0x9c1   : > { %15056 = vmatprep.mubr.msk.f32.mxu1 %vm17138_vm1, %v22458_v63  ;;  %22504 = vst [vmem:[#allocation48_spill] sm:$0xff] %v20652_v4 }
 0x9c3   : > { %v7218_v61 = vpop.f32.mrb[102].mxu1 }
 0x9c4   : > { %v14897_v37 = vpop.f32.mrb[103].mxu1  ;;  %15057 = vmatmul.mubr.msk.f32.gmra.mrb[136].mxu1 %vm519_vm3, %v20640_v5  ;;  %v20658_v61 = vld [vmem:[#allocation2 + $0x418] sm:$0xff] }
 0x9c5   : > { %15059 = vmatprep.mubr.msk.f32.mxu1 %vm17138_vm1, %v22458_v63  ;;  %22505 = vst [vmem:[#allocation49_spill] sm:$0xff] %v20658_v61 }
 0x9c8   : > { %15060 = vmatmul.mubr.msk.f32.gmra.mrb[42].mxu1 %vm519_vm3, %v20646_v6  ;;  %v20664_v6 = vld [vmem:[#allocation2 + $0x420] sm:$0xff] }
 0x9c9   : > { %15062 = vmatprep.mubr.msk.f32.mxu1 %vm17138_vm1, %v22458_v63  ;;  %22506 = vst [vmem:[#allocation50_spill] sm:$0xff] %v20664_v6 }
 0x9cc   : > { %15063 = vmatmul.mubr.msk.f32.gmra.mrb[44].mxu1 %vm519_vm3, %v20652_v4  ;;  %v20670_v4 = vld [vmem:[#allocation2 + $0x428] sm:$0xff] }
 0x9cd   : > { %15065 = vmatprep.mubr.msk.f32.mxu1 %vm17138_vm1, %v22458_v63  ;;  %22507 = vst [vmem:[#allocation51_spill] sm:$0xff] %v20670_v4 }
 0x9cf   : > { %v7233_v37 = vpop.f32.mrb[104].mxu1 }
 0x9d0   : > { %v14906_v5 = vpop.f32.mrb[105].mxu1  ;;  %15066 = vmatmul.mubr.msk.f32.gmra.mrb[138].mxu1 %vm519_vm3, %v20658_v61  ;;  %v20676_v37 = vld [vmem:[#allocation2 + $0x430] sm:$0xff] }
 0x9d1   : > { %15068 = vmatprep.mubr.msk.f32.mxu1 %vm17138_vm1, %v22458_v63  ;;  %22508 = vst [vmem:[#allocation52_spill] sm:$0xff] %v20676_v37 }
 0x9d4   : > { %15069 = vmatmul.mubr.msk.f32.gmra.mrb[48].mxu1 %vm519_vm3, %v20664_v6  ;;  %v20682_v6 = vld [vmem:[#allocation2 + $0x438] sm:$0xff] }
 0x9d5   : > { %15071 = vmatprep.mubr.msk.f32.mxu1 %vm17138_vm1, %v22458_v63  ;;  %22509 = vst [vmem:[#allocation53_spill] sm:$0xff] %v20682_v6 }
 0x9d8   : > { %15072 = vmatmul.mubr.msk.f32.gmra.mrb[50].mxu1 %vm519_vm3, %v20670_v4  ;;  %v20688_v4 = vld [vmem:[#allocation2 + $0x440] sm:$0xff] }
 0x9d9   : > { %15074 = vmatprep.mubr.msk.f32.mxu1 %vm17138_vm1, %v22458_v63  ;;  %22510 = vst [vmem:[#allocation54_spill] sm:$0xff] %v20688_v4 }
 0x9db   : > { %v7248_v5 = vpop.f32.mrb[106].mxu1 }
 0x9dc   : > { %v14915_v61 = vpop.f32.mrb[107].mxu1  ;;  %15075 = vmatmul.mubr.msk.f32.gmra.mrb[140].mxu1 %vm519_vm3, %v20676_v37  ;;  %v20694_v5 = vld [vmem:[#allocation2 + $0x448] sm:$0xff] }
 0x9dd   : > { %15077 = vmatprep.mubr.msk.f32.mxu1 %vm17138_vm1, %v22458_v63  ;;  %22511 = vst [vmem:[#allocation55_spill] sm:$0xff] %v20694_v5 }
 0x9e0   : > { %15078 = vmatmul.mubr.msk.f32.gmra.mrb[54].mxu1 %vm519_vm3, %v20682_v6  ;;  %v20700_v6 = vld [vmem:[#allocation2 + $0x450] sm:$0xff] }
 0x9e1   : > { %15080 = vmatprep.mubr.msk.f32.mxu1 %vm17138_vm1, %v22458_v63  ;;  %22512 = vst [vmem:[#allocation56_spill] sm:$0xff] %v20700_v6 }
 0x9e4   : > { %15081 = vmatmul.mubr.msk.f32.gmra.mrb[56].mxu1 %vm519_vm3, %v20688_v4  ;;  %v20706_v4 = vld [vmem:[#allocation2 + $0x458] sm:$0xff] }
 0x9e5   : > { %15083 = vmatprep.mubr.msk.f32.mxu1 %vm17138_vm1, %v22458_v63  ;;  %22513 = vst [vmem:[#allocation57_spill] sm:$0xff] %v20706_v4 }
 0x9e7   : > { %v7263_v61 = vpop.f32.mrb[108].mxu1 }
 0x9e8   : > { %v14924_v37 = vpop.f32.mrb[109].mxu1  ;;  %15084 = vmatmul.mubr.msk.f32.gmra.mrb[142].mxu1 %vm519_vm3, %v20694_v5  ;;  %v20712_v61 = vld [vmem:[#allocation2 + $0x460] sm:$0xff] }
 0x9e9   : > { %15086 = vmatprep.mubr.msk.f32.mxu1 %vm17138_vm1, %v22458_v63  ;;  %22514 = vst [vmem:[#allocation58_spill] sm:$0xff] %v20712_v61 }
 0x9ec   : > { %15087 = vmatmul.mubr.msk.f32.gmra.mrb[60].mxu1 %vm519_vm3, %v20700_v6  ;;  %v20718_v6 = vld [vmem:[#allocation2 + $0x468] sm:$0xff] }
 0x9ed   : > { %15089 = vmatprep.mubr.msk.f32.mxu1 %vm17138_vm1, %v22458_v63  ;;  %22515 = vst [vmem:[#allocation59_spill] sm:$0xff] %v20718_v6 }
 0x9f0   : > { %15090 = vmatmul.mubr.msk.f32.gmra.mrb[62].mxu1 %vm519_vm3, %v20706_v4  ;;  %v20724_v4 = vld [vmem:[#allocation2 + $0x470] sm:$0xff] }
 0x9f1   : > { %15092 = vmatprep.mubr.msk.f32.mxu1 %vm17138_vm1, %v22458_v63  ;;  %22516 = vst [vmem:[#allocation60_spill] sm:$0xff] %v20724_v4 }
 0x9f3   : > { %v7278_v37 = vpop.f32.mrb[110].mxu1 }
 0x9f4   : > { %v14933_v5 = vpop.f32.mrb[111].mxu1  ;;  %15093 = vmatmul.mubr.msk.f32.gmra.mrb[144].mxu1 %vm519_vm3, %v20712_v61  ;;  %v20730_v37 = vld [vmem:[#allocation2 + $0x478] sm:$0xff] }
 0x9f5   : > { %15095 = vmatprep.mubr.msk.f32.mxu1 %vm17138_vm1, %v22458_v63  ;;  %22517 = vst [vmem:[#allocation61_spill] sm:$0xff] %v20730_v37 }
 0x9f8   : > { %15096 = vmatmul.mubr.msk.f32.gmra.mrb[66].mxu1 %vm519_vm3, %v20718_v6  ;;  %v20736_v6 = vld [vmem:[#allocation2 + $0x480] sm:$0xff] }
 0x9f9   : > { %15098 = vmatprep.mubr.msk.f32.mxu1 %vm17138_vm1, %v22458_v63  ;;  %22518 = vst [vmem:[#allocation62_spill] sm:$0xff] %v20736_v6 }
 0x9fc   : > { %15099 = vmatmul.mubr.msk.f32.gmra.mrb[68].mxu1 %vm519_vm3, %v20724_v4  ;;  %v20742_v4 = vld [vmem:[#allocation2 + $0x488] sm:$0xff] }
 0x9fd   : > { %15101 = vmatprep.mubr.msk.f32.mxu1 %vm17138_vm1, %v22458_v63  ;;  %22519 = vst [vmem:[#allocation63_spill] sm:$0xff] %v20742_v4 }
 0x9ff   : > { %v7293_v5 = vpop.f32.mrb[112].mxu1 }
 0xa00   : > { %v14942_v61 = vpop.f32.mrb[113].mxu1  ;;  %15102 = vmatmul.mubr.msk.f32.gmra.mrb[146].mxu1 %vm519_vm3, %v20730_v37  ;;  %v20748_v5 = vld [vmem:[#allocation2 + $0x490] sm:$0xff] }
 0xa01   : > { %15104 = vmatprep.mubr.msk.f32.mxu1 %vm17138_vm1, %v22458_v63  ;;  %22520 = vst [vmem:[#allocation64_spill] sm:$0xff] %v20748_v5 }
 0xa04   : > { %15105 = vmatmul.mubr.msk.f32.gmra.mrb[72].mxu1 %vm519_vm3, %v20736_v6  ;;  %v20754_v6 = vld [vmem:[#allocation2 + $0x498] sm:$0xff] }
 0xa05   : > { %15107 = vmatprep.mubr.msk.f32.mxu1 %vm17138_vm1, %v22458_v63  ;;  %22521 = vst [vmem:[#allocation65_spill] sm:$0xff] %v20754_v6 }
 0xa08   : > { %15108 = vmatmul.mubr.msk.f32.gmra.mrb[74].mxu1 %vm519_vm3, %v20742_v4  ;;  %v20760_v4 = vld [vmem:[#allocation2 + $0x4a0] sm:$0xff] }
 0xa09   : > { %15110 = vmatprep.mubr.msk.f32.mxu1 %vm17138_vm1, %v22458_v63  ;;  %22522 = vst [vmem:[#allocation66_spill] sm:$0xff] %v20760_v4 }
 0xa0b   : > { %v7308_v61 = vpop.f32.mrb[114].mxu1 }
 0xa0c   : > { %v14951_v37 = vpop.f32.mrb[115].mxu1  ;;  %15111 = vmatmul.mubr.msk.f32.gmra.mrb[148].mxu1 %vm519_vm3, %v20748_v5  ;;  %v20766_v61 = vld [vmem:[#allocation2 + $0x4a8] sm:$0xff] }
 0xa0d   : > { %15113 = vmatprep.mubr.msk.f32.mxu1 %vm17138_vm1, %v22458_v63  ;;  %22523 = vst [vmem:[#allocation67_spill] sm:$0xff] %v20766_v61 }
 0xa10   : > { %15114 = vmatmul.mubr.msk.f32.gmra.mrb[78].mxu1 %vm519_vm3, %v20754_v6  ;;  %v20772_v6 = vld [vmem:[#allocation2 + $0x4b0] sm:$0xff] }
 0xa11   : > { %15116 = vmatprep.mubr.msk.f32.mxu1 %vm17138_vm1, %v22458_v63  ;;  %22524 = vst [vmem:[#allocation68_spill] sm:$0xff] %v20772_v6 }
 0xa14   : > { %15117 = vmatmul.mubr.msk.f32.gmra.mrb[80].mxu1 %vm519_vm3, %v20760_v4  ;;  %v20778_v4 = vld [vmem:[#allocation2 + $0x4b8] sm:$0xff] }
 0xa15   : > { %15119 = vmatprep.mubr.msk.f32.mxu1 %vm17138_vm1, %v22458_v63  ;;  %22525 = vst [vmem:[#allocation69_spill] sm:$0xff] %v20778_v4 }
 0xa17   : > { %v7323_v37 = vpop.f32.mrb[116].mxu1 }
 0xa18   : > { %v14960_v5 = vpop.f32.mrb[117].mxu1  ;;  %15120 = vmatmul.mubr.msk.f32.gmra.mrb[150].mxu1 %vm519_vm3, %v20766_v61  ;;  %v20784_v37 = vld [vmem:[#allocation2 + $0x4c0] sm:$0xff] }
 0xa19   : > { %15122 = vmatprep.mubr.msk.f32.mxu1 %vm17138_vm1, %v22458_v63  ;;  %22526 = vst [vmem:[#allocation70_spill] sm:$0xff] %v20784_v37 }
 0xa1c   : > { %15123 = vmatmul.mubr.msk.f32.gmra.mrb[84].mxu1 %vm519_vm3, %v20772_v6  ;;  %v20790_v6 = vld [vmem:[#allocation2 + $0x4c8] sm:$0xff] }
 0xa1d   : > { %15125 = vmatprep.mubr.msk.f32.mxu1 %vm17138_vm1, %v22458_v63 }
 0xa20   : > { %15126 = vmatmul.mubr.msk.f32.gmra.mrb[86].mxu1 %vm519_vm3, %v20778_v4  ;;  %v20796_v4 = vld [vmem:[#allocation2 + $0x4d0] sm:$0xff] }
 0xa21   : > { %15128 = vmatprep.mubr.msk.f32.mxu1 %vm17138_vm1, %v22458_v63 }
 0xa23   : > { %v7338_v5 = vpop.f32.mrb[118].mxu1 }
 0xa24   : > { %v14969_v61 = vpop.f32.mrb[119].mxu1  ;;  %15129 = vmatmul.mubr.msk.f32.gmra.mrb[152].mxu1 %vm519_vm3, %v20784_v37 }
 0xa25   : > { %15131 = vmatprep.mubr.msk.f32.mxu1 %vm17138_vm1, %v22458_v63  ;;  %v270_v61 = vld [vmem:[%s22327_s3 + $0x10] sm:$0xf] }
 0xa28   : > { %15132 = vmatmul.mubr.msk.f32.gmra.mrb[90].mxu1 %vm519_vm3, %v20790_v6 }
 0xa29   : > { %15134 = vmatprep.mubr.msk.f32.mxu1 %vm17138_vm1, %v22458_v63 }
 0xa2c   : > { %15135 = vmatmul.mubr.msk.f32.gmra.mrb[92].mxu1 %vm519_vm3, %v20796_v4 }
 0xa2d   : > { %15139 = vmatprep.mubr.msk.f32.mxu1 %vm17138_vm1, %v22458_v63 }
 0xa2f   : > { %v7353_v5 = vpop.f32.mrb[120].mxu1 }
 0xa30   : > { %v14978_v37 = vpop.f32.mrb[121].mxu1  ;;  %15140 = vmatmul.mubr.msk.f32.vlgmr.msra.gmra.mrb[0].mxu1 %vm519_vm3, %v19994_v59  ;;  %v22536_v5 = vld [vmem:[#allocation12_spill] sm:$0xff] }
 0xa31   : > { %15281 = vmatpush3.msk.msra.mxu1 %vm880_vm0, %v270_v61  ;;  %15142 = vmatprep.mubr.msk.f32.mxu1 %vm17138_vm1, %v22458_v63  ;;  %v22535_v61 = vld [vmem:[#allocation11_spill] sm:$0xff] }
 0xa32   : > { %15423 = vmatprep.subr.mxu1 %v22458_v63 }
 0xa34   : > { %15143 = vmatmul.mubr.msk.f32.gmra.mrb[2].mxu1 %vm519_vm3, %v20000_v22 }
 0xa35   : > { %15145 = vmatprep.mubr.msk.f32.mxu1 %vm17138_vm1, %v22458_v63 }
 0xa38   : > { %15146 = vmatmul.mubr.msk.f32.gmra.mrb[154].mxu1 %vm519_vm3, %v20006_v27 }
 0xa39   : > { %15148 = vmatprep.mubr.msk.f32.mxu1 %vm17138_vm1, %v22458_v63 }
 0xa3b   : > { %v7368_v59 = vpop.f32.mrb[122].mxu1 }
 0xa3c   : > { %v14987_v37 = vpop.f32.mrb[123].mxu1  ;;  %15149 = vmatmul.mubr.msk.f32.gmra.mrb[6].mxu1 %vm519_vm3, %v20012_v0  ;;  %v22537_v59 = vld [vmem:[#allocation13_spill] sm:$0xff] }
 0xa3d   : > { %15151 = vmatprep.mubr.msk.f32.mxu1 %vm17138_vm1, %v22458_v63 }
 0xa40   : > { %15152 = vmatmul.mubr.msk.f32.gmra.mrb[8].mxu1 %vm519_vm3, %v20018_v54 }
 0xa41   : > { %15154 = vmatprep.mubr.msk.f32.mxu1 %vm17138_vm1, %v22458_v63 }
 0xa44   : > { %15155 = vmatmul.mubr.msk.f32.gmra.mrb[156].mxu1 %vm519_vm3, %v20024_v58 }
 0xa45   : > { %15157 = vmatprep.mubr.msk.f32.mxu1 %vm17138_vm1, %v22458_v63 }
 0xa48   : > { %15158 = vmatmul.mubr.msk.f32.gmra.mrb[12].mxu1 %vm519_vm3, %v20030_v12 }
 0xa49   : > { %15160 = vmatprep.mubr.msk.f32.mxu1 %vm17138_vm1, %v22458_v63 }
 0xa4c   : > { %15161 = vmatmul.mubr.msk.f32.gmra.mrb[14].mxu1 %vm519_vm3, %v20036_v55 }
 0xa4d   : > { %15163 = vmatprep.mubr.msk.f32.mxu1 %vm17138_vm1, %v22458_v63 }
 0xa4f   : > { %v7696_v22 = vpop.f32.mrb[124].mxu1 }
 0xa50   : > { %v15004_v27 = vpop.f32.mrb[125].mxu1  ;;  %15164 = vmatmul.mubr.msk.f32.gmra.mrb[158].mxu1 %vm519_vm3, %v20042_v29 }
 0xa51   : > { %15166 = vmatprep.mubr.msk.f32.mxu1 %vm17138_vm1, %v22458_v63  ;;  %v22538_v27 = vld [vmem:[#allocation14_spill] sm:$0xff] }
 0xa54   : > { %15167 = vmatmul.mubr.msk.f32.gmra.mrb[18].mxu1 %vm519_vm3, %v20048_v35 }
 0xa55   : > { %15169 = vmatprep.mubr.msk.f32.mxu1 %vm17138_vm1, %v22458_v63 }
 0xa58   : > { %15170 = vmatmul.mubr.msk.f32.gmra.mrb[20].mxu1 %vm519_vm3, %v20054_v11 }
 0xa59   : > { %15172 = vmatprep.mubr.msk.f32.mxu1 %vm17138_vm1, %v22458_v63 }
 0xa5b   : > { %v7711_v0 = vpop.f32.mrb[126].mxu1 }
 0xa5c   : > { %v15013_v54 = vpop.f32.mrb[127].mxu1  ;;  %15173 = vmatmul.mubr.msk.f32.gmra.mrb[160].mxu1 %vm519_vm3, %v20060_v46  ;;  %v22539_v0 = vld [vmem:[#allocation15_spill] sm:$0xff] }
 0xa5d   : > { %15175 = vmatprep.mubr.msk.f32.mxu1 %vm17138_vm1, %v22458_v63  ;;  %v22540_v54 = vld [vmem:[#allocation16_spill] sm:$0xff] }
 0xa60   : > { %15176 = vmatmul.mubr.msk.f32.gmra.mrb[24].mxu1 %vm519_vm3, %v20066_v40 }
 0xa61   : > { %15178 = vmatprep.mubr.msk.f32.mxu1 %vm17138_vm1, %v22458_v63 }
 0xa64   : > { %15179 = vmatmul.mubr.msk.f32.gmra.mrb[26].mxu1 %vm519_vm3, %v20072_v50 }
 0xa65   : > { %15181 = vmatprep.mubr.msk.f32.mxu1 %vm17138_vm1, %v22458_v63 }
 0xa67   : > { %v7726_v58 = vpop.f32.mrb[128].mxu1 }
 0xa68   : > { %v15022_v12 = vpop.f32.mrb[129].mxu1  ;;  %15182 = vmatmul.mubr.msk.f32.gmra.mrb[162].mxu1 %vm519_vm3, %v20078_v34 }
 0xa69   : > { %15184 = vmatprep.mubr.msk.f32.mxu1 %vm17138_vm1, %v22458_v63 }
 0xa6c   : > { %15185 = vmatmul.mubr.msk.f32.gmra.mrb[30].mxu1 %vm519_vm3, %v20084_v60 }
 0xa6d   : > { %15187 = vmatprep.mubr.msk.f32.mxu1 %vm17138_vm1, %v22458_v63 }
 0xa70   : > { %15188 = vmatmul.mubr.msk.f32.gmra.mrb[32].mxu1 %vm519_vm3, %v20090_v13 }
 0xa71   : > { %15190 = vmatprep.mubr.msk.f32.mxu1 %vm17138_vm1, %v22458_v63 }
 0xa73   : > { %v7741_v55 = vpop.f32.mrb[130].mxu1 }
 0xa74   : > { %v15031_v29 = vpop.f32.mrb[131].mxu1  ;;  %15191 = vmatmul.mubr.msk.f32.gmra.mrb[164].mxu1 %vm519_vm3, %v20096_v15  ;;  %v22541_v55 = vld [vmem:[#allocation17_spill] sm:$0xff] }
 0xa75   : > { %15193 = vmatprep.mubr.msk.f32.mxu1 %vm17138_vm1, %v22458_v63  ;;  %v22542_v29 = vld [vmem:[#allocation18_spill] sm:$0xff] }
 0xa78   : > { %15194 = vmatmul.mubr.msk.f32.gmra.mrb[36].mxu1 %vm519_vm3, %v20102_v21 }
 0xa79   : > { %15196 = vmatprep.mubr.msk.f32.mxu1 %vm17138_vm1, %v22458_v63 }
 0xa7c   : > { %15197 = vmatmul.mubr.msk.f32.gmra.mrb[38].mxu1 %vm519_vm3, %v20108_v42 }
 0xa7d   : > { %15199 = vmatprep.mubr.msk.f32.mxu1 %vm17138_vm1, %v22458_v63 }
 0xa7f   : > { %v7756_v35 = vpop.f32.mrb[132].mxu1 }
 0xa80   : > { %v15040_v11 = vpop.f32.mrb[133].mxu1  ;;  %15200 = vmatmul.mubr.msk.f32.gmra.mrb[166].mxu1 %vm519_vm3, %v20114_v28  ;;  %v22543_v35 = vld [vmem:[#allocation19_spill] sm:$0xff] }
 0xa81   : > { %15202 = vmatprep.mubr.msk.f32.mxu1 %vm17138_vm1, %v22458_v63 }
 0xa84   : > { %15203 = vmatmul.mubr.msk.f32.gmra.mrb[42].mxu1 %vm519_vm3, %v20120_v1 }
 0xa85   : > { %15205 = vmatprep.mubr.msk.f32.mxu1 %vm17138_vm1, %v22458_v63 }
 0xa88   : > { %15206 = vmatmul.mubr.msk.f32.gmra.mrb[44].mxu1 %vm519_vm3, %v20126_v19 }
 0xa89   : > { %15208 = vmatprep.mubr.msk.f32.mxu1 %vm17138_vm1, %v22458_v63 }
 0xa8b   : > { %v7771_v46 = vpop.f32.mrb[134].mxu1 }
 0xa8c   : > { %v15049_v40 = vpop.f32.mrb[135].mxu1  ;;  %15209 = vmatmul.mubr.msk.f32.gmra.mrb[168].mxu1 %vm519_vm3, %v20132_v20 }
 0xa8d   : > { %15211 = vmatprep.mubr.msk.f32.mxu1 %vm17138_vm1, %v22458_v63  ;;  %v22544_v40 = vld [vmem:[#allocation20_spill] sm:$0xff] }
 0xa90   : > { %15212 = vmatmul.mubr.msk.f32.gmra.mrb[48].mxu1 %vm519_vm3, %v20138_v44 }
 0xa91   : > { %15214 = vmatprep.mubr.msk.f32.mxu1 %vm17138_vm1, %v22458_v63 }
 0xa94   : > { %15215 = vmatmul.mubr.msk.f32.gmra.mrb[50].mxu1 %vm519_vm3, %v20144_v47 }
 0xa95   : > { %15217 = vmatprep.mubr.msk.f32.mxu1 %vm17138_vm1, %v22458_v63 }
 0xa97   : > { %v7786_v50 = vpop.f32.mrb[136].mxu1 }
 0xa98   : > { %v15058_v34 = vpop.f32.mrb[137].mxu1  ;;  %15218 = vmatmul.mubr.msk.f32.gmra.mrb[170].mxu1 %vm519_vm3, %v20150_v52  ;;  %v20983_v52 = vld [vmem:[#allocation2 + $0x178] sm:$0xff]  ;;  %v22545_v50 = vld [vmem:[#allocation21_spill] sm:$0xff] }
 0xa99   : > { %15220 = vmatprep.mubr.msk.f32.mxu1 %vm17138_vm1, %v22458_v63  ;;  %v22546_v34 = vld [vmem:[#allocation22_spill] sm:$0xff] }
 0xa9c   : > { %15221 = vmatmul.mubr.msk.f32.gmra.mrb[54].mxu1 %vm519_vm3, %v20156_v26 }
 0xa9d   : > { %15223 = vmatprep.mubr.msk.f32.mxu1 %vm17138_vm1, %v22458_v63 }
 0xaa0   : > { %15224 = vmatmul.mubr.msk.f32.gmra.mrb[56].mxu1 %vm519_vm3, %v20162_v31  ;;  %v20989_v31 = vld [vmem:[#allocation2 + $0x180] sm:$0xff] }
 0xaa1   : > { %15226 = vmatprep.mubr.msk.f32.mxu1 %vm17138_vm1, %v22458_v63 }
 0xaa3   : > { %v7801_v60 = vpop.f32.mrb[138].mxu1 }
 0xaa4   : > { %v15067_v13 = vpop.f32.mrb[139].mxu1  ;;  %15227 = vmatmul.mubr.msk.f32.gmra.mrb[172].mxu1 %vm519_vm3, %v20168_v25  ;;  %v20995_v25 = vld [vmem:[#allocation2 + $0x188] sm:$0xff] }
 0xaa5   : > { %15229 = vmatprep.mubr.msk.f32.mxu1 %vm17138_vm1, %v22458_v63 }
 0xaa8   : > { %15230 = vmatmul.mubr.msk.f32.gmra.mrb[60].mxu1 %vm519_vm3, %v20174_v38  ;;  %v271_v38 = vld [vmem:[%s22327_s3 + $0x14] sm:$0xf] }
 0xaa9   : > { %15232 = vmatprep.mubr.msk.f32.mxu1 %vm17138_vm1, %v22458_v63 }
 0xaac   : > { %15233 = vmatmul.mubr.msk.f32.gmra.mrb[62].mxu1 %vm519_vm3, %v20180_v56 }
 0xaad   : > { %15235 = vmatprep.mubr.msk.f32.mxu1 %vm17138_vm1, %v22458_v63 }
 0xaaf   : > { %v7816_v15 = vpop.f32.mrb[140].mxu1 }
 0xab0   : > { %v15076_v21 = vpop.f32.mrb[141].mxu1  ;;  %15236 = vmatmul.mubr.msk.f32.gmra.mrb[174].mxu1 %vm519_vm3, %v20186_v9  ;;  %v22547_v15 = vld [vmem:[#allocation23_spill] sm:$0xff] }
 0xab1   : > { %15238 = vmatprep.mubr.msk.f32.mxu1 %vm17138_vm1, %v22458_v63  ;;  %v22548_v21 = vld [vmem:[#allocation24_spill] sm:$0xff] }
 0xab4   : > { %15239 = vmatmul.mubr.msk.f32.gmra.mrb[66].mxu1 %vm519_vm3, %v20192_v16 }
 0xab5   : > { %15241 = vmatprep.mubr.msk.f32.mxu1 %vm17138_vm1, %v22458_v63 }
 0xab8   : > { %15242 = vmatmul.mubr.msk.f32.gmra.mrb[68].mxu1 %vm519_vm3, %v20198_v49  ;;  %v21018_v49 = vld [vmem:[#allocation2 + $0x1e0] sm:$0xff] }
 0xab9   : > { %15244 = vmatprep.mubr.msk.f32.mxu1 %vm17138_vm1, %v22458_v63 }
 0xabb   : > { %v7831_v42 = vpop.f32.mrb[142].mxu1 }
 0xabc   : > { %v15085_v28 = vpop.f32.mrb[143].mxu1  ;;  %15245 = vmatmul.mubr.msk.f32.gmra.mrb[176].mxu1 %vm519_vm3, %v20204_v3  ;;  %v22549_v42 = vld [vmem:[#allocation25_spill] sm:$0xff] }
 0xabd   : > { %15247 = vmatprep.mubr.msk.f32.mxu1 %vm17138_vm1, %v22458_v63 }
 0xac0   : > { %15248 = vmatmul.mubr.msk.f32.gmra.mrb[72].mxu1 %vm519_vm3, %v20210_v39  ;;  %v21024_v39 = vld [vmem:[#allocation2 + $0x1e8] sm:$0xff] }
 0xac1   : > { %15250 = vmatprep.mubr.msk.f32.mxu1 %vm17138_vm1, %v22458_v63 }
 0xac4   : > { %15251 = vmatmul.mubr.msk.f32.gmra.mrb[74].mxu1 %vm519_vm3, %v20216_v43 }
 0xac5   : > { %15253 = vmatprep.mubr.msk.f32.mxu1 %vm17138_vm1, %v22458_v63 }
 0xac7   : > { %v7846_v1 = vpop.f32.mrb[144].mxu1 }
 0xac8   : > { %v15094_v19 = vpop.f32.mrb[145].mxu1  ;;  %15254 = vmatmul.mubr.msk.f32.gmra.mrb[178].mxu1 %vm519_vm3, %v20222_v18 }
 0xac9   : > { %15256 = vmatprep.mubr.msk.f32.mxu1 %vm17138_vm1, %v22458_v63  ;;  %v22550_v19 = vld [vmem:[#allocation26_spill] sm:$0xff] }
 0xacc   : > { %15257 = vmatmul.mubr.msk.f32.gmra.mrb[78].mxu1 %vm519_vm3, %v20228_v2 }
 0xacd   : > { %15259 = vmatprep.mubr.msk.f32.mxu1 %vm17138_vm1, %v22458_v63 }
 0xad0   : > { %15260 = vmatmul.mubr.msk.f32.gmra.mrb[80].mxu1 %vm519_vm3, %v20234_v24 }
 0xad1   : > { %15262 = vmatprep.mubr.msk.f32.mxu1 %vm17138_vm1, %v22458_v63 }
 0xad3   : > { %v7861_v20 = vpop.f32.mrb[146].mxu1 }
 0xad4   : > { %v15103_v44 = vpop.f32.mrb[147].mxu1  ;;  %15263 = vmatmul.mubr.msk.f32.gmra.mrb[180].mxu1 %vm519_vm3, %v20240_v36  ;;  %v22551_v20 = vld [vmem:[#allocation27_spill] sm:$0xff] }
 0xad5   : > { %15265 = vmatprep.mubr.msk.f32.mxu1 %vm17138_vm1, %v22458_v63  ;;  %v22552_v44 = vld [vmem:[#allocation28_spill] sm:$0xff] }
 0xad8   : > { %15266 = vmatmul.mubr.msk.f32.gmra.mrb[84].mxu1 %vm519_vm3, %v20246_v8 }
 0xad9   : > { %15268 = vmatprep.mubr.msk.f32.mxu1 %vm17138_vm1, %v22458_v63 }
 0xadc   : > { %15269 = vmatmul.mubr.msk.f32.gmra.mrb[86].mxu1 %vm519_vm3, %v20252_v62  ;;  %v22527_v62 = vld [vmem:[#allocation3_spill] sm:$0xff] }
 0xadd   : > { %15271 = vmatprep.mubr.msk.f32.mxu1 %vm17138_vm1, %v22458_v63 }
 0xadf   : > { %v7876_v47 = vpop.f32.mrb[148].mxu1 }
 0xae0   : > { %v15112_v26 = vpop.f32.mrb[149].mxu1  ;;  %15272 = vmatmul.mubr.msk.f32.gmra.mrb[182].mxu1 %vm519_vm3, %v20983_v52 }
 0xae1   : > { %15274 = vmatprep.mubr.msk.f32.mxu1 %vm17138_vm1, %v22458_v63 }
 0xae4   : > { %15275 = vmatmul.mubr.msk.f32.gmra.mrb[90].mxu1 %vm519_vm3, %v20989_v31 }
 0xae5   : > { %15277 = vmatprep.mubr.msk.f32.mxu1 %vm17138_vm1, %v22458_v63 }
 0xae8   : > { %15278 = vmatmul.mubr.msk.f32.gmra.mrb[92].mxu1 %vm519_vm3, %v20995_v25 }
 0xae9   : > { %15282 = vmatprep.mubr.msk.f32.mxu1 %vm17138_vm1, %v22458_v63 }
 0xaeb   : > { %v7891_v56 = vpop.f32.mrb[150].mxu1 }
 0xaec   : > { %v15121_v9 = vpop.f32.mrb[151].mxu1  ;;  %15283 = vmatmul.mubr.msk.f32.vlgmr.msra.gmra.mrb[0].mxu1 %vm519_vm3, %v20272_v51  ;;  %v22528_v51 = vld [vmem:[#allocation4_spill] sm:$0xff]  ;;  %v22554_v56 = vld [vmem:[#allocation30_spill] sm:$0xff] }
 0xaed   : > { %15424 = vmatpush3.msk.msra.mxu1 %vm880_vm0, %v271_v38  ;;  %15285 = vmatprep.mubr.msk.f32.mxu1 %vm17138_vm1, %v22458_v63  ;;  %v22553_v38 = vld [vmem:[#allocation29_spill] sm:$0xff]  ;;  %v22555_v9 = vld [vmem:[#allocation31_spill] sm:$0xff] }
 0xaee   : > { %15566 = vmatprep.subr.mxu1 %v22458_v63 }
 0xaf0   : > { %15286 = vmatmul.mubr.msk.f32.gmra.mrb[2].mxu1 %vm519_vm3, %v20278_v7 }
 0xaf1   : > { %15288 = vmatprep.mubr.msk.f32.mxu1 %vm17138_vm1, %v22458_v63 }
 0xaf4   : > { %15289 = vmatmul.mubr.msk.f32.gmra.mrb[184].mxu1 %vm519_vm3, %v20284_v33 }
 0xaf5   : > { %15291 = vmatprep.mubr.msk.f32.mxu1 %vm17138_vm1, %v22458_v63 }
 0xaf7   : > { %v7906_v16 = vpop.f32.mrb[152].mxu1 }
 0xaf8   : > { %v15130_v3 = vpop.f32.mrb[153].mxu1  ;;  %15292 = vmatmul.mubr.msk.f32.gmra.mrb[6].mxu1 %vm519_vm3, %v21018_v49 }
 0xaf9   : > { %15294 = vmatprep.mubr.msk.f32.mxu1 %vm17138_vm1, %v22458_v63  ;;  %v21186_v3 = vld [vmem:[#allocation2 + $0x328] sm:$0xff] }
 0xafc   : > { %15295 = vmatmul.mubr.msk.f32.gmra.mrb[8].mxu1 %vm519_vm3, %v21024_v39 }
 0xafd   : > { %15297 = vmatprep.mubr.msk.f32.mxu1 %vm17138_vm1, %v22458_v63 }
 0xb00   : > { %15298 = vmatmul.mubr.msk.f32.gmra.mrb[186].mxu1 %vm519_vm3, %v20296_v23  ;;  %v22529_v23 = vld [vmem:[#allocation5_spill] sm:$0xff] }
 0xb01   : > { %15300 = vmatprep.mubr.msk.f32.mxu1 %vm17138_vm1, %v22458_v63 }
 0xb04   : > { %15301 = vmatmul.mubr.msk.f32.gmra.mrb[12].mxu1 %vm519_vm3, %v20302_v10  ;;  %v22530_v10 = vld [vmem:[#allocation6_spill] sm:$0xff] }
 0xb05   : > { %15303 = vmatprep.mubr.msk.f32.mxu1 %vm17138_vm1, %v22458_v63 }
 0xb08   : > { %15304 = vmatmul.mubr.msk.f32.gmra.mrb[14].mxu1 %vm519_vm3, %v20308_v32  ;;  %v22531_v32 = vld [vmem:[#allocation7_spill] sm:$0xff] }
 0xb09   : > { %15306 = vmatprep.mubr.msk.f32.mxu1 %vm17138_vm1, %v22458_v63 }
 0xb0b   : > { %v8234_v43 = vpop.f32.mrb[154].mxu1 }
 0xb0c   : > { %v15147_v18 = vpop.f32.mrb[155].mxu1  ;;  %15307 = vmatmul.mubr.msk.f32.gmra.mrb[188].mxu1 %vm519_vm3, %v20314_v41 }
 0xb0d   : > { %15309 = vmatprep.mubr.msk.f32.mxu1 %vm17138_vm1, %v22458_v63  ;;  %v21192_v18 = vld [vmem:[#allocation2 + $0x330] sm:$0xff] }
 0xb10   : > { %15310 = vmatmul.mubr.msk.f32.gmra.mrb[18].mxu1 %vm519_vm3, %v20320_v48 }
 0xb11   : > { %15312 = vmatprep.mubr.msk.f32.mxu1 %vm17138_vm1, %v22458_v63 }
 0xb14   : > { %15313 = vmatmul.mubr.msk.f32.gmra.mrb[20].mxu1 %vm519_vm3, %v20326_v14  ;;  %v22532_v14 = vld [vmem:[#allocation8_spill] sm:$0xff] }
 0xb15   : > { %15315 = vmatprep.mubr.msk.f32.mxu1 %vm17138_vm1, %v22458_v63 }
 0xb17   : > { %v8249_v2 = vpop.f32.mrb[156].mxu1 }
 0xb18   : > { %v15156_v24 = vpop.f32.mrb[157].mxu1  ;;  %15316 = vmatmul.mubr.msk.f32.gmra.mrb[190].mxu1 %vm519_vm3, %v20332_v30  ;;  %v22533_v30 = vld [vmem:[#allocation9_spill] sm:$0xff]  ;;  %v21198_v2 = vld [vmem:[#allocation2 + $0x338] sm:$0xff] }
 0xb19   : > { %15318 = vmatprep.mubr.msk.f32.mxu1 %vm17138_vm1, %v22458_v63  ;;  %v272_v24 = vld [vmem:[%s22327_s3 + $0x18] sm:$0xf] }
 0xb1c   : > { %15319 = vmatmul.mubr.msk.f32.gmra.mrb[24].mxu1 %vm519_vm3, %v20338_v57  ;;  %v22534_v57 = vld [vmem:[#allocation10_spill] sm:$0xff] }
 0xb1d   : > { %15321 = vmatprep.mubr.msk.f32.mxu1 %vm17138_vm1, %v22458_v63 }
 0xb20   : > { %15322 = vmatmul.mubr.msk.f32.gmra.mrb[26].mxu1 %vm519_vm3, %v20344_v45 }
 0xb21   : > { %15324 = vmatprep.mubr.msk.f32.mxu1 %vm17138_vm1, %v22458_v63 }
 0xb23   : > { %v8264_v36 = vpop.f32.mrb[158].mxu1 }
 0xb24   : > { %v15165_v8 = vpop.f32.mrb[159].mxu1  ;;  %15325 = vmatmul.mubr.msk.f32.gmra.mrb[192].mxu1 %vm519_vm3, %v20350_v17 }
 0xb25   : > { %15327 = vmatprep.mubr.msk.f32.mxu1 %vm17138_vm1, %v22458_v63 }
 0xb28   : > { %15328 = vmatmul.mubr.msk.f32.gmra.mrb[30].mxu1 %vm519_vm3, %v22527_v62  ;;  %v22556_v62 = vld [vmem:[#allocation32_spill] sm:$0xff] }
 0xb29   : > { %15330 = vmatprep.mubr.msk.f32.mxu1 %vm17138_vm1, %v22458_v63 }
 0xb2c   : > { %15331 = vmatmul.mubr.msk.f32.gmra.mrb[32].mxu1 %vm519_vm3, %v22528_v51  ;;  %v22557_v51 = vld [vmem:[#allocation33_spill] sm:$0xff] }
 0xb2d   : > { %15333 = vmatprep.mubr.msk.f32.mxu1 %vm17138_vm1, %v22458_v63 }
 0xb2f   : > { %v8279_v7 = vpop.f32.mrb[160].mxu1 }
 0xb30   : > { %v15174_v33 = vpop.f32.mrb[161].mxu1  ;;  %15334 = vmatmul.mubr.msk.f32.gmra.mrb[194].mxu1 %vm519_vm3, %v22529_v23 }
 0xb31   : > { %15336 = vmatprep.mubr.msk.f32.mxu1 %vm17138_vm1, %v22458_v63  ;;  %v21221_v33 = vld [vmem:[#allocation2 + $0x390] sm:$0xff] }
 0xb34   : > { %15337 = vmatmul.mubr.msk.f32.gmra.mrb[36].mxu1 %vm519_vm3, %v22530_v10  ;;  %v21227_v10 = vld [vmem:[#allocation2 + $0x398] sm:$0xff] }
 0xb35   : > { %15339 = vmatprep.mubr.msk.f32.mxu1 %vm17138_vm1, %v22458_v63 }
 0xb38   : > { %15340 = vmatmul.mubr.msk.f32.gmra.mrb[38].mxu1 %vm519_vm3, %v22531_v32  ;;  %v22559_v32 = vld [vmem:[#allocation35_spill] sm:$0xff] }
 0xb39   : > { %15342 = vmatprep.mubr.msk.f32.mxu1 %vm17138_vm1, %v22458_v63 }
 0xb3b   : > { %v8294_v41 = vpop.f32.mrb[162].mxu1 }
 0xb3c   : > { %v15183_v48 = vpop.f32.mrb[163].mxu1  ;;  %15343 = vmatmul.mubr.msk.f32.gmra.mrb[196].mxu1 %vm519_vm3, %v22532_v14  ;;  %v22560_v41 = vld [vmem:[#allocation36_spill] sm:$0xff] }
 0xb3d   : > { %15345 = vmatprep.mubr.msk.f32.mxu1 %vm17138_vm1, %v22458_v63 }
 0xb40   : > { %15346 = vmatmul.mubr.msk.f32.gmra.mrb[42].mxu1 %vm519_vm3, %v22533_v30  ;;  %v22561_v30 = vld [vmem:[#allocation37_spill] sm:$0xff] }
 0xb41   : > { %15348 = vmatprep.mubr.msk.f32.mxu1 %vm17138_vm1, %v22458_v63 }
 0xb44   : > { %15349 = vmatmul.mubr.msk.f32.gmra.mrb[44].mxu1 %vm519_vm3, %v22534_v57  ;;  %v22562_v57 = vld [vmem:[#allocation38_spill] sm:$0xff] }
 0xb45   : > { %15351 = vmatprep.mubr.msk.f32.mxu1 %vm17138_vm1, %v22458_v63 }
 0xb47   : > { %v8309_v45 = vpop.f32.mrb[164].mxu1 }
 0xb48   : > { %v15192_v17 = vpop.f32.mrb[165].mxu1  ;;  %15352 = vmatmul.mubr.msk.f32.gmra.mrb[198].mxu1 %vm519_vm3, %v22535_v61  ;;  %v22563_v45 = vld [vmem:[#allocation39_spill] sm:$0xff] }
 0xb49   : > { %15354 = vmatprep.mubr.msk.f32.mxu1 %vm17138_vm1, %v22458_v63 }
 0xb4c   : > { %15355 = vmatmul.mubr.msk.f32.gmra.mrb[48].mxu1 %vm519_vm3, %v22536_v5  ;;  %v22564_v5 = vld [vmem:[#allocation40_spill] sm:$0xff] }
 0xb4d   : > { %15357 = vmatprep.mubr.msk.f32.mxu1 %vm17138_vm1, %v22458_v63 }
 0xb50   : > { %15358 = vmatmul.mubr.msk.f32.gmra.mrb[50].mxu1 %vm519_vm3, %v22537_v59  ;;  %v22565_v59 = vld [vmem:[#allocation41_spill] sm:$0xff] }
 0xb51   : > { %15360 = vmatprep.mubr.msk.f32.mxu1 %vm17138_vm1, %v22458_v63 }
 0xb53   : > { %v8324_v37 = vpop.f32.mrb[166].mxu1 }
 0xb54   : > { %v15201_v22 = vpop.f32.mrb[167].mxu1  ;;  %15361 = vmatmul.mubr.msk.f32.gmra.mrb[200].mxu1 %vm519_vm3, %v22538_v27  ;;  %v22566_v37 = vld [vmem:[#allocation42_spill] sm:$0xff] }
 0xb55   : > { %15363 = vmatprep.mubr.msk.f32.mxu1 %vm17138_vm1, %v22458_v63 }
 0xb58   : > { %15364 = vmatmul.mubr.msk.f32.gmra.mrb[54].mxu1 %vm519_vm3, %v22539_v0  ;;  %v22567_v0 = vld [vmem:[#allocation43_spill] sm:$0xff] }
 0xb59   : > { %15366 = vmatprep.mubr.msk.f32.mxu1 %vm17138_vm1, %v22458_v63 }
 0xb5c   : > { %15367 = vmatmul.mubr.msk.f32.gmra.mrb[56].mxu1 %vm519_vm3, %v22540_v54  ;;  %v22568_v54 = vld [vmem:[#allocation44_spill] sm:$0xff] }
 0xb5d   : > { %15369 = vmatprep.mubr.msk.f32.mxu1 %vm17138_vm1, %v22458_v63 }
 0xb5f   : > { %v8339_v58 = vpop.f32.mrb[168].mxu1 }
 0xb60   : > { %v15210_v12 = vpop.f32.mrb[169].mxu1  ;;  %15370 = vmatmul.mubr.msk.f32.gmra.mrb[202].mxu1 %vm519_vm3, %v22541_v55  ;;  %v22569_v58 = vld [vmem:[#allocation45_spill] sm:$0xff] }
 0xb61   : > { %15372 = vmatprep.mubr.msk.f32.mxu1 %vm17138_vm1, %v22458_v63 }
 0xb64   : > { %15373 = vmatmul.mubr.msk.f32.gmra.mrb[60].mxu1 %vm519_vm3, %v22542_v29  ;;  %v22570_v29 = vld [vmem:[#allocation46_spill] sm:$0xff] }
 0xb65   : > { %15375 = vmatprep.mubr.msk.f32.mxu1 %vm17138_vm1, %v22458_v63 }
 0xb68   : > { %15376 = vmatmul.mubr.msk.f32.gmra.mrb[62].mxu1 %vm519_vm3, %v22543_v35  ;;  %v22571_v35 = vld [vmem:[#allocation47_spill] sm:$0xff] }
 0xb69   : > { %15378 = vmatprep.mubr.msk.f32.mxu1 %vm17138_vm1, %v22458_v63 }
 0xb6b   : > { %v8354_v11 = vpop.f32.mrb[170].mxu1 }
 0xb6c   : > { %v15219_v46 = vpop.f32.mrb[171].mxu1  ;;  %15379 = vmatmul.mubr.msk.f32.gmra.mrb[204].mxu1 %vm519_vm3, %v22544_v40  ;;  %v22572_v11 = vld [vmem:[#allocation48_spill] sm:$0xff] }
 0xb6d   : > { %15381 = vmatprep.mubr.msk.f32.mxu1 %vm17138_vm1, %v22458_v63 }
 0xb70   : > { %15382 = vmatmul.mubr.msk.f32.gmra.mrb[66].mxu1 %vm519_vm3, %v22545_v50  ;;  %v22573_v50 = vld [vmem:[#allocation49_spill] sm:$0xff] }
 0xb71   : > { %15384 = vmatprep.mubr.msk.f32.mxu1 %vm17138_vm1, %v22458_v63 }
 0xb74   : > { %15385 = vmatmul.mubr.msk.f32.gmra.mrb[68].mxu1 %vm519_vm3, %v22546_v34  ;;  %v22574_v34 = vld [vmem:[#allocation50_spill] sm:$0xff] }
 0xb75   : > { %15387 = vmatprep.mubr.msk.f32.mxu1 %vm17138_vm1, %v22458_v63 }
 0xb77   : > { %v8369_v60 = vpop.f32.mrb[172].mxu1 }
 0xb78   : > { %v15228_v13 = vpop.f32.mrb[173].mxu1  ;;  %15388 = vmatmul.mubr.msk.f32.gmra.mrb[206].mxu1 %vm519_vm3, %v22547_v15  ;;  %v22575_v60 = vld [vmem:[#allocation51_spill] sm:$0xff] }
 0xb79   : > { %15390 = vmatprep.mubr.msk.f32.mxu1 %vm17138_vm1, %v22458_v63 }
 0xb7c   : > { %15391 = vmatmul.mubr.msk.f32.gmra.mrb[72].mxu1 %vm519_vm3, %v22548_v21  ;;  %v22576_v21 = vld [vmem:[#allocation52_spill] sm:$0xff] }
 0xb7d   : > { %15393 = vmatprep.mubr.msk.f32.mxu1 %vm17138_vm1, %v22458_v63 }
 0xb80   : > { %15394 = vmatmul.mubr.msk.f32.gmra.mrb[74].mxu1 %vm519_vm3, %v22549_v42  ;;  %v22577_v42 = vld [vmem:[#allocation53_spill] sm:$0xff] }
 0xb81   : > { %15396 = vmatprep.mubr.msk.f32.mxu1 %vm17138_vm1, %v22458_v63 }
 0xb83   : > { %v8384_v28 = vpop.f32.mrb[174].mxu1 }
 0xb84   : > { %v15237_v1 = vpop.f32.mrb[175].mxu1  ;;  %15397 = vmatmul.mubr.msk.f32.gmra.mrb[208].mxu1 %vm519_vm3, %v22550_v19  ;;  %v22578_v28 = vld [vmem:[#allocation54_spill] sm:$0xff] }
 0xb85   : > { %15399 = vmatprep.mubr.msk.f32.mxu1 %vm17138_vm1, %v22458_v63 }
 0xb88   : > { %15400 = vmatmul.mubr.msk.f32.gmra.mrb[78].mxu1 %vm519_vm3, %v22551_v20  ;;  %v22579_v20 = vld [vmem:[#allocation55_spill] sm:$0xff] }
 0xb89   : > { %15402 = vmatprep.mubr.msk.f32.mxu1 %vm17138_vm1, %v22458_v63 }
 0xb8c   : > { %15403 = vmatmul.mubr.msk.f32.gmra.mrb[80].mxu1 %vm519_vm3, %v22552_v44  ;;  %v22580_v44 = vld [vmem:[#allocation56_spill] sm:$0xff] }
 0xb8d   : > { %15405 = vmatprep.mubr.msk.f32.mxu1 %vm17138_vm1, %v22458_v63 }
 0xb8f   : > { %v8399_v47 = vpop.f32.mrb[176].mxu1 }
 0xb90   : > { %v15246_v26 = vpop.f32.mrb[177].mxu1  ;;  %15406 = vmatmul.mubr.msk.f32.gmra.mrb[210].mxu1 %vm519_vm3, %v22553_v38  ;;  %v22581_v47 = vld [vmem:[#allocation57_spill] sm:$0xff] }
 0xb91   : > { %15408 = vmatprep.mubr.msk.f32.mxu1 %vm17138_vm1, %v22458_v63 }
 0xb94   : > { %15409 = vmatmul.mubr.msk.f32.gmra.mrb[84].mxu1 %vm519_vm3, %v22554_v56  ;;  %v22582_v56 = vld [vmem:[#allocation58_spill] sm:$0xff] }
 0xb95   : > { %15411 = vmatprep.mubr.msk.f32.mxu1 %vm17138_vm1, %v22458_v63 }
 0xb98   : > { %15412 = vmatmul.mubr.msk.f32.gmra.mrb[86].mxu1 %vm519_vm3, %v22555_v9  ;;  %v22583_v9 = vld [vmem:[#allocation59_spill] sm:$0xff] }
 0xb99   : > { %15414 = vmatprep.mubr.msk.f32.mxu1 %vm17138_vm1, %v22458_v63 }
 0xb9b   : > { %v8414_v16 = vpop.f32.mrb[178].mxu1 }
 0xb9c   : > { %v15255_v43 = vpop.f32.mrb[179].mxu1  ;;  %15415 = vmatmul.mubr.msk.f32.gmra.mrb[212].mxu1 %vm519_vm3, %v21186_v3  ;;  %v22584_v16 = vld [vmem:[#allocation60_spill] sm:$0xff] }
 0xb9d   : > { %15417 = vmatprep.mubr.msk.f32.mxu1 %vm17138_vm1, %v22458_v63 }
 0xba0   : > { %15418 = vmatmul.mubr.msk.f32.gmra.mrb[90].mxu1 %vm519_vm3, %v21192_v18 }
 0xba1   : > { %15420 = vmatprep.mubr.msk.f32.mxu1 %vm17138_vm1, %v22458_v63 }
 0xba4   : > { %15421 = vmatmul.mubr.msk.f32.gmra.mrb[92].mxu1 %vm519_vm3, %v21198_v2 }
 0xba5   : > { %15425 = vmatprep.mubr.msk.f32.mxu1 %vm17138_vm1, %v22458_v63 }
 0xba7   : > { %v8429_v36 = vpop.f32.mrb[180].mxu1 }
 0xba8   : > { %v15264_v8 = vpop.f32.mrb[181].mxu1  ;;  %15426 = vmatmul.mubr.msk.f32.vlgmr.msra.gmra.mrb[0].mxu1 %vm519_vm3, %v22556_v62  ;;  %v22585_v36 = vld [vmem:[#allocation61_spill] sm:$0xff]  ;;  %v22587_v62 = vld [vmem:[#allocation63_spill] sm:$0xff] }
 0xba9   : > { %15567 = vmatpush3.msk.msra.mxu1 %vm880_vm0, %v272_v24  ;;  %15428 = vmatprep.mubr.msk.f32.mxu1 %vm17138_vm1, %v22458_v63  ;;  %v22586_v8 = vld [vmem:[#allocation62_spill] sm:$0xff] }
 0xbaa   : > { %15709 = vmatprep.subr.mxu1 %v22458_v63 }
 0xbac   : > { %15429 = vmatmul.mubr.msk.f32.gmra.mrb[2].mxu1 %vm519_vm3, %v22557_v51 }
 0xbad   : > { %15431 = vmatprep.mubr.msk.f32.mxu1 %vm17138_vm1, %v22458_v63 }
 0xbb0   : > { %15432 = vmatmul.mubr.msk.f32.gmra.mrb[214].mxu1 %vm519_vm3, %v20556_v53  ;;  %v22558_v53 = vld [vmem:[#allocation34_spill] sm:$0xff] }
 0xbb1   : > { %15434 = vmatprep.mubr.msk.f32.mxu1 %vm17138_vm1, %v22458_v63 }
 0xbb3   : > { %v8444_v7 = vpop.f32.mrb[182].mxu1 }
 0xbb4   : > { %v15273_v23 = vpop.f32.mrb[183].mxu1  ;;  %15435 = vmatmul.mubr.msk.f32.gmra.mrb[6].mxu1 %vm519_vm3, %v21221_v33 }
 0xbb5   : > { %15437 = vmatprep.mubr.msk.f32.mxu1 %vm17138_vm1, %v22458_v63  ;;  %v22588_v23 = vld [vmem:[#allocation64_spill] sm:$0xff] }
 0xbb8   : > { %15438 = vmatmul.mubr.msk.f32.gmra.mrb[8].mxu1 %vm519_vm3, %v21227_v10 }
 0xbb9   : > { %15440 = vmatprep.mubr.msk.f32.mxu1 %vm17138_vm1, %v22458_v63 }
 0xbbc   : > { %15441 = vmatmul.mubr.msk.f32.gmra.mrb[216].mxu1 %vm519_vm3, %v22558_v53  ;;  %v22589_v53 = vld [vmem:[#allocation65_spill] sm:$0xff] }
 0xbbd   : > { %15443 = vmatprep.mubr.msk.f32.mxu1 %vm17138_vm1, %v22458_v63 }
 0xbc0   : > { %15444 = vmatmul.mubr.msk.f32.gmra.mrb[12].mxu1 %vm519_vm3, %v22559_v32  ;;  %v22590_v32 = vld [vmem:[#allocation66_spill] sm:$0xff] }
 0xbc1   : > { %15446 = vmatprep.mubr.msk.f32.mxu1 %vm17138_vm1, %v22458_v63 }
 0xbc4   : > { %15447 = vmatmul.mubr.msk.f32.gmra.mrb[14].mxu1 %vm519_vm3, %v22560_v41 }
 0xbc5   : > { %15449 = vmatprep.mubr.msk.f32.mxu1 %vm17138_vm1, %v22458_v63 }
 0xbc7   : > { %v8772_v48 = vpop.f32.mrb[184].mxu1 }
 0xbc8   : > { %v15290_v14 = vpop.f32.mrb[185].mxu1  ;;  %15450 = vmatmul.mubr.msk.f32.gmra.mrb[218].mxu1 %vm519_vm3, %v22561_v30  ;;  %v22592_v30 = vld [vmem:[#allocation68_spill] sm:$0xff] }
 0xbc9   : > { %15452 = vmatprep.mubr.msk.f32.mxu1 %vm17138_vm1, %v22458_v63  ;;  %v22591_v14 = vld [vmem:[#allocation67_spill] sm:$0xff] }
 0xbcc   : > { %15453 = vmatmul.mubr.msk.f32.gmra.mrb[18].mxu1 %vm519_vm3, %v22562_v57  ;;  %v22593_v57 = vld [vmem:[#allocation69_spill] sm:$0xff] }
 0xbcd   : > { %15455 = vmatprep.mubr.msk.f32.mxu1 %vm17138_vm1, %v22458_v63 }
 0xbd0   : > { %15456 = vmatmul.mubr.msk.f32.gmra.mrb[20].mxu1 %vm519_vm3, %v22563_v45 }
 0xbd1   : > { %15458 = vmatprep.mubr.msk.f32.mxu1 %vm17138_vm1, %v22458_v63 }
 0xbd3   : > { %v8787_v17 = vpop.f32.mrb[186].mxu1 }
 0xbd4   : > { %v15299_v61 = vpop.f32.mrb[187].mxu1  ;;  %15459 = vmatmul.mubr.msk.f32.gmra.mrb[220].mxu1 %vm519_vm3, %v22564_v5 }
 0xbd5   : > { %15461 = vmatprep.mubr.msk.f32.mxu1 %vm17138_vm1, %v22458_v63  ;;  %v22594_v61 = vld [vmem:[#allocation70_spill] sm:$0xff] }
 0xbd8   : > { %15462 = vmatmul.mubr.msk.f32.gmra.mrb[24].mxu1 %vm519_vm3, %v22565_v59  ;;  %v21389_v59 = vld [vmem:[#allocation2 + $0x4d8] sm:$0xff] }
 0xbd9   : > { %15464 = vmatprep.mubr.msk.f32.mxu1 %vm17138_vm1, %v22458_v63 }
 0xbdc   : > { %15465 = vmatmul.mubr.msk.f32.gmra.mrb[26].mxu1 %vm519_vm3, %v22566_v37 }
 0xbdd   : > { %15467 = vmatprep.mubr.msk.f32.mxu1 %vm17138_vm1, %v22458_v63 }
 0xbdf   : > { %v8802_v22 = vpop.f32.mrb[188].mxu1 }
 0xbe0   : > { %v15308_v27 = vpop.f32.mrb[189].mxu1  ;;  %15468 = vmatmul.mubr.msk.f32.gmra.mrb[222].mxu1 %vm519_vm3, %v22567_v0  ;;  %v273_v22 = vld [vmem:[%s22327_s3 + $0x1c] sm:$0xf]  ;;  %v9581_v0 = vld [vmem:[#allocation2 + $0x30] sm:$0xff] }
 0xbe1   : > { %15470 = vmatprep.mubr.msk.f32.mxu1 %vm17138_vm1, %v22458_v63 }
 0xbe4   : > { %15471 = vmatmul.mubr.msk.f32.gmra.mrb[30].mxu1 %vm519_vm3, %v22568_v54 }
 0xbe5   : > { %15473 = vmatprep.mubr.msk.f32.mxu1 %vm17138_vm1, %v22458_v63 }
 0xbe8   : > { %15474 = vmatmul.mubr.msk.f32.gmra.mrb[32].mxu1 %vm519_vm3, %v22569_v58  ;;  %v9582_v58 = vld [vmem:[#allocation2 + $0x38] sm:$0xff] }
 0xbe9   : > { %15476 = vmatprep.mubr.msk.f32.mxu1 %vm17138_vm1, %v22458_v63 }
 0xbeb   : > { %v8817_v12 = vpop.f32.mrb[190].mxu1 }
 0xbec   : > { %v15317_v55 = vpop.f32.mrb[191].mxu1  ;;  %15477 = vmatmul.mubr.msk.f32.gmra.mrb[224].mxu1 %vm519_vm3, %v22570_v29  ;;  %v9583_v12 = vld [vmem:[#allocation2 + $0x40] sm:$0xff]  ;;  %v9584_v29 = vld [vmem:[#allocation2 + $0x48] sm:$0xff] }
 0xbed   : > { %15479 = vmatprep.mubr.msk.f32.mxu1 %vm17138_vm1, %v22458_v63 }
 0xbf0   : > { %15480 = vmatmul.mubr.msk.f32.gmra.mrb[36].mxu1 %vm519_vm3, %v22571_v35 }
 0xbf1   : > { %15482 = vmatprep.mubr.msk.f32.mxu1 %vm17138_vm1, %v22458_v63 }
 0xbf4   : > { %15483 = vmatmul.mubr.msk.f32.gmra.mrb[38].mxu1 %vm519_vm3, %v22572_v11  ;;  %v9585_v11 = vld [vmem:[#allocation2 + $0x50] sm:$0xff] }
 0xbf5   : > { %15485 = vmatprep.mubr.msk.f32.mxu1 %vm17138_vm1, %v22458_v63 }
 0xbf7   : > { %v8832_v46 = vpop.f32.mrb[192].mxu1 }
 0xbf8   : > { %v15326_v40 = vpop.f32.mrb[193].mxu1  ;;  %15486 = vmatmul.mubr.msk.f32.gmra.mrb[226].mxu1 %vm519_vm3, %v22573_v50  ;;  %v9586_v46 = vld [vmem:[#allocation2 + $0x58] sm:$0xff]  ;;  %v9588_v50 = vld [vmem:[#allocation2 + $0x68] sm:$0xff] }
 0xbf9   : > { %15488 = vmatprep.mubr.msk.f32.mxu1 %vm17138_vm1, %v22458_v63  ;;  %v9587_v40 = vld [vmem:[#allocation2 + $0x60] sm:$0xff] }
 0xbfc   : > { %15489 = vmatmul.mubr.msk.f32.gmra.mrb[42].mxu1 %vm519_vm3, %v22574_v34 }
 0xbfd   : > { %15491 = vmatprep.mubr.msk.f32.mxu1 %vm17138_vm1, %v22458_v63 }
 0xc00   : > { %15492 = vmatmul.mubr.msk.f32.gmra.mrb[44].mxu1 %vm519_vm3, %v22575_v60  ;;  %v9589_v60 = vld [vmem:[#allocation2 + $0x70] sm:$0xff] }
 0xc01   : > { %15494 = vmatprep.mubr.msk.f32.mxu1 %vm17138_vm1, %v22458_v63 }
 0xc03   : > { %v8847_v13 = vpop.f32.mrb[194].mxu1 }
 0xc04   : > { %v15335_v15 = vpop.f32.mrb[195].mxu1  ;;  %15495 = vmatmul.mubr.msk.f32.gmra.mrb[228].mxu1 %vm519_vm3, %v22576_v21  ;;  %v9591_v21 = vld [vmem:[#allocation2 + $0x80] sm:$0xff] }
 0xc05   : > { %15497 = vmatprep.mubr.msk.f32.mxu1 %vm17138_vm1, %v22458_v63  ;;  %v9590_v15 = vld [vmem:[#allocation2 + $0x78] sm:$0xff] }
 0xc08   : > { %15498 = vmatmul.mubr.msk.f32.gmra.mrb[48].mxu1 %vm519_vm3, %v22577_v42 }
 0xc09   : > { %15500 = vmatprep.mubr.msk.f32.mxu1 %vm17138_vm1, %v22458_v63 }
 0xc0c   : > { %15501 = vmatmul.mubr.msk.f32.gmra.mrb[50].mxu1 %vm519_vm3, %v22578_v28  ;;  %v9592_v28 = vld [vmem:[#allocation2 + $0x88] sm:$0xff] }
 0xc0d   : > { %15503 = vmatprep.mubr.msk.f32.mxu1 %vm17138_vm1, %v22458_v63 }
 0xc0f   : > { %v8862_v1 = vpop.f32.mrb[196].mxu1 }
 0xc10   : > { %v15344_v19 = vpop.f32.mrb[197].mxu1  ;;  %15504 = vmatmul.mubr.msk.f32.gmra.mrb[230].mxu1 %vm519_vm3, %v22579_v20  ;;  %v9594_v20 = vld [vmem:[#allocation2 + $0x98] sm:$0xff] }
 0xc11   : > { %15506 = vmatprep.mubr.msk.f32.mxu1 %vm17138_vm1, %v22458_v63  ;;  %v9593_v19 = vld [vmem:[#allocation2 + $0x90] sm:$0xff] }
 0xc14   : > { %15507 = vmatmul.mubr.msk.f32.gmra.mrb[54].mxu1 %vm519_vm3, %v22580_v44 }
 0xc15   : > { %15509 = vmatprep.mubr.msk.f32.mxu1 %vm17138_vm1, %v22458_v63 }
 0xc18   : > { %15510 = vmatmul.mubr.msk.f32.gmra.mrb[56].mxu1 %vm519_vm3, %v22581_v47  ;;  %v9595_v47 = vld [vmem:[#allocation2 + $0xa0] sm:$0xff] }
 0xc19   : > { %15512 = vmatprep.mubr.msk.f32.mxu1 %vm17138_vm1, %v22458_v63 }
 0xc1b   : > { %v8877_v26 = vpop.f32.mrb[198].mxu1 }
 0xc1c   : > { %v15353_v38 = vpop.f32.mrb[199].mxu1  ;;  %15513 = vmatmul.mubr.msk.f32.gmra.mrb[232].mxu1 %vm519_vm3, %v22582_v56  ;;  %v9597_v56 = vld [vmem:[#allocation2 + $0xb0] sm:$0xff] }
 0xc1d   : > { %15515 = vmatprep.mubr.msk.f32.mxu1 %vm17138_vm1, %v22458_v63  ;;  %v9596_v38 = vld [vmem:[#allocation2 + $0xa8] sm:$0xff] }
 0xc20   : > { %15516 = vmatmul.mubr.msk.f32.gmra.mrb[60].mxu1 %vm519_vm3, %v22583_v9 }
 0xc21   : > { %15518 = vmatprep.mubr.msk.f32.mxu1 %vm17138_vm1, %v22458_v63 }
 0xc24   : > { %15519 = vmatmul.mubr.msk.f32.gmra.mrb[62].mxu1 %vm519_vm3, %v22584_v16  ;;  %v9598_v16 = vld [vmem:[#allocation2 + $0xb8] sm:$0xff] }
 0xc25   : > { %15521 = vmatprep.mubr.msk.f32.mxu1 %vm17138_vm1, %v22458_v63 }
 0xc27   : > { %v8892_v43 = vpop.f32.mrb[200].mxu1 }
 0xc28   : > { %v15362_v24 = vpop.f32.mrb[201].mxu1  ;;  %15522 = vmatmul.mubr.msk.f32.gmra.mrb[234].mxu1 %vm519_vm3, %v22585_v36  ;;  %v9600_v36 = vld [vmem:[#allocation2 + $0xc8] sm:$0xff] }
 0xc29   : > { %15524 = vmatprep.mubr.msk.f32.mxu1 %vm17138_vm1, %v22458_v63  ;;  %v9599_v24 = vld [vmem:[#allocation2 + $0xc0] sm:$0xff] }
 0xc2c   : > { %15525 = vmatmul.mubr.msk.f32.gmra.mrb[66].mxu1 %vm519_vm3, %v22586_v8 }
 0xc2d   : > { %15527 = vmatprep.mubr.msk.f32.mxu1 %vm17138_vm1, %v22458_v63 }
 0xc30   : > { %15528 = vmatmul.mubr.msk.f32.gmra.mrb[68].mxu1 %vm519_vm3, %v22587_v62  ;;  %v9601_v62 = vld [vmem:[#allocation2 + $0xd0] sm:$0xff] }
 0xc31   : > { %15530 = vmatprep.mubr.msk.f32.mxu1 %vm17138_vm1, %v22458_v63 }
 0xc33   : > { %v8907_v51 = vpop.f32.mrb[202].mxu1 }
 0xc34   : > { %v15371_v7 = vpop.f32.mrb[203].mxu1  ;;  %15531 = vmatmul.mubr.msk.f32.gmra.mrb[236].mxu1 %vm519_vm3, %v22588_v23  ;;  %v9603_v23 = vld [vmem:[#allocation2 + $0xe0] sm:$0xff] }
 0xc35   : > { %15533 = vmatprep.mubr.msk.f32.mxu1 %vm17138_vm1, %v22458_v63  ;;  %v9602_v7 = vld [vmem:[#allocation2 + $0xd8] sm:$0xff] }
 0xc38   : > { %15534 = vmatmul.mubr.msk.f32.gmra.mrb[72].mxu1 %vm519_vm3, %v22589_v53 }
 0xc39   : > { %15536 = vmatprep.mubr.msk.f32.mxu1 %vm17138_vm1, %v22458_v63 }
 0xc3c   : > { %15537 = vmatmul.mubr.msk.f32.gmra.mrb[74].mxu1 %vm519_vm3, %v22590_v32  ;;  %v9604_v32 = vld [vmem:[#allocation2 + $0xe8] sm:$0xff] }
 0xc3d   : > { %15539 = vmatprep.mubr.msk.f32.mxu1 %vm17138_vm1, %v22458_v63 }
 0xc3f   : > { %v8922_v41 = vpop.f32.mrb[204].mxu1 }
 0xc40   : > { %v15380_v48 = vpop.f32.mrb[205].mxu1  ;;  %15540 = vmatmul.mubr.msk.f32.gmra.mrb[238].mxu1 %vm519_vm3, %v22591_v14  ;;  %v9606_v14 = vld [vmem:[#allocation2 + $0xf8] sm:$0xff] }
 0xc41   : > { %15542 = vmatprep.mubr.msk.f32.mxu1 %vm17138_vm1, %v22458_v63  ;;  %v9605_v48 = vld [vmem:[#allocation2 + $0xf0] sm:$0xff] }
 0xc44   : > { %15543 = vmatmul.mubr.msk.f32.gmra.mrb[78].mxu1 %vm519_vm3, %v22592_v30 }
 0xc45   : > { %15545 = vmatprep.mubr.msk.f32.mxu1 %vm17138_vm1, %v22458_v63 }
 0xc48   : > { %15546 = vmatmul.mubr.msk.f32.gmra.mrb[80].mxu1 %vm519_vm3, %v22593_v57  ;;  %v9607_v57 = vld [vmem:[#allocation2 + $0x100] sm:$0xff] }
 0xc49   : > { %15548 = vmatprep.mubr.msk.f32.mxu1 %vm17138_vm1, %v22458_v63 }
 0xc4b   : > { %v8937_v45 = vpop.f32.mrb[206].mxu1 }
 0xc4c   : > { %v15389_v17 = vpop.f32.mrb[207].mxu1  ;;  %15549 = vmatmul.mubr.msk.f32.gmra.mrb[240].mxu1 %vm519_vm3, %v22594_v61  ;;  %v9609_v61 = vld [vmem:[#allocation2 + $0x110] sm:$0xff] }
 0xc4d   : > { %15551 = vmatprep.mubr.msk.f32.mxu1 %vm17138_vm1, %v22458_v63  ;;  %v9608_v17 = vld [vmem:[#allocation2 + $0x108] sm:$0xff] }
 0xc50   : > { %15552 = vmatmul.mubr.msk.f32.gmra.mrb[84].mxu1 %vm519_vm3, %v20790_v6  ;;  %v21395_v6 = vld [vmem:[#allocation2 + $0x4e0] sm:$0xff] }
 0xc51   : > { %15554 = vmatprep.mubr.msk.f32.mxu1 %vm17138_vm1, %v22458_v63 }
 0xc54   : > { %15555 = vmatmul.mubr.msk.f32.gmra.mrb[86].mxu1 %vm519_vm3, %v20796_v4  ;;  %v21401_v4 = vld [vmem:[#allocation2 + $0x4e8] sm:$0xff] }
 0xc55   : > { %15557 = vmatprep.mubr.msk.f32.mxu1 %vm17138_vm1, %v22458_v63 }
 0xc57   : > { %v8952_v5 = vpop.f32.mrb[208].mxu1 }
 0xc58   : > { %v15398_v37 = vpop.f32.mrb[209].mxu1  ;;  %15558 = vmatmul.mubr.msk.f32.gmra.mrb[242].mxu1 %vm519_vm3, %v21389_v59 }
 0xc59   : > { %15560 = vmatprep.mubr.msk.f32.mxu1 %vm17138_vm1, %v22458_v63  ;;  %v9610_v37 = vld [vmem:[#allocation2 + $0x118] sm:$0xff] }
 0xc5c   : > { %15561 = vmatmul.mubr.msk.f32.gmra.mrb[90].mxu1 %vm519_vm3, %v21395_v6 }
 0xc5d   : > { %15563 = vmatprep.mubr.msk.f32.mxu1 %vm17138_vm1, %v22458_v63 }
 0xc60   : > { %15564 = vmatmul.mubr.msk.f32.gmra.mrb[92].mxu1 %vm519_vm3, %v21401_v4 }
 0xc61   : > { %15568 = vmatprep.mubr.msk.f32.mxu1 %vm17138_vm1, %v22458_v63 }
 0xc63   : > { %v8967_v27 = vpop.f32.mrb[210].mxu1 }
 0xc64   : > { %v15407_v54 = vpop.f32.mrb[211].mxu1  ;;  %15569 = vmatmul.mubr.msk.f32.vlgmr.msra.gmra.mrb[0].mxu1 %vm519_vm3, %v9581_v0  ;;  %v9611_v27 = vld [vmem:[#allocation2 + $0x120] sm:$0xff]  ;;  %v9612_v0 = vld [vmem:[#allocation2 + $0x128] sm:$0xff] }
 0xc65   : > { %15710 = vmatpush3.msk.msra.mxu1 %vm880_vm0, %v273_v22  ;;  %15571 = vmatprep.mubr.msk.f32.mxu1 %vm17138_vm1, %v22458_v63 }
 0xc66   : > { %15852 = vmatprep.subr.mxu1 %v22458_v63 }
 0xc68   : > { %15572 = vmatmul.mubr.msk.f32.gmra.mrb[2].mxu1 %vm519_vm3, %v9582_v58  ;;  %v9613_v58 = vld [vmem:[#allocation2 + $0x130] sm:$0xff] }
 0xc69   : > { %15574 = vmatprep.mubr.msk.f32.mxu1 %vm17138_vm1, %v22458_v63 }
 0xc6c   : > { %15575 = vmatmul.mubr.msk.f32.gmra.mrb[244].mxu1 %vm519_vm3, %v9583_v12 }
 0xc6d   : > { %15577 = vmatprep.mubr.msk.f32.mxu1 %vm17138_vm1, %v22458_v63 }
 0xc6f   : > { %v8982_v55 = vpop.f32.mrb[212].mxu1 }
 0xc70   : > { %v15416_v35 = vpop.f32.mrb[213].mxu1  ;;  %15578 = vmatmul.mubr.msk.f32.gmra.mrb[6].mxu1 %vm519_vm3, %v9584_v29  ;;  %v9614_v55 = vld [vmem:[#allocation2 + $0x138] sm:$0xff]  ;;  %v9615_v29 = vld [vmem:[#allocation2 + $0x140] sm:$0xff] }
 0xc71   : > { %15580 = vmatprep.mubr.msk.f32.mxu1 %vm17138_vm1, %v22458_v63 }
 0xc74   : > { %15581 = vmatmul.mubr.msk.f32.gmra.mrb[8].mxu1 %vm519_vm3, %v9585_v11  ;;  %v9616_v11 = vld [vmem:[#allocation2 + $0x148] sm:$0xff] }
 0xc75   : > { %15583 = vmatprep.mubr.msk.f32.mxu1 %vm17138_vm1, %v22458_v63 }
 0xc78   : > { %15584 = vmatmul.mubr.msk.f32.gmra.mrb[246].mxu1 %vm519_vm3, %v9586_v46 }
 0xc79   : > { %15586 = vmatprep.mubr.msk.f32.mxu1 %vm17138_vm1, %v22458_v63 }
 0xc7c   : > { %15587 = vmatmul.mubr.msk.f32.gmra.mrb[12].mxu1 %vm519_vm3, %v9587_v40  ;;  %v9617_v40 = vld [vmem:[#allocation2 + $0x150] sm:$0xff] }
 0xc7d   : > { %15589 = vmatprep.mubr.msk.f32.mxu1 %vm17138_vm1, %v22458_v63 }
 0xc80   : > { %15590 = vmatmul.mubr.msk.f32.gmra.mrb[14].mxu1 %vm519_vm3, %v9588_v50  ;;  %v9618_v50 = vld [vmem:[#allocation2 + $0x158] sm:$0xff] }
 0xc81   : > { %15592 = vmatprep.mubr.msk.f32.mxu1 %vm17138_vm1, %v22458_v63 }
 0xc83   : > { %v9310_v34 = vpop.f32.mrb[214].mxu1 }
 0xc84   : > { %v15433_v13 = vpop.f32.mrb[215].mxu1  ;;  %15593 = vmatmul.mubr.msk.f32.gmra.mrb[248].mxu1 %vm519_vm3, %v9589_v60  ;;  %v9619_v60 = vld [vmem:[#allocation2 + $0x160] sm:$0xff] }
 0xc85   : > { %15595 = vmatprep.mubr.msk.f32.mxu1 %vm17138_vm1, %v22458_v63 }
 0xc88   : > { %15596 = vmatmul.mubr.msk.f32.gmra.mrb[18].mxu1 %vm519_vm3, %v9590_v15  ;;  %v9620_v15 = vld [vmem:[#allocation2 + $0x168] sm:$0xff] }
 0xc89   : > { %15598 = vmatprep.mubr.msk.f32.mxu1 %vm17138_vm1, %v22458_v63 }
 0xc8c   : > { %15599 = vmatmul.mubr.msk.f32.gmra.mrb[20].mxu1 %vm519_vm3, %v9591_v21  ;;  %v9621_v21 = vld [vmem:[#allocation2 + $0x170] sm:$0xff] }
 0xc8d   : > { %15601 = vmatprep.mubr.msk.f32.mxu1 %vm17138_vm1, %v22458_v63 }
 0xc8f   : > { %v9325_v42 = vpop.f32.mrb[216].mxu1 }
 0xc90   : > { %v15442_v1 = vpop.f32.mrb[217].mxu1  ;;  %15602 = vmatmul.mubr.msk.f32.gmra.mrb[250].mxu1 %vm519_vm3, %v9592_v28 }
 0xc91   : > { %15604 = vmatprep.mubr.msk.f32.mxu1 %vm17138_vm1, %v22458_v63 }
 0xc94   : > { %15605 = vmatmul.mubr.msk.f32.gmra.mrb[24].mxu1 %vm519_vm3, %v9593_v19  ;;  %v9625_v19 = vld [vmem:[#allocation2 + $0x190] sm:$0xff] }
 0xc95   : > { %15607 = vmatprep.mubr.msk.f32.mxu1 %vm17138_vm1, %v22458_v63 }
 0xc98   : > { %15608 = vmatmul.mubr.msk.f32.gmra.mrb[26].mxu1 %vm519_vm3, %v9594_v20 }
 0xc99   : > { %15610 = vmatprep.mubr.msk.f32.mxu1 %vm17138_vm1, %v22458_v63 }
 0xc9b   : > { %v9340_v44 = vpop.f32.mrb[218].mxu1 }
 0xc9c   : > { %v15451_v26 = vpop.f32.mrb[219].mxu1  ;;  %15611 = vmatmul.mubr.msk.f32.gmra.mrb[252].mxu1 %vm519_vm3, %v9595_v47 }
 0xc9d   : > { %15613 = vmatprep.mubr.msk.f32.mxu1 %vm17138_vm1, %v22458_v63  ;;  %v10121_v26 = vld [vmem:[#allocation2 + $0x1f0] sm:$0xff] }
 0xca0   : > { %15614 = vmatmul.mubr.msk.f32.gmra.mrb[30].mxu1 %vm519_vm3, %v9596_v38 }
 0xca1   : > { %15616 = vmatprep.mubr.msk.f32.mxu1 %vm17138_vm1, %v22458_v63 }
 0xca4   : > { %15617 = vmatmul.mubr.msk.f32.gmra.mrb[32].mxu1 %vm519_vm3, %v9597_v56  ;;  %v10122_v56 = vld [vmem:[#allocation2 + $0x1f8] sm:$0xff] }
 0xca5   : > { %15619 = vmatprep.mubr.msk.f32.mxu1 %vm17138_vm1, %v22458_v63 }
 0xca7   : > { %v9355_v9 = vpop.f32.mrb[220].mxu1 }
 0xca8   : > { %v15460_v43 = vpop.f32.mrb[221].mxu1  ;;  %15620 = vmatmul.mubr.msk.f32.gmra.mrb[254].mxu1 %vm519_vm3, %v9598_v16  ;;  %v10123_v9 = vld [vmem:[#allocation2 + $0x200] sm:$0xff]  ;;  %v10125_v16 = vld [vmem:[#allocation2 + $0x210] sm:$0xff] }
 0xca9   : > { %15622 = vmatprep.mubr.msk.f32.mxu1 %vm17138_vm1, %v22458_v63  ;;  %v10126_v43 = vld [vmem:[#allocation2 + $0x218] sm:$0xff] }
 0xcac   : > { %15623 = vmatmul.mubr.msk.f32.gmra.mrb[36].mxu1 %vm519_vm3, %v9599_v24 }
 0xcad   : > { %15625 = vmatprep.mubr.msk.f32.mxu1 %vm17138_vm1, %v22458_v63 }
 0xcb0   : > { %15626 = vmatmul.mubr.msk.f32.gmra.mrb[38].mxu1 %vm519_vm3, %v9600_v36  ;;  %v10127_v36 = vld [vmem:[#allocation2 + $0x220] sm:$0xff] }
 0xcb1   : > { %15628 = vmatprep.mubr.msk.f32.mxu1 %vm17138_vm1, %v22458_v63 }
 0xcb3   : > { %v9370_v8 = vpop.f32.mrb[222].mxu1 }
 0xcb4   : > { %v15469_v51 = vpop.f32.mrb[223].mxu1  ;;  %15629 = vmatmul.mubr.msk.f32.gmra.mrb[4].mxu1 %vm519_vm3, %v9601_v62  ;;  %v10128_v62 = vld [vmem:[#allocation2 + $0x228] sm:$0xff] }
 0xcb5   : > { %15631 = vmatprep.mubr.msk.f32.mxu1 %vm17138_vm1, %v22458_v63  ;;  %v10129_v51 = vld [vmem:[#allocation2 + $0x230] sm:$0xff] }
 0xcb8   : > { %15632 = vmatmul.mubr.msk.f32.gmra.mrb[42].mxu1 %vm519_vm3, %v9602_v7 }
 0xcb9   : > { %15634 = vmatprep.mubr.msk.f32.mxu1 %vm17138_vm1, %v22458_v63 }
 0xcbc   : > { %15635 = vmatmul.mubr.msk.f32.gmra.mrb[44].mxu1 %vm519_vm3, %v9603_v23  ;;  %v10130_v23 = vld [vmem:[#allocation2 + $0x238] sm:$0xff] }
 0xcbd   : > { %15637 = vmatprep.mubr.msk.f32.mxu1 %vm17138_vm1, %v22458_v63 }
 0xcbf   : > { %v9385_v53 = vpop.f32.mrb[224].mxu1 }
 0xcc0   : > { %v15478_v41 = vpop.f32.mrb[225].mxu1  ;;  %15638 = vmatmul.mubr.msk.f32.gmra.mrb[10].mxu1 %vm519_vm3, %v9604_v32  ;;  %v10131_v32 = vld [vmem:[#allocation2 + $0x240] sm:$0xff] }
 0xcc1   : > { %15640 = vmatprep.mubr.msk.f32.mxu1 %vm17138_vm1, %v22458_v63  ;;  %v10132_v41 = vld [vmem:[#allocation2 + $0x248] sm:$0xff] }
 0xcc4   : > { %15641 = vmatmul.mubr.msk.f32.gmra.mrb[48].mxu1 %vm519_vm3, %v9605_v48 }
 0xcc5   : > { %15643 = vmatprep.mubr.msk.f32.mxu1 %vm17138_vm1, %v22458_v63 }
 0xcc8   : > { %15644 = vmatmul.mubr.msk.f32.gmra.mrb[50].mxu1 %vm519_vm3, %v9606_v14  ;;  %v10133_v14 = vld [vmem:[#allocation2 + $0x250] sm:$0xff] }
 0xcc9   : > { %15646 = vmatprep.mubr.msk.f32.mxu1 %vm17138_vm1, %v22458_v63 }
 0xccb   : > { %v9400_v30 = vpop.f32.mrb[226].mxu1 }
 0xccc   : > { %v15487_v45 = vpop.f32.mrb[227].mxu1  ;;  %15647 = vmatmul.mubr.msk.f32.gmra.mrb[16].mxu1 %vm519_vm3, %v9607_v57  ;;  %v10134_v57 = vld [vmem:[#allocation2 + $0x258] sm:$0xff] }
 0xccd   : > { %15649 = vmatprep.mubr.msk.f32.mxu1 %vm17138_vm1, %v22458_v63  ;;  %v10135_v45 = vld [vmem:[#allocation2 + $0x260] sm:$0xff] }
 0xcd0   : > { %15650 = vmatmul.mubr.msk.f32.gmra.mrb[54].mxu1 %vm519_vm3, %v9608_v17 }
 0xcd1   : > { %15652 = vmatprep.mubr.msk.f32.mxu1 %vm17138_vm1, %v22458_v63 }
 0xcd4   : > { %15653 = vmatmul.mubr.msk.f32.gmra.mrb[56].mxu1 %vm519_vm3, %v9609_v61  ;;  %v10136_v61 = vld [vmem:[#allocation2 + $0x268] sm:$0xff] }
 0xcd5   : > { %15655 = vmatprep.mubr.msk.f32.mxu1 %vm17138_vm1, %v22458_v63 }
 0xcd7   : > { %v9415_v5 = vpop.f32.mrb[228].mxu1 }
 0xcd8   : > { %v15496_v22 = vpop.f32.mrb[229].mxu1  ;;  %15656 = vmatmul.mubr.msk.f32.gmra.mrb[22].mxu1 %vm519_vm3, %v9610_v37  ;;  %v10137_v37 = vld [vmem:[#allocation2 + $0x270] sm:$0xff] }
 0xcd9   : > { %15658 = vmatprep.mubr.msk.f32.mxu1 %vm17138_vm1, %v22458_v63  ;;  %v10138_v22 = vld [vmem:[#allocation2 + $0x278] sm:$0xff] }
 0xcdc   : > { %15659 = vmatmul.mubr.msk.f32.gmra.mrb[60].mxu1 %vm519_vm3, %v9611_v27 }
 0xcdd   : > { %15661 = vmatprep.mubr.msk.f32.mxu1 %vm17138_vm1, %v22458_v63 }
 0xce0   : > { %15662 = vmatmul.mubr.msk.f32.gmra.mrb[62].mxu1 %vm519_vm3, %v9612_v0  ;;  %v10139_v0 = vld [vmem:[#allocation2 + $0x280] sm:$0xff] }
 0xce1   : > { %15664 = vmatprep.mubr.msk.f32.mxu1 %vm17138_vm1, %v22458_v63 }
 0xce3   : > { %v9430_v54 = vpop.f32.mrb[230].mxu1 }
 0xce4   : > { %v15505_v12 = vpop.f32.mrb[231].mxu1  ;;  %15665 = vmatmul.mubr.msk.f32.gmra.mrb[28].mxu1 %vm519_vm3, %v9613_v58  ;;  %v10140_v58 = vld [vmem:[#allocation2 + $0x288] sm:$0xff] }
 0xce5   : > { %15667 = vmatprep.mubr.msk.f32.mxu1 %vm17138_vm1, %v22458_v63  ;;  %v10141_v12 = vld [vmem:[#allocation2 + $0x290] sm:$0xff] }
 0xce8   : > { %15668 = vmatmul.mubr.msk.f32.gmra.mrb[66].mxu1 %vm519_vm3, %v9614_v55 }
 0xce9   : > { %15670 = vmatprep.mubr.msk.f32.mxu1 %vm17138_vm1, %v22458_v63 }
 0xcec   : > { %15671 = vmatmul.mubr.msk.f32.gmra.mrb[68].mxu1 %vm519_vm3, %v9615_v29  ;;  %v10142_v29 = vld [vmem:[#allocation2 + $0x298] sm:$0xff] }
 0xced   : > { %15673 = vmatprep.mubr.msk.f32.mxu1 %vm17138_vm1, %v22458_v63 }
 0xcef   : > { %v9445_v35 = vpop.f32.mrb[232].mxu1 }
 0xcf0   : > { %v15514_v46 = vpop.f32.mrb[233].mxu1  ;;  %15674 = vmatmul.mubr.msk.f32.gmra.mrb[34].mxu1 %vm519_vm3, %v9616_v11  ;;  %v10143_v11 = vld [vmem:[#allocation2 + $0x2a0] sm:$0xff] }
 0xcf1   : > { %15676 = vmatprep.mubr.msk.f32.mxu1 %vm17138_vm1, %v22458_v63  ;;  %v10144_v46 = vld [vmem:[#allocation2 + $0x2a8] sm:$0xff] }
 0xcf4   : > { %15677 = vmatmul.mubr.msk.f32.gmra.mrb[72].mxu1 %vm519_vm3, %v9617_v40 }
 0xcf5   : > { %15679 = vmatprep.mubr.msk.f32.mxu1 %vm17138_vm1, %v22458_v63 }
 0xcf8   : > { %15680 = vmatmul.mubr.msk.f32.gmra.mrb[74].mxu1 %vm519_vm3, %v9618_v50  ;;  %v10145_v50 = vld [vmem:[#allocation2 + $0x2b0] sm:$0xff] }
 0xcf9   : > { %15682 = vmatprep.mubr.msk.f32.mxu1 %vm17138_vm1, %v22458_v63 }
 0xcfb   : > { %v9460_v34 = vpop.f32.mrb[234].mxu1 }
 0xcfc   : > { %v15523_v13 = vpop.f32.mrb[235].mxu1  ;;  %15683 = vmatmul.mubr.msk.f32.gmra.mrb[40].mxu1 %vm519_vm3, %v9619_v60  ;;  %v10146_v60 = vld [vmem:[#allocation2 + $0x2b8] sm:$0xff] }
 0xcfd   : > { %15685 = vmatprep.mubr.msk.f32.mxu1 %vm17138_vm1, %v22458_v63  ;;  %v10147_v13 = vld [vmem:[#allocation2 + $0x2c0] sm:$0xff] }
 0xd00   : > { %15686 = vmatmul.mubr.msk.f32.gmra.mrb[78].mxu1 %vm519_vm3, %v9620_v15 }
 0xd01   : > { %15688 = vmatprep.mubr.msk.f32.mxu1 %vm17138_vm1, %v22458_v63 }
 0xd04   : > { %15689 = vmatmul.mubr.msk.f32.gmra.mrb[80].mxu1 %vm519_vm3, %v9621_v21  ;;  %v10148_v21 = vld [vmem:[#allocation2 + $0x2c8] sm:$0xff] }
 0xd05   : > { %15691 = vmatprep.mubr.msk.f32.mxu1 %vm17138_vm1, %v22458_v63 }
 0xd07   : > { %v9475_v42 = vpop.f32.mrb[236].mxu1 }
 0xd08   : > { %v15532_v28 = vpop.f32.mrb[237].mxu1  ;;  %15692 = vmatmul.mubr.msk.f32.gmra.mrb[46].mxu1 %vm519_vm3, %v20983_v52  ;;  %v9626_v52 = vld [vmem:[#allocation2 + $0x198] sm:$0xff] }
 0xd09   : > { %15694 = vmatprep.mubr.msk.f32.mxu1 %vm17138_vm1, %v22458_v63  ;;  %v10149_v28 = vld [vmem:[#allocation2 + $0x2d0] sm:$0xff] }
 0xd0c   : > { %15695 = vmatmul.mubr.msk.f32.gmra.mrb[84].mxu1 %vm519_vm3, %v20989_v31  ;;  %v9627_v31 = vld [vmem:[#allocation2 + $0x1a0] sm:$0xff] }
 0xd0d   : > { %15697 = vmatprep.mubr.msk.f32.mxu1 %vm17138_vm1, %v22458_v63 }
 0xd10   : > { %15698 = vmatmul.mubr.msk.f32.gmra.mrb[86].mxu1 %vm519_vm3, %v20995_v25  ;;  %v274_v25 = vld [vmem:[%s22327_s3 + $0x20] sm:$0xf] }
 0xd11   : > { %15700 = vmatprep.mubr.msk.f32.mxu1 %vm17138_vm1, %v22458_v63 }
 0xd13   : > { %v9490_v1 = vpop.f32.mrb[238].mxu1 }
 0xd14   : > { %v15541_v20 = vpop.f32.mrb[239].mxu1  ;;  %15701 = vmatmul.mubr.msk.f32.gmra.mrb[52].mxu1 %vm519_vm3, %v9625_v19  ;;  %v10150_v1 = vld [vmem:[#allocation2 + $0x2d8] sm:$0xff] }
 0xd15   : > { %15703 = vmatprep.mubr.msk.f32.mxu1 %vm17138_vm1, %v22458_v63  ;;  %v10151_v20 = vld [vmem:[#allocation2 + $0x2e0] sm:$0xff] }
 0xd18   : > { %15704 = vmatmul.mubr.msk.f32.gmra.mrb[90].mxu1 %vm519_vm3, %v9626_v52 }
 0xd19   : > { %15706 = vmatprep.mubr.msk.f32.mxu1 %vm17138_vm1, %v22458_v63 }
 0xd1c   : > { %15707 = vmatmul.mubr.msk.f32.gmra.mrb[92].mxu1 %vm519_vm3, %v9627_v31  ;;  %v10152_v31 = vld [vmem:[#allocation2 + $0x2e8] sm:$0xff] }
 0xd1d   : > { %15711 = vmatprep.mubr.msk.f32.mxu1 %vm17138_vm1, %v22458_v63 }
 0xd1f   : > { %v9505_v44 = vpop.f32.mrb[240].mxu1 }
 0xd20   : > { %v15550_v47 = vpop.f32.mrb[241].mxu1  ;;  %15712 = vmatmul.mubr.msk.f32.vlgmr.msra.gmra.mrb[0].mxu1 %vm519_vm3, %v21018_v49 }
 0xd21   : > { %15853 = vmatpush3.msk.msra.mxu1 %vm880_vm0, %v274_v25  ;;  %15714 = vmatprep.mubr.msk.f32.mxu1 %vm17138_vm1, %v22458_v63  ;;  %v10153_v25 = vld [vmem:[#allocation2 + $0x2f0] sm:$0xff]  ;;  %v10154_v47 = vld [vmem:[#allocation2 + $0x2f8] sm:$0xff] }
 0xd24   : > { %15715 = vmatmul.mubr.msk.f32.gmra.mrb[2].mxu1 %vm519_vm3, %v21024_v39  ;;  %v10124_v39 = vld [vmem:[#allocation2 + $0x208] sm:$0xff] }
 0xd25   : > { %15717 = vmatprep.mubr.msk.f32.mxu1 %vm17138_vm1, %v22458_v63 }
 0xd28   : > { %15718 = vmatmul.mubr.msk.f32.gmra.mrb[58].mxu1 %vm519_vm3, %v10121_v26 }
 0xd29   : > { %15720 = vmatprep.mubr.msk.f32.mxu1 %vm17138_vm1, %v22458_v63 }
 0xd2b   : > { %v9520_v38 = vpop.f32.mrb[242].mxu1 }
 0xd2c   : > { %v15559_v49 = vpop.f32.mrb[243].mxu1  ;;  %15721 = vmatmul.mubr.msk.f32.gmra.mrb[6].mxu1 %vm519_vm3, %v10122_v56  ;;  %v10155_v38 = vld [vmem:[#allocation2 + $0x300] sm:$0xff]  ;;  %v10156_v56 = vld [vmem:[#allocation2 + $0x308] sm:$0xff] }
 0xd2d   : > { %15723 = vmatprep.mubr.msk.f32.mxu1 %vm17138_vm1, %v22458_v63 }
 0xd30   : > { %15724 = vmatmul.mubr.msk.f32.gmra.mrb[8].mxu1 %vm519_vm3, %v10123_v9  ;;  %v10157_v9 = vld [vmem:[#allocation2 + $0x310] sm:$0xff] }
 0xd31   : > { %15726 = vmatprep.mubr.msk.f32.mxu1 %vm17138_vm1, %v22458_v63 }
 0xd34   : > { %15727 = vmatmul.mubr.msk.f32.gmra.mrb[64].mxu1 %vm519_vm3, %v10124_v39 }
 0xd35   : > { %15729 = vmatprep.mubr.msk.f32.mxu1 %vm17138_vm1, %v22458_v63 }
 0xd38   : > { %15730 = vmatmul.mubr.msk.f32.gmra.mrb[12].mxu1 %vm519_vm3, %v10125_v16  ;;  %v10158_v16 = vld [vmem:[#allocation2 + $0x318] sm:$0xff] }
 0xd39   : > { %15732 = vmatprep.mubr.msk.f32.mxu1 %vm17138_vm1, %v22458_v63 }
 0xd3c   : > { %15733 = vmatmul.mubr.msk.f32.gmra.mrb[14].mxu1 %vm519_vm3, %v10126_v43  ;;  %v10159_v43 = vld [vmem:[#allocation2 + $0x320] sm:$0xff] }
 0xd3d   : > { %15735 = vmatprep.mubr.msk.f32.mxu1 %vm17138_vm1, %v22458_v63 }
 0xd3f   : > { %v9848_v24 = vpop.f32.mrb[244].mxu1 }
 0xd40   : > { %v15576_v8 = vpop.f32.mrb[245].mxu1  ;;  %15736 = vmatmul.mubr.msk.f32.gmra.mrb[70].mxu1 %vm519_vm3, %v10127_v36 }
 0xd41   : > { %15738 = vmatprep.mubr.msk.f32.mxu1 %vm17138_vm1, %v22458_v63 }
 0xd44   : > { %15739 = vmatmul.mubr.msk.f32.gmra.mrb[18].mxu1 %vm519_vm3, %v10128_v62  ;;  %v10163_v62 = vld [vmem:[#allocation2 + $0x340] sm:$0xff] }
 0xd45   : > { %15741 = vmatprep.mubr.msk.f32.mxu1 %vm17138_vm1, %v22458_v63 }
 0xd48   : > { %15742 = vmatmul.mubr.msk.f32.gmra.mrb[20].mxu1 %vm519_vm3, %v10129_v51 }
 0xd49   : > { %15744 = vmatprep.mubr.msk.f32.mxu1 %vm17138_vm1, %v22458_v63 }
 0xd4b   : > { %v9863_v7 = vpop.f32.mrb[246].mxu1 }
 0xd4c   : > { %v15585_v53 = vpop.f32.mrb[247].mxu1  ;;  %15745 = vmatmul.mubr.msk.f32.gmra.mrb[76].mxu1 %vm519_vm3, %v10130_v23  ;;  %v10659_v23 = vld [vmem:[#allocation2 + $0x3a0] sm:$0xff] }
 0xd4d   : > { %15747 = vmatprep.mubr.msk.f32.mxu1 %vm17138_vm1, %v22458_v63 }
 0xd50   : > { %15748 = vmatmul.mubr.msk.f32.gmra.mrb[24].mxu1 %vm519_vm3, %v10131_v32  ;;  %v10660_v32 = vld [vmem:[#allocation2 + $0x3a8] sm:$0xff] }
 0xd51   : > { %15750 = vmatprep.mubr.msk.f32.mxu1 %vm17138_vm1, %v22458_v63 }
 0xd54   : > { %15751 = vmatmul.mubr.msk.f32.gmra.mrb[26].mxu1 %vm519_vm3, %v10132_v41 }
 0xd55   : > { %15753 = vmatprep.mubr.msk.f32.mxu1 %vm17138_vm1, %v22458_v63 }
 0xd57   : > { %v9878_v48 = vpop.f32.mrb[248].mxu1 }
 0xd58   : > { %v15594_v30 = vpop.f32.mrb[249].mxu1  ;;  %15754 = vmatmul.mubr.msk.f32.gmra.mrb[82].mxu1 %vm519_vm3, %v10133_v14  ;;  %v10663_v48 = vld [vmem:[#allocation2 + $0x3c0] sm:$0xff]  ;;  %v10664_v14 = vld [vmem:[#allocation2 + $0x3c8] sm:$0xff] }
 0xd59   : > { %15756 = vmatprep.mubr.msk.f32.mxu1 %vm17138_vm1, %v22458_v63 }
 0xd5c   : > { %15757 = vmatmul.mubr.msk.f32.gmra.mrb[30].mxu1 %vm519_vm3, %v10134_v57  ;;  %v10665_v57 = vld [vmem:[#allocation2 + $0x3d0] sm:$0xff] }
 0xd5d   : > { %15759 = vmatprep.mubr.msk.f32.mxu1 %vm17138_vm1, %v22458_v63 }
 0xd60   : > { %15760 = vmatmul.mubr.msk.f32.gmra.mrb[32].mxu1 %vm519_vm3, %v10135_v45 }
 0xd61   : > { %15762 = vmatprep.mubr.msk.f32.mxu1 %vm17138_vm1, %v22458_v63 }
 0xd63   : > { %v9893_v17 = vpop.f32.mrb[250].mxu1 }
 0xd64   : > { %v15603_v5 = vpop.f32.mrb[251].mxu1  ;;  %15763 = vmatmul.mubr.msk.f32.gmra.mrb[88].mxu1 %vm519_vm3, %v10136_v61  ;;  %v10666_v17 = vld [vmem:[#allocation2 + $0x3d8] sm:$0xff]  ;;  %v10667_v61 = vld [vmem:[#allocation2 + $0x3e0] sm:$0xff] }
 0xd65   : > { %15765 = vmatprep.mubr.msk.f32.mxu1 %vm17138_vm1, %v22458_v63 }
 0xd68   : > { %15766 = vmatmul.mubr.msk.f32.gmra.mrb[36].mxu1 %vm519_vm3, %v10137_v37  ;;  %v10668_v37 = vld [vmem:[#allocation2 + $0x3e8] sm:$0xff] }
 0xd69   : > { %15768 = vmatprep.mubr.msk.f32.mxu1 %vm17138_vm1, %v22458_v63 }
 0xd6c   : > { %15769 = vmatmul.mubr.msk.f32.gmra.mrb[38].mxu1 %vm519_vm3, %v10138_v22 }
 0xd6d   : > { %15771 = vmatprep.mubr.msk.f32.mxu1 %vm17138_vm1, %v22458_v63 }
 0xd6f   : > { %v9908_v27 = vpop.f32.mrb[252].mxu1 }
 0xd70   : > { %v15612_v54 = vpop.f32.mrb[253].mxu1  ;;  %15772 = vmatmul.mubr.msk.f32.gmra.mrb[94].mxu1 %vm519_vm3, %v10139_v0  ;;  %v10669_v27 = vld [vmem:[#allocation2 + $0x3f0] sm:$0xff]  ;;  %v10670_v0 = vld [vmem:[#allocation2 + $0x3f8] sm:$0xff] }
 0xd71   : > { %15774 = vmatprep.mubr.msk.f32.mxu1 %vm17138_vm1, %v22458_v63 }
 0xd74   : > { %15775 = vmatmul.mubr.msk.f32.gmra.mrb[42].mxu1 %vm519_vm3, %v10140_v58  ;;  %v10671_v58 = vld [vmem:[#allocation2 + $0x400] sm:$0xff] }
 0xd75   : > { %15777 = vmatprep.mubr.msk.f32.mxu1 %vm17138_vm1, %v22458_v63 }
 0xd78   : > { %15778 = vmatmul.mubr.msk.f32.gmra.mrb[44].mxu1 %vm519_vm3, %v10141_v12 }
 0xd79   : > { %15780 = vmatprep.mubr.msk.f32.mxu1 %vm17138_vm1, %v22458_v63 }
 0xd7b   : > { %v9923_v55 = vpop.f32.mrb[254].mxu1 }
 0xd7c   : > { %v15621_v35 = vpop.f32.mrb[255].mxu1  ;;  %15781 = vmatmul.mubr.msk.f32.gmra.mrb[96].mxu1 %vm519_vm3, %v10142_v29  ;;  %v10672_v55 = vld [vmem:[#allocation2 + $0x408] sm:$0xff]  ;;  %v10673_v29 = vld [vmem:[#allocation2 + $0x410] sm:$0xff] }
 0xd7d   : > { %15783 = vmatprep.mubr.msk.f32.mxu1 %vm17138_vm1, %v22458_v63 }
 0xd80   : > { %15784 = vmatmul.mubr.msk.f32.gmra.mrb[48].mxu1 %vm519_vm3, %v10143_v11  ;;  %v10674_v11 = vld [vmem:[#allocation2 + $0x418] sm:$0xff] }
 0xd81   : > { %15786 = vmatprep.mubr.msk.f32.mxu1 %vm17138_vm1, %v22458_v63 }
 0xd84   : > { %15787 = vmatmul.mubr.msk.f32.gmra.mrb[50].mxu1 %vm519_vm3, %v10144_v46 }
 0xd85   : > { %15789 = vmatprep.mubr.msk.f32.mxu1 %vm17138_vm1, %v22458_v63 }
 0xd87   : > { %v9938_v40 = vpop.f32.mrb[4].mxu1 }
 0xd88   : > { %v15630_v34 = vpop.f32.mrb[5].mxu1  ;;  %15790 = vmatmul.mubr.msk.f32.gmra.mrb[98].mxu1 %vm519_vm3, %v10145_v50  ;;  %v10675_v40 = vld [vmem:[#allocation2 + $0x420] sm:$0xff]  ;;  %v10676_v50 = vld [vmem:[#allocation2 + $0x428] sm:$0xff] }
 0xd89   : > { %15792 = vmatprep.mubr.msk.f32.mxu1 %vm17138_vm1, %v22458_v63 }
 0xd8c   : > { %15793 = vmatmul.mubr.msk.f32.gmra.mrb[54].mxu1 %vm519_vm3, %v10146_v60  ;;  %v10677_v60 = vld [vmem:[#allocation2 + $0x430] sm:$0xff] }
 0xd8d   : > { %15795 = vmatprep.mubr.msk.f32.mxu1 %vm17138_vm1, %v22458_v63 }
 0xd90   : > { %15796 = vmatmul.mubr.msk.f32.gmra.mrb[56].mxu1 %vm519_vm3, %v10147_v13 }
 0xd91   : > { %15798 = vmatprep.mubr.msk.f32.mxu1 %vm17138_vm1, %v22458_v63 }
 0xd93   : > { %v9953_v15 = vpop.f32.mrb[10].mxu1 }
 0xd94   : > { %v15639_v42 = vpop.f32.mrb[11].mxu1  ;;  %15799 = vmatmul.mubr.msk.f32.gmra.mrb[100].mxu1 %vm519_vm3, %v10148_v21  ;;  %v10678_v15 = vld [vmem:[#allocation2 + $0x438] sm:$0xff]  ;;  %v10679_v21 = vld [vmem:[#allocation2 + $0x440] sm:$0xff] }
 0xd95   : > { %15801 = vmatprep.mubr.msk.f32.mxu1 %vm17138_vm1, %v22458_v63 }
 0xd98   : > { %15802 = vmatmul.mubr.msk.f32.gmra.mrb[60].mxu1 %vm519_vm3, %v10149_v28  ;;  %v10680_v28 = vld [vmem:[#allocation2 + $0x448] sm:$0xff] }
 0xd99   : > { %15804 = vmatprep.mubr.msk.f32.mxu1 %vm17138_vm1, %v22458_v63 }
 0xd9c   : > { %15805 = vmatmul.mubr.msk.f32.gmra.mrb[62].mxu1 %vm519_vm3, %v10150_v1 }
 0xd9d   : > { %15807 = vmatprep.mubr.msk.f32.mxu1 %vm17138_vm1, %v22458_v63 }
 0xd9f   : > { %v9968_v19 = vpop.f32.mrb[16].mxu1 }
 0xda0   : > { %v15648_v52 = vpop.f32.mrb[17].mxu1  ;;  %15808 = vmatmul.mubr.msk.f32.gmra.mrb[102].mxu1 %vm519_vm3, %v10151_v20  ;;  %v10681_v19 = vld [vmem:[#allocation2 + $0x450] sm:$0xff]  ;;  %v10682_v20 = vld [vmem:[#allocation2 + $0x458] sm:$0xff] }
 0xda1   : > { %15810 = vmatprep.mubr.msk.f32.mxu1 %vm17138_vm1, %v22458_v63 }
 0xda4   : > { %15811 = vmatmul.mubr.msk.f32.gmra.mrb[66].mxu1 %vm519_vm3, %v10152_v31  ;;  %v10683_v31 = vld [vmem:[#allocation2 + $0x460] sm:$0xff] }
 0xda5   : > { %15813 = vmatprep.mubr.msk.f32.mxu1 %vm17138_vm1, %v22458_v63 }
 0xda8   : > { %15814 = vmatmul.mubr.msk.f32.gmra.mrb[68].mxu1 %vm519_vm3, %v10153_v25 }
 0xda9   : > { %15816 = vmatprep.mubr.msk.f32.mxu1 %vm17138_vm1, %v22458_v63 }
 0xdab   : > { %v9983_v44 = vpop.f32.mrb[22].mxu1 }
 0xdac   : > { %v15657_v26 = vpop.f32.mrb[23].mxu1  ;;  %15817 = vmatmul.mubr.msk.f32.gmra.mrb[104].mxu1 %vm519_vm3, %v10154_v47  ;;  %v10684_v44 = vld [vmem:[#allocation2 + $0x468] sm:$0xff]  ;;  %v10685_v47 = vld [vmem:[#allocation2 + $0x470] sm:$0xff] }
 0xdad   : > { %15819 = vmatprep.mubr.msk.f32.mxu1 %vm17138_vm1, %v22458_v63 }
 0xdb0   : > { %15820 = vmatmul.mubr.msk.f32.gmra.mrb[72].mxu1 %vm519_vm3, %v10155_v38  ;;  %v10686_v38 = vld [vmem:[#allocation2 + $0x478] sm:$0xff] }
 0xdb1   : > { %15822 = vmatprep.mubr.msk.f32.mxu1 %vm17138_vm1, %v22458_v63 }
 0xdb4   : > { %15823 = vmatmul.mubr.msk.f32.gmra.mrb[74].mxu1 %vm519_vm3, %v10156_v56 }
 0xdb5   : > { %15825 = vmatprep.mubr.msk.f32.mxu1 %vm17138_vm1, %v22458_v63 }
 0xdb7   : > { %v9998_v49 = vpop.f32.mrb[28].mxu1 }
 0xdb8   : > { %v15666_v39 = vpop.f32.mrb[29].mxu1  ;;  %15826 = vmatmul.mubr.msk.f32.gmra.mrb[106].mxu1 %vm519_vm3, %v10157_v9  ;;  %v10687_v49 = vld [vmem:[#allocation2 + $0x480] sm:$0xff]  ;;  %v10688_v9 = vld [vmem:[#allocation2 + $0x488] sm:$0xff] }
 0xdb9   : > { %15828 = vmatprep.mubr.msk.f32.mxu1 %vm17138_vm1, %v22458_v63 }
 0xdbc   : > { %15829 = vmatmul.mubr.msk.f32.gmra.mrb[78].mxu1 %vm519_vm3, %v10158_v16  ;;  %v10689_v16 = vld [vmem:[#allocation2 + $0x490] sm:$0xff] }
 0xdbd   : > { %15831 = vmatprep.mubr.msk.f32.mxu1 %vm17138_vm1, %v22458_v63 }
 0xdc0   : > { %15832 = vmatmul.mubr.msk.f32.gmra.mrb[80].mxu1 %vm519_vm3, %v10159_v43 }
 0xdc1   : > { %15834 = vmatprep.mubr.msk.f32.mxu1 %vm17138_vm1, %v22458_v63 }
 0xdc3   : > { %v10013_v24 = vpop.f32.mrb[34].mxu1 }
 0xdc4   : > { %v15675_v36 = vpop.f32.mrb[35].mxu1  ;;  %15835 = vmatmul.mubr.msk.f32.gmra.mrb[108].mxu1 %vm519_vm3, %v21186_v3  ;;  %v10164_v3 = vld [vmem:[#allocation2 + $0x348] sm:$0xff]  ;;  %v10690_v24 = vld [vmem:[#allocation2 + $0x498] sm:$0xff] }
 0xdc5   : > { %15837 = vmatprep.mubr.msk.f32.mxu1 %vm17138_vm1, %v22458_v63  ;;  %v10691_v36 = vld [vmem:[#allocation2 + $0x4a0] sm:$0xff] }
 0xdc8   : > { %15838 = vmatmul.mubr.msk.f32.gmra.mrb[84].mxu1 %vm519_vm3, %v21192_v18  ;;  %v10165_v18 = vld [vmem:[#allocation2 + $0x350] sm:$0xff] }
 0xdc9   : > { %15840 = vmatprep.mubr.msk.f32.mxu1 %vm17138_vm1, %v22458_v63 }
 0xdcc   : > { %15841 = vmatmul.mubr.msk.f32.gmra.mrb[86].mxu1 %vm519_vm3, %v21198_v2 }
 0xdcd   : > { %15843 = vmatprep.mubr.msk.f32.mxu1 %vm17138_vm1, %v22458_v63 }
 0xdcf   : > { %v10028_v8 = vpop.f32.mrb[40].mxu1 }
 0xdd0   : > { %v15684_v51 = vpop.f32.mrb[41].mxu1  ;;  %15844 = vmatmul.mubr.msk.f32.gmra.mrb[110].mxu1 %vm519_vm3, %v10163_v62  ;;  %v10692_v62 = vld [vmem:[#allocation2 + $0x4a8] sm:$0xff] }
 0xdd1   : > { %15846 = vmatprep.mubr.msk.f32.mxu1 %vm17138_vm1, %v22458_v63 }
 0xdd4   : > { %15847 = vmatmul.mubr.msk.f32.gmra.mrb[90].mxu1 %vm519_vm3, %v10164_v3  ;;  %v10693_v3 = vld [vmem:[#allocation2 + $0x4b0] sm:$0xff] }
 0xdd5   : > { %15849 = vmatprep.mubr.msk.f32.mxu1 %vm17138_vm1, %v22458_v63 }
 0xdd8   : > { %15850 = vmatmul.mubr.msk.f32.gmra.mrb[92].mxu1 %vm519_vm3, %v10165_v18  ;;  %v10694_v18 = vld [vmem:[#allocation2 + $0x4b8] sm:$0xff] }
 0xdd9   : > { %15854 = vmatprep.mubr.msk.f32.mxu1 %vm17138_vm1, %v22458_v63 }
 0xddb   : > { %v10043_v2 = vpop.f32.mrb[46].mxu1 }
 0xddc   : > { %v15693_v7 = vpop.f32.mrb[47].mxu1  ;;  %15855 = vmatmul.mubr.msk.f32.vlgmr.msra.gmra.mrb[0].mxu1 %vm519_vm3, %v21221_v33  ;;  %v10661_v33 = vld [vmem:[#allocation2 + $0x3b0] sm:$0xff] }
 0xddd   : > { %15857 = vmatprep.mubr.msk.f32.mxu1 %vm17138_vm1, %v22458_v63  ;;  %v10695_v7 = vld [vmem:[#allocation2 + $0x4c0] sm:$0xff] }
 0xde0   : > { %15858 = vmatmul.mubr.msk.f32.gmra.mrb[2].mxu1 %vm519_vm3, %v21227_v10  ;;  %v10662_v10 = vld [vmem:[#allocation2 + $0x3b8] sm:$0xff] }
 0xde1   : > { %15860 = vmatprep.mubr.msk.f32.mxu1 %vm17138_vm1, %v22458_v63 }
 0xde4   : > { %15861 = vmatmul.mubr.msk.f32.gmra.mrb[112].mxu1 %vm519_vm3, %v10659_v23 }
 0xde5   : > { %15863 = vmatprep.mubr.msk.f32.mxu1 %vm17138_vm1, %v22458_v63 }
 0xde7   : > { %v10058_v53 = vpop.f32.mrb[52].mxu1 }
 0xde8   : > { %v15702_v41 = vpop.f32.mrb[53].mxu1  ;;  %15864 = vmatmul.mubr.msk.f32.gmra.mrb[6].mxu1 %vm519_vm3, %v10660_v32  ;;  %v10696_v53 = vld [vmem:[#allocation2 + $0x4c8] sm:$0xff]  ;;  %v10697_v32 = vld [vmem:[#allocation2 + $0x4d0] sm:$0xff] }
 0xde9   : > { %15866 = vmatprep.mubr.msk.f32.mxu1 %vm17138_vm1, %v22458_v63 }
 0xdec   : > { %15867 = vmatmul.mubr.msk.f32.gmra.mrb[8].mxu1 %vm519_vm3, %v10661_v33 }
 0xded   : > { %15869 = vmatprep.mubr.msk.f32.mxu1 %vm17138_vm1, %v22458_v63 }
 0xdf0   : > { %15870 = vmatmul.mubr.msk.f32.gmra.mrb[114].mxu1 %vm519_vm3, %v10662_v10 }
 0xdf1   : > { %15872 = vmatprep.mubr.msk.f32.mxu1 %vm17138_vm1, %v22458_v63 }
 0xdf4   : > { %15873 = vmatmul.mubr.msk.f32.gmra.mrb[12].mxu1 %vm519_vm3, %v10663_v48  ;;  %v10701_v48 = vld [vmem:[#allocation2 + $0x4f0] sm:$0xff] }
 0xdf5   : > { %15875 = vmatprep.mubr.msk.f32.mxu1 %vm17138_vm1, %v22458_v63 }
 0xdf8   : > { %15876 = vmatmul.mubr.msk.f32.gmra.mrb[14].mxu1 %vm519_vm3, %v10664_v14 }
 0xdf9   : > { %15878 = vmatprep.mubr.msk.f32.mxu1 %vm17138_vm1, %v22458_v63 }
 0xdfb   : > { %v10386_v30 = vpop.f32.mrb[58].mxu1 }
 0xdfc   : > { %v15719_v45 = vpop.f32.mrb[59].mxu1  ;;  %15879 = vmatmul.mubr.msk.f32.gmra.mrb[116].mxu1 %vm519_vm3, %v10665_v57 }
 0xdfd   : > { %15881 = vmatprep.mubr.msk.f32.mxu1 %vm17138_vm1, %v22458_v63 }
 0xe00   : > { %15882 = vmatmul.mubr.msk.f32.gmra.mrb[18].mxu1 %vm519_vm3, %v10666_v17 }
 0xe01   : > { %15884 = vmatprep.mubr.msk.f32.mxu1 %vm17138_vm1, %v22458_v63 }
 0xe04   : > { %15885 = vmatmul.mubr.msk.f32.gmra.mrb[20].mxu1 %vm519_vm3, %v10667_v61 }
 0xe05   : > { %15887 = vmatprep.mubr.msk.f32.mxu1 %vm17138_vm1, %v22458_v63 }
 0xe07   : > { %v10401_v5 = vpop.f32.mrb[64].mxu1 }
 0xe08   : > { %v15728_v22 = vpop.f32.mrb[65].mxu1  ;;  %15888 = vmatmul.mubr.msk.f32.gmra.mrb[118].mxu1 %vm519_vm3, %v10668_v37 }
 0xe09   : > { %15890 = vmatprep.mubr.msk.f32.mxu1 %vm17138_vm1, %v22458_v63 }
 0xe0c   : > { %15891 = vmatmul.mubr.msk.f32.gmra.mrb[24].mxu1 %vm519_vm3, %v10669_v27 }
 0xe0d   : > { %15893 = vmatprep.mubr.msk.f32.mxu1 %vm17138_vm1, %v22458_v63 }
 0xe10   : > { %15894 = vmatmul.mubr.msk.f32.gmra.mrb[26].mxu1 %vm519_vm3, %v10670_v0 }
 0xe11   : > { %15896 = vmatprep.mubr.msk.f32.mxu1 %vm17138_vm1, %v22458_v63 }
 0xe13   : > { %v10416_v54 = vpop.f32.mrb[70].mxu1 }
 0xe14   : > { %v15737_v12 = vpop.f32.mrb[71].mxu1  ;;  %15897 = vmatmul.mubr.msk.f32.gmra.mrb[120].mxu1 %vm519_vm3, %v10671_v58 }
 0xe15   : > { %15899 = vmatprep.mubr.msk.f32.mxu1 %vm17138_vm1, %v22458_v63 }
 0xe18   : > { %15900 = vmatmul.mubr.msk.f32.gmra.mrb[30].mxu1 %vm519_vm3, %v10672_v55 }
 0xe19   : > { %15902 = vmatprep.mubr.msk.f32.mxu1 %vm17138_vm1, %v22458_v63 }
 0xe1c   : > { %15903 = vmatmul.mubr.msk.f32.gmra.mrb[32].mxu1 %vm519_vm3, %v10673_v29 }
 0xe1d   : > { %15905 = vmatprep.mubr.msk.f32.mxu1 %vm17138_vm1, %v22458_v63 }
 0xe1f   : > { %v10431_v35 = vpop.f32.mrb[76].mxu1 }
 0xe20   : > { %v15746_v46 = vpop.f32.mrb[77].mxu1  ;;  %15906 = vmatmul.mubr.msk.f32.gmra.mrb[122].mxu1 %vm519_vm3, %v10674_v11 }
 0xe21   : > { %15908 = vmatprep.mubr.msk.f32.mxu1 %vm17138_vm1, %v22458_v63 }
 0xe24   : > { %15909 = vmatmul.mubr.msk.f32.gmra.mrb[36].mxu1 %vm519_vm3, %v10675_v40 }
 0xe25   : > { %15911 = vmatprep.mubr.msk.f32.mxu1 %vm17138_vm1, %v22458_v63 }
 0xe28   : > { %15912 = vmatmul.mubr.msk.f32.gmra.mrb[38].mxu1 %vm519_vm3, %v10676_v50 }
 0xe29   : > { %15914 = vmatprep.mubr.msk.f32.mxu1 %vm17138_vm1, %v22458_v63 }
 0xe2b   : > { %v10446_v34 = vpop.f32.mrb[82].mxu1 }
 0xe2c   : > { %v15755_v13 = vpop.f32.mrb[83].mxu1  ;;  %15915 = vmatmul.mubr.msk.f32.gmra.mrb[124].mxu1 %vm519_vm3, %v10677_v60 }
 0xe2d   : > { %15917 = vmatprep.mubr.msk.f32.mxu1 %vm17138_vm1, %v22458_v63 }
 0xe30   : > { %15918 = vmatmul.mubr.msk.f32.gmra.mrb[42].mxu1 %vm519_vm3, %v10678_v15 }
 0xe31   : > { %15920 = vmatprep.mubr.msk.f32.mxu1 %vm17138_vm1, %v22458_v63 }
 0xe34   : > { %15921 = vmatmul.mubr.msk.f32.gmra.mrb[44].mxu1 %vm519_vm3, %v10679_v21 }
 0xe35   : > { %15923 = vmatprep.mubr.msk.f32.mxu1 %vm17138_vm1, %v22458_v63 }
 0xe37   : > { %v10461_v42 = vpop.f32.mrb[88].mxu1 }
 0xe38   : > { %v15764_v1 = vpop.f32.mrb[89].mxu1  ;;  %15924 = vmatmul.mubr.msk.f32.gmra.mrb[126].mxu1 %vm519_vm3, %v10680_v28 }
 0xe39   : > { %15926 = vmatprep.mubr.msk.f32.mxu1 %vm17138_vm1, %v22458_v63 }
 0xe3c   : > { %15927 = vmatmul.mubr.msk.f32.gmra.mrb[48].mxu1 %vm519_vm3, %v10681_v19 }
 0xe3d   : > { %15929 = vmatprep.mubr.msk.f32.mxu1 %vm17138_vm1, %v22458_v63 }
 0xe40   : > { %15930 = vmatmul.mubr.msk.f32.gmra.mrb[50].mxu1 %vm519_vm3, %v10682_v20 }
 0xe41   : > { %15932 = vmatprep.mubr.msk.f32.mxu1 %vm17138_vm1, %v22458_v63 }
 0xe43   : > { %v10476_v52 = vpop.f32.mrb[94].mxu1 }
 0xe44   : > { %v15773_v25 = vpop.f32.mrb[95].mxu1  ;;  %15933 = vmatmul.mubr.msk.f32.gmra.mrb[128].mxu1 %vm519_vm3, %v10683_v31 }
 0xe45   : > { %15935 = vmatprep.mubr.msk.f32.mxu1 %vm17138_vm1, %v22458_v63 }
 0xe48   : > { %15936 = vmatmul.mubr.msk.f32.gmra.mrb[54].mxu1 %vm519_vm3, %v10684_v44 }
 0xe49   : > { %15938 = vmatprep.mubr.msk.f32.mxu1 %vm17138_vm1, %v22458_v63 }
 0xe4c   : > { %15939 = vmatmul.mubr.msk.f32.gmra.mrb[56].mxu1 %vm519_vm3, %v10685_v47 }
 0xe4d   : > { %15941 = vmatprep.mubr.msk.f32.mxu1 %vm17138_vm1, %v22458_v63 }
 0xe4f   : > { %v10491_v26 = vpop.f32.mrb[96].mxu1 }
 0xe50   : > { %v15782_v56 = vpop.f32.mrb[97].mxu1  ;;  %15942 = vmatmul.mubr.msk.f32.gmra.mrb[130].mxu1 %vm519_vm3, %v10686_v38  ;;  %v21855_v38 = vld [vmem:[%s22328_s4] ss:$0 sm:$0xff] }
 0xe51   : > { %15944 = vmatprep.mubr.msk.f32.mxu1 %vm17138_vm1, %v22458_v63 }
 0xe54   : > { %15945 = vmatmul.mubr.msk.f32.gmra.mrb[60].mxu1 %vm519_vm3, %v10687_v49 }
 0xe55   : > { %15947 = vmatprep.mubr.msk.f32.mxu1 %vm17138_vm1, %v22458_v63 }
 0xe58   : > { %15948 = vmatmul.mubr.msk.f32.gmra.mrb[62].mxu1 %vm519_vm3, %v10688_v9 }
 0xe59   : > { %15950 = vmatprep.mubr.msk.f32.mxu1 %vm17138_vm1, %v22458_v63 }
 0xe5b   : > { %v10506_v39 = vpop.f32.mrb[98].mxu1 }
 0xe5c   : > { %v15791_v43 = vpop.f32.mrb[99].mxu1  ;;  %15951 = vmatmul.mubr.msk.f32.gmra.mrb[132].mxu1 %vm519_vm3, %v10689_v16 }
 0xe5d   : > { %15953 = vmatprep.mubr.msk.f32.mxu1 %vm17138_vm1, %v22458_v63 }
 0xe60   : > { %15954 = vmatmul.mubr.msk.f32.gmra.mrb[66].mxu1 %vm519_vm3, %v10690_v24 }
 0xe61   : > { %15956 = vmatprep.mubr.msk.f32.mxu1 %vm17138_vm1, %v22458_v63 }
 0xe64   : > { %15957 = vmatmul.mubr.msk.f32.gmra.mrb[68].mxu1 %vm519_vm3, %v10691_v36 }
 0xe65   : > { %15959 = vmatprep.mubr.msk.f32.mxu1 %vm17138_vm1, %v22458_v63 }
 0xe67   : > { %v10521_v8 = vpop.f32.mrb[100].mxu1 }
 0xe68   : > { %v15800_v51 = vpop.f32.mrb[101].mxu1  ;;  %15960 = vmatmul.mubr.msk.f32.gmra.mrb[134].mxu1 %vm519_vm3, %v10692_v62 }
 0xe69   : > { %15962 = vmatprep.mubr.msk.f32.mxu1 %vm17138_vm1, %v22458_v63 }
 0xe6c   : > { %15963 = vmatmul.mubr.msk.f32.gmra.mrb[72].mxu1 %vm519_vm3, %v10693_v3 }
 0xe6d   : > { %15965 = vmatprep.mubr.msk.f32.mxu1 %vm17138_vm1, %v22458_v63 }
 0xe70   : > { %15966 = vmatmul.mubr.msk.f32.gmra.mrb[74].mxu1 %vm519_vm3, %v10694_v18 }
 0xe71   : > { %15968 = vmatprep.mubr.msk.f32.mxu1 %vm17138_vm1, %v22458_v63 }
 0xe73   : > { %v10536_v2 = vpop.f32.mrb[102].mxu1 }
 0xe74   : > { %v15809_v23 = vpop.f32.mrb[103].mxu1  ;;  %15969 = vmatmul.mubr.msk.f32.gmra.mrb[136].mxu1 %vm519_vm3, %v10695_v7 }
 0xe75   : > { %15971 = vmatprep.mubr.msk.f32.mxu1 %vm17138_vm1, %v22458_v63 }
 0xe78   : > { %15972 = vmatmul.mubr.msk.f32.gmra.mrb[78].mxu1 %vm519_vm3, %v10696_v53 }
 0xe79   : > { %15974 = vmatprep.mubr.msk.f32.mxu1 %vm17138_vm1, %v22458_v63 }
 0xe7c   : > { %15975 = vmatmul.mubr.msk.f32.gmra.mrb[80].mxu1 %vm519_vm3, %v10697_v32 }
 0xe7d   : > { %15977 = vmatprep.mubr.msk.f32.mxu1 %vm17138_vm1, %v22458_v63 }
 0xe7f   : > { %v10551_v41 = vpop.f32.mrb[104].mxu1 }
 0xe80   : > { %v15818_v33 = vpop.f32.mrb[105].mxu1  ;;  %15978 = vmatmul.mubr.msk.f32.gmra.mrb[138].mxu1 %vm519_vm3, %v21389_v59  ;;  %v10702_v59 = vld [vmem:[#allocation2 + $0x4f8] sm:$0xff] }
 0xe81   : > { %15980 = vmatprep.mubr.msk.f32.mxu1 %vm17138_vm1, %v22458_v63 }
 0xe84   : > { %15981 = vmatmul.mubr.msk.f32.gmra.mrb[84].mxu1 %vm519_vm3, %v21395_v6  ;;  %v10703_v6 = vld [vmem:[#allocation2 + $0x500] sm:$0xff] }
 0xe85   : > { %15983 = vmatprep.mubr.msk.f32.mxu1 %vm17138_vm1, %v22458_v63 }
 0xe88   : > { %15984 = vmatmul.mubr.msk.f32.gmra.mrb[86].mxu1 %vm519_vm3, %v21401_v4 }
 0xe89   : > { %15986 = vmatprep.mubr.msk.f32.mxu1 %vm17138_vm1, %v22458_v63 }
 0xe8b   : > { %v10566_v10 = vpop.f32.mrb[106].mxu1 }
 0xe8c   : > { %v15827_v14 = vpop.f32.mrb[107].mxu1  ;;  %15987 = vmatmul.mubr.msk.f32.gmra.mrb[140].mxu1 %vm519_vm3, %v10701_v48 }
 0xe8d   : > { %15989 = vmatprep.mubr.msk.f32.mxu1 %vm17138_vm1, %v22458_v63 }
 0xe90   : > { %15990 = vmatmul.mubr.msk.f32.gmra.mrb[90].mxu1 %vm519_vm3, %v10702_v59 }
 0xe91   : > { %15992 = vmatprep.mubr.msk.f32.mxu1 %vm17138_vm1, %v22458_v63 }
 0xe94   : > { %15993 = vmatmul.mubr.msk.f32.gmra.mrb[92].mxu1 %vm519_vm3, %v10703_v6 }
 0xe97   : > { %v10581_v4 = vpop.f32.mrb[108].mxu1 }
 0xe98   : > { %v15836_v30 = vpop.f32.mrb[109].mxu1 }
 0xea3   : > { %v10596_v57 = vpop.f32.mrb[110].mxu1 }
 0xea4   : > { %v15845_v45 = vpop.f32.mrb[111].mxu1 }
 0xeaf   : > { %v10914_v17 = vpop.f32.mrb[0].mxu1 }
 0xeb0   : > { %v15856_v61 = vpop.f32.mrb[1].mxu1  ;;  %v21861_v39 = vadd.f32 %v21855_v38, %v10914_v17 }
 0xeb2   : > { %v11342_v62 = vmul.f32 %v21861_v39, %v21861_v39  ;;  %v11242_v2 = vsel %vm519_vm3, %v21861_v39, 0.0 }
 0xeb3   : > { %v10919_v5 = vpop.f32.mrb[2].mxu1 }
 0xeb4   : > { %v15859_v37 = vpop.f32.mrb[3].mxu1  ;;  %v21858_v49 = vadd.f32 %v21855_v38, %v10919_v5  ;;  %v11389_v10 = vsel %vm519_vm3, %v11342_v62, 0.0 }
 0xeb6   : > { %v11343_v24 = vmul.f32 %v21858_v49, %v21858_v49  ;;  %v11243_v51 = vsel %vm519_vm3, %v21858_v49, 0.0 }
 0xeb7   : > { %v10924_v22 = vpop.f32.mrb[112].mxu1  ;;  %v11244_v48 = vadd.f32 %v11243_v51, %v11242_v2 }
 0xeb8   : > { %v15862_v27 = vpop.f32.mrb[113].mxu1  ;;  %v11390_v23 = vsel %vm519_vm3, %v11343_v24, 0.0 }
 0xeb9   : > { %v11391_v30 = vadd.f32 %v11390_v23, %v11389_v10 }
 0xebb   : > { %v10929_v0 = vpop.f32.mrb[6].mxu1 }
 0xebc   : > { %v15865_v54 = vpop.f32.mrb[7].mxu1  ;;  %v21864_v16 = vadd.f32 %v21855_v38, %v10929_v0 }
 0xebe   : > { %v11345_v3 = vmul.f32 %v21864_v16, %v21864_v16  ;;  %v11247_v53 = vsel %vm519_vm3, %v21864_v16, 0.0 }
 0xebf   : > { %v10934_v58 = vpop.f32.mrb[8].mxu1  ;;  %v11248_v57 = vadd.f32 %v11247_v53, %v11244_v48 }
 0xec0   : > { %v15868_v12 = vpop.f32.mrb[9].mxu1  ;;  %v21869_v36 = vadd.f32 %v21855_v38, %v10934_v58  ;;  %v11394_v14 = vsel %vm519_vm3, %v11345_v3, 0.0 }
 0xec1   : > { %v11395_v27 = vadd.f32 %v11394_v14, %v11391_v30 }
 0xec2   : > { %v11346_v32 = vmul.f32 %v21869_v36, %v21869_v36  ;;  %v11249_v59 = vsel %vm519_vm3, %v21869_v36, 0.0 }
 0xec3   : > { %v10939_v55 = vpop.f32.mrb[114].mxu1  ;;  %v11250_v0 = vadd.f32 %v11249_v59, %v11248_v57 }
 0xec4   : > { %v15871_v29 = vpop.f32.mrb[115].mxu1  ;;  %v11396_v17 = vsel %vm519_vm3, %v11346_v32, 0.0 }
 0xec5   : > { %v11397_v29 = vadd.f32 %v11396_v17, %v11395_v27 }
 0xec7   : > { %v10944_v63 = vpop.f32.mrb[12].mxu1 }
 0xec8   : > { %v15874_v35 = vpop.f32.mrb[13].mxu1  ;;  %v21878_v18 = vadd.f32 %v21855_v38, %v10944_v63 }
 0xeca   : > { %v11348_v6 = vmul.f32 %v21878_v18, %v21878_v18  ;;  %v11253_v61 = vsel %vm519_vm3, %v21878_v18, 0.0 }
 0xecb   : > { %v10949_v11 = vpop.f32.mrb[14].mxu1  ;;  %v11254_v63 = vadd.f32 %v11253_v61, %v11250_v0 }
 0xecc   : > { %v15877_v46 = vpop.f32.mrb[15].mxu1  ;;  %v21888_v41 = vadd.f32 %v21855_v38, %v10949_v11  ;;  %v11400_v54 = vsel %vm519_vm3, %v11348_v6, 0.0 }
 0xece   : > { %v11349_v5 = vmul.f32 %v21888_v41, %v21888_v41  ;;  %v11255_v58 = vsel %vm519_vm3, %v21888_v41, 0.0 }
 0xecf   : > { %v10954_v40 = vpop.f32.mrb[116].mxu1 }
 0xed0   : > { %v15880_v50 = vpop.f32.mrb[117].mxu1  ;;  %v11402_v11 = vsel %vm519_vm3, %v11349_v5, 0.0 }
 0xed3   : > { %v10959_v34 = vpop.f32.mrb[18].mxu1 }
 0xed4   : > { %v15883_v60 = vpop.f32.mrb[19].mxu1  ;;  %v21897_v4 = vadd.f32 %v21855_v38, %v10959_v34 }
 0xed5   : > { %v11401_v60 = vadd.f32 %v11400_v54, %v11397_v29 }
 0xed6   : > { %v11351_v12 = vmul.f32 %v21897_v4, %v21897_v4  ;;  %v11259_v46 = vsel %vm519_vm3, %v21897_v4, 0.0 }
 0xed7   : > { %v10964_v13 = vpop.f32.mrb[20].mxu1 }
 0xed8   : > { %v15886_v15 = vpop.f32.mrb[21].mxu1  ;;  %v21905_v37 = vadd.f32 %v21855_v38, %v10964_v13  ;;  %v11256_v13 = vadd.f32 %v11255_v58, %v11254_v63 }
 0xed9   : > { %v11406_v15 = vsel %vm519_vm3, %v11351_v12, 0.0 }
 0xeda   : > { %v11352_v40 = vmul.f32 %v21905_v37, %v21905_v37 }
 0xedb   : > { %v10969_v21 = vpop.f32.mrb[118].mxu1 }
 0xedc   : > { %v15889_v42 = vpop.f32.mrb[119].mxu1  ;;  %v11261_v21 = vsel %vm519_vm3, %v21905_v37, 0.0 }
 0xedf   : > { %v10974_v28 = vpop.f32.mrb[24].mxu1 }
 0xee0   : > { %v15892_v1 = vpop.f32.mrb[25].mxu1  ;;  %v21913_v55 = vadd.f32 %v21855_v38, %v10974_v28 }
 0xee1   : > { %v11403_v1 = vadd.f32 %v11402_v11, %v11401_v60 }
 0xee2   : > { %v11354_v42 = vmul.f32 %v21913_v55, %v21913_v55 }
 0xee3   : > { %v10979_v19 = vpop.f32.mrb[26].mxu1 }
 0xee4   : > { %v15895_v20 = vpop.f32.mrb[27].mxu1  ;;  %v21921_v50 = vadd.f32 %v21855_v38, %v10979_v19  ;;  %v11408_v19 = vsel %vm519_vm3, %v11352_v40, 0.0 }
 0xee5   : > { %v11260_v20 = vadd.f32 %v11259_v46, %v11256_v13 }
 0xee7   : > { %v10984_v52 = vpop.f32.mrb[120].mxu1  ;;  %v11262_v24 = vadd.f32 %v11261_v21, %v11260_v20 }
 0xee8   : > { %v15898_v31 = vpop.f32.mrb[121].mxu1 }
 0xee9   : > { %v11265_v31 = vsel %vm519_vm3, %v21913_v55, 0.0 }
 0xeea   : > { %v11266_v2 = vadd.f32 %v11265_v31, %v11262_v24 }
 0xeeb   : > { %v10989_v25 = vpop.f32.mrb[30].mxu1 }
 0xeec   : > { %v15901_v44 = vpop.f32.mrb[31].mxu1  ;;  %v21929_v28 = vadd.f32 %v21855_v38, %v10989_v25  ;;  %v11412_v25 = vsel %vm519_vm3, %v11354_v42, 0.0 }
 0xeed   : > { %v11355_v44 = vmul.f32 %v21921_v50, %v21921_v50 }
 0xeee   : > { %v11357_v62 = vmul.f32 %v21929_v28, %v21929_v28  ;;  %v11271_v53 = vsel %vm519_vm3, %v21929_v28, 0.0 }
 0xeef   : > { %v21850_v47 = vpop.f32.mrb[32].mxu1 }
 0xef0   : > { %v15904_v26 = vpop.f32.mrb[33].mxu1 }
 0xef1   : > { %v21938_v26 = vadd.f32 %v21855_v38, %v21850_v47  ;;  %v11414_v47 = vsel %vm519_vm3, %v11355_v44, 0.0 }
 0xef3   : > { %v10999_v56 = vpop.f32.mrb[122].mxu1  ;;  %v11358_v32 = vmul.f32 %v21938_v26, %v21938_v26  ;;  %v11273_v59 = vsel %vm519_vm3, %v21938_v26, 0.0 }
 0xef4   : > { %v15907_v9 = vpop.f32.mrb[123].mxu1 }
 0xef5   : > { %v11407_v9 = vadd.f32 %v11406_v15, %v11403_v1 }
 0xef7   : > { %v11004_v43 = vpop.f32.mrb[36].mxu1  ;;  %v11409_v3 = vadd.f32 %v11408_v19, %v11407_v9 }
 0xef8   : > { %v15910_v8 = vpop.f32.mrb[37].mxu1  ;;  %v21946_v51 = vadd.f32 %v21855_v38, %v11004_v43  ;;  %v11418_v43 = vsel %vm519_vm3, %v11357_v62, 0.0 }
 0xef9   : > { %v11267_v8 = vsel %vm519_vm3, %v21921_v50, 0.0  ;;  %v11413_v48 = vadd.f32 %v11412_v25, %v11409_v3 }
 0xefa   : > { %v11268_v14 = vadd.f32 %v11267_v8, %v11266_v2  ;;  %v11360_v6 = vmul.f32 %v21946_v51, %v21946_v51  ;;  %v11277_v61 = vsel %vm519_vm3, %v21946_v51, 0.0 }
 0xefb   : > { %v11009_v7 = vpop.f32.mrb[38].mxu1  ;;  %v11415_v57 = vadd.f32 %v11414_v47, %v11413_v48 }
 0xefc   : > { %v15913_v33 = vpop.f32.mrb[39].mxu1  ;;  %v11424_v58 = vsel %vm519_vm3, %v11360_v6, 0.0 }
 0xefd   : > { %v21954_v33 = vadd.f32 %v21855_v38, %v11009_v7  ;;  %v11420_v7 = vsel %vm519_vm3, %v11358_v32, 0.0  ;;  %v11419_v0 = vadd.f32 %v11418_v43, %v11415_v57 }
 0xeff   : > { %v11014_v45 = vpop.f32.mrb[124].mxu1  ;;  %v11361_v5 = vmul.f32 %v21954_v33, %v21954_v33  ;;  %v11279_v12 = vsel %vm519_vm3, %v21954_v33, 0.0 }
 0xf00   : > { %v15916_v22 = vpop.f32.mrb[125].mxu1  ;;  %v11272_v45 = vadd.f32 %v11271_v53, %v11268_v14 }
 0xf01   : > { %v11426_v40 = vsel %vm519_vm3, %v11361_v5, 0.0 }
 0xf02   : > { %v11274_v54 = vadd.f32 %v11273_v59, %v11272_v45 }
 0xf03   : > { %v11019_v35 = vpop.f32.mrb[42].mxu1 }
 0xf04   : > { %v15919_v34 = vpop.f32.mrb[43].mxu1  ;;  %v21962_v30 = vadd.f32 %v21855_v38, %v11019_v35  ;;  %v11421_v35 = vadd.f32 %v11420_v7, %v11419_v0  ;;  %v11278_v11 = vadd.f32 %v11277_v61, %v11274_v54 }
 0xf06   : > { %v11363_v29 = vmul.f32 %v21962_v30, %v21962_v30  ;;  %v11283_v34 = vsel %vm519_vm3, %v21962_v30, 0.0  ;;  %v11425_v21 = vadd.f32 %v11424_v58, %v11421_v35  ;;  %v11280_v42 = vadd.f32 %v11279_v12, %v11278_v11 }
 0xf07   : > { %v11024_v52 = vpop.f32.mrb[44].mxu1 }
 0xf08   : > { %v15922_v56 = vpop.f32.mrb[45].mxu1  ;;  %v21970_v22 = vadd.f32 %v21855_v38, %v11024_v52  ;;  %v11430_v1 = vsel %vm519_vm3, %v11363_v29, 0.0  ;;  %v11427_v19 = vadd.f32 %v11426_v40, %v11425_v21  ;;  %v11284_v31 = vadd.f32 %v11283_v34, %v11280_v42 }
 0xf0a   : > { %v11364_v60 = vmul.f32 %v21970_v22, %v21970_v22  ;;  %v11285_v20 = vsel %vm519_vm3, %v21970_v22, 0.0  ;;  %v11431_v8 = vadd.f32 %v11430_v1, %v11427_v19 }
 0xf0b   : > { %v11029_v23 = vpop.f32.mrb[126].mxu1  ;;  %v11286_v62 = vadd.f32 %v11285_v20, %v11284_v31 }
 0xf0c   : > { %v15925_v10 = vpop.f32.mrb[127].mxu1  ;;  %v11432_v56 = vsel %vm519_vm3, %v11364_v60, 0.0 }
 0xf0d   : > { %v11433_v23 = vadd.f32 %v11432_v56, %v11431_v8 }
 0xf0f   : > { %v11034_v17 = vpop.f32.mrb[48].mxu1 }
 0xf10   : > { %v15928_v27 = vpop.f32.mrb[49].mxu1  ;;  %v21978_v63 = vadd.f32 %v21855_v38, %v11034_v17 }
 0xf12   : > { %v11366_v52 = vmul.f32 %v21978_v63, %v21978_v63  ;;  %v11289_v9 = vsel %vm519_vm3, %v21978_v63, 0.0 }
 0xf13   : > { %v11039_v46 = vpop.f32.mrb[50].mxu1  ;;  %v11290_v47 = vadd.f32 %v11289_v9, %v11286_v62 }
 0xf14   : > { %v21986_v13 = vadd.f32 %v21855_v38, %v11039_v46  ;;  %v15931_v15 = vpop.f32.mrb[51].mxu1  ;;  %v11436_v3 = vsel %vm519_vm3, %v11366_v52, 0.0 }
 0xf15   : > { %v11437_v14 = vadd.f32 %v11436_v3, %v11433_v23 }
 0xf16   : > { %v11367_v24 = vmul.f32 %v21986_v13, %v21986_v13  ;;  %v11291_v2 = vsel %vm519_vm3, %v21986_v13, 0.0 }
 0xf17   : > { %v11044_v44 = vpop.f32.mrb[128].mxu1  ;;  %v11292_v43 = vadd.f32 %v11291_v2, %v11290_v47 }
 0xf18   : > { %v15934_v25 = vpop.f32.mrb[129].mxu1  ;;  %v11438_v32 = vsel %vm519_vm3, %v11367_v24, 0.0 }
 0xf19   : > { %v11439_v57 = vadd.f32 %v11438_v32, %v11437_v14 }
 0xf1b   : > { %v11049_v53 = vpop.f32.mrb[54].mxu1 }
 0xf1c   : > { %v22003_v10 = vadd.f32 %v21855_v38, %v11049_v53  ;;  %v15937_v48 = vpop.f32.mrb[55].mxu1 }
 0xf1e   : > { %v11295_v59 = vsel %vm519_vm3, %v22003_v10, 0.0  ;;  %v11369_v6 = vmul.f32 %v22003_v10, %v22003_v10 }
 0xf1f   : > { %v11296_v45 = vadd.f32 %v11295_v59, %v11292_v43  ;;  %v11054_v17 = vpop.f32.mrb[56].mxu1 }
 0xf20   : > { %v11442_v7 = vsel %vm519_vm3, %v11369_v6, 0.0  ;;  %v22011_v61 = vadd.f32 %v21855_v38, %v11054_v17  ;;  %v15940_v5 = vpop.f32.mrb[57].mxu1 }
 0xf21   : > { %v11443_v27 = vadd.f32 %v11442_v7, %v11439_v57 }
 0xf22   : > { %v11297_v0 = vsel %vm519_vm3, %v22011_v61, 0.0  ;;  %v11370_v54 = vmul.f32 %v22011_v61, %v22011_v61 }
 0xf23   : > { %v11298_v58 = vadd.f32 %v11297_v0, %v11296_v45  ;;  %v11059_v12 = vpop.f32.mrb[130].mxu1 }
 0xf24   : > { %v11444_v29 = vsel %vm519_vm3, %v11370_v54, 0.0  ;;  %v15943_v35 = vpop.f32.mrb[131].mxu1 }
 0xf25   : > { %v11445_v11 = vadd.f32 %v11444_v29, %v11443_v27 }
 0xf27   : > { %v11064_v46 = vpop.f32.mrb[60].mxu1 }
 0xf28   : > { %v22019_v40 = vadd.f32 %v21855_v38, %v11064_v46  ;;  %v15946_v34 = vpop.f32.mrb[61].mxu1 }
 0xf2a   : > { %v11301_v60 = vsel %vm519_vm3, %v22019_v40, 0.0  ;;  %v11372_v15 = vmul.f32 %v22019_v40, %v22019_v40 }
 0xf2b   : > { %v11302_v21 = vadd.f32 %v11301_v60, %v11298_v58  ;;  %v11069_v42 = vpop.f32.mrb[62].mxu1 }
 0xf2c   : > { %v11448_v1 = vsel %vm519_vm3, %v11372_v15, 0.0  ;;  %v22027_v20 = vadd.f32 %v21855_v38, %v11069_v42  ;;  %v15949_v52 = vpop.f32.mrb[63].mxu1 }
 0xf2d   : > { %v11449_v19 = vadd.f32 %v11448_v1, %v11445_v11 }
 0xf2e   : > { %v11303_v31 = vsel %vm519_vm3, %v22027_v20, 0.0  ;;  %v11373_v44 = vmul.f32 %v22027_v20, %v22027_v20 }
 0xf2f   : > { %v11304_v56 = vadd.f32 %v11303_v31, %v11302_v21  ;;  %v11074_v9 = vpop.f32.mrb[132].mxu1 }
 0xf30   : > { %v11450_v24 = vsel %vm519_vm3, %v11373_v44, 0.0  ;;  %v15952_v25 = vpop.f32.mrb[133].mxu1 }
 0xf31   : > { %v11451_v8 = vadd.f32 %v11450_v24, %v11449_v19 }
 0xf33   : > { %v11079_v62 = vpop.f32.mrb[66].mxu1 }
 0xf34   : > { %v22035_v3 = vadd.f32 %v21855_v38, %v11079_v62  ;;  %v15955_v2 = vpop.f32.mrb[67].mxu1 }
 0xf36   : > { %v11307_v23 = vsel %vm519_vm3, %v22035_v3, 0.0  ;;  %v11375_v47 = vmul.f32 %v22035_v3, %v22035_v3 }
 0xf37   : > { %v11308_v53 = vadd.f32 %v11307_v23, %v11304_v56  ;;  %v11084_v32 = vpop.f32.mrb[68].mxu1 }
 0xf38   : > { %v11454_v48 = vsel %vm519_vm3, %v11375_v47, 0.0  ;;  %v22043_v14 = vadd.f32 %v21855_v38, %v11084_v32  ;;  %v15958_v43 = vpop.f32.mrb[69].mxu1 }
 0xf39   : > { %v11455_v59 = vadd.f32 %v11454_v48, %v11451_v8 }
 0xf3a   : > { %v11309_v6 = vsel %vm519_vm3, %v22043_v14, 0.0  ;;  %v11376_v57 = vmul.f32 %v22043_v14, %v22043_v14 }
 0xf3b   : > { %v11310_v45 = vadd.f32 %v11309_v6, %v11308_v53  ;;  %v11089_v17 = vpop.f32.mrb[134].mxu1 }
 0xf3c   : > { %v11456_v7 = vsel %vm519_vm3, %v11376_v57, 0.0  ;;  %v15961_v5 = vpop.f32.mrb[135].mxu1 }
 0xf3d   : > { %v11457_v27 = vadd.f32 %v11456_v7, %v11455_v59 }
 0xf3f   : > { %v11094_v0 = vpop.f32.mrb[72].mxu1 }
 0xf40   : > { %v22051_v54 = vadd.f32 %v21855_v38, %v11094_v0  ;;  %v15964_v58 = vpop.f32.mrb[73].mxu1 }
 0xf42   : > { %v11313_v12 = vsel %vm519_vm3, %v22051_v54, 0.0  ;;  %v11378_v29 = vmul.f32 %v22051_v54, %v22051_v54 }
 0xf43   : > { %v11314_v35 = vadd.f32 %v11313_v12, %v11310_v45  ;;  %v11099_v11 = vpop.f32.mrb[74].mxu1 }
 0xf44   : > { %v11460_v46 = vsel %vm519_vm3, %v11378_v29, 0.0  ;;  %v22059_v34 = vadd.f32 %v21855_v38, %v11099_v11  ;;  %v15967_v60 = vpop.f32.mrb[75].mxu1 }
 0xf45   : > { %v11461_v15 = vadd.f32 %v11460_v46, %v11457_v27 }
 0xf46   : > { %v11315_v21 = vsel %vm519_vm3, %v22059_v34, 0.0  ;;  %v11379_v42 = vmul.f32 %v22059_v34, %v22059_v34 }
 0xf47   : > { %v11316_v1 = vadd.f32 %v11315_v21, %v11314_v35  ;;  %v11104_v52 = vpop.f32.mrb[136].mxu1 }
 0xf48   : > { %v11462_v19 = vsel %vm519_vm3, %v11379_v42, 0.0  ;;  %v15970_v31 = vpop.f32.mrb[137].mxu1 }
 0xf49   : > { %v11463_v44 = vadd.f32 %v11462_v19, %v11461_v15 }
 0xf4b   : > { %v11109_v56 = vpop.f32.mrb[78].mxu1 }
 0xf4c   : > { %v22067_v9 = vadd.f32 %v21855_v38, %v11109_v56  ;;  %v15973_v24 = vpop.f32.mrb[79].mxu1 }
 0xf4e   : > { %v11319_v25 = vsel %vm519_vm3, %v22067_v9, 0.0  ;;  %v11381_v8 = vmul.f32 %v22067_v9, %v22067_v9 }
 0xf4f   : > { %v11320_v62 = vadd.f32 %v11319_v25, %v11316_v1  ;;  %v11114_v2 = vpop.f32.mrb[80].mxu1 }
 0xf50   : > { %v11466_v23 = vsel %vm519_vm3, %v11381_v8, 0.0  ;;  %v22075_v47 = vadd.f32 %v21855_v38, %v11114_v2  ;;  %v15976_v53 = vpop.f32.mrb[81].mxu1 }
 0xf51   : > { %v11467_v32 = vadd.f32 %v11466_v23, %v11463_v44 }
 0xf52   : > { %v11321_v48 = vsel %vm519_vm3, %v22075_v47, 0.0  ;;  %v11382_v43 = vmul.f32 %v22075_v47, %v22075_v47 }
 0xf53   : > { %v11322_v59 = vadd.f32 %v11321_v48, %v11320_v62  ;;  %v11119_v6 = vpop.f32.mrb[138].mxu1 }
 0xf54   : > { %v11468_v57 = vsel %vm519_vm3, %v11382_v43, 0.0  ;;  %v15979_v45 = vpop.f32.mrb[139].mxu1 }
 0xf55   : > { %v11469_v17 = vadd.f32 %v11468_v57, %v11467_v32 }
 0xf57   : > { %v11124_v7 = vpop.f32.mrb[84].mxu1 }
 0xf58   : > { %v22083_v5 = vadd.f32 %v21855_v38, %v11124_v7  ;;  %v15982_v27 = vpop.f32.mrb[85].mxu1 }
 0xf5a   : > { %v11325_v0 = vsel %vm519_vm3, %v22083_v5, 0.0  ;;  %v11384_v58 = vmul.f32 %v22083_v5, %v22083_v5 }
 0xf5b   : > { %v11326_v12 = vadd.f32 %v11325_v0, %v11322_v59  ;;  %v11129_v29 = vpop.f32.mrb[86].mxu1 }
 0xf5c   : > { %v11472_v35 = vsel %vm519_vm3, %v11384_v58, 0.0  ;;  %v22091_v11 = vadd.f32 %v21855_v38, %v11129_v29  ;;  %v15985_v46 = vpop.f32.mrb[87].mxu1 }
 0xf5d   : > { %v11473_v60 = vadd.f32 %v11472_v35, %v11469_v17 }
 0xf5e   : > { %v11327_v15 = vsel %vm519_vm3, %v22091_v11, 0.0  ;;  %v11385_v21 = vmul.f32 %v22091_v11, %v22091_v11 }
 0xf5f   : > { %v11328_v42 = vadd.f32 %v11327_v15, %v11326_v12  ;;  %v11134_v1 = vpop.f32.mrb[140].mxu1 }
 0xf60   : > { %v11474_v52 = vsel %vm519_vm3, %v11385_v21, 0.0  ;;  %v15988_v19 = vpop.f32.mrb[141].mxu1 }
 0xf61   : > { %v11475_v31 = vadd.f32 %v11474_v52, %v11473_v60 }
 0xf63   : > { %v11139_v44 = vpop.f32.mrb[90].mxu1 }
 0xf64   : > { %v22099_v56 = vadd.f32 %v21855_v38, %v11139_v44  ;;  %v15991_v24 = vpop.f32.mrb[91].mxu1 }
 0xf66   : > { %v11331_v25 = vsel %vm519_vm3, %v22099_v56, 0.0  ;;  %v11387_v8 = vmul.f32 %v22099_v56, %v22099_v56 }
 0xf67   : > { %v11332_v62 = vadd.f32 %v11331_v25, %v11328_v42  ;;  %v11144_v2 = vpop.f32.mrb[92].mxu1 }
 0xf68   : > { %v11478_v23 = vsel %vm519_vm3, %v11387_v8, 0.0  ;;  %v22107_v53 = vadd.f32 %v21855_v38, %v11144_v2  ;;  %v15994_v32 = vpop.f32.mrb[93].mxu1 }
 0xf69   : > { %v11479_v48 = vadd.f32 %v11478_v23, %v11475_v31 }
 0xf6a   : > { %v11333_v43 = vsel %vm519_vm3, %v22107_v53, 0.0  ;;  %v11388_v59 = vmul.f32 %v22107_v53, %v22107_v53 }
 0xf6b   : > { %v11334_v6 = vadd.f32 %v11333_v43, %v11332_v62 }
 0xf6c   : > { %v11480_v57 = vsel %vm519_vm3, %v11388_v59, 0.0 }
 0xf6d   : > { %v11336_v45 = vrot.slane %v11334_v6, 4  ;;  %v11481_v17 = vadd.f32 %v11480_v57, %v11479_v48 }
 0xf6f   : > { %v11337_v7 = vadd.f32 %v11336_v45, %v11334_v6  ;;  %v11483_v27 = vrot.slane %v11481_v17, 4 }
 0xf71   : > { %v11338_v0 = vrot.slane %v11337_v7, 2  ;;  %v11484_v58 = vadd.f32 %v11483_v27, %v11481_v17 }
 0xf73   : > { %v11339_v12 = vadd.f32 %v11338_v0, %v11337_v7  ;;  %v11485_v38 = vrot.slane %v11484_v58, 2 }
 0xf75   : > { %v11340_v29 = vrot.slane %v11339_v12, 1  ;;  %v11486_v35 = vadd.f32 %v11485_v38, %v11484_v58 }
 0xf77   : > { %v11341_v46 = vadd.f32 %v11340_v29, %v11339_v12  ;;  %v11487_v60 = vrot.slane %v11486_v35, 1 }
 0xf79   : > { %v11488_v15 = vadd.f32 %v11487_v60, %v11486_v35  ;;  %v22114_v21 = vmul.f32 0.00390625, %v11341_v46 }
 0xf7b   : > { %v11490_v42 = vmul.f32 0.00390625, %v11488_v15  ;;  %v11491_v1 = vmul.f32 %v22114_v21, %v22114_v21  ;;  %v11510_v19 = vsub.f32 %v21986_v13, %v22114_v21  ;;  %v11511_v31 = vsub.f32 %v22003_v10, %v22114_v21 }
 0xf7c   : > { %v11512_v44 = vsub.f32 %v22011_v61, %v22114_v21  ;;  %v11513_v24 = vsub.f32 %v22019_v40, %v22114_v21  ;;  %v11514_v25 = vsub.f32 %v22027_v20, %v22114_v21  ;;  %v11515_v8 = vsub.f32 %v22035_v3, %v22114_v21 }
 0xf7d   : > { %v11492_v52 = vsub.f32 %v11490_v42, %v11491_v1  ;;  %v11516_v62 = vsub.f32 %v22043_v14, %v22114_v21  ;;  %v11517_v13 = vsub.f32 %v22051_v54, %v22114_v21  ;;  %v11518_v10 = vsub.f32 %v22059_v34, %v22114_v21 }
 0xf7e   : > { %v11519_v61 = vsub.f32 %v22067_v9, %v22114_v21  ;;  %v11520_v40 = vsub.f32 %v22075_v47, %v22114_v21  ;;  %v11521_v20 = vsub.f32 %v22083_v5, %v22114_v21  ;;  %v11522_v3 = vsub.f32 %v22091_v11, %v22114_v21 }
 0xf7f   : > { %v11523_v14 = vsub.f32 %v22099_v56, %v22114_v21  ;;  %v11524_v54 = vsub.f32 %v22107_v53, %v22114_v21  ;;  %v11525_v2 = vadd.f32 1e-05, %v11492_v52  ;;  %v11493_v34 = vsub.f32 %v21861_v39, %v22114_v21 }
 0xf80   : > { %v11494_v9 = vsub.f32 %v21858_v49, %v22114_v21  ;;  %v11495_v47 = vsub.f32 %v21864_v16, %v22114_v21  ;;  %v11496_v5 = vsub.f32 %v21869_v36, %v22114_v21  ;;  %v11497_v11 = vsub.f32 %v21878_v18, %v22114_v21 }
 0xf81   : > { %17095 = vrsqrt.f32 %v11525_v2  ;;  %v11498_v56 = vsub.f32 %v21888_v41, %v22114_v21  ;;  %v11499_v23 = vsub.f32 %v21897_v4, %v22114_v21  ;;  %v11500_v39 = vsub.f32 %v21905_v37, %v22114_v21 }
 0xf82   : > { %v11501_v49 = vsub.f32 %v21913_v55, %v22114_v21  ;;  %v11502_v16 = vsub.f32 %v21921_v50, %v22114_v21  ;;  %v11503_v36 = vsub.f32 %v21929_v28, %v22114_v21  ;;  %v11504_v18 = vsub.f32 %v21938_v26, %v22114_v21 }
 0xf83   : > { %v11505_v41 = vsub.f32 %v21946_v51, %v22114_v21  ;;  %v11506_v4 = vsub.f32 %v21954_v33, %v22114_v21  ;;  %v11507_v37 = vsub.f32 %v21962_v30, %v22114_v21  ;;  %v11508_v55 = vsub.f32 %v21970_v22, %v22114_v21 }
 0xf84   : > { %v11509_v50 = vsub.f32 %v21978_v63, %v22114_v21 }
 0xf8b   : > { %v17096_v53 = vpop.eup %17095 }
 0xf8c   : > { %v11527_v28 = vmul.f32 %v17096_v53, %v11493_v34  ;;  %v11528_v32 = vmul.f32 %v17096_v53, %v11494_v9  ;;  %v11529_v48 = vmul.f32 %v17096_v53, %v11495_v47  ;;  %v11530_v26 = vmul.f32 %v17096_v53, %v11496_v5  ;;  %v17104_v34 = vld [vmem:[%s17196_s25 + $0x38] sm:$0xff]  ;;  %v17105_v47 = vld [vmem:[%s17196_s25 + $0x40] sm:$0xff] }
 0xf8d   : > { %v11531_v43 = vmul.f32 %v17096_v53, %v11497_v11  ;;  %v11532_v59 = vmul.f32 %v17096_v53, %v11498_v56  ;;  %v11533_v51 = vmul.f32 %v17096_v53, %v11499_v23  ;;  %v11534_v6 = vmul.f32 %v17096_v53, %v11500_v39  ;;  %v17106_v11 = vld [vmem:[%s17196_s25 + $0x48] sm:$0xff]  ;;  %v17107_v23 = vld [vmem:[%s17196_s25 + $0x50] sm:$0xff] }
 0xf8e   : > { %v11535_v57 = vmul.f32 %v17096_v53, %v11501_v49  ;;  %v11536_v45 = vmul.f32 %v17096_v53, %v11502_v16  ;;  %v11537_v33 = vmul.f32 %v17096_v53, %v11503_v36  ;;  %v11538_v17 = vmul.f32 %v17096_v53, %v11504_v18  ;;  %v17108_v49 = vld [vmem:[%s17196_s25 + $0x58] sm:$0xff]  ;;  %v17109_v36 = vld [vmem:[%s17196_s25 + $0x60] sm:$0xff] }
 0xf8f   : > { %v11539_v7 = vmul.f32 %v17096_v53, %v11505_v41  ;;  %v11540_v30 = vmul.f32 %v17096_v53, %v11506_v4  ;;  %v11541_v27 = vmul.f32 %v17096_v53, %v11507_v37  ;;  %v11542_v22 = vmul.f32 %v17096_v53, %v11508_v55  ;;  %v17110_v41 = vld [vmem:[%s17196_s25 + $0x68] sm:$0xff]  ;;  %v17111_v4 = vld [vmem:[%s17196_s25 + $0x70] sm:$0xff]  ;;  %v17112_v55 = vld [vmem:[%s17196_s25 + $0x78] sm:$0xff] }
 0xf90   : > { %v11543_v0 = vmul.f32 %v17096_v53, %v11509_v50  ;;  %v11544_v58 = vmul.f32 %v17096_v53, %v11510_v19  ;;  %v11545_v63 = vmul.f32 %v17096_v53, %v11511_v31  ;;  %v11546_v12 = vmul.f32 %v17096_v53, %v11512_v44  ;;  %v17097_v44 = vld [vmem:[%s17196_s25] sm:$0xff] }
 0xf91   : > { %v22182_v38 = vmul.f32 %v17096_v53, %v11513_v24  ;;  %v22184_v29 = vmul.f32 %v17096_v53, %v11514_v25  ;;  %v22186_v35 = vmul.f32 %v17096_v53, %v11515_v8  ;;  %v22188_v46 = vmul.f32 %v17096_v53, %v11516_v62  ;;  %v17098_v25 = vld [vmem:[%s17196_s25 + $0x8] sm:$0xff]  ;;  %v17099_v62 = vld [vmem:[%s17196_s25 + $0x10] sm:$0xff] }
 0xf92   : > { %v22190_v60 = vmul.f32 %v17096_v53, %v11517_v13  ;;  %v22192_v15 = vmul.f32 %v17096_v53, %v11518_v10  ;;  %v22194_v21 = vmul.f32 %v17096_v53, %v11519_v61  ;;  %v22196_v42 = vmul.f32 %v17096_v53, %v11520_v40  ;;  %v17100_v10 = vld [vmem:[%s17196_s25 + $0x18] sm:$0xff]  ;;  %v17101_v40 = vld [vmem:[%s17196_s25 + $0x20] sm:$0xff] }
 0xf93   : > { %v22205_v1 = vmul.f32 %v17096_v53, %v11521_v20  ;;  %v22207_v52 = vmul.f32 %v17096_v53, %v11522_v3  ;;  %v22209_v19 = vmul.f32 %v17096_v53, %v11523_v14  ;;  %v22211_v31 = vmul.f32 %v17096_v53, %v11524_v54  ;;  %v17102_v3 = vld [vmem:[%s17196_s25 + $0x28] sm:$0xff]  ;;  %v17103_v54 = vld [vmem:[%s17196_s25 + $0x30] sm:$0xff] }
 0xf94   : > { %v11559_v24 = vadd.f32 %v17097_v44, %v11527_v28  ;;  %v11560_v8 = vadd.f32 %v17098_v25, %v11528_v32  ;;  %v11561_v13 = vadd.f32 %v17099_v62, %v11529_v48  ;;  %v11562_v61 = vadd.f32 %v17100_v10, %v11530_v26  ;;  %v17113_v28 = vld [vmem:[%s17196_s25 + $0x80] sm:$0xff]  ;;  %v17114_v48 = vld [vmem:[%s17196_s25 + $0x88] sm:$0xff]  ;;  %v17127_v44 = vld [vmem:[%s17196_s25 + $0xf0] sm:$0xff] }
 0xf95   : > { %v11563_v20 = vadd.f32 %v17101_v40, %v11531_v43  ;;  %v11564_v14 = vadd.f32 %v17102_v3, %v11532_v59  ;;  %v11565_v2 = vadd.f32 %v17103_v54, %v11533_v51  ;;  %v11566_v9 = vadd.f32 %v17104_v34, %v11534_v6  ;;  %v17115_v43 = vld [vmem:[%s17196_s25 + $0x90] sm:$0xff]  ;;  %v17116_v51 = vld [vmem:[%s17196_s25 + $0x98] sm:$0xff] }
 0xf96   : > { %v11567_v5 = vadd.f32 %v17105_v47, %v11535_v57  ;;  %v11568_v56 = vadd.f32 %v17106_v11, %v11536_v45  ;;  %v11569_v39 = vadd.f32 %v17107_v23, %v11537_v33  ;;  %v11570_v16 = vadd.f32 %v17108_v49, %v11538_v17  ;;  %11591 = vst.msk [vmem:[%s22203_s23] sm:$0xff] %vm519_vm3, %v11559_v24  ;;  %v17117_v57 = vld [vmem:[%s17196_s25 + $0xa0] sm:$0xff]  ;;  %v17118_v33 = vld [vmem:[%s17196_s25 + $0xa8] sm:$0xff]  ;;  %v17128_v25 = vld [vmem:[%s17196_s25 + $0xf8] sm:$0xff] }
 0xf97   : > { %11592 = vst.msk [vmem:[%s22203_s23 + $0x8] sm:$0xff] %vm519_vm3, %v11560_v8  ;;  %11593 = vst.msk [vmem:[%s22203_s23 + $0x10] sm:$0xff] %vm519_vm3, %v11561_v13  ;;  %v11571_v18 = vadd.f32 %v17109_v36, %v11539_v7  ;;  %v11572_v53 = vadd.f32 %v17110_v41, %v11540_v30  ;;  %v11573_v37 = vadd.f32 %v17111_v4, %v11541_v27  ;;  %v17119_v7 = vld [vmem:[%s17196_s25 + $0xb0] sm:$0xff]  ;;  %v17120_v27 = vld [vmem:[%s17196_s25 + $0xb8] sm:$0xff] }
 0xf98   : > { %11594 = vst.msk [vmem:[%s22203_s23 + $0x18] sm:$0xff] %vm519_vm3, %v11562_v61  ;;  %v11574_v50 = vadd.f32 %v17112_v55, %v11542_v22  ;;  %11595 = vst.msk [vmem:[%s22203_s23 + $0x20] sm:$0xff] %vm519_vm3, %v11563_v20  ;;  %v11575_v32 = vadd.f32 %v17113_v28, %v11543_v0  ;;  %v11576_v26 = vadd.f32 %v17114_v48, %v11544_v58  ;;  %v17121_v0 = vld [vmem:[%s17196_s25 + $0xc0] sm:$0xff] }
 0xf99   : > { %11596 = vst.msk [vmem:[%s22203_s23 + $0x28] sm:$0xff] %vm519_vm3, %v11564_v14  ;;  %11597 = vst.msk [vmem:[%s22203_s23 + $0x30] sm:$0xff] %vm519_vm3, %v11565_v2  ;;  %v11577_v59 = vadd.f32 %v17115_v43, %v11545_v63  ;;  %v11578_v6 = vadd.f32 %v17116_v51, %v11546_v12  ;;  %v11579_v45 = vadd.f32 %v17117_v57, %v22182_v38  ;;  %v17122_v63 = vld [vmem:[%s17196_s25 + $0xc8] sm:$0xff]  ;;  %v17123_v38 = vld [vmem:[%s17196_s25 + $0xd0] sm:$0xff] }
 0xf9a   : > { %11598 = vst.msk [vmem:[%s22203_s23 + $0x38] sm:$0xff] %vm519_vm3, %v11566_v9  ;;  %11599 = vst.msk [vmem:[%s22203_s23 + $0x40] sm:$0xff] %vm519_vm3, %v11567_v5  ;;  %v11580_v17 = vadd.f32 %v17118_v33, %v22184_v29  ;;  %v11581_v30 = vadd.f32 %v17119_v7, %v22186_v35  ;;  %v11582_v22 = vadd.f32 %v17120_v27, %v22188_v46  ;;  %v17124_v35 = vld [vmem:[%s17196_s25 + $0xd8] sm:$0xff] }
 0xf9b   : > { %11600 = vst.msk [vmem:[%s22203_s23 + $0x48] sm:$0xff] %vm519_vm3, %v11568_v56  ;;  %11601 = vst.msk [vmem:[%s22203_s23 + $0x50] sm:$0xff] %vm519_vm3, %v11569_v39  ;;  %v11583_v58 = vadd.f32 %v17121_v0, %v22190_v60  ;;  %v11584_v12 = vadd.f32 %v17122_v63, %v22192_v15  ;;  %v11585_v29 = vadd.f32 %v17123_v38, %v22194_v21  ;;  %v17125_v60 = vld [vmem:[%s17196_s25 + $0xe0] sm:$0xff]  ;;  %v17126_v21 = vld [vmem:[%s17196_s25 + $0xe8] sm:$0xff] }
 0xf9c   : > { %11602 = vst.msk [vmem:[%s22203_s23 + $0x58] sm:$0xff] %vm519_vm3, %v11570_v16  ;;  %11603 = vst.msk [vmem:[%s22203_s23 + $0x60] sm:$0xff] %vm519_vm3, %v11571_v18  ;;  %v11586_v46 = vadd.f32 %v17124_v35, %v22196_v42  ;;  %v11587_v15 = vadd.f32 %v17125_v60, %v22205_v1  ;;  %v11588_v42 = vadd.f32 %v17126_v21, %v22207_v52 }
 0xf9d   : > { %11604 = vst.msk [vmem:[%s22203_s23 + $0x68] sm:$0xff] %vm519_vm3, %v11572_v53  ;;  %11605 = vst.msk [vmem:[%s22203_s23 + $0x70] sm:$0xff] %vm519_vm3, %v11573_v37  ;;  %v11589_v24 = vadd.f32 %v17127_v44, %v22209_v19  ;;  %v11590_v8 = vadd.f32 %v17128_v25, %v22211_v31 }
 0xf9e   : > { %11606 = vst.msk [vmem:[%s22203_s23 + $0x78] sm:$0xff] %vm519_vm3, %v11574_v50  ;;  %11607 = vst.msk [vmem:[%s22203_s23 + $0x80] sm:$0xff] %vm519_vm3, %v11575_v32 }
 0xf9f   : > { %11608 = vst.msk [vmem:[%s22203_s23 + $0x88] sm:$0xff] %vm519_vm3, %v11576_v26  ;;  %11609 = vst.msk [vmem:[%s22203_s23 + $0x90] sm:$0xff] %vm519_vm3, %v11577_v59 }
 0xfa0   : > { %11610 = vst.msk [vmem:[%s22203_s23 + $0x98] sm:$0xff] %vm519_vm3, %v11578_v6  ;;  %11611 = vst.msk [vmem:[%s22203_s23 + $0xa0] sm:$0xff] %vm519_vm3, %v11579_v45 }
 0xfa1   : > { %11612 = vst.msk [vmem:[%s22203_s23 + $0xa8] sm:$0xff] %vm519_vm3, %v11580_v17  ;;  %11613 = vst.msk [vmem:[%s22203_s23 + $0xb0] sm:$0xff] %vm519_vm3, %v11581_v30 }
 0xfa2   : > { %11614 = vst.msk [vmem:[%s22203_s23 + $0xb8] sm:$0xff] %vm519_vm3, %v11582_v22  ;;  %11615 = vst.msk [vmem:[%s22203_s23 + $0xc0] sm:$0xff] %vm519_vm3, %v11583_v58 }
 0xfa3   : > { %11616 = vst.msk [vmem:[%s22203_s23 + $0xc8] sm:$0xff] %vm519_vm3, %v11584_v12  ;;  %11617 = vst.msk [vmem:[%s22203_s23 + $0xd0] sm:$0xff] %vm519_vm3, %v11585_v29 }
 0xfa4   : > { %11618 = vst.msk [vmem:[%s22203_s23 + $0xd8] sm:$0xff] %vm519_vm3, %v11586_v46  ;;  %11619 = vst.msk [vmem:[%s22203_s23 + $0xe0] sm:$0xff] %vm519_vm3, %v11587_v15 }
 0xfa5   : > { %11620 = vst.msk [vmem:[%s22203_s23 + $0xe8] sm:$0xff] %vm519_vm3, %v11588_v42  ;;  %11621 = vst.msk [vmem:[%s22203_s23 + $0xf0] sm:$0xff] %vm519_vm3, %v11589_v24 }
 0xfa6   : > { %11622 = vst.msk [vmem:[%s22203_s23 + $0xf8] sm:$0xff] %vm519_vm3, %v11590_v8 }
 0xfa7 PF: > { %s15_s18 = sadd.s32 1, %s17135_s18  }
 0xfa8   : > { %p12_p4 = scmp.ge.s32.totalorder %s15_s18, 4  }
 0xfaa   :  { %14 = sbr.rel (!%p12_p4) target bundleno = 1 (0x1), region = 72 }

</bundles_post_ra>
